<compile_context>
chip_gen: v7x
topology: tpu7x:2x2x1
jax: 0.10.0
libtpu: 0.0.40
codegen_flags: <defaults>
</compile_context>

<pallas_src>
import functools

import jax
import jax.numpy as jnp
from jax.experimental import pallas as pl
from jax.experimental.pallas import tpu as pltpu

BN_EPS = 1e-5
VMEM_LIMIT_BYTES = 32 * 1024 * 1024


# ------------------------------ fused kernel --------------------------------

def _residual_block_kernel(*refs, num_conv, H, W, relu_merge):
    # ref order: x, cc_w, cc_b, [dw_w, dw_b, pw_w, pw_b, bn_s, bn_b]*num_conv,
    #            mw0, mw1, mb, m_scale, m_shift, out, pad_in_scratch, pad_h_scratch
    x_ref, cc_w_ref, cc_b_ref = refs[0], refs[1], refs[2]
    p = 3
    blocks = []
    for _ in range(num_conv):
        blocks.append(refs[p:p + 6])
        p += 6
    mw0_ref, mw1_ref, mb_ref, ms_ref, msh_ref = refs[p:p + 5]
    p += 5
    o_ref = refs[p]
    pad_in_ref, pad_h_ref = refs[p + 1], refs[p + 2]

    Cout = o_ref.shape[-1]
    HW = H * W

    def conv3x3(slab_f32, w_ref):
        """'same' 3x3 conv of a zero-padded (H+2, W+2, Cin) f32 slab.
        Taps are sliced in f32 (proven relayout path) and cast to bf16 right at
        the MXU boundary; accumulation is f32."""
        w = w_ref[...]                                   # (9, Cin, Cout) bf16
        Cin = slab_f32.shape[-1]
        acc = jnp.zeros((HW, Cout), jnp.float32)
        for ki in range(3):
            for kj in range(3):
                tap = slab_f32[ki:ki + H, kj:kj + W, :].reshape(HW, Cin)
                acc = acc + jnp.dot(tap.astype(jnp.bfloat16), w[ki * 3 + kj],
                                    preferred_element_type=jnp.float32)
        return acc

    # ---- in-kernel halo padding (no wrapper-side jnp.pad) -------------------
    pad_in_ref[...] = jnp.zeros(pad_in_ref.shape, pad_in_ref.dtype)
    pad_h_ref[...] = jnp.zeros(pad_h_ref.shape, pad_h_ref.dtype)
    pad_in_ref[1:H + 1, 1:W + 1, :] = x_ref[0].astype(jnp.float32)
    xp = pad_in_ref[...]                                 # (H+2, W+2, Cin) f32

    # ---- x0 = change_channels(x): 3x3 conv + bias (no activation / BN) ------
    x0 = conv3x3(xp, cc_w_ref) + cc_b_ref[...]           # (HW, Cout) f32

    # merge-conv contribution of x0 (implicit torch.cat: split merge weights)
    pad_h_ref[1:H + 1, 1:W + 1, :] = x0.reshape(H, W, Cout)
    macc = conv3x3(pad_h_ref[...], mw0_ref)              # (HW, Cout) f32

    # ---- x1 = Depwise_Block chain: depthwise 3x3 -> 1x1 -> ReLU -> BN -------
    cur = xp                                             # padded input of block 0
    for dw_w_ref, dw_b_ref, pw_w_ref, pw_b_ref, bs_ref, bsh_ref in blocks:
        Ci = cur.shape[-1]
        dww = dw_w_ref[...]                              # (9, 1, Ci) f32
        dw = jnp.zeros((H, W, Ci), jnp.float32)
        for ki in range(3):                              # depthwise taps on VPU (f32)
            for kj in range(3):
                dw = dw + cur[ki:ki + H, kj:kj + W, :] * dww[ki * 3 + kj]
        dw = dw + dw_b_ref[...]
        # pointwise 1x1 on the MXU (bf16 operands, f32 accumulate)
        h = jnp.dot(dw.reshape(HW, Ci).astype(jnp.bfloat16), pw_w_ref[...],
                    preferred_element_type=jnp.float32)
        h = h + pw_b_ref[...]
        h = jnp.maximum(h, 0.0)                          # module order: ReLU then BN
        h = h * bs_ref[...] + bsh_ref[...]
        # repad for the next consumer (next depthwise block, or the merge conv)
        pad_h_ref[1:H + 1, 1:W + 1, :] = h.reshape(H, W, Cout)
        cur = pad_h_ref[...]                             # (H+2, W+2, Cout) f32

    # ---- merge(cat(x0, x1)): conv -> (ReLU if not last) -> BN ---------------
    y = macc + conv3x3(cur, mw1_ref) + mb_ref[...]
    if relu_merge:
        y = jnp.maximum(y, 0.0)
    y = y * ms_ref[...] + msh_ref[...]
    o_ref[0] = y.reshape(H, W, Cout).astype(o_ref.dtype)


# ------------------------------- JAX wrapper ---------------------------------

def _bn_fold(bn):
    scale = bn["gamma"] / jnp.sqrt(bn["var"] + BN_EPS)
    shift = bn["beta"] - bn["mean"] * scale
    return scale, shift


def residual_block(x_nchw, p):
    """Residual_Block forward as ONE fused Pallas kernel (grid over batch)."""
    x = jnp.transpose(x_nchw, (0, 2, 3, 1))              # NCHW -> NHWC
    N, H, W, Cin = x.shape
    Cout = p["cc_w"].shape[-1]
    num_conv = len(p["blocks"])
    Hp, Wp = H + 2, W + 2

    def conv_w(w):                                       # (3,3,Ci,Co) -> (9,Ci,Co) bf16
        return w.reshape(9, w.shape[2], w.shape[3]).astype(jnp.bfloat16)

    def row(v):                                          # (C,) -> (1,C) f32
        return v.reshape(1, -1).astype(jnp.float32)

    operands = [x.astype(jnp.bfloat16), conv_w(p["cc_w"]), row(p["cc_b"])]
    in_specs = [
        pl.BlockSpec((1, H, W, Cin), lambda n: (n, 0, 0, 0)),
        pl.BlockSpec((9, Cin, Cout), lambda n: (0, 0, 0)),
        pl.BlockSpec((1, Cout), lambda n: (0, 0)),
    ]

    cis = []
    for blk in p["blocks"]:
        Ci = blk["pw_w"].shape[0]
        cis.append(Ci)
        bscale, bshift = _bn_fold(blk["bn"])
        operands += [
            blk["dw_w"].reshape(9, 1, Ci).astype(jnp.float32),   # depthwise stays f32 (VPU)
            row(blk["dw_b"]),
            blk["pw_w"].astype(jnp.bfloat16),
            row(blk["pw_b"]),
            row(bscale),
            row(bshift),
        ]
        in_specs += [
            pl.BlockSpec((9, 1, Ci), lambda n: (0, 0, 0)),
            pl.BlockSpec((1, Ci), lambda n: (0, 0)),
            pl.BlockSpec((Ci, Cout), lambda n: (0, 0)),
            pl.BlockSpec((1, Cout), lambda n: (0, 0)),
            pl.BlockSpec((1, Cout), lambda n: (0, 0)),
            pl.BlockSpec((1, Cout), lambda n: (0, 0)),
        ]

    m_scale, m_shift = _bn_fold(p["merge_bn"])
    operands += [conv_w(p["merge_w"][:, :, :Cout, :]),   # x0 half of the concat
                 conv_w(p["merge_w"][:, :, Cout:, :]),   # x1 half of the concat
                 row(p["merge_b"]), row(m_scale), row(m_shift)]
    in_specs += [
        pl.BlockSpec((9, Cout, Cout), lambda n: (0, 0, 0)),
        pl.BlockSpec((9, Cout, Cout), lambda n: (0, 0, 0)),
        pl.BlockSpec((1, Cout), lambda n: (0, 0)),
        pl.BlockSpec((1, Cout), lambda n: (0, 0)),
        pl.BlockSpec((1, Cout), lambda n: (0, 0)),
    ]

    # Advisory cost estimate.
    flops_px = 2.0 * 9 * Cin * Cout
    for ci in cis:
        flops_px += 2.0 * 9 * ci + 2.0 * ci * Cout + 4.0 * Cout
    flops_px += 2.0 * 9 * (2 * Cout) * Cout + 4.0 * Cout
    flops = N * H * W * flops_px
    bytes_acc = sum(int(op.size) * op.dtype.itemsize for op in operands) \
        + N * H * W * Cout * 4

    out = pl.pallas_call(
        functools.partial(_residual_block_kernel, num_conv=num_conv,
                          H=H, W=W, relu_merge=not p["last"]),
        out_shape=jax.ShapeDtypeStruct((N, H, W, Cout), jnp.float32),
        grid=(N,),
        in_specs=in_specs,
        out_specs=pl.BlockSpec((1, H, W, Cout), lambda n: (n, 0, 0, 0)),
        scratch_shapes=[
            pltpu.VMEM((Hp, Wp, Cin), jnp.float32),      # padded network input
            pltpu.VMEM((Hp, Wp, Cout), jnp.float32),     # padded x0 / h_i / x1 (reused)
        ],
        compiler_params=pltpu.CompilerParams(
            dimension_semantics=("parallel",),
            vmem_limit_bytes=VMEM_LIMIT_BYTES),
        cost_estimate=pl.CostEstimate(flops=int(flops), transcendentals=0,
                                      bytes_accessed=int(bytes_acc)),
    )(*operands)

    return jnp.transpose(out, (0, 3, 1, 2))              # NHWC -> NCHW


# ----------------------------- parameter init --------------------------------

def init_bn(key, c):
    k = jax.random.split(key, 4)
    return dict(
        gamma=1.0 + 0.1 * jax.random.normal(k[0], (c,), jnp.float32),
        beta=0.1 * jax.random.normal(k[1], (c,), jnp.float32),
        mean=0.1 * jax.random.normal(k[2], (c,), jnp.float32),
        var=0.5 + 0.1 * jnp.abs(jax.random.normal(k[3], (c,), jnp.float32)),
    )


def init_conv(key, kh, kw, cin, cout):
    kw_, kb = jax.random.split(key)
    fan_in = kh * kw * cin
    w = jax.random.normal(kw_, (kh, kw, cin, cout), jnp.float32) / jnp.sqrt(fan_in)
    b = 0.05 * jax.random.normal(kb, (cout,), jnp.float32)
    return w, b


def init_depwise_block(key, cin, cout):
    k = jax.random.split(key, 5)
    return dict(
        dw_w=jax.random.normal(k[0], (3, 3, cin), jnp.float32) / 3.0,
        dw_b=0.05 * jax.random.normal(k[1], (cin,), jnp.float32),
        pw_w=jax.random.normal(k[2], (cin, cout), jnp.float32) / jnp.sqrt(cin),
        pw_b=0.05 * jax.random.normal(k[3], (cout,), jnp.float32),
        bn=init_bn(k[4], cout),
    )


def init_residual_block(key, cin, cout, num_conv=2, last=False):
    k = jax.random.split(key, num_conv + 3)
    cc_w, cc_b = init_conv(k[0], 3, 3, cin, cout)
    blocks = [init_depwise_block(k[1], cin, cout)]
    for i in range(1, num_conv):
        blocks.append(init_depwise_block(k[1 + i], cout, cout))
    merge_w, merge_b = init_conv(k[num_conv + 1], 3, 3, 2 * cout, cout)
    return dict(cc_w=cc_w, cc_b=cc_b, blocks=blocks,
                merge_w=merge_w, merge_b=merge_b,
                merge_bn=init_bn(k[num_conv + 2], cout), last=last)


# --------------------------------- main ---------------------------------------

if __name__ == "__main__":
    key = jax.random.PRNGKey(0)
    k_params, k_x = jax.random.split(key)

    in_channels, out_channels = 4, 8
    N, H, W = 2, 16, 16

    params = init_residual_block(k_params, in_channels, out_channels,
                                 num_conv=2, last=False)
    x = jax.random.normal(k_x, (N, in_channels, H, W), jnp.float32)  # NCHW like PyTorch

    fwd = jax.jit(lambda inp: residual_block(inp, params))
    out = fwd(x)
    jax.block_until_ready(out)

    assert out.shape == (N, out_channels, H, W)
    assert bool(jnp.all(jnp.isfinite(out)))
    print("KERNEL_OK")
</pallas_src>

<mosaic_0001>
module attributes {stable_mosaic.version = 11 : i64} {
  func.func @_residual_block_kernel(%arg0: i32, %arg1: memref<1x16x16x4xbf16, #tpu.memory_space<vmem>>, %arg2: memref<9x4x8xbf16, #tpu.memory_space<vmem>>, %arg3: memref<1x8xf32, #tpu.memory_space<vmem>>, %arg4: memref<9x1x4xf32, #tpu.memory_space<vmem>>, %arg5: memref<1x4xf32, #tpu.memory_space<vmem>>, %arg6: memref<4x8xbf16, #tpu.memory_space<vmem>>, %arg7: memref<1x8xf32, #tpu.memory_space<vmem>>, %arg8: memref<1x8xf32, #tpu.memory_space<vmem>>, %arg9: memref<1x8xf32, #tpu.memory_space<vmem>>, %arg10: memref<9x1x8xf32, #tpu.memory_space<vmem>>, %arg11: memref<1x8xf32, #tpu.memory_space<vmem>>, %arg12: memref<8x8xbf16, #tpu.memory_space<vmem>>, %arg13: memref<1x8xf32, #tpu.memory_space<vmem>>, %arg14: memref<1x8xf32, #tpu.memory_space<vmem>>, %arg15: memref<1x8xf32, #tpu.memory_space<vmem>>, %arg16: memref<9x8x8xbf16, #tpu.memory_space<vmem>>, %arg17: memref<9x8x8xbf16, #tpu.memory_space<vmem>>, %arg18: memref<1x8xf32, #tpu.memory_space<vmem>>, %arg19: memref<1x8xf32, #tpu.memory_space<vmem>>, %arg20: memref<1x8xf32, #tpu.memory_space<vmem>>, %arg21: memref<1x16x16x8xf32, #tpu.memory_space<vmem>>, %arg22: memref<18x18x4xf32, #tpu.memory_space<vmem>>, %arg23: memref<18x18x8xf32, #tpu.memory_space<vmem>>) attributes {dimension_semantics = [#tpu.dimension_semantics<parallel>], iteration_bounds = array<i64: 2>, scalar_prefetch = 0 : i64, scratch_operands = 2 : i64, tpu.core_type = #tpu.core_type<tc>, window_params = [{transform_indices = @transform_0, window_bounds = array<i64: 1, 16, 16, 4>}, {pipeline_mode = #tpu.pipeline_mode<synchronous>, transform_indices = @transform_1, window_bounds = array<i64: 9, 4, 8>}, {pipeline_mode = #tpu.pipeline_mode<synchronous>, transform_indices = @transform_2, window_bounds = array<i64: 1, 8>}, {pipeline_mode = #tpu.pipeline_mode<synchronous>, transform_indices = @transform_3, window_bounds = array<i64: 9, 1, 4>}, {pipeline_mode = #tpu.pipeline_mode<synchronous>, transform_indices = @transform_4, window_bounds = array<i64: 1, 4>}, {pipeline_mode = #tpu.pipeline_mode<synchronous>, transform_indices = @transform_5, window_bounds = array<i64: 4, 8>}, {pipeline_mode = #tpu.pipeline_mode<synchronous>, transform_indices = @transform_6, window_bounds = array<i64: 1, 8>}, {pipeline_mode = #tpu.pipeline_mode<synchronous>, transform_indices = @transform_7, window_bounds = array<i64: 1, 8>}, {pipeline_mode = #tpu.pipeline_mode<synchronous>, transform_indices = @transform_8, window_bounds = array<i64: 1, 8>}, {pipeline_mode = #tpu.pipeline_mode<synchronous>, transform_indices = @transform_9, window_bounds = array<i64: 9, 1, 8>}, {pipeline_mode = #tpu.pipeline_mode<synchronous>, transform_indices = @transform_10, window_bounds = array<i64: 1, 8>}, {pipeline_mode = #tpu.pipeline_mode<synchronous>, transform_indices = @transform_11, window_bounds = array<i64: 8, 8>}, {pipeline_mode = #tpu.pipeline_mode<synchronous>, transform_indices = @transform_12, window_bounds = array<i64: 1, 8>}, {pipeline_mode = #tpu.pipeline_mode<synchronous>, transform_indices = @transform_13, window_bounds = array<i64: 1, 8>}, {pipeline_mode = #tpu.pipeline_mode<synchronous>, transform_indices = @transform_14, window_bounds = array<i64: 1, 8>}, {pipeline_mode = #tpu.pipeline_mode<synchronous>, transform_indices = @transform_15, window_bounds = array<i64: 9, 8, 8>}, {pipeline_mode = #tpu.pipeline_mode<synchronous>, transform_indices = @transform_16, window_bounds = array<i64: 9, 8, 8>}, {pipeline_mode = #tpu.pipeline_mode<synchronous>, transform_indices = @transform_17, window_bounds = array<i64: 1, 8>}, {pipeline_mode = #tpu.pipeline_mode<synchronous>, transform_indices = @transform_18, window_bounds = array<i64: 1, 8>}, {pipeline_mode = #tpu.pipeline_mode<synchronous>, transform_indices = @transform_19, window_bounds = array<i64: 1, 8>}, {transform_indices = @transform_20, window_bounds = array<i64: 1, 16, 16, 8>}]} {
    %cst = arith.constant 0.000000e+00 : f32
    %0 = vector.broadcast %cst : f32 to vector<18x18x4xf32>
    %c0 = arith.constant 0 : index
    %c0_0 = arith.constant 0 : index
    %c0_1 = arith.constant 0 : index
    %1 = vector.load %arg22[%c0, %c0_0, %c0_1] : memref<18x18x4xf32, #tpu.memory_space<vmem>>, vector<18x18x4xf32>
    tpu.vector_store %arg22[%c0, %c0_0, %c0_1], %0 {strides = array<i32>} : memref<18x18x4xf32, #tpu.memory_space<vmem>>, vector<18x18x4xf32>,
    %cst_2 = arith.constant 0.000000e+00 : f32
    %2 = vector.broadcast %cst_2 : f32 to vector<18x18x8xf32>
    %c0_3 = arith.constant 0 : index
    %c0_4 = arith.constant 0 : index
    %c0_5 = arith.constant 0 : index
    %3 = vector.load %arg23[%c0_3, %c0_4, %c0_5] : memref<18x18x8xf32, #tpu.memory_space<vmem>>, vector<18x18x8xf32>
    tpu.vector_store %arg23[%c0_3, %c0_4, %c0_5], %2 {strides = array<i32>} : memref<18x18x8xf32, #tpu.memory_space<vmem>>, vector<18x18x8xf32>,
    %c0_6 = arith.constant 0 : index
    %c0_7 = arith.constant 0 : index
    %c0_8 = arith.constant 0 : index
    %c0_9 = arith.constant 0 : index
    %4 = vector.load %arg1[%c0_6, %c0_7, %c0_8, %c0_9] : memref<1x16x16x4xbf16, #tpu.memory_space<vmem>>, vector<1x16x16x4xbf16>
    %5 = vector.shape_cast %4 : vector<1x16x16x4xbf16> to vector<16x16x4xbf16>
    %6 = arith.extf %5 : vector<16x16x4xbf16> to vector<16x16x4xf32>
    %c1 = arith.constant 1 : index
    %c1_10 = arith.constant 1 : index
    %c0_11 = arith.constant 0 : index
    %7 = vector.load %arg22[%c1, %c1_10, %c0_11] : memref<18x18x4xf32, #tpu.memory_space<vmem>>, vector<16x16x4xf32>
    tpu.vector_store %arg22[%c1, %c1_10, %c0_11], %6 {strides = array<i32>} : memref<18x18x4xf32, #tpu.memory_space<vmem>>, vector<16x16x4xf32>,
    %c0_12 = arith.constant 0 : index
    %c0_13 = arith.constant 0 : index
    %c0_14 = arith.constant 0 : index
    %8 = vector.load %arg22[%c0_12, %c0_13, %c0_14] : memref<18x18x4xf32, #tpu.memory_space<vmem>>, vector<18x18x4xf32>
    %c0_15 = arith.constant 0 : index
    %c0_16 = arith.constant 0 : index
    %c0_17 = arith.constant 0 : index
    %9 = vector.load %arg2[%c0_15, %c0_16, %c0_17] : memref<9x4x8xbf16, #tpu.memory_space<vmem>>, vector<9x4x8xbf16>
    %cst_18 = arith.constant 0.000000e+00 : f32
    %10 = vector.broadcast %cst_18 : f32 to vector<256x8xf32>
    %11 = vector.extract_strided_slice %8 {offsets = [0, 0, 0], sizes = [16, 16, 4], strides = [1, 1, 1]} : vector<18x18x4xf32> to vector<16x16x4xf32>
    %12 = vector.shape_cast %11 : vector<16x16x4xf32> to vector<256x4xf32>
    %13 = arith.truncf %12 : vector<256x4xf32> to vector<256x4xbf16>
    %14 = vector.extract_strided_slice %9 {offsets = [0, 0, 0], sizes = [1, 4, 8], strides = [1, 1, 1]} : vector<9x4x8xbf16> to vector<1x4x8xbf16>
    %15 = vector.shape_cast %14 : vector<1x4x8xbf16> to vector<4x8xbf16>
    %cst_19 = arith.constant dense<0.000000e+00> : vector<256x8xf32>
    %16 = tpu.matmul %13, %15, %cst_19 {dimension_numbers = #tpu.dot_dimension_numbers<[1], [0], [0], [1], [0, 0, 1, 1], [], []>} : vector<256x4xbf16>, vector<4x8xbf16>, vector<256x8xf32> -> vector<256x8xf32>
    %17 = arith.addf %10, %16 : vector<256x8xf32>
    %18 = vector.extract_strided_slice %8 {offsets = [0, 1, 0], sizes = [16, 16, 4], strides = [1, 1, 1]} : vector<18x18x4xf32> to vector<16x16x4xf32>
    %19 = vector.shape_cast %18 : vector<16x16x4xf32> to vector<256x4xf32>
    %20 = arith.truncf %19 : vector<256x4xf32> to vector<256x4xbf16>
    %21 = vector.extract_strided_slice %9 {offsets = [1, 0, 0], sizes = [1, 4, 8], strides = [1, 1, 1]} : vector<9x4x8xbf16> to vector<1x4x8xbf16>
    %22 = vector.shape_cast %21 : vector<1x4x8xbf16> to vector<4x8xbf16>
    %cst_20 = arith.constant dense<0.000000e+00> : vector<256x8xf32>
    %23 = tpu.matmul %20, %22, %cst_20 {dimension_numbers = #tpu.dot_dimension_numbers<[1], [0], [0], [1], [0, 0, 1, 1], [], []>} : vector<256x4xbf16>, vector<4x8xbf16>, vector<256x8xf32> -> vector<256x8xf32>
    %24 = arith.addf %17, %23 : vector<256x8xf32>
    %25 = vector.extract_strided_slice %8 {offsets = [0, 2, 0], sizes = [16, 16, 4], strides = [1, 1, 1]} : vector<18x18x4xf32> to vector<16x16x4xf32>
    %26 = vector.shape_cast %25 : vector<16x16x4xf32> to vector<256x4xf32>
    %27 = arith.truncf %26 : vector<256x4xf32> to vector<256x4xbf16>
    %28 = vector.extract_strided_slice %9 {offsets = [2, 0, 0], sizes = [1, 4, 8], strides = [1, 1, 1]} : vector<9x4x8xbf16> to vector<1x4x8xbf16>
    %29 = vector.shape_cast %28 : vector<1x4x8xbf16> to vector<4x8xbf16>
    %cst_21 = arith.constant dense<0.000000e+00> : vector<256x8xf32>
    %30 = tpu.matmul %27, %29, %cst_21 {dimension_numbers = #tpu.dot_dimension_numbers<[1], [0], [0], [1], [0, 0, 1, 1], [], []>} : vector<256x4xbf16>, vector<4x8xbf16>, vector<256x8xf32> -> vector<256x8xf32>
    %31 = arith.addf %24, %30 : vector<256x8xf32>
    %32 = vector.extract_strided_slice %8 {offsets = [1, 0, 0], sizes = [16, 16, 4], strides = [1, 1, 1]} : vector<18x18x4xf32> to vector<16x16x4xf32>
    %33 = vector.shape_cast %32 : vector<16x16x4xf32> to vector<256x4xf32>
    %34 = arith.truncf %33 : vector<256x4xf32> to vector<256x4xbf16>
    %35 = vector.extract_strided_slice %9 {offsets = [3, 0, 0], sizes = [1, 4, 8], strides = [1, 1, 1]} : vector<9x4x8xbf16> to vector<1x4x8xbf16>
    %36 = vector.shape_cast %35 : vector<1x4x8xbf16> to vector<4x8xbf16>
    %cst_22 = arith.constant dense<0.000000e+00> : vector<256x8xf32>
    %37 = tpu.matmul %34, %36, %cst_22 {dimension_numbers = #tpu.dot_dimension_numbers<[1], [0], [0], [1], [0, 0, 1, 1], [], []>} : vector<256x4xbf16>, vector<4x8xbf16>, vector<256x8xf32> -> vector<256x8xf32>
    %38 = arith.addf %31, %37 : vector<256x8xf32>
    %39 = vector.extract_strided_slice %8 {offsets = [1, 1, 0], sizes = [16, 16, 4], strides = [1, 1, 1]} : vector<18x18x4xf32> to vector<16x16x4xf32>
    %40 = vector.shape_cast %39 : vector<16x16x4xf32> to vector<256x4xf32>
    %41 = arith.truncf %40 : vector<256x4xf32> to vector<256x4xbf16>
    %42 = vector.extract_strided_slice %9 {offsets = [4, 0, 0], sizes = [1, 4, 8], strides = [1, 1, 1]} : vector<9x4x8xbf16> to vector<1x4x8xbf16>
    %43 = vector.shape_cast %42 : vector<1x4x8xbf16> to vector<4x8xbf16>
    %cst_23 = arith.constant dense<0.000000e+00> : vector<256x8xf32>
    %44 = tpu.matmul %41, %43, %cst_23 {dimension_numbers = #tpu.dot_dimension_numbers<[1], [0], [0], [1], [0, 0, 1, 1], [], []>} : vector<256x4xbf16>, vector<4x8xbf16>, vector<256x8xf32> -> vector<256x8xf32>
    %45 = arith.addf %38, %44 : vector<256x8xf32>
    %46 = vector.extract_strided_slice %8 {offsets = [1, 2, 0], sizes = [16, 16, 4], strides = [1, 1, 1]} : vector<18x18x4xf32> to vector<16x16x4xf32>
    %47 = vector.shape_cast %46 : vector<16x16x4xf32> to vector<256x4xf32>
    %48 = arith.truncf %47 : vector<256x4xf32> to vector<256x4xbf16>
    %49 = vector.extract_strided_slice %9 {offsets = [5, 0, 0], sizes = [1, 4, 8], strides = [1, 1, 1]} : vector<9x4x8xbf16> to vector<1x4x8xbf16>
    %50 = vector.shape_cast %49 : vector<1x4x8xbf16> to vector<4x8xbf16>
    %cst_24 = arith.constant dense<0.000000e+00> : vector<256x8xf32>
    %51 = tpu.matmul %48, %50, %cst_24 {dimension_numbers = #tpu.dot_dimension_numbers<[1], [0], [0], [1], [0, 0, 1, 1], [], []>} : vector<256x4xbf16>, vector<4x8xbf16>, vector<256x8xf32> -> vector<256x8xf32>
    %52 = arith.addf %45, %51 : vector<256x8xf32>
    %53 = vector.extract_strided_slice %8 {offsets = [2, 0, 0], sizes = [16, 16, 4], strides = [1, 1, 1]} : vector<18x18x4xf32> to vector<16x16x4xf32>
    %54 = vector.shape_cast %53 : vector<16x16x4xf32> to vector<256x4xf32>
    %55 = arith.truncf %54 : vector<256x4xf32> to vector<256x4xbf16>
    %56 = vector.extract_strided_slice %9 {offsets = [6, 0, 0], sizes = [1, 4, 8], strides = [1, 1, 1]} : vector<9x4x8xbf16> to vector<1x4x8xbf16>
    %57 = vector.shape_cast %56 : vector<1x4x8xbf16> to vector<4x8xbf16>
    %cst_25 = arith.constant dense<0.000000e+00> : vector<256x8xf32>
    %58 = tpu.matmul %55, %57, %cst_25 {dimension_numbers = #tpu.dot_dimension_numbers<[1], [0], [0], [1], [0, 0, 1, 1], [], []>} : vector<256x4xbf16>, vector<4x8xbf16>, vector<256x8xf32> -> vector<256x8xf32>
    %59 = arith.addf %52, %58 : vector<256x8xf32>
    %60 = vector.extract_strided_slice %8 {offsets = [2, 1, 0], sizes = [16, 16, 4], strides = [1, 1, 1]} : vector<18x18x4xf32> to vector<16x16x4xf32>
    %61 = vector.shape_cast %60 : vector<16x16x4xf32> to vector<256x4xf32>
    %62 = arith.truncf %61 : vector<256x4xf32> to vector<256x4xbf16>
    %63 = vector.extract_strided_slice %9 {offsets = [7, 0, 0], sizes = [1, 4, 8], strides = [1, 1, 1]} : vector<9x4x8xbf16> to vector<1x4x8xbf16>
    %64 = vector.shape_cast %63 : vector<1x4x8xbf16> to vector<4x8xbf16>
    %cst_26 = arith.constant dense<0.000000e+00> : vector<256x8xf32>
    %65 = tpu.matmul %62, %64, %cst_26 {dimension_numbers = #tpu.dot_dimension_numbers<[1], [0], [0], [1], [0, 0, 1, 1], [], []>} : vector<256x4xbf16>, vector<4x8xbf16>, vector<256x8xf32> -> vector<256x8xf32>
    %66 = arith.addf %59, %65 : vector<256x8xf32>
    %67 = vector.extract_strided_slice %8 {offsets = [2, 2, 0], sizes = [16, 16, 4], strides = [1, 1, 1]} : vector<18x18x4xf32> to vector<16x16x4xf32>
    %68 = vector.shape_cast %67 : vector<16x16x4xf32> to vector<256x4xf32>
    %69 = arith.truncf %68 : vector<256x4xf32> to vector<256x4xbf16>
    %70 = vector.extract_strided_slice %9 {offsets = [8, 0, 0], sizes = [1, 4, 8], strides = [1, 1, 1]} : vector<9x4x8xbf16> to vector<1x4x8xbf16>
    %71 = vector.shape_cast %70 : vector<1x4x8xbf16> to vector<4x8xbf16>
    %cst_27 = arith.constant dense<0.000000e+00> : vector<256x8xf32>
    %72 = tpu.matmul %69, %71, %cst_27 {dimension_numbers = #tpu.dot_dimension_numbers<[1], [0], [0], [1], [0, 0, 1, 1], [], []>} : vector<256x4xbf16>, vector<4x8xbf16>, vector<256x8xf32> -> vector<256x8xf32>
    %73 = arith.addf %66, %72 : vector<256x8xf32>
    %c0_28 = arith.constant 0 : index
    %c0_29 = arith.constant 0 : index
    %74 = vector.load %arg3[%c0_28, %c0_29] : memref<1x8xf32, #tpu.memory_space<vmem>>, vector<1x8xf32>
    %75 = vector.broadcast %74 : vector<1x8xf32> to vector<256x8xf32>
    %76 = arith.addf %73, %75 : vector<256x8xf32>
    %77 = vector.shape_cast %76 : vector<256x8xf32> to vector<16x16x8xf32>
    %c1_30 = arith.constant 1 : index
    %c1_31 = arith.constant 1 : index
    %c0_32 = arith.constant 0 : index
    %78 = vector.load %arg23[%c1_30, %c1_31, %c0_32] : memref<18x18x8xf32, #tpu.memory_space<vmem>>, vector<16x16x8xf32>
    tpu.vector_store %arg23[%c1_30, %c1_31, %c0_32], %77 {strides = array<i32>} : memref<18x18x8xf32, #tpu.memory_space<vmem>>, vector<16x16x8xf32>,
    %c0_33 = arith.constant 0 : index
    %c0_34 = arith.constant 0 : index
    %c0_35 = arith.constant 0 : index
    %79 = vector.load %arg23[%c0_33, %c0_34, %c0_35] : memref<18x18x8xf32, #tpu.memory_space<vmem>>, vector<18x18x8xf32>
    %c0_36 = arith.constant 0 : index
    %c0_37 = arith.constant 0 : index
    %c0_38 = arith.constant 0 : index
    %80 = vector.load %arg16[%c0_36, %c0_37, %c0_38] : memref<9x8x8xbf16, #tpu.memory_space<vmem>>, vector<9x8x8xbf16>
    %cst_39 = arith.constant 0.000000e+00 : f32
    %81 = vector.broadcast %cst_39 : f32 to vector<256x8xf32>
    %82 = vector.extract_strided_slice %79 {offsets = [0, 0, 0], sizes = [16, 16, 8], strides = [1, 1, 1]} : vector<18x18x8xf32> to vector<16x16x8xf32>
    %83 = vector.shape_cast %82 : vector<16x16x8xf32> to vector<256x8xf32>
    %84 = arith.truncf %83 : vector<256x8xf32> to vector<256x8xbf16>
    %85 = vector.extract_strided_slice %80 {offsets = [0, 0, 0], sizes = [1, 8, 8], strides = [1, 1, 1]} : vector<9x8x8xbf16> to vector<1x8x8xbf16>
    %86 = vector.shape_cast %85 : vector<1x8x8xbf16> to vector<8x8xbf16>
    %cst_40 = arith.constant dense<0.000000e+00> : vector<256x8xf32>
    %87 = tpu.matmul %84, %86, %cst_40 {dimension_numbers = #tpu.dot_dimension_numbers<[1], [0], [0], [1], [0, 0, 1, 1], [], []>} : vector<256x8xbf16>, vector<8x8xbf16>, vector<256x8xf32> -> vector<256x8xf32>
    %88 = arith.addf %81, %87 : vector<256x8xf32>
    %89 = vector.extract_strided_slice %79 {offsets = [0, 1, 0], sizes = [16, 16, 8], strides = [1, 1, 1]} : vector<18x18x8xf32> to vector<16x16x8xf32>
    %90 = vector.shape_cast %89 : vector<16x16x8xf32> to vector<256x8xf32>
    %91 = arith.truncf %90 : vector<256x8xf32> to vector<256x8xbf16>
    %92 = vector.extract_strided_slice %80 {offsets = [1, 0, 0], sizes = [1, 8, 8], strides = [1, 1, 1]} : vector<9x8x8xbf16> to vector<1x8x8xbf16>
    %93 = vector.shape_cast %92 : vector<1x8x8xbf16> to vector<8x8xbf16>
    %cst_41 = arith.constant dense<0.000000e+00> : vector<256x8xf32>
    %94 = tpu.matmul %91, %93, %cst_41 {dimension_numbers = #tpu.dot_dimension_numbers<[1], [0], [0], [1], [0, 0, 1, 1], [], []>} : vector<256x8xbf16>, vector<8x8xbf16>, vector<256x8xf32> -> vector<256x8xf32>
    %95 = arith.addf %88, %94 : vector<256x8xf32>
    %96 = vector.extract_strided_slice %79 {offsets = [0, 2, 0], sizes = [16, 16, 8], strides = [1, 1, 1]} : vector<18x18x8xf32> to vector<16x16x8xf32>
    %97 = vector.shape_cast %96 : vector<16x16x8xf32> to vector<256x8xf32>
    %98 = arith.truncf %97 : vector<256x8xf32> to vector<256x8xbf16>
    %99 = vector.extract_strided_slice %80 {offsets = [2, 0, 0], sizes = [1, 8, 8], strides = [1, 1, 1]} : vector<9x8x8xbf16> to vector<1x8x8xbf16>
    %100 = vector.shape_cast %99 : vector<1x8x8xbf16> to vector<8x8xbf16>
    %cst_42 = arith.constant dense<0.000000e+00> : vector<256x8xf32>
    %101 = tpu.matmul %98, %100, %cst_42 {dimension_numbers = #tpu.dot_dimension_numbers<[1], [0], [0], [1], [0, 0, 1, 1], [], []>} : vector<256x8xbf16>, vector<8x8xbf16>, vector<256x8xf32> -> vector<256x8xf32>
    %102 = arith.addf %95, %101 : vector<256x8xf32>
    %103 = vector.extract_strided_slice %79 {offsets = [1, 0, 0], sizes = [16, 16, 8], strides = [1, 1, 1]} : vector<18x18x8xf32> to vector<16x16x8xf32>
    %104 = vector.shape_cast %103 : vector<16x16x8xf32> to vector<256x8xf32>
    %105 = arith.truncf %104 : vector<256x8xf32> to vector<256x8xbf16>
    %106 = vector.extract_strided_slice %80 {offsets = [3, 0, 0], sizes = [1, 8, 8], strides = [1, 1, 1]} : vector<9x8x8xbf16> to vector<1x8x8xbf16>
    %107 = vector.shape_cast %106 : vector<1x8x8xbf16> to vector<8x8xbf16>
    %cst_43 = arith.constant dense<0.000000e+00> : vector<256x8xf32>
    %108 = tpu.matmul %105, %107, %cst_43 {dimension_numbers = #tpu.dot_dimension_numbers<[1], [0], [0], [1], [0, 0, 1, 1], [], []>} : vector<256x8xbf16>, vector<8x8xbf16>, vector<256x8xf32> -> vector<256x8xf32>
    %109 = arith.addf %102, %108 : vector<256x8xf32>
    %110 = vector.extract_strided_slice %79 {offsets = [1, 1, 0], sizes = [16, 16, 8], strides = [1, 1, 1]} : vector<18x18x8xf32> to vector<16x16x8xf32>
    %111 = vector.shape_cast %110 : vector<16x16x8xf32> to vector<256x8xf32>
    %112 = arith.truncf %111 : vector<256x8xf32> to vector<256x8xbf16>
    %113 = vector.extract_strided_slice %80 {offsets = [4, 0, 0], sizes = [1, 8, 8], strides = [1, 1, 1]} : vector<9x8x8xbf16> to vector<1x8x8xbf16>
    %114 = vector.shape_cast %113 : vector<1x8x8xbf16> to vector<8x8xbf16>
    %cst_44 = arith.constant dense<0.000000e+00> : vector<256x8xf32>
    %115 = tpu.matmul %112, %114, %cst_44 {dimension_numbers = #tpu.dot_dimension_numbers<[1], [0], [0], [1], [0, 0, 1, 1], [], []>} : vector<256x8xbf16>, vector<8x8xbf16>, vector<256x8xf32> -> vector<256x8xf32>
    %116 = arith.addf %109, %115 : vector<256x8xf32>
    %117 = vector.extract_strided_slice %79 {offsets = [1, 2, 0], sizes = [16, 16, 8], strides = [1, 1, 1]} : vector<18x18x8xf32> to vector<16x16x8xf32>
    %118 = vector.shape_cast %117 : vector<16x16x8xf32> to vector<256x8xf32>
    %119 = arith.truncf %118 : vector<256x8xf32> to vector<256x8xbf16>
    %120 = vector.extract_strided_slice %80 {offsets = [5, 0, 0], sizes = [1, 8, 8], strides = [1, 1, 1]} : vector<9x8x8xbf16> to vector<1x8x8xbf16>
    %121 = vector.shape_cast %120 : vector<1x8x8xbf16> to vector<8x8xbf16>
    %cst_45 = arith.constant dense<0.000000e+00> : vector<256x8xf32>
    %122 = tpu.matmul %119, %121, %cst_45 {dimension_numbers = #tpu.dot_dimension_numbers<[1], [0], [0], [1], [0, 0, 1, 1], [], []>} : vector<256x8xbf16>, vector<8x8xbf16>, vector<256x8xf32> -> vector<256x8xf32>
    %123 = arith.addf %116, %122 : vector<256x8xf32>
    %124 = vector.extract_strided_slice %79 {offsets = [2, 0, 0], sizes = [16, 16, 8], strides = [1, 1, 1]} : vector<18x18x8xf32> to vector<16x16x8xf32>
    %125 = vector.shape_cast %124 : vector<16x16x8xf32> to vector<256x8xf32>
    %126 = arith.truncf %125 : vector<256x8xf32> to vector<256x8xbf16>
    %127 = vector.extract_strided_slice %80 {offsets = [6, 0, 0], sizes = [1, 8, 8], strides = [1, 1, 1]} : vector<9x8x8xbf16> to vector<1x8x8xbf16>
    %128 = vector.shape_cast %127 : vector<1x8x8xbf16> to vector<8x8xbf16>
    %cst_46 = arith.constant dense<0.000000e+00> : vector<256x8xf32>
    %129 = tpu.matmul %126, %128, %cst_46 {dimension_numbers = #tpu.dot_dimension_numbers<[1], [0], [0], [1], [0, 0, 1, 1], [], []>} : vector<256x8xbf16>, vector<8x8xbf16>, vector<256x8xf32> -> vector<256x8xf32>
    %130 = arith.addf %123, %129 : vector<256x8xf32>
    %131 = vector.extract_strided_slice %79 {offsets = [2, 1, 0], sizes = [16, 16, 8], strides = [1, 1, 1]} : vector<18x18x8xf32> to vector<16x16x8xf32>
    %132 = vector.shape_cast %131 : vector<16x16x8xf32> to vector<256x8xf32>
    %133 = arith.truncf %132 : vector<256x8xf32> to vector<256x8xbf16>
    %134 = vector.extract_strided_slice %80 {offsets = [7, 0, 0], sizes = [1, 8, 8], strides = [1, 1, 1]} : vector<9x8x8xbf16> to vector<1x8x8xbf16>
    %135 = vector.shape_cast %134 : vector<1x8x8xbf16> to vector<8x8xbf16>
    %cst_47 = arith.constant dense<0.000000e+00> : vector<256x8xf32>
    %136 = tpu.matmul %133, %135, %cst_47 {dimension_numbers = #tpu.dot_dimension_numbers<[1], [0], [0], [1], [0, 0, 1, 1], [], []>} : vector<256x8xbf16>, vector<8x8xbf16>, vector<256x8xf32> -> vector<256x8xf32>
    %137 = arith.addf %130, %136 : vector<256x8xf32>
    %138 = vector.extract_strided_slice %79 {offsets = [2, 2, 0], sizes = [16, 16, 8], strides = [1, 1, 1]} : vector<18x18x8xf32> to vector<16x16x8xf32>
    %139 = vector.shape_cast %138 : vector<16x16x8xf32> to vector<256x8xf32>
    %140 = arith.truncf %139 : vector<256x8xf32> to vector<256x8xbf16>
    %141 = vector.extract_strided_slice %80 {offsets = [8, 0, 0], sizes = [1, 8, 8], strides = [1, 1, 1]} : vector<9x8x8xbf16> to vector<1x8x8xbf16>
    %142 = vector.shape_cast %141 : vector<1x8x8xbf16> to vector<8x8xbf16>
    %cst_48 = arith.constant dense<0.000000e+00> : vector<256x8xf32>
    %143 = tpu.matmul %140, %142, %cst_48 {dimension_numbers = #tpu.dot_dimension_numbers<[1], [0], [0], [1], [0, 0, 1, 1], [], []>} : vector<256x8xbf16>, vector<8x8xbf16>, vector<256x8xf32> -> vector<256x8xf32>
    %144 = arith.addf %137, %143 : vector<256x8xf32>
    %c0_49 = arith.constant 0 : index
    %c0_50 = arith.constant 0 : index
    %c0_51 = arith.constant 0 : index
    %145 = vector.load %arg4[%c0_49, %c0_50, %c0_51] : memref<9x1x4xf32, #tpu.memory_space<vmem>>, vector<9x1x4xf32>
    %cst_52 = arith.constant 0.000000e+00 : f32
    %146 = vector.broadcast %cst_52 : f32 to vector<16x16x4xf32>
    %147 = vector.extract_strided_slice %8 {offsets = [0, 0, 0], sizes = [16, 16, 4], strides = [1, 1, 1]} : vector<18x18x4xf32> to vector<16x16x4xf32>
    %148 = vector.extract_strided_slice %145 {offsets = [0, 0, 0], sizes = [1, 1, 4], strides = [1, 1, 1]} : vector<9x1x4xf32> to vector<1x1x4xf32>
    %149 = vector.shape_cast %148 : vector<1x1x4xf32> to vector<1x4xf32>
    %150 = vector.shape_cast %149 : vector<1x4xf32> to vector<1x1x4xf32>
    %151 = vector.broadcast %150 : vector<1x1x4xf32> to vector<16x16x4xf32>
    %152 = arith.mulf %147, %151 : vector<16x16x4xf32>
    %153 = arith.addf %146, %152 : vector<16x16x4xf32>
    %154 = vector.extract_strided_slice %8 {offsets = [0, 1, 0], sizes = [16, 16, 4], strides = [1, 1, 1]} : vector<18x18x4xf32> to vector<16x16x4xf32>
    %155 = vector.extract_strided_slice %145 {offsets = [1, 0, 0], sizes = [1, 1, 4], strides = [1, 1, 1]} : vector<9x1x4xf32> to vector<1x1x4xf32>
    %156 = vector.shape_cast %155 : vector<1x1x4xf32> to vector<1x4xf32>
    %157 = vector.shape_cast %156 : vector<1x4xf32> to vector<1x1x4xf32>
    %158 = vector.broadcast %157 : vector<1x1x4xf32> to vector<16x16x4xf32>
    %159 = arith.mulf %154, %158 : vector<16x16x4xf32>
    %160 = arith.addf %153, %159 : vector<16x16x4xf32>
    %161 = vector.extract_strided_slice %8 {offsets = [0, 2, 0], sizes = [16, 16, 4], strides = [1, 1, 1]} : vector<18x18x4xf32> to vector<16x16x4xf32>
    %162 = vector.extract_strided_slice %145 {offsets = [2, 0, 0], sizes = [1, 1, 4], strides = [1, 1, 1]} : vector<9x1x4xf32> to vector<1x1x4xf32>
    %163 = vector.shape_cast %162 : vector<1x1x4xf32> to vector<1x4xf32>
    %164 = vector.shape_cast %163 : vector<1x4xf32> to vector<1x1x4xf32>
    %165 = vector.broadcast %164 : vector<1x1x4xf32> to vector<16x16x4xf32>
    %166 = arith.mulf %161, %165 : vector<16x16x4xf32>
    %167 = arith.addf %160, %166 : vector<16x16x4xf32>
    %168 = vector.extract_strided_slice %8 {offsets = [1, 0, 0], sizes = [16, 16, 4], strides = [1, 1, 1]} : vector<18x18x4xf32> to vector<16x16x4xf32>
    %169 = vector.extract_strided_slice %145 {offsets = [3, 0, 0], sizes = [1, 1, 4], strides = [1, 1, 1]} : vector<9x1x4xf32> to vector<1x1x4xf32>
    %170 = vector.shape_cast %169 : vector<1x1x4xf32> to vector<1x4xf32>
    %171 = vector.shape_cast %170 : vector<1x4xf32> to vector<1x1x4xf32>
    %172 = vector.broadcast %171 : vector<1x1x4xf32> to vector<16x16x4xf32>
    %173 = arith.mulf %168, %172 : vector<16x16x4xf32>
    %174 = arith.addf %167, %173 : vector<16x16x4xf32>
    %175 = vector.extract_strided_slice %8 {offsets = [1, 1, 0], sizes = [16, 16, 4], strides = [1, 1, 1]} : vector<18x18x4xf32> to vector<16x16x4xf32>
    %176 = vector.extract_strided_slice %145 {offsets = [4, 0, 0], sizes = [1, 1, 4], strides = [1, 1, 1]} : vector<9x1x4xf32> to vector<1x1x4xf32>
    %177 = vector.shape_cast %176 : vector<1x1x4xf32> to vector<1x4xf32>
    %178 = vector.shape_cast %177 : vector<1x4xf32> to vector<1x1x4xf32>
    %179 = vector.broadcast %178 : vector<1x1x4xf32> to vector<16x16x4xf32>
    %180 = arith.mulf %175, %179 : vector<16x16x4xf32>
    %181 = arith.addf %174, %180 : vector<16x16x4xf32>
    %182 = vector.extract_strided_slice %8 {offsets = [1, 2, 0], sizes = [16, 16, 4], strides = [1, 1, 1]} : vector<18x18x4xf32> to vector<16x16x4xf32>
    %183 = vector.extract_strided_slice %145 {offsets = [5, 0, 0], sizes = [1, 1, 4], strides = [1, 1, 1]} : vector<9x1x4xf32> to vector<1x1x4xf32>
    %184 = vector.shape_cast %183 : vector<1x1x4xf32> to vector<1x4xf32>
    %185 = vector.shape_cast %184 : vector<1x4xf32> to vector<1x1x4xf32>
    %186 = vector.broadcast %185 : vector<1x1x4xf32> to vector<16x16x4xf32>
    %187 = arith.mulf %182, %186 : vector<16x16x4xf32>
    %188 = arith.addf %181, %187 : vector<16x16x4xf32>
    %189 = vector.extract_strided_slice %8 {offsets = [2, 0, 0], sizes = [16, 16, 4], strides = [1, 1, 1]} : vector<18x18x4xf32> to vector<16x16x4xf32>
    %190 = vector.extract_strided_slice %145 {offsets = [6, 0, 0], sizes = [1, 1, 4], strides = [1, 1, 1]} : vector<9x1x4xf32> to vector<1x1x4xf32>
    %191 = vector.shape_cast %190 : vector<1x1x4xf32> to vector<1x4xf32>
    %192 = vector.shape_cast %191 : vector<1x4xf32> to vector<1x1x4xf32>
    %193 = vector.broadcast %192 : vector<1x1x4xf32> to vector<16x16x4xf32>
    %194 = arith.mulf %189, %193 : vector<16x16x4xf32>
    %195 = arith.addf %188, %194 : vector<16x16x4xf32>
    %196 = vector.extract_strided_slice %8 {offsets = [2, 1, 0], sizes = [16, 16, 4], strides = [1, 1, 1]} : vector<18x18x4xf32> to vector<16x16x4xf32>
    %197 = vector.extract_strided_slice %145 {offsets = [7, 0, 0], sizes = [1, 1, 4], strides = [1, 1, 1]} : vector<9x1x4xf32> to vector<1x1x4xf32>
    %198 = vector.shape_cast %197 : vector<1x1x4xf32> to vector<1x4xf32>
    %199 = vector.shape_cast %198 : vector<1x4xf32> to vector<1x1x4xf32>
    %200 = vector.broadcast %199 : vector<1x1x4xf32> to vector<16x16x4xf32>
    %201 = arith.mulf %196, %200 : vector<16x16x4xf32>
    %202 = arith.addf %195, %201 : vector<16x16x4xf32>
    %203 = vector.extract_strided_slice %8 {offsets = [2, 2, 0], sizes = [16, 16, 4], strides = [1, 1, 1]} : vector<18x18x4xf32> to vector<16x16x4xf32>
    %204 = vector.extract_strided_slice %145 {offsets = [8, 0, 0], sizes = [1, 1, 4], strides = [1, 1, 1]} : vector<9x1x4xf32> to vector<1x1x4xf32>
    %205 = vector.shape_cast %204 : vector<1x1x4xf32> to vector<1x4xf32>
    %206 = vector.shape_cast %205 : vector<1x4xf32> to vector<1x1x4xf32>
    %207 = vector.broadcast %206 : vector<1x1x4xf32> to vector<16x16x4xf32>
    %208 = arith.mulf %203, %207 : vector<16x16x4xf32>
    %209 = arith.addf %202, %208 : vector<16x16x4xf32>
    %c0_53 = arith.constant 0 : index
    %c0_54 = arith.constant 0 : index
    %210 = vector.load %arg5[%c0_53, %c0_54] : memref<1x4xf32, #tpu.memory_space<vmem>>, vector<1x4xf32>
    %211 = vector.shape_cast %210 : vector<1x4xf32> to vector<1x1x4xf32>
    %212 = vector.broadcast %211 : vector<1x1x4xf32> to vector<16x16x4xf32>
    %213 = arith.addf %209, %212 : vector<16x16x4xf32>
    %214 = vector.shape_cast %213 : vector<16x16x4xf32> to vector<256x4xf32>
    %215 = arith.truncf %214 : vector<256x4xf32> to vector<256x4xbf16>
    %c0_55 = arith.constant 0 : index
    %c0_56 = arith.constant 0 : index
    %216 = vector.load %arg6[%c0_55, %c0_56] : memref<4x8xbf16, #tpu.memory_space<vmem>>, vector<4x8xbf16>
    %cst_57 = arith.constant dense<0.000000e+00> : vector<256x8xf32>
    %217 = tpu.matmul %215, %216, %cst_57 {dimension_numbers = #tpu.dot_dimension_numbers<[1], [0], [0], [1], [0, 0, 1, 1], [], []>} : vector<256x4xbf16>, vector<4x8xbf16>, vector<256x8xf32> -> vector<256x8xf32>
    %c0_58 = arith.constant 0 : index
    %c0_59 = arith.constant 0 : index
    %218 = vector.load %arg7[%c0_58, %c0_59] : memref<1x8xf32, #tpu.memory_space<vmem>>, vector<1x8xf32>
    %219 = vector.broadcast %218 : vector<1x8xf32> to vector<256x8xf32>
    %220 = arith.addf %217, %219 : vector<256x8xf32>
    %cst_60 = arith.constant 0.000000e+00 : f32
    %221 = vector.broadcast %cst_60 : f32 to vector<256x8xf32>
    %222 = arith.maximumf %220, %221 : vector<256x8xf32>
    %c0_61 = arith.constant 0 : index
    %c0_62 = arith.constant 0 : index
    %223 = vector.load %arg8[%c0_61, %c0_62] : memref<1x8xf32, #tpu.memory_space<vmem>>, vector<1x8xf32>
    %224 = vector.broadcast %223 : vector<1x8xf32> to vector<256x8xf32>
    %225 = arith.mulf %222, %224 : vector<256x8xf32>
    %c0_63 = arith.constant 0 : index
    %c0_64 = arith.constant 0 : index
    %226 = vector.load %arg9[%c0_63, %c0_64] : memref<1x8xf32, #tpu.memory_space<vmem>>, vector<1x8xf32>
    %227 = vector.broadcast %226 : vector<1x8xf32> to vector<256x8xf32>
    %228 = arith.addf %225, %227 : vector<256x8xf32>
    %229 = vector.shape_cast %228 : vector<256x8xf32> to vector<16x16x8xf32>
    %c1_65 = arith.constant 1 : index
    %c1_66 = arith.constant 1 : index
    %c0_67 = arith.constant 0 : index
    %230 = vector.load %arg23[%c1_65, %c1_66, %c0_67] : memref<18x18x8xf32, #tpu.memory_space<vmem>>, vector<16x16x8xf32>
    tpu.vector_store %arg23[%c1_65, %c1_66, %c0_67], %229 {strides = array<i32>} : memref<18x18x8xf32, #tpu.memory_space<vmem>>, vector<16x16x8xf32>,
    %c0_68 = arith.constant 0 : index
    %c0_69 = arith.constant 0 : index
    %c0_70 = arith.constant 0 : index
    %231 = vector.load %arg23[%c0_68, %c0_69, %c0_70] : memref<18x18x8xf32, #tpu.memory_space<vmem>>, vector<18x18x8xf32>
    %c0_71 = arith.constant 0 : index
    %c0_72 = arith.constant 0 : index
    %c0_73 = arith.constant 0 : index
    %232 = vector.load %arg10[%c0_71, %c0_72, %c0_73] : memref<9x1x8xf32, #tpu.memory_space<vmem>>, vector<9x1x8xf32>
    %cst_74 = arith.constant 0.000000e+00 : f32
    %233 = vector.broadcast %cst_74 : f32 to vector<16x16x8xf32>
    %234 = vector.extract_strided_slice %231 {offsets = [0, 0, 0], sizes = [16, 16, 8], strides = [1, 1, 1]} : vector<18x18x8xf32> to vector<16x16x8xf32>
    %235 = vector.extract_strided_slice %232 {offsets = [0, 0, 0], sizes = [1, 1, 8], strides = [1, 1, 1]} : vector<9x1x8xf32> to vector<1x1x8xf32>
    %236 = vector.shape_cast %235 : vector<1x1x8xf32> to vector<1x8xf32>
    %237 = vector.shape_cast %236 : vector<1x8xf32> to vector<1x1x8xf32>
    %238 = vector.broadcast %237 : vector<1x1x8xf32> to vector<16x16x8xf32>
    %239 = arith.mulf %234, %238 : vector<16x16x8xf32>
    %240 = arith.addf %233, %239 : vector<16x16x8xf32>
    %241 = vector.extract_strided_slice %231 {offsets = [0, 1, 0], sizes = [16, 16, 8], strides = [1, 1, 1]} : vector<18x18x8xf32> to vector<16x16x8xf32>
    %242 = vector.extract_strided_slice %232 {offsets = [1, 0, 0], sizes = [1, 1, 8], strides = [1, 1, 1]} : vector<9x1x8xf32> to vector<1x1x8xf32>
    %243 = vector.shape_cast %242 : vector<1x1x8xf32> to vector<1x8xf32>
    %244 = vector.shape_cast %243 : vector<1x8xf32> to vector<1x1x8xf32>
    %245 = vector.broadcast %244 : vector<1x1x8xf32> to vector<16x16x8xf32>
    %246 = arith.mulf %241, %245 : vector<16x16x8xf32>
    %247 = arith.addf %240, %246 : vector<16x16x8xf32>
    %248 = vector.extract_strided_slice %231 {offsets = [0, 2, 0], sizes = [16, 16, 8], strides = [1, 1, 1]} : vector<18x18x8xf32> to vector<16x16x8xf32>
    %249 = vector.extract_strided_slice %232 {offsets = [2, 0, 0], sizes = [1, 1, 8], strides = [1, 1, 1]} : vector<9x1x8xf32> to vector<1x1x8xf32>
    %250 = vector.shape_cast %249 : vector<1x1x8xf32> to vector<1x8xf32>
    %251 = vector.shape_cast %250 : vector<1x8xf32> to vector<1x1x8xf32>
    %252 = vector.broadcast %251 : vector<1x1x8xf32> to vector<16x16x8xf32>
    %253 = arith.mulf %248, %252 : vector<16x16x8xf32>
    %254 = arith.addf %247, %253 : vector<16x16x8xf32>
    %255 = vector.extract_strided_slice %231 {offsets = [1, 0, 0], sizes = [16, 16, 8], strides = [1, 1, 1]} : vector<18x18x8xf32> to vector<16x16x8xf32>
    %256 = vector.extract_strided_slice %232 {offsets = [3, 0, 0], sizes = [1, 1, 8], strides = [1, 1, 1]} : vector<9x1x8xf32> to vector<1x1x8xf32>
    %257 = vector.shape_cast %256 : vector<1x1x8xf32> to vector<1x8xf32>
    %258 = vector.shape_cast %257 : vector<1x8xf32> to vector<1x1x8xf32>
    %259 = vector.broadcast %258 : vector<1x1x8xf32> to vector<16x16x8xf32>
    %260 = arith.mulf %255, %259 : vector<16x16x8xf32>
    %261 = arith.addf %254, %260 : vector<16x16x8xf32>
    %262 = vector.extract_strided_slice %231 {offsets = [1, 1, 0], sizes = [16, 16, 8], strides = [1, 1, 1]} : vector<18x18x8xf32> to vector<16x16x8xf32>
    %263 = vector.extract_strided_slice %232 {offsets = [4, 0, 0], sizes = [1, 1, 8], strides = [1, 1, 1]} : vector<9x1x8xf32> to vector<1x1x8xf32>
    %264 = vector.shape_cast %263 : vector<1x1x8xf32> to vector<1x8xf32>
    %265 = vector.shape_cast %264 : vector<1x8xf32> to vector<1x1x8xf32>
    %266 = vector.broadcast %265 : vector<1x1x8xf32> to vector<16x16x8xf32>
    %267 = arith.mulf %262, %266 : vector<16x16x8xf32>
    %268 = arith.addf %261, %267 : vector<16x16x8xf32>
    %269 = vector.extract_strided_slice %231 {offsets = [1, 2, 0], sizes = [16, 16, 8], strides = [1, 1, 1]} : vector<18x18x8xf32> to vector<16x16x8xf32>
    %270 = vector.extract_strided_slice %232 {offsets = [5, 0, 0], sizes = [1, 1, 8], strides = [1, 1, 1]} : vector<9x1x8xf32> to vector<1x1x8xf32>
    %271 = vector.shape_cast %270 : vector<1x1x8xf32> to vector<1x8xf32>
    %272 = vector.shape_cast %271 : vector<1x8xf32> to vector<1x1x8xf32>
    %273 = vector.broadcast %272 : vector<1x1x8xf32> to vector<16x16x8xf32>
    %274 = arith.mulf %269, %273 : vector<16x16x8xf32>
    %275 = arith.addf %268, %274 : vector<16x16x8xf32>
    %276 = vector.extract_strided_slice %231 {offsets = [2, 0, 0], sizes = [16, 16, 8], strides = [1, 1, 1]} : vector<18x18x8xf32> to vector<16x16x8xf32>
    %277 = vector.extract_strided_slice %232 {offsets = [6, 0, 0], sizes = [1, 1, 8], strides = [1, 1, 1]} : vector<9x1x8xf32> to vector<1x1x8xf32>
    %278 = vector.shape_cast %277 : vector<1x1x8xf32> to vector<1x8xf32>
    %279 = vector.shape_cast %278 : vector<1x8xf32> to vector<1x1x8xf32>
    %280 = vector.broadcast %279 : vector<1x1x8xf32> to vector<16x16x8xf32>
    %281 = arith.mulf %276, %280 : vector<16x16x8xf32>
    %282 = arith.addf %275, %281 : vector<16x16x8xf32>
    %283 = vector.extract_strided_slice %231 {offsets = [2, 1, 0], sizes = [16, 16, 8], strides = [1, 1, 1]} : vector<18x18x8xf32> to vector<16x16x8xf32>
    %284 = vector.extract_strided_slice %232 {offsets = [7, 0, 0], sizes = [1, 1, 8], strides = [1, 1, 1]} : vector<9x1x8xf32> to vector<1x1x8xf32>
    %285 = vector.shape_cast %284 : vector<1x1x8xf32> to vector<1x8xf32>
    %286 = vector.shape_cast %285 : vector<1x8xf32> to vector<1x1x8xf32>
    %287 = vector.broadcast %286 : vector<1x1x8xf32> to vector<16x16x8xf32>
    %288 = arith.mulf %283, %287 : vector<16x16x8xf32>
    %289 = arith.addf %282, %288 : vector<16x16x8xf32>
    %290 = vector.extract_strided_slice %231 {offsets = [2, 2, 0], sizes = [16, 16, 8], strides = [1, 1, 1]} : vector<18x18x8xf32> to vector<16x16x8xf32>
    %291 = vector.extract_strided_slice %232 {offsets = [8, 0, 0], sizes = [1, 1, 8], strides = [1, 1, 1]} : vector<9x1x8xf32> to vector<1x1x8xf32>
    %292 = vector.shape_cast %291 : vector<1x1x8xf32> to vector<1x8xf32>
    %293 = vector.shape_cast %292 : vector<1x8xf32> to vector<1x1x8xf32>
    %294 = vector.broadcast %293 : vector<1x1x8xf32> to vector<16x16x8xf32>
    %295 = arith.mulf %290, %294 : vector<16x16x8xf32>
    %296 = arith.addf %289, %295 : vector<16x16x8xf32>
    %c0_75 = arith.constant 0 : index
    %c0_76 = arith.constant 0 : index
    %297 = vector.load %arg11[%c0_75, %c0_76] : memref<1x8xf32, #tpu.memory_space<vmem>>, vector<1x8xf32>
    %298 = vector.shape_cast %297 : vector<1x8xf32> to vector<1x1x8xf32>
    %299 = vector.broadcast %298 : vector<1x1x8xf32> to vector<16x16x8xf32>
    %300 = arith.addf %296, %299 : vector<16x16x8xf32>
    %301 = vector.shape_cast %300 : vector<16x16x8xf32> to vector<256x8xf32>
    %302 = arith.truncf %301 : vector<256x8xf32> to vector<256x8xbf16>
    %c0_77 = arith.constant 0 : index
    %c0_78 = arith.constant 0 : index
    %303 = vector.load %arg12[%c0_77, %c0_78] : memref<8x8xbf16, #tpu.memory_space<vmem>>, vector<8x8xbf16>
    %cst_79 = arith.constant dense<0.000000e+00> : vector<256x8xf32>
    %304 = tpu.matmul %302, %303, %cst_79 {dimension_numbers = #tpu.dot_dimension_numbers<[1], [0], [0], [1], [0, 0, 1, 1], [], []>} : vector<256x8xbf16>, vector<8x8xbf16>, vector<256x8xf32> -> vector<256x8xf32>
    %c0_80 = arith.constant 0 : index
    %c0_81 = arith.constant 0 : index
    %305 = vector.load %arg13[%c0_80, %c0_81] : memref<1x8xf32, #tpu.memory_space<vmem>>, vector<1x8xf32>
    %306 = vector.broadcast %305 : vector<1x8xf32> to vector<256x8xf32>
    %307 = arith.addf %304, %306 : vector<256x8xf32>
    %cst_82 = arith.constant 0.000000e+00 : f32
    %308 = vector.broadcast %cst_82 : f32 to vector<256x8xf32>
    %309 = arith.maximumf %307, %308 : vector<256x8xf32>
    %c0_83 = arith.constant 0 : index
    %c0_84 = arith.constant 0 : index
    %310 = vector.load %arg14[%c0_83, %c0_84] : memref<1x8xf32, #tpu.memory_space<vmem>>, vector<1x8xf32>
    %311 = vector.broadcast %310 : vector<1x8xf32> to vector<256x8xf32>
    %312 = arith.mulf %309, %311 : vector<256x8xf32>
    %c0_85 = arith.constant 0 : index
    %c0_86 = arith.constant 0 : index
    %313 = vector.load %arg15[%c0_85, %c0_86] : memref<1x8xf32, #tpu.memory_space<vmem>>, vector<1x8xf32>
    %314 = vector.broadcast %313 : vector<1x8xf32> to vector<256x8xf32>
    %315 = arith.addf %312, %314 : vector<256x8xf32>
    %316 = vector.shape_cast %315 : vector<256x8xf32> to vector<16x16x8xf32>
    %c1_87 = arith.constant 1 : index
    %c1_88 = arith.constant 1 : index
    %c0_89 = arith.constant 0 : index
    %317 = vector.load %arg23[%c1_87, %c1_88, %c0_89] : memref<18x18x8xf32, #tpu.memory_space<vmem>>, vector<16x16x8xf32>
    tpu.vector_store %arg23[%c1_87, %c1_88, %c0_89], %316 {strides = array<i32>} : memref<18x18x8xf32, #tpu.memory_space<vmem>>, vector<16x16x8xf32>,
    %c0_90 = arith.constant 0 : index
    %c0_91 = arith.constant 0 : index
    %c0_92 = arith.constant 0 : index
    %318 = vector.load %arg23[%c0_90, %c0_91, %c0_92] : memref<18x18x8xf32, #tpu.memory_space<vmem>>, vector<18x18x8xf32>
    %c0_93 = arith.constant 0 : index
    %c0_94 = arith.constant 0 : index
    %c0_95 = arith.constant 0 : index
    %319 = vector.load %arg17[%c0_93, %c0_94, %c0_95] : memref<9x8x8xbf16, #tpu.memory_space<vmem>>, vector<9x8x8xbf16>
    %cst_96 = arith.constant 0.000000e+00 : f32
    %320 = vector.broadcast %cst_96 : f32 to vector<256x8xf32>
    %321 = vector.extract_strided_slice %318 {offsets = [0, 0, 0], sizes = [16, 16, 8], strides = [1, 1, 1]} : vector<18x18x8xf32> to vector<16x16x8xf32>
    %322 = vector.shape_cast %321 : vector<16x16x8xf32> to vector<256x8xf32>
    %323 = arith.truncf %322 : vector<256x8xf32> to vector<256x8xbf16>
    %324 = vector.extract_strided_slice %319 {offsets = [0, 0, 0], sizes = [1, 8, 8], strides = [1, 1, 1]} : vector<9x8x8xbf16> to vector<1x8x8xbf16>
    %325 = vector.shape_cast %324 : vector<1x8x8xbf16> to vector<8x8xbf16>
    %cst_97 = arith.constant dense<0.000000e+00> : vector<256x8xf32>
    %326 = tpu.matmul %323, %325, %cst_97 {dimension_numbers = #tpu.dot_dimension_numbers<[1], [0], [0], [1], [0, 0, 1, 1], [], []>} : vector<256x8xbf16>, vector<8x8xbf16>, vector<256x8xf32> -> vector<256x8xf32>
    %327 = arith.addf %320, %326 : vector<256x8xf32>
    %328 = vector.extract_strided_slice %318 {offsets = [0, 1, 0], sizes = [16, 16, 8], strides = [1, 1, 1]} : vector<18x18x8xf32> to vector<16x16x8xf32>
    %329 = vector.shape_cast %328 : vector<16x16x8xf32> to vector<256x8xf32>
    %330 = arith.truncf %329 : vector<256x8xf32> to vector<256x8xbf16>
    %331 = vector.extract_strided_slice %319 {offsets = [1, 0, 0], sizes = [1, 8, 8], strides = [1, 1, 1]} : vector<9x8x8xbf16> to vector<1x8x8xbf16>
    %332 = vector.shape_cast %331 : vector<1x8x8xbf16> to vector<8x8xbf16>
    %cst_98 = arith.constant dense<0.000000e+00> : vector<256x8xf32>
    %333 = tpu.matmul %330, %332, %cst_98 {dimension_numbers = #tpu.dot_dimension_numbers<[1], [0], [0], [1], [0, 0, 1, 1], [], []>} : vector<256x8xbf16>, vector<8x8xbf16>, vector<256x8xf32> -> vector<256x8xf32>
    %334 = arith.addf %327, %333 : vector<256x8xf32>
    %335 = vector.extract_strided_slice %318 {offsets = [0, 2, 0], sizes = [16, 16, 8], strides = [1, 1, 1]} : vector<18x18x8xf32> to vector<16x16x8xf32>
    %336 = vector.shape_cast %335 : vector<16x16x8xf32> to vector<256x8xf32>
    %337 = arith.truncf %336 : vector<256x8xf32> to vector<256x8xbf16>
    %338 = vector.extract_strided_slice %319 {offsets = [2, 0, 0], sizes = [1, 8, 8], strides = [1, 1, 1]} : vector<9x8x8xbf16> to vector<1x8x8xbf16>
    %339 = vector.shape_cast %338 : vector<1x8x8xbf16> to vector<8x8xbf16>
    %cst_99 = arith.constant dense<0.000000e+00> : vector<256x8xf32>
    %340 = tpu.matmul %337, %339, %cst_99 {dimension_numbers = #tpu.dot_dimension_numbers<[1], [0], [0], [1], [0, 0, 1, 1], [], []>} : vector<256x8xbf16>, vector<8x8xbf16>, vector<256x8xf32> -> vector<256x8xf32>
    %341 = arith.addf %334, %340 : vector<256x8xf32>
    %342 = vector.extract_strided_slice %318 {offsets = [1, 0, 0], sizes = [16, 16, 8], strides = [1, 1, 1]} : vector<18x18x8xf32> to vector<16x16x8xf32>
    %343 = vector.shape_cast %342 : vector<16x16x8xf32> to vector<256x8xf32>
    %344 = arith.truncf %343 : vector<256x8xf32> to vector<256x8xbf16>
    %345 = vector.extract_strided_slice %319 {offsets = [3, 0, 0], sizes = [1, 8, 8], strides = [1, 1, 1]} : vector<9x8x8xbf16> to vector<1x8x8xbf16>
    %346 = vector.shape_cast %345 : vector<1x8x8xbf16> to vector<8x8xbf16>
    %cst_100 = arith.constant dense<0.000000e+00> : vector<256x8xf32>
    %347 = tpu.matmul %344, %346, %cst_100 {dimension_numbers = #tpu.dot_dimension_numbers<[1], [0], [0], [1], [0, 0, 1, 1], [], []>} : vector<256x8xbf16>, vector<8x8xbf16>, vector<256x8xf32> -> vector<256x8xf32>
    %348 = arith.addf %341, %347 : vector<256x8xf32>
    %349 = vector.extract_strided_slice %318 {offsets = [1, 1, 0], sizes = [16, 16, 8], strides = [1, 1, 1]} : vector<18x18x8xf32> to vector<16x16x8xf32>
    %350 = vector.shape_cast %349 : vector<16x16x8xf32> to vector<256x8xf32>
    %351 = arith.truncf %350 : vector<256x8xf32> to vector<256x8xbf16>
    %352 = vector.extract_strided_slice %319 {offsets = [4, 0, 0], sizes = [1, 8, 8], strides = [1, 1, 1]} : vector<9x8x8xbf16> to vector<1x8x8xbf16>
    %353 = vector.shape_cast %352 : vector<1x8x8xbf16> to vector<8x8xbf16>
    %cst_101 = arith.constant dense<0.000000e+00> : vector<256x8xf32>
    %354 = tpu.matmul %351, %353, %cst_101 {dimension_numbers = #tpu.dot_dimension_numbers<[1], [0], [0], [1], [0, 0, 1, 1], [], []>} : vector<256x8xbf16>, vector<8x8xbf16>, vector<256x8xf32> -> vector<256x8xf32>
    %355 = arith.addf %348, %354 : vector<256x8xf32>
    %356 = vector.extract_strided_slice %318 {offsets = [1, 2, 0], sizes = [16, 16, 8], strides = [1, 1, 1]} : vector<18x18x8xf32> to vector<16x16x8xf32>
    %357 = vector.shape_cast %356 : vector<16x16x8xf32> to vector<256x8xf32>
    %358 = arith.truncf %357 : vector<256x8xf32> to vector<256x8xbf16>
    %359 = vector.extract_strided_slice %319 {offsets = [5, 0, 0], sizes = [1, 8, 8], strides = [1, 1, 1]} : vector<9x8x8xbf16> to vector<1x8x8xbf16>
    %360 = vector.shape_cast %359 : vector<1x8x8xbf16> to vector<8x8xbf16>
    %cst_102 = arith.constant dense<0.000000e+00> : vector<256x8xf32>
    %361 = tpu.matmul %358, %360, %cst_102 {dimension_numbers = #tpu.dot_dimension_numbers<[1], [0], [0], [1], [0, 0, 1, 1], [], []>} : vector<256x8xbf16>, vector<8x8xbf16>, vector<256x8xf32> -> vector<256x8xf32>
    %362 = arith.addf %355, %361 : vector<256x8xf32>
    %363 = vector.extract_strided_slice %318 {offsets = [2, 0, 0], sizes = [16, 16, 8], strides = [1, 1, 1]} : vector<18x18x8xf32> to vector<16x16x8xf32>
    %364 = vector.shape_cast %363 : vector<16x16x8xf32> to vector<256x8xf32>
    %365 = arith.truncf %364 : vector<256x8xf32> to vector<256x8xbf16>
    %366 = vector.extract_strided_slice %319 {offsets = [6, 0, 0], sizes = [1, 8, 8], strides = [1, 1, 1]} : vector<9x8x8xbf16> to vector<1x8x8xbf16>
    %367 = vector.shape_cast %366 : vector<1x8x8xbf16> to vector<8x8xbf16>
    %cst_103 = arith.constant dense<0.000000e+00> : vector<256x8xf32>
    %368 = tpu.matmul %365, %367, %cst_103 {dimension_numbers = #tpu.dot_dimension_numbers<[1], [0], [0], [1], [0, 0, 1, 1], [], []>} : vector<256x8xbf16>, vector<8x8xbf16>, vector<256x8xf32> -> vector<256x8xf32>
    %369 = arith.addf %362, %368 : vector<256x8xf32>
    %370 = vector.extract_strided_slice %318 {offsets = [2, 1, 0], sizes = [16, 16, 8], strides = [1, 1, 1]} : vector<18x18x8xf32> to vector<16x16x8xf32>
    %371 = vector.shape_cast %370 : vector<16x16x8xf32> to vector<256x8xf32>
    %372 = arith.truncf %371 : vector<256x8xf32> to vector<256x8xbf16>
    %373 = vector.extract_strided_slice %319 {offsets = [7, 0, 0], sizes = [1, 8, 8], strides = [1, 1, 1]} : vector<9x8x8xbf16> to vector<1x8x8xbf16>
    %374 = vector.shape_cast %373 : vector<1x8x8xbf16> to vector<8x8xbf16>
    %cst_104 = arith.constant dense<0.000000e+00> : vector<256x8xf32>
    %375 = tpu.matmul %372, %374, %cst_104 {dimension_numbers = #tpu.dot_dimension_numbers<[1], [0], [0], [1], [0, 0, 1, 1], [], []>} : vector<256x8xbf16>, vector<8x8xbf16>, vector<256x8xf32> -> vector<256x8xf32>
    %376 = arith.addf %369, %375 : vector<256x8xf32>
    %377 = vector.extract_strided_slice %318 {offsets = [2, 2, 0], sizes = [16, 16, 8], strides = [1, 1, 1]} : vector<18x18x8xf32> to vector<16x16x8xf32>
    %378 = vector.shape_cast %377 : vector<16x16x8xf32> to vector<256x8xf32>
    %379 = arith.truncf %378 : vector<256x8xf32> to vector<256x8xbf16>
    %380 = vector.extract_strided_slice %319 {offsets = [8, 0, 0], sizes = [1, 8, 8], strides = [1, 1, 1]} : vector<9x8x8xbf16> to vector<1x8x8xbf16>
    %381 = vector.shape_cast %380 : vector<1x8x8xbf16> to vector<8x8xbf16>
    %cst_105 = arith.constant dense<0.000000e+00> : vector<256x8xf32>
    %382 = tpu.matmul %379, %381, %cst_105 {dimension_numbers = #tpu.dot_dimension_numbers<[1], [0], [0], [1], [0, 0, 1, 1], [], []>} : vector<256x8xbf16>, vector<8x8xbf16>, vector<256x8xf32> -> vector<256x8xf32>
    %383 = arith.addf %376, %382 : vector<256x8xf32>
    %384 = arith.addf %144, %383 : vector<256x8xf32>
    %c0_106 = arith.constant 0 : index
    %c0_107 = arith.constant 0 : index
    %385 = vector.load %arg18[%c0_106, %c0_107] : memref<1x8xf32, #tpu.memory_space<vmem>>, vector<1x8xf32>
    %386 = vector.broadcast %385 : vector<1x8xf32> to vector<256x8xf32>
    %387 = arith.addf %384, %386 : vector<256x8xf32>
    %cst_108 = arith.constant 0.000000e+00 : f32
    %388 = vector.broadcast %cst_108 : f32 to vector<256x8xf32>
    %389 = arith.maximumf %387, %388 : vector<256x8xf32>
    %c0_109 = arith.constant 0 : index
    %c0_110 = arith.constant 0 : index
    %390 = vector.load %arg19[%c0_109, %c0_110] : memref<1x8xf32, #tpu.memory_space<vmem>>, vector<1x8xf32>
    %391 = vector.broadcast %390 : vector<1x8xf32> to vector<256x8xf32>
    %392 = arith.mulf %389, %391 : vector<256x8xf32>
    %c0_111 = arith.constant 0 : index
    %c0_112 = arith.constant 0 : index
    %393 = vector.load %arg20[%c0_111, %c0_112] : memref<1x8xf32, #tpu.memory_space<vmem>>, vector<1x8xf32>
    %394 = vector.broadcast %393 : vector<1x8xf32> to vector<256x8xf32>
    %395 = arith.addf %392, %394 : vector<256x8xf32>
    %396 = vector.shape_cast %395 : vector<256x8xf32> to vector<16x16x8xf32>
    %c0_113 = arith.constant 0 : index
    %c0_114 = arith.constant 0 : index
    %c0_115 = arith.constant 0 : index
    %c0_116 = arith.constant 0 : index
    %397 = vector.load %arg21[%c0_113, %c0_114, %c0_115, %c0_116] : memref<1x16x16x8xf32, #tpu.memory_space<vmem>>, vector<1x16x16x8xf32>
    %398 = vector.shape_cast %397 : vector<1x16x16x8xf32> to vector<16x16x8xf32>
    %399 = vector.shape_cast %396 : vector<16x16x8xf32> to vector<1x16x16x8xf32>
    tpu.vector_store %arg21[%c0_113, %c0_114, %c0_115, %c0_116], %399 {strides = array<i32>} : memref<1x16x16x8xf32, #tpu.memory_space<vmem>>, vector<1x16x16x8xf32>,
    return
  }
  func.func @transform_0(%arg0: i32) -> (i32, i32, i32, i32) {
    %c0_i32 = arith.constant 0 : i32
    %c0_i32_0 = arith.constant 0 : i32
    %c0_i32_1 = arith.constant 0 : i32
    %c0_i32_2 = arith.constant 0 : i32
    return %arg0, %c0_i32, %c0_i32_0, %c0_i32_1 : i32, i32, i32, i32
  }
  func.func @transform_1(%arg0: i32) -> (i32, i32, i32) {
    %c0_i32 = arith.constant 0 : i32
    %c0_i32_0 = arith.constant 0 : i32
    %c0_i32_1 = arith.constant 0 : i32
    %c0_i32_2 = arith.constant 0 : i32
    return %c0_i32, %c0_i32_0, %c0_i32_1 : i32, i32, i32
  }
  func.func @transform_2(%arg0: i32) -> (i32, i32) {
    %c0_i32 = arith.constant 0 : i32
    %c0_i32_0 = arith.constant 0 : i32
    %c0_i32_1 = arith.constant 0 : i32
    return %c0_i32, %c0_i32_0 : i32, i32
  }
  func.func @transform_3(%arg0: i32) -> (i32, i32, i32) {
    %c0_i32 = arith.constant 0 : i32
    %c0_i32_0 = arith.constant 0 : i32
    %c0_i32_1 = arith.constant 0 : i32
    %c0_i32_2 = arith.constant 0 : i32
    return %c0_i32, %c0_i32_0, %c0_i32_1 : i32, i32, i32
  }
  func.func @transform_4(%arg0: i32) -> (i32, i32) {
    %c0_i32 = arith.constant 0 : i32
    %c0_i32_0 = arith.constant 0 : i32
    %c0_i32_1 = arith.constant 0 : i32
    return %c0_i32, %c0_i32_0 : i32, i32
  }
  func.func @transform_5(%arg0: i32) -> (i32, i32) {
    %c0_i32 = arith.constant 0 : i32
    %c0_i32_0 = arith.constant 0 : i32
    %c0_i32_1 = arith.constant 0 : i32
    return %c0_i32, %c0_i32_0 : i32, i32
  }
  func.func @transform_6(%arg0: i32) -> (i32, i32) {
    %c0_i32 = arith.constant 0 : i32
    %c0_i32_0 = arith.constant 0 : i32
    %c0_i32_1 = arith.constant 0 : i32
    return %c0_i32, %c0_i32_0 : i32, i32
  }
  func.func @transform_7(%arg0: i32) -> (i32, i32) {
    %c0_i32 = arith.constant 0 : i32
    %c0_i32_0 = arith.constant 0 : i32
    %c0_i32_1 = arith.constant 0 : i32
    return %c0_i32, %c0_i32_0 : i32, i32
  }
  func.func @transform_8(%arg0: i32) -> (i32, i32) {
    %c0_i32 = arith.constant 0 : i32
    %c0_i32_0 = arith.constant 0 : i32
    %c0_i32_1 = arith.constant 0 : i32
    return %c0_i32, %c0_i32_0 : i32, i32
  }
  func.func @transform_9(%arg0: i32) -> (i32, i32, i32) {
    %c0_i32 = arith.constant 0 : i32
    %c0_i32_0 = arith.constant 0 : i32
    %c0_i32_1 = arith.constant 0 : i32
    %c0_i32_2 = arith.constant 0 : i32
    return %c0_i32, %c0_i32_0, %c0_i32_1 : i32, i32, i32
  }
  func.func @transform_10(%arg0: i32) -> (i32, i32) {
    %c0_i32 = arith.constant 0 : i32
    %c0_i32_0 = arith.constant 0 : i32
    %c0_i32_1 = arith.constant 0 : i32
    return %c0_i32, %c0_i32_0 : i32, i32
  }
  func.func @transform_11(%arg0: i32) -> (i32, i32) {
    %c0_i32 = arith.constant 0 : i32
    %c0_i32_0 = arith.constant 0 : i32
    %c0_i32_1 = arith.constant 0 : i32
    return %c0_i32, %c0_i32_0 : i32, i32
  }
  func.func @transform_12(%arg0: i32) -> (i32, i32) {
    %c0_i32 = arith.constant 0 : i32
    %c0_i32_0 = arith.constant 0 : i32
    %c0_i32_1 = arith.constant 0 : i32
    return %c0_i32, %c0_i32_0 : i32, i32
  }
  func.func @transform_13(%arg0: i32) -> (i32, i32) {
    %c0_i32 = arith.constant 0 : i32
    %c0_i32_0 = arith.constant 0 : i32
    %c0_i32_1 = arith.constant 0 : i32
    return %c0_i32, %c0_i32_0 : i32, i32
  }
  func.func @transform_14(%arg0: i32) -> (i32, i32) {
    %c0_i32 = arith.constant 0 : i32
    %c0_i32_0 = arith.constant 0 : i32
    %c0_i32_1 = arith.constant 0 : i32
    return %c0_i32, %c0_i32_0 : i32, i32
  }
  func.func @transform_15(%arg0: i32) -> (i32, i32, i32) {
    %c0_i32 = arith.constant 0 : i32
    %c0_i32_0 = arith.constant 0 : i32
    %c0_i32_1 = arith.constant 0 : i32
    %c0_i32_2 = arith.constant 0 : i32
    return %c0_i32, %c0_i32_0, %c0_i32_1 : i32, i32, i32
  }
  func.func @transform_16(%arg0: i32) -> (i32, i32, i32) {
    %c0_i32 = arith.constant 0 : i32
    %c0_i32_0 = arith.constant 0 : i32
    %c0_i32_1 = arith.constant 0 : i32
    %c0_i32_2 = arith.constant 0 : i32
    return %c0_i32, %c0_i32_0, %c0_i32_1 : i32, i32, i32
  }
  func.func @transform_17(%arg0: i32) -> (i32, i32) {
    %c0_i32 = arith.constant 0 : i32
    %c0_i32_0 = arith.constant 0 : i32
    %c0_i32_1 = arith.constant 0 : i32
    return %c0_i32, %c0_i32_0 : i32, i32
  }
  func.func @transform_18(%arg0: i32) -> (i32, i32) {
    %c0_i32 = arith.constant 0 : i32
    %c0_i32_0 = arith.constant 0 : i32
    %c0_i32_1 = arith.constant 0 : i32
    return %c0_i32, %c0_i32_0 : i32, i32
  }
  func.func @transform_19(%arg0: i32) -> (i32, i32) {
    %c0_i32 = arith.constant 0 : i32
    %c0_i32_0 = arith.constant 0 : i32
    %c0_i32_1 = arith.constant 0 : i32
    return %c0_i32, %c0_i32_0 : i32, i32
  }
  func.func @transform_20(%arg0: i32) -> (i32, i32, i32, i32) {
    %c0_i32 = arith.constant 0 : i32
    %c0_i32_0 = arith.constant 0 : i32
    %c0_i32_1 = arith.constant 0 : i32
    %c0_i32_2 = arith.constant 0 : i32
    return %arg0, %c0_i32, %c0_i32_0, %c0_i32_1 : i32, i32, i32, i32
  }
}

</mosaic_0001>

<bundles_post_ra>
// kernel: _lambda_.1
= control target key start
LH: loop header
LB: loop body
LE: loop exit
PB: predicated region body
PF: predicated region fallthrough
CT: control target
= control target key end

     0   :  { %s21154_s0 = inlined_call_operand.vmem [shape: bf16[2,16,16,4], index: 0, kind: input, shape index: {}]   ;;  %s21155_s1 = inlined_call_operand.vmem [shape: bf16[9,4,8], index: 1, kind: input, shape index: {}]   ;;  %s21156_s2 = inlined_call_operand.vmem [shape: f32[1,8], index: 2, kind: input, shape index: {}]   ;;  %s21157_s3 = inlined_call_operand.vmem [shape: f32[9,1,4], index: 3, kind: input, shape index: {}]   ;;  %s21158_s4 = inlined_call_operand.vmem [shape: f32[1,4], index: 4, kind: input, shape index: {}]   ;;  %s21159_s5 = inlined_call_operand.vmem [shape: bf16[4,8], index: 5, kind: input, shape index: {}]   ;;  %s21160_s6 = inlined_call_operand.vmem [shape: f32[1,8], index: 6, kind: input, shape index: {}]   ;;  %s21161_s7 = inlined_call_operand.vmem [shape: f32[1,8], index: 7, kind: input, shape index: {}]   ;;  %s21162_s8 = inlined_call_operand.vmem [shape: f32[1,8], index: 8, kind: input, shape index: {}]   ;;  %s21163_s9 = inlined_call_operand.vmem [shape: f32[9,1,8], index: 9, kind: input, shape index: {}]   ;;  %s21164_s10 = inlined_call_operand.vmem [shape: f32[1,8], index: 10, kind: input, shape index: {}]   ;;  %s21165_s11 = inlined_call_operand.vmem [shape: bf16[8,8], index: 11, kind: input, shape index: {}]   ;;  %s21166_s12 = inlined_call_operand.vmem [shape: f32[1,8], index: 12, kind: input, shape index: {}]   ;;  %s21167_s13 = inlined_call_operand.vmem [shape: f32[1,8], index: 13, kind: input, shape index: {}]   ;;  %s21168_s14 = inlined_call_operand.vmem [shape: f32[1,8], index: 14, kind: input, shape index: {}]   ;;  %s21169_s15 = inlined_call_operand.vmem [shape: bf16[9,8,8], index: 15, kind: input, shape index: {}]   ;;  %s21170_s16 = inlined_call_operand.vmem [shape: bf16[9,8,8], index: 16, kind: input, shape index: {}]   ;;  %s21171_s17 = inlined_call_operand.vmem [shape: f32[1,8], index: 17, kind: input, shape index: {}]   ;;  %s21172_s18 = inlined_call_operand.vmem [shape: f32[1,8], index: 18, kind: input, shape index: {}]   ;;  %s21173_s19 = inlined_call_operand.vmem [shape: f32[1,8], index: 19, kind: input, shape index: {}]   ;;  %s21174_s20 = inlined_call_operand.vmem [shape: f32[2,16,16,8], index: 20, kind: output, shape index: {}]  }
   0x1   :  { %21293 = sst [smem:[#allocation42_spill]] %s21154_s0 }
   0x2   :  { %21294 = sst [smem:[#allocation43_spill]] %s21155_s1  ;;  %s15437_s1 = smov 0  }
   0x3   :  { %21295 = sst [smem:[#allocation44_spill]] %s21156_s2 }
   0x4   :  { %21296 = sst [smem:[#allocation45_spill]] %s21157_s3 }
   0x5   :  { %21297 = sst [smem:[#allocation46_spill]] %s21158_s4 }
   0x6 LB: > { %s12317_s22 = sadd.s32 4294967295, %s15329_s1   ;;  %p12321_p0 = scmp.ge.s32.totalorder %s15329_s1, 1  ;;  %s15329_s1 = sphi %s15437_s1, %s30_s1  }
   0x7   : > { %p562_p1 = scmp.lt.s32.totalorder %s15329_s1, 3 }
   0x9   : > { %p563_p2 = pnand %p12321_p0, %p562_p1 }
   0xb   : > { %566 = sbr.rel (%p563_p2) target bundleno = 2609 (0xa31), region = 100 }
  0x12   : > { %s21298_s2 = sld [smem:[#allocation43_spill]]  ;;  %vm1144_vm0 = vcmask 1041408   ;;  %vm631_vm1 = vcmask 31744   ;;  %vm634_vm2 = vcmask 25600   ;;  %v21180_v2 = vmov 0.0   ;;  %p620_p3 = scmp.lt.s32.totalorder %s12317_s22, 1 }
  0x13   : > { %632 = vst.msk [vmem:[#allocation2] sm:$0xff] %vm631_vm1, %v21180_v2  ;;  %633 = vst.msk [vmem:[#allocation2 + $0x8] sm:$0xff] %vm631_vm1, %v21180_v2  ;;  %s21299_s4 = sld [smem:[#allocation45_spill]]  ;;  %s21300_s23 = sld [smem:[#allocation42_spill]]  ;;  %vm967_vm3 = vcmask 1046528   ;;  %vm1521_vm4 = vcmask 1045504  }
  0x14   : > { %635 = vst.msk [vmem:[#allocation2 + $0x10] sm:$0x3] %vm634_vm2, %v21180_v2  ;;  %638 = vst.msk [vmem:[#allocation2 + $0x28] sm:$0x3] %vm634_vm2, %v21180_v2  ;;  %s21531_s22 = smov (!%p620_p3, %s12317_s22), 1  ;;  %vm687_vm5 = vcmask 64512  }
  0x15   : > { %636 = vst.msk [vmem:[#allocation2 + $0x18] sm:$0xff] %vm631_vm1, %v21180_v2  ;;  %637 = vst.msk [vmem:[#allocation2 + $0x20] sm:$0xff] %vm631_vm1, %v21180_v2  ;;  %s12822_s26 = sshll.u32 %s21531_s22, 7  ;;  %vm3503_vm6 = vcmask 1043456   ;;  %vm690_vm7 = vcmask 58368   ;;  %s21356_s28 = sld [smem:[#allocation44_spill]] }
  0x16   : > { %639 = vst.msk [vmem:[#allocation2 + $0x30] sm:$0xff] %vm631_vm1, %v21180_v2  ;;  %640 = vst.msk [vmem:[#allocation2 + $0x38] sm:$0xff] %vm631_vm1, %v21180_v2 }
  0x17   : > { %641 = vst.msk [vmem:[#allocation2 + $0x40] sm:$0x3] %vm634_vm2, %v21180_v2  ;;  %644 = vst.msk [vmem:[#allocation2 + $0x58] sm:$0x3] %vm634_vm2, %v21180_v2 }
  0x18   : > { %v895_v0 = vld [vmem:[%s21298_s2 + $0x2] sm:$0x3]  ;;  %642 = vst.msk [vmem:[#allocation2 + $0x48] sm:$0xff] %vm631_vm1, %v21180_v2  ;;  %643 = vst.msk [vmem:[#allocation2 + $0x50] sm:$0xff] %vm631_vm1, %v21180_v2  ;;  %v15563_v3 = vld [vmem:[%s21298_s2] sm:$0x3] }
  0x19   : > { %15184 = vmatprep.subr.msk.bf16.mxu0 %vm1144_vm0, %v895_v0  ;;  %v1146_v1 = vsel %vm1144_vm0, %v895_v0, 0  ;;  %645 = vst.msk [vmem:[#allocation2 + $0x60] sm:$0xff] %vm631_vm1, %v21180_v2  ;;  %646 = vst.msk [vmem:[#allocation2 + $0x68] sm:$0xff] %vm631_vm1, %v21180_v2  ;;  %v12615_v4 = vld [vmem:[%s21299_s4] ss:$0 sm:$0xff]  ;;  %s15581_s24 = scalar_lea.vmem %s21300_s23, %s12822_s26  ;;  %s21409_s26 = sld [smem:[#allocation46_spill]] }
  0x1a   : > { %647 = vst.msk [vmem:[#allocation2 + $0x70] sm:$0x3] %vm634_vm2, %v21180_v2  ;;  %650 = vst.msk [vmem:[#allocation2 + $0x88] sm:$0x3] %vm634_vm2, %v21180_v2  ;;  %13397 = vmatpush3.bf16.msra.mxu0 %v1146_v1  ;;  %v12616_v5 = vld [vmem:[%s21299_s4 + $0x1] ss:$0 sm:$0xff] }
  0x1b   : > { %648 = vst.msk [vmem:[#allocation2 + $0x78] sm:$0xff] %vm631_vm1, %v21180_v2  ;;  %649 = vst.msk [vmem:[#allocation2 + $0x80] sm:$0xff] %vm631_vm1, %v21180_v2  ;;  %15185 = vmatprep.subr.msk.bf16.mxu0 %vm1144_vm0, %v15563_v3  ;;  %v12617_v6 = vld [vmem:[%s21299_s4 + $0x2] ss:$0 sm:$0xff]  ;;  %v12888_v8 = vld [vmem:[%s15581_s24 + $0x8] sm:$0xff]   ;;  %s12823_s23 = sshll.u32 %s21531_s22, 8 }
  0x1c   : > { %651 = vst.msk [vmem:[#allocation2 + $0x90] sm:$0xff] %vm631_vm1, %v21180_v2  ;;  %652 = vst.msk [vmem:[#allocation2 + $0x98] sm:$0xff] %vm631_vm1, %v21180_v2  ;;  %v12825_v7 = vld [vmem:[%s15581_s24] sm:$0xff]   ;;  %v15590_v10 = vld [vmem:[#allocation2 + $0x8] sm:$0xff]  ;;  %v12830_v14 = vunpack.c.l.bf16 %v12888_v8  ;;  %v12831_v15 = vunpack.c.h.bf16 %v12888_v8 }
  0x1d   : > { %653 = vst.msk [vmem:[#allocation2 + $0xa0] sm:$0x3] %vm634_vm2, %v21180_v2  ;;  %656 = vst.msk [vmem:[#allocation2 + $0xb8] sm:$0x3] %vm634_vm2, %v21180_v2  ;;  %v15588_v9 = vld [vmem:[#allocation2] sm:$0xff]  ;;  %v12826_v12 = vunpack.c.l.bf16 %v12825_v7  ;;  %v12827_v13 = vunpack.c.h.bf16 %v12825_v7  ;;  %v969_v17 = vrot.slane %v15590_v10, 1  ;;  %v15598_v19 = vmul.f32 %v12616_v5, %v15590_v10 }
  0x1e   : > { %654 = vst.msk [vmem:[#allocation2 + $0xa8] sm:$0xff] %vm631_vm1, %v21180_v2  ;;  %655 = vst.msk [vmem:[#allocation2 + $0xb0] sm:$0xff] %vm631_vm1, %v21180_v2  ;;  %v15592_v11 = vld [vmem:[#allocation2 + $0x10] sm:$0x3]  ;;  %v968_v16 = vrot.slane %v15588_v9, 1  ;;  %v5502_v24 = vmul.f32 %v12615_v4, %v15590_v10  ;;  %v15610_v25 = vmul.f32 %v12617_v6, %v15590_v10  ;;  %v12890_v26 = vld [vmem:[%s15581_s24 + $0x18] sm:$0xff]  }
  0x1f   : > { %657 = vst.msk [vmem:[#allocation2 + $0xc0] sm:$0xff] %vm631_vm1, %v21180_v2  ;;  %658 = vst.msk [vmem:[#allocation2 + $0xc8] sm:$0xff] %vm631_vm1, %v21180_v2  ;;  %v971_v18 = vrot.slane %v15592_v11, 1  ;;  %v5573_v20 = vmul.f32 %v12616_v5, %v15592_v11  ;;  %v12889_v21 = vld [vmem:[%s15581_s24 + $0x10] sm:$0xff]   ;;  %v21179_v28 = vrot.slane %v15598_v19, 1  ;;  %v12891_v30 = vld [vmem:[%s15581_s24 + $0x20] sm:$0xff]   ;;  %v5819_v31 = vmul.f32 %v12617_v6, %v15592_v11 }
  0x20   : > { %659 = vst.msk [vmem:[#allocation2 + $0xd0] sm:$0x3] %vm634_vm2, %v21180_v2  ;;  %662 = vst.msk [vmem:[#allocation2 + $0xe8] sm:$0x3] %vm634_vm2, %v21180_v2  ;;  %v970_v22 = vsel %vm967_vm3, %v968_v16, %v969_v17  ;;  %v21178_v32 = vrot.slane %v15610_v25, 2  ;;  %v12834_v33 = vunpack.c.l.bf16 %v12889_v21  ;;  %v12892_v34 = vld [vmem:[%s15581_s24 + $0x28] sm:$0xff]   ;;  %v12835_v37 = vunpack.c.h.bf16 %v12889_v21 }
  0x21   : > { %660 = vst.msk [vmem:[#allocation2 + $0xd8] sm:$0xff] %vm631_vm1, %v21180_v2  ;;  %661 = vst.msk [vmem:[#allocation2 + $0xe0] sm:$0xff] %vm631_vm1, %v21180_v2  ;;  %v972_v23 = vsel %vm967_vm3, %v969_v17, %v971_v18  ;;  %v5670_v29 = vrot.slane %v5573_v20, 1  ;;  %v12893_v35 = vld [vmem:[%s15581_s24 + $0x30] sm:$0xff]   ;;  %v12838_v38 = vunpack.c.l.bf16 %v12890_v26  ;;  %v12839_v39 = vunpack.c.h.bf16 %v12890_v26  ;;  %v12894_v40 = vld [vmem:[%s15581_s24 + $0x38] sm:$0xff]  }
  0x22   : > { %663 = vst.msk [vmem:[#allocation2 + $0xf0] sm:$0xff] %vm631_vm1, %v21180_v2  ;;  %664 = vst.msk [vmem:[#allocation2 + $0xf8] sm:$0xff] %vm631_vm1, %v21180_v2  ;;  %v1080_v27 = vpack.c.bf16 %v972_v23, %v970_v22  ;;  %v15625_v41 = vld [vmem:[%s15581_s24 + $0x40] sm:$0xff]   ;;  %v5916_v43 = vrot.slane %v5819_v31, 2  ;;  %v12842_v44 = vunpack.c.l.bf16 %v12891_v30  ;;  %v12843_v45 = vunpack.c.h.bf16 %v12891_v30  ;;  %v12896_v1 = vld [vmem:[%s15581_s24 + $0x48] sm:$0xff]  }
  0x23   : > { %665 = vst.msk [vmem:[#allocation2 + $0x100] sm:$0x3] %vm634_vm2, %v21180_v2  ;;  %668 = vst.msk [vmem:[#allocation2 + $0x118] sm:$0x3] %vm634_vm2, %v21180_v2  ;;  %v5671_v36 = vsel %vm967_vm3, %v21179_v28, %v5670_v29  ;;  %v12846_v46 = vunpack.c.l.bf16 %v12892_v34  ;;  %v12847_v47 = vunpack.c.h.bf16 %v12892_v34  ;;  %v12850_v48 = vunpack.c.l.bf16 %v12893_v35  ;;  %v15678_v20 = vld [vmem:[%s15581_s24 + $0x58] sm:$0xff]  }
  0x24   : > { %666 = vst.msk [vmem:[#allocation2 + $0x108] sm:$0xff] %vm631_vm1, %v21180_v2  ;;  %667 = vst.msk [vmem:[#allocation2 + $0x110] sm:$0xff] %vm631_vm1, %v21180_v2  ;;  %13398 = vmatprep.mubr.msk.bf16.mxu0 %vm631_vm1, %v1080_v27  ;;  %v5780_v42 = vadd.f32 %v5671_v36, %v5502_v24  ;;  %v12851_v49 = vunpack.c.h.bf16 %v12893_v35  ;;  %v5917_v50 = vsel %vm1521_vm4, %v21178_v32, %v5916_v43  ;;  %v12854_v54 = vunpack.c.l.bf16 %v12894_v40  ;;  %v15683_v21 = vld [vmem:[%s21298_s2 + $0x4] sm:$0x3] }
  0x25   : > { %669 = vst.msk [vmem:[#allocation2 + $0x120] sm:$0xff] %vm631_vm1, %v21180_v2  ;;  %670 = vst.msk [vmem:[#allocation2 + $0x128] sm:$0xff] %vm631_vm1, %v21180_v2  ;;  %v12855_v55 = vunpack.c.h.bf16 %v12894_v40  ;;  %v12858_v56 = vunpack.c.l.bf16 %v15625_v41  ;;  %v12859_v17 = vunpack.c.h.bf16 %v15625_v41  ;;  %v12862_v18 = vunpack.c.l.bf16 %v12896_v1 }
  0x26   : > { %671 = vst.msk [vmem:[#allocation2 + $0x130] sm:$0x3] %vm634_vm2, %v21180_v2  ;;  %674 = vst.msk [vmem:[#allocation2 + $0x148] sm:$0x3] %vm634_vm2, %v21180_v2  ;;  %v15643_v57 = vadd.f32 %v5917_v50, %v5780_v42  ;;  %v12863_v27 = vunpack.c.h.bf16 %v12896_v1  ;;  %v12870_v42 = vunpack.c.l.bf16 %v15678_v20 }
  0x27   : > { %672 = vst.msk [vmem:[#allocation2 + $0x138] sm:$0xff] %vm631_vm1, %v21180_v2  ;;  %673 = vst.msk [vmem:[#allocation2 + $0x140] sm:$0xff] %vm631_vm1, %v21180_v2 }
  0x28   : > { %675 = vst.msk [vmem:[#allocation2 + $0x150] sm:$0xff] %vm631_vm1, %v21180_v2  ;;  %676 = vst.msk [vmem:[#allocation2 + $0x158] sm:$0xff] %vm631_vm1, %v21180_v2 }
  0x29   : > { %677 = vst.msk [vmem:[#allocation2 + $0x160] sm:$0x3] %vm634_vm2, %v21180_v2  ;;  %680 = vst.msk [vmem:[#allocation2 + $0x178] sm:$0x3] %vm634_vm2, %v21180_v2 }
  0x2a   : > { %678 = vst.msk [vmem:[#allocation2 + $0x168] sm:$0xff] %vm631_vm1, %v21180_v2  ;;  %679 = vst.msk [vmem:[#allocation2 + $0x170] sm:$0xff] %vm631_vm1, %v21180_v2 }
  0x2b   : > { %681 = vst.msk [vmem:[#allocation2 + $0x180] sm:$0xff] %vm631_vm1, %v21180_v2  ;;  %682 = vst.msk [vmem:[#allocation2 + $0x188] sm:$0xff] %vm631_vm1, %v21180_v2 }
  0x2c   : > { %683 = vst.msk [vmem:[#allocation2 + $0x190] sm:$0x3] %vm634_vm2, %v21180_v2  ;;  %686 = vst.msk [vmem:[#allocation2 + $0x1a8] sm:$0x3] %vm634_vm2, %v21180_v2 }
  0x2d   : > { %684 = vst.msk [vmem:[#allocation2 + $0x198] sm:$0xff] %vm631_vm1, %v21180_v2  ;;  %685 = vst.msk [vmem:[#allocation2 + $0x1a0] sm:$0xff] %vm631_vm1, %v21180_v2 }
  0x2e   : > { %21301 = vst [vmem:[#allocation4_spill] sm:$0xff] %v15598_v19  ;;  %808 = vst.msk [vmem:[#allocation2 + $0x19] sm:$0xff] %vm631_vm1, %v12826_v12  ;;  %v1358_v12 = vsel %vm1144_vm0, %v15563_v3, 0 }
  0x2f   : > { %809 = vst.msk [vmem:[#allocation2 + $0x21] sm:$0xff] %vm631_vm1, %v12827_v13  ;;  %810 = vst.msk [vmem:[#allocation2 + $0x31] sm:$0xff] %vm631_vm1, %v12830_v14  ;;  %v12897_v13 = vld [vmem:[%s15581_s24 + $0x50] sm:$0xff]  }
  0x30   : > { %811 = vst.msk [vmem:[#allocation2 + $0x39] sm:$0xff] %vm631_vm1, %v12831_v15  ;;  %21302 = vst [vmem:[#allocation5_spill] sm:$0xff] %v15610_v25  ;;  %v12866_v35 = vunpack.c.l.bf16 %v12897_v13  ;;  %v12867_v41 = vunpack.c.h.bf16 %v12897_v13 }
  0x31   : > { %812 = vst.msk [vmem:[#allocation2 + $0x49] sm:$0xff] %vm631_vm1, %v12834_v33  ;;  %813 = vst.msk [vmem:[#allocation2 + $0x51] sm:$0xff] %vm631_vm1, %v12835_v37 }
  0x32   : > { %814 = vst.msk [vmem:[#allocation2 + $0x61] sm:$0xff] %vm631_vm1, %v12838_v38  ;;  %815 = vst.msk [vmem:[#allocation2 + $0x69] sm:$0xff] %vm631_vm1, %v12839_v39 }
  0x33   : > { %816 = vst.msk [vmem:[#allocation2 + $0x79] sm:$0xff] %vm631_vm1, %v12842_v44  ;;  %817 = vst.msk [vmem:[#allocation2 + $0x81] sm:$0xff] %vm631_vm1, %v12843_v45 }
  0x34   : > { %21303 = vst [vmem:[#allocation6_spill] sm:$0xff] %v15643_v57  ;;  %818 = vst.msk [vmem:[#allocation2 + $0x91] sm:$0xff] %vm631_vm1, %v12846_v46 }
  0x35   : > { %v15634_v51 = vld [vmem:[#allocation2 + $0x18] sm:$0xff]  ;;  %819 = vst.msk [vmem:[#allocation2 + $0x99] sm:$0xff] %vm631_vm1, %v12847_v47  ;;  %820 = vst.msk [vmem:[#allocation2 + $0xa9] sm:$0xff] %vm631_vm1, %v12850_v48 }
  0x36   : > { %v15636_v52 = vld [vmem:[#allocation2 + $0x20] sm:$0xff]  ;;  %v15638_v53 = vld [vmem:[#allocation2 + $0x28] sm:$0x3]  ;;  %v973_v58 = vrot.slane %v15634_v51, 1  ;;  %v15648_v61 = vld [vmem:[#allocation2 + $0x30] sm:$0xff]  ;;  %821 = vst.msk [vmem:[#allocation2 + $0xb1] sm:$0xff] %vm631_vm1, %v12851_v49 }
  0x37   : > { %v974_v59 = vrot.slane %v15636_v52, 1  ;;  %v976_v60 = vrot.slane %v15638_v53, 1  ;;  %v15650_v62 = vld [vmem:[#allocation2 + $0x38] sm:$0xff]  ;;  %v15656_v63 = vld [vmem:[#allocation2 + $0x40] sm:$0x3]  ;;  %v978_v0 = vrot.slane %v15648_v61, 1 }
  0x38   : > { %822 = vst.msk [vmem:[#allocation2 + $0xc1] sm:$0xff] %vm631_vm1, %v12854_v54  ;;  %823 = vst.msk [vmem:[#allocation2 + $0xc9] sm:$0xff] %vm631_vm1, %v12855_v55  ;;  %v979_v6 = vrot.slane %v15650_v62, 1  ;;  %v981_v7 = vrot.slane %v15656_v63, 1  ;;  %v15674_v16 = vld [vmem:[#allocation2 + $0x48] sm:$0xff]  ;;  %v15689_v22 = vld [vmem:[#allocation2 + $0x50] sm:$0xff] }
  0x39   : > { %824 = vst.msk [vmem:[#allocation2 + $0xd9] sm:$0xff] %vm631_vm1, %v12858_v56  ;;  %v975_v4 = vsel %vm967_vm3, %v973_v58, %v974_v59  ;;  %v977_v5 = vsel %vm967_vm3, %v974_v59, %v976_v60  ;;  %v15691_v23 = vld [vmem:[#allocation2 + $0x58] sm:$0x3]  ;;  %v983_v24 = vrot.slane %v15674_v16, 1  ;;  %v15694_v26 = vld [vmem:[#allocation2 + $0x60] sm:$0xff]  ;;  %v984_v29 = vrot.slane %v15689_v22, 1 }
  0x3a   : > { %v15667_v8 = vpack.c.bf16 %v977_v5, %v975_v4  ;;  %v980_v14 = vsel %vm967_vm3, %v978_v0, %v979_v6  ;;  %v982_v15 = vsel %vm967_vm3, %v979_v6, %v981_v7  ;;  %v986_v30 = vrot.slane %v15691_v23, 1  ;;  %v15698_v31 = vld [vmem:[#allocation2 + $0x68] sm:$0xff]  ;;  %v15700_v33 = vld [vmem:[#allocation2 + $0x70] sm:$0x3]  ;;  %825 = vst.msk [vmem:[#allocation2 + $0xe1] sm:$0xff] %vm631_vm1, %v12859_v17  ;;  %826 = vst.msk [vmem:[#allocation2 + $0xf1] sm:$0xff] %vm631_vm1, %v12862_v18 }
  0x3b   : > { %v15687_v3 = vpack.c.bf16 %v982_v15, %v980_v14  ;;  %v988_v34 = vrot.slane %v15694_v26, 1  ;;  %v989_v36 = vrot.slane %v15698_v31, 1  ;;  %v991_v37 = vrot.slane %v15700_v33, 1  ;;  %v15709_v38 = vld [vmem:[#allocation2 + $0x78] sm:$0xff]  ;;  %v15711_v39 = vld [vmem:[#allocation2 + $0x80] sm:$0xff]  ;;  %827 = vst.msk [vmem:[#allocation2 + $0xf9] sm:$0xff] %vm631_vm1, %v12863_v27 }
  0x3c   : > { %21304 = vst [vmem:[#allocation7_spill] sm:$0xff] %v15667_v8  ;;  %13399 = vmatmul.mubr.msk.bf16.vlgmr.msra.gmra.mrb[0].mxu0 %vm631_vm1, %v15667_v8  ;;  %v15713_v40 = vld [vmem:[#allocation2 + $0x88] sm:$0x3]  ;;  %v985_v43 = vsel %vm967_vm3, %v983_v24, %v984_v29  ;;  %v987_v44 = vsel %vm967_vm3, %v984_v29, %v986_v30  ;;  %v15721_v45 = vld [vmem:[#allocation2 + $0x90] sm:$0xff]  ;;  %v15723_v46 = vld [vmem:[#allocation2 + $0x98] sm:$0xff]  ;;  %v993_v55 = vrot.slane %v15709_v38, 1 }
  0x3d   : > { %21305 = vst [vmem:[#allocation8_spill] sm:$0xff] %v15687_v3  ;;  %13431 = vmatpush3.bf16.msra.mxu0 %v1358_v12  ;;  %13402 = vmatprep.mubr.msk.bf16.mxu0 %vm631_vm1, %v15687_v3  ;;  %v15725_v47 = vld [vmem:[#allocation2 + $0xa0] sm:$0x3]  ;;  %828 = vst.msk [vmem:[#allocation2 + $0x109] sm:$0xff] %vm631_vm1, %v12866_v35  ;;  %v15728_v48 = vpack.c.bf16 %v987_v44, %v985_v43  ;;  %v990_v49 = vsel %vm967_vm3, %v988_v34, %v989_v36  ;;  %v994_v56 = vrot.slane %v15711_v39, 1  ;;  %v15748_v5 = vld [vmem:[#allocation2 + $0xa8] sm:$0xff] }
  0x3e   : > { %15186 = vmatprep.subr.msk.bf16.mxu0 %vm1144_vm0, %v15683_v21  ;;  %v992_v50 = vsel %vm967_vm3, %v989_v36, %v991_v37  ;;  %829 = vst.msk [vmem:[#allocation2 + $0x111] sm:$0xff] %vm631_vm1, %v12867_v41  ;;  %830 = vst.msk [vmem:[#allocation2 + $0x121] sm:$0xff] %vm631_vm1, %v12870_v42  ;;  %v996_v58 = vrot.slane %v15713_v40, 1  ;;  %v998_v59 = vrot.slane %v15721_v45, 1  ;;  %v999_v60 = vrot.slane %v15723_v46, 1  ;;  %v15752_v12 = vld [vmem:[#allocation2 + $0xb0] sm:$0xff] }
  0x3f   : > { %21306 = vst [vmem:[#allocation9_spill] sm:$0xff] %v15728_v48  ;;  %v15734_v54 = vpack.c.bf16 %v992_v50, %v990_v49  ;;  %v1001_v0 = vrot.slane %v15725_v47, 1  ;;  %v995_v1 = vsel %vm967_vm3, %v993_v55, %v994_v56  ;;  %v15754_v13 = vld [vmem:[#allocation2 + $0xb8] sm:$0x3]  ;;  %v12899_v14 = vld [vmem:[%s15581_s24 + $0x60] sm:$0xff]   ;;  %v15759_v17 = vld [vmem:[#allocation2 + $0xc8] sm:$0xff]  ;;  %v12871_v36 = vunpack.c.h.bf16 %v15678_v20 }
  0x40   : > { %v997_v4 = vsel %vm967_vm3, %v994_v56, %v996_v58  ;;  %v1000_v6 = vsel %vm967_vm3, %v998_v59, %v999_v60  ;;  %v15757_v15 = vld [vmem:[#allocation2 + $0xc0] sm:$0xff]  ;;  %v15761_v18 = vld [vmem:[#allocation2 + $0xd0] sm:$0x3]  ;;  %v1003_v27 = vrot.slane %v15748_v5, 1  ;;  %v12900_v29 = vld [vmem:[%s15581_s24 + $0x68] sm:$0xff]   ;;  %v1004_v34 = vrot.slane %v15752_v12, 1 }
  0x41   : > { %21307 = vst [vmem:[#allocation10_spill] sm:$0xff] %v15734_v54  ;;  %v1002_v7 = vsel %vm967_vm3, %v999_v60, %v1001_v0  ;;  %v15763_v24 = vpack.c.bf16 %v997_v4, %v995_v1  ;;  %v1006_v35 = vrot.slane %v15754_v13, 1  ;;  %v12901_v37 = vld [vmem:[%s15581_s24 + $0x70] sm:$0xff]   ;;  %v1008_v41 = vrot.slane %v15757_v15, 1  ;;  %831 = vst.msk [vmem:[#allocation2 + $0x129] sm:$0xff] %vm631_vm1, %v12871_v36  ;;  %v15779_v55 = vld [vmem:[#allocation2 + $0xd8] sm:$0xff] }
  0x42   : > { %v15767_v30 = vpack.c.bf16 %v1002_v7, %v1000_v6  ;;  %v1009_v42 = vrot.slane %v15759_v17, 1  ;;  %v1011_v43 = vrot.slane %v15761_v18, 1  ;;  %v12874_v44 = vunpack.c.l.bf16 %v12899_v14  ;;  %v15792_v6 = vld [vmem:[#allocation2 + $0xe0] sm:$0xff]  ;;  %v15794_v7 = vld [vmem:[#allocation2 + $0xe8] sm:$0x3] }
  0x43   : > { %21308 = vst [vmem:[#allocation11_spill] sm:$0xff] %v15763_v24  ;;  %v12875_v49 = vunpack.c.h.bf16 %v12899_v14  ;;  %v12878_v50 = vunpack.c.l.bf16 %v12900_v29  ;;  %v12879_v20 = vunpack.c.h.bf16 %v12900_v29  ;;  %v12882_v56 = vunpack.c.l.bf16 %v12901_v37  ;;  %v15796_v14 = vld [vmem:[#allocation2 + $0xf0] sm:$0xff]  ;;  %v15802_v29 = vld [vmem:[#allocation2 + $0xf8] sm:$0xff] }
  0x44   : > { %13403 = vmatmul.mubr.msk.bf16.gmra.mrb[4].mxu0 %vm631_vm1, %v15728_v48  ;;  %21309 = vst [vmem:[#allocation12_spill] sm:$0xff] %v15767_v30  ;;  %832 = vst.msk [vmem:[#allocation2 + $0x139] sm:$0xff] %vm631_vm1, %v12874_v44  ;;  %v12883_v58 = vunpack.c.h.bf16 %v12901_v37  ;;  %v1005_v59 = vsel %vm967_vm3, %v1003_v27, %v1004_v34  ;;  %v1007_v60 = vsel %vm967_vm3, %v1004_v34, %v1006_v35  ;;  %v1013_v27 = vrot.slane %v15779_v55, 1  ;;  %v15804_v34 = vld [vmem:[#allocation2 + $0x100] sm:$0x3] }
  0x45   : > { %13406 = vmatprep.mubr.msk.bf16.mxu0 %vm631_vm1, %v15734_v54  ;;  %833 = vst.msk [vmem:[#allocation2 + $0x141] sm:$0xff] %vm631_vm1, %v12875_v49  ;;  %834 = vst.msk [vmem:[#allocation2 + $0x151] sm:$0xff] %vm631_vm1, %v12878_v50  ;;  %v1010_v1 = vsel %vm967_vm3, %v1008_v41, %v1009_v42  ;;  %v1012_v4 = vsel %vm967_vm3, %v1009_v42, %v1011_v43  ;;  %v15806_v35 = vpack.c.bf16 %v1007_v60, %v1005_v59  ;;  %v15840_v32 = vld [vmem:[#allocation2 + $0x120] sm:$0xff] }
  0x46   : > { %835 = vst.msk [vmem:[#allocation2 + $0x159] sm:$0xff] %vm631_vm1, %v12879_v20  ;;  %836 = vst.msk [vmem:[#allocation2 + $0x169] sm:$0xff] %vm631_vm1, %v12882_v56  ;;  %v1522_v36 = vrot.slane %v15588_v9, 2  ;;  %v1523_v37 = vrot.slane %v15590_v10, 2  ;;  %v1525_v41 = vrot.slane %v15592_v11, 2  ;;  %v15811_v42 = vpack.c.bf16 %v1012_v4, %v1010_v1 }
  0x47   : > { %837 = vst.msk [vmem:[#allocation2 + $0x171] sm:$0xff] %vm631_vm1, %v12883_v58  ;;  %21310 = vst [vmem:[#allocation13_spill] sm:$0xff] %v15806_v35  ;;  %v1014_v43 = vrot.slane %v15792_v6, 1  ;;  %v1016_v44 = vrot.slane %v15794_v7, 1  ;;  %v1018_v49 = vrot.slane %v15796_v14, 1  ;;  %v1019_v50 = vrot.slane %v15802_v29, 1 }
  0x48   : > { %21311 = vst [vmem:[#allocation14_spill] sm:$0xff] %v15811_v42  ;;  %v1021_v20 = vrot.slane %v15804_v34, 1  ;;  %v15819_v56 = vsel %vm1521_vm4, %v1522_v36, %v1523_v37  ;;  %v15822_v58 = vsel %vm1521_vm4, %v1523_v37, %v1525_v41  ;;  %v15834_v36 = vld [vmem:[#allocation2 + $0x108] sm:$0xff]  ;;  %v15836_v37 = vld [vmem:[#allocation2 + $0x110] sm:$0xff]  ;;  %v15838_v41 = vld [vmem:[#allocation2 + $0x118] sm:$0x3] }
  0x49   : > { %v1015_v59 = vsel %vm967_vm3, %v1013_v27, %v1014_v43  ;;  %v1017_v60 = vsel %vm967_vm3, %v1014_v43, %v1016_v44  ;;  %v1020_v1 = vsel %vm967_vm3, %v1018_v49, %v1019_v50  ;;  %v15842_v28 = vld [vmem:[#allocation2 + $0x128] sm:$0xff]  ;;  %v15844_v2 = vld [vmem:[#allocation2 + $0x130] sm:$0x3]  ;;  %v1023_v43 = vrot.slane %v15834_v36, 1 }
  0x4a   : > { %v1022_v4 = vsel %vm967_vm3, %v1019_v50, %v1021_v20  ;;  %v15846_v11 = vpack.c.bf16 %v1017_v60, %v1015_v59  ;;  %v1024_v44 = vrot.slane %v15836_v37, 1  ;;  %v1026_v49 = vrot.slane %v15838_v41, 1 }
  0x4b   : > { %v15848_v27 = vpack.c.bf16 %v1022_v4, %v1020_v1  ;;  %v1028_v50 = vrot.slane %v15840_v32, 1  ;;  %v1029_v20 = vrot.slane %v15842_v28, 1  ;;  %v1031_v0 = vrot.slane %v15844_v2, 1  ;;  %v15864_v57 = vld [vmem:[#allocation2 + $0x138] sm:$0xff] }
  0x4c   : > { %13407 = vmatmul.mubr.msk.bf16.gmra.mrb[8].mxu0 %vm631_vm1, %v15763_v24  ;;  %21312 = vst [vmem:[#allocation15_spill] sm:$0xff] %v15846_v11  ;;  %v1025_v59 = vsel %vm967_vm3, %v1023_v43, %v1024_v44  ;;  %v1027_v60 = vsel %vm967_vm3, %v1024_v44, %v1026_v49  ;;  %v15866_v25 = vld [vmem:[#allocation2 + $0x140] sm:$0xff]  ;;  %v15868_v19 = vld [vmem:[#allocation2 + $0x148] sm:$0x3]  ;;  %v1033_v44 = vrot.slane %v15864_v57, 1 }
  0x4d   : > { %13410 = vmatprep.mubr.msk.bf16.mxu0 %vm631_vm1, %v15767_v30  ;;  %21313 = vst [vmem:[#allocation16_spill] sm:$0xff] %v15848_v27  ;;  %v1030_v1 = vsel %vm967_vm3, %v1028_v50, %v1029_v20  ;;  %v1032_v4 = vsel %vm967_vm3, %v1029_v20, %v1031_v0  ;;  %v1034_v0 = vrot.slane %v15866_v25, 1  ;;  %v1036_v49 = vrot.slane %v15868_v19, 1  ;;  %v15894_v24 = vld [vmem:[#allocation2 + $0x168] sm:$0xff] }
  0x4e   : > { %v15878_v43 = vpack.c.bf16 %v1032_v4, %v1030_v1  ;;  %v15896_v54 = vld [vmem:[#allocation2 + $0x170] sm:$0xff]  ;;  %v15898_v48 = vld [vmem:[#allocation2 + $0x178] sm:$0x3] }
  0x50   : > { %21315 = vst [vmem:[#allocation18_spill] sm:$0xff] %v15878_v43 }
  0x54   : > { %13411 = vmatmul.mubr.msk.bf16.gmra.mrb[12].mxu0 %vm631_vm1, %v15806_v35  ;;  %v15874_v35 = vld [vmem:[#allocation2 + $0x160] sm:$0x3] }
  0x55   : > { %13414 = vmatprep.mubr.msk.bf16.mxu0 %vm631_vm1, %v15811_v42  ;;  %v15870_v42 = vld [vmem:[#allocation2 + $0x150] sm:$0xff]  ;;  %v1041_v30 = vrot.slane %v15874_v35, 1 }
  0x56   : > { %v1038_v50 = vrot.slane %v15870_v42, 1 }
  0x5c   : > { %13415 = vmatmul.mubr.msk.bf16.gmra.mrb[16].mxu0 %vm631_vm1, %v15846_v11  ;;  %v15872_v11 = vld [vmem:[#allocation2 + $0x158] sm:$0xff] }
  0x5d   : > { %13418 = vmatprep.mubr.msk.bf16.mxu0 %vm631_vm1, %v15848_v27  ;;  %v15876_v27 = vpack.c.bf16 %v1027_v60, %v1025_v59  ;;  %v1039_v20 = vrot.slane %v15872_v11, 1  ;;  %v1035_v59 = vsel %vm967_vm3, %v1033_v44, %v1034_v0  ;;  %v1037_v60 = vsel %vm967_vm3, %v1034_v0, %v1036_v49 }
  0x5e   : > { %v15900_v3 = vpack.c.bf16 %v1037_v60, %v1035_v59  ;;  %v1044_v44 = vrot.slane %v15896_v54, 1  ;;  %v1046_v0 = vrot.slane %v15898_v48, 1  ;;  %v15923_v59 = vpack.c.bf16 %v15636_v52, %v15634_v51 }
  0x5f   : > { %21314 = vst [vmem:[#allocation17_spill] sm:$0xff] %v15876_v27  ;;  %v1040_v1 = vsel %vm967_vm3, %v1038_v50, %v1039_v20  ;;  %v1042_v4 = vsel %vm967_vm3, %v1039_v20, %v1041_v30  ;;  %v21319_v20 = vpack.c.bf16 %v15590_v10, %v15588_v9  ;;  %v15927_v60 = vpack.c.bf16 %v15650_v62, %v15648_v61 }
  0x60   : > { %21316 = vst [vmem:[#allocation19_spill] sm:$0xff] %v15900_v3  ;;  %v1047_v49 = vsel %vm967_vm3, %v1044_v44, %v1046_v0  ;;  %v15941_v9 = vpack.c.bf16 %v15689_v22, %v15674_v16  ;;  %v15945_v10 = vpack.c.bf16 %v15698_v31, %v15694_v26  ;;  %v15969_v0 = vpack.c.bf16 %v15759_v17, %v15757_v15 }
  0x62   : > { %21320 = vst [vmem:[#allocation22_spill] sm:$0xff] %v15969_v0 }
  0x64   : > { %13419 = vmatmul.mubr.msk.bf16.gmra.mrb[20].mxu0 %vm631_vm1, %v15876_v27  ;;  %v15902_v27 = vpack.c.bf16 %v1042_v4, %v1040_v1  ;;  %v897_v1 = vld [vmem:[%s21298_s2 + $0x6] sm:$0x3]  ;;  %v15957_v4 = vpack.c.bf16 %v15723_v46, %v15721_v45 }
  0x65   : > { %13422 = vmatprep.mubr.msk.bf16.mxu0 %vm631_vm1, %v15878_v43  ;;  %v1043_v43 = vrot.slane %v15894_v24, 1 }
  0x66   : > { %21317 = vst [vmem:[#allocation20_spill] sm:$0xff] %v15902_v27 }
  0x67   : > { %v1045_v30 = vsel %vm967_vm3, %v1043_v43, %v1044_v44  ;;  %v1699_v43 = vsel %vm1144_vm0, %v15683_v21, 0  ;;  %v15953_v21 = vpack.c.bf16 %v15711_v39, %v15709_v38  ;;  %v15965_v44 = vpack.c.bf16 %v15752_v12, %v15748_v5 }
  0x68   : > { %v15913_v50 = vpack.c.bf16 %v1047_v49, %v1045_v30  ;;  %v15977_v30 = vpack.c.bf16 %v15792_v6, %v15779_v55  ;;  %v15981_v49 = vpack.c.bf16 %v15802_v29, %v15796_v14 }
  0x6a   : > { %21318 = vst [vmem:[#allocation21_spill] sm:$0xff] %v15913_v50  ;;  %21321 = vst [vmem:[#allocation23_spill] sm:$0xff] %v15977_v30 }
  0x6b   : > { %21322 = vst [vmem:[#allocation24_spill] sm:$0xff] %v15981_v49 }
  0x6c   : > { %13423 = vmatmul.mubr.msk.bf16.gmra.mrb[24].mxu0 %vm631_vm1, %v15900_v3 }
  0x6d   : > { %13426 = vmatprep.mubr.msk.bf16.mxu0 %vm631_vm1, %v15902_v27  ;;  %v16002_v27 = vpack.c.bf16 %v15866_v25, %v15864_v57 }
  0x6f   : > { %21325 = vst [vmem:[#allocation27_spill] sm:$0xff] %v16002_v27 }
  0x74   : > { %13427 = vmatmul.mubr.msk.bf16.gmra.mrb[28].mxu0 %vm631_vm1, %v15913_v50  ;;  %v12902_v50 = vld [vmem:[%s15581_s24 + $0x78] sm:$0xff]  }
  0x75   : > { %13432 = vmatprep.mubr.msk.bf16.mxu0 %vm631_vm1, %v21319_v20  ;;  %v15989_v20 = vpack.c.bf16 %v15836_v37, %v15834_v36  ;;  %v12886_v3 = vunpack.c.l.bf16 %v12902_v50  ;;  %v12887_v8 = vunpack.c.h.bf16 %v12902_v50  ;;  %v1527_v50 = vrot.slane %v15634_v51, 2 }
  0x77   : > { %21323 = vst [vmem:[#allocation25_spill] sm:$0xff] %v15989_v20  ;;  %838 = vst.msk [vmem:[#allocation2 + $0x181] sm:$0xff] %vm631_vm1, %v12886_v3  ;;  %v1532_v3 = vrot.slane %v15648_v61, 2 }
  0x78   : > { %839 = vst.msk [vmem:[#allocation2 + $0x189] sm:$0xff] %vm631_vm1, %v12887_v8  ;;  %v1533_v8 = vrot.slane %v15650_v62, 2 }
  0x7c   : > { %13433 = vmatmul.mubr.msk.bf16.vlgmr.msra.gmra.mrb[0].mxu0 %vm631_vm1, %v15923_v59 }
  0x7d   : > { %13465 = vmatpush3.bf16.msra.mxu0 %v1699_v43  ;;  %13436 = vmatprep.mubr.msk.bf16.mxu0 %vm631_vm1, %v15927_v60  ;;  %v15993_v43 = vpack.c.bf16 %v15842_v28, %v15840_v32 }
  0x7e   : > { %15187 = vmatprep.subr.msk.bf16.mxu0 %vm1144_vm0, %v897_v1 }
  0x7f   : > { %21324 = vst [vmem:[#allocation26_spill] sm:$0xff] %v15993_v43 }
  0x84   : > { %13437 = vmatmul.mubr.msk.bf16.gmra.mrb[4].mxu0 %vm631_vm1, %v15941_v9 }
  0x85   : > { %13440 = vmatprep.mubr.msk.bf16.mxu0 %vm631_vm1, %v15945_v10 }
  0x8c   : > { %13441 = vmatmul.mubr.msk.bf16.gmra.mrb[8].mxu0 %vm631_vm1, %v15953_v21 }
  0x8d   : > { %13444 = vmatprep.mubr.msk.bf16.mxu0 %vm631_vm1, %v15957_v4 }
  0x94   : > { %13445 = vmatmul.mubr.msk.bf16.gmra.mrb[12].mxu0 %vm631_vm1, %v15965_v44 }
  0x95   : > { %13448 = vmatprep.mubr.msk.bf16.mxu0 %vm631_vm1, %v15969_v0  ;;  %v1535_v0 = vrot.slane %v15656_v63, 2  ;;  %v1537_v63 = vrot.slane %v15674_v16, 2 }
  0x97   : > { %v1536_v61 = vsel %vm1521_vm4, %v1533_v8, %v1535_v0  ;;  %v16048_v0 = vld [vmem:[%s21298_s2 + $0x8] sm:$0x3] }
  0x9c   : > { %13449 = vmatmul.mubr.msk.bf16.gmra.mrb[16].mxu0 %vm631_vm1, %v15977_v30  ;;  %v1530_v30 = vrot.slane %v15638_v53, 2  ;;  %v1534_v53 = vsel %vm1521_vm4, %v1532_v3, %v1533_v8  ;;  %v1550_v3 = vrot.slane %v15713_v40, 2  ;;  %v1552_v8 = vrot.slane %v15721_v45, 2 }
  0x9d   : > { %13452 = vmatprep.mubr.msk.bf16.mxu0 %vm631_vm1, %v15981_v49  ;;  %v16006_v49 = vpack.c.bf16 %v15872_v11, %v15870_v42  ;;  %v16036_v62 = vpack.c.bf16 %v1536_v61, %v1534_v53  ;;  %v1560_v61 = vrot.slane %v15754_v13, 2 }
  0x9f   : > { %21326 = vst [vmem:[#allocation28_spill] sm:$0xff] %v16006_v49 }
  0xa4   : > { %13453 = vmatmul.mubr.msk.bf16.gmra.mrb[20].mxu0 %vm631_vm1, %v15989_v20  ;;  %v1528_v20 = vrot.slane %v15636_v52, 2 }
  0xa5   : > { %13456 = vmatprep.mubr.msk.bf16.mxu0 %vm631_vm1, %v15993_v43  ;;  %v16016_v43 = vpack.c.bf16 %v15896_v54, %v15894_v24 }
  0xa6   : > { %v1529_v51 = vsel %vm1521_vm4, %v1527_v50, %v1528_v20  ;;  %v1531_v52 = vsel %vm1521_vm4, %v1528_v20, %v1530_v30  ;;  %v1543_v30 = vrot.slane %v15698_v31, 2  ;;  %v1545_v20 = vrot.slane %v15700_v33, 2 }
  0xa7   : > { %21327 = vst [vmem:[#allocation29_spill] sm:$0xff] %v16016_v43  ;;  %v1548_v50 = vrot.slane %v15711_v39, 2 }
  0xac   : > { %13457 = vmatmul.mubr.msk.bf16.gmra.mrb[24].mxu0 %vm631_vm1, %v16002_v27  ;;  %v16034_v27 = vpack.c.bf16 %v1531_v52, %v1529_v51  ;;  %v1555_v51 = vrot.slane %v15725_v47, 2  ;;  %v1558_v47 = vrot.slane %v15752_v12, 2 }
  0xad   : > { %13460 = vmatprep.mubr.msk.bf16.mxu0 %vm631_vm1, %v16006_v49  ;;  %v21328_v49 = vpack.c.bf16 %v15822_v58, %v15819_v56  ;;  %v1540_v56 = vrot.slane %v15691_v23, 2  ;;  %v1899_v58 = vsel %vm1144_vm0, %v897_v1, 0  ;;  %v1547_v1 = vrot.slane %v15709_v38, 2 }
  0xae   : > { %v1551_v38 = vsel %vm1521_vm4, %v1548_v50, %v1550_v3  ;;  %v1582_v3 = vrot.slane %v15840_v32, 2 }
  0xaf   : > { %v1549_v52 = vsel %vm1521_vm4, %v1547_v1, %v1548_v50  ;;  %v1580_v50 = vrot.slane %v15838_v41, 2 }
  0xb0   : > { %v16078_v53 = vpack.c.bf16 %v1551_v38, %v1549_v52  ;;  %v1590_v38 = vrot.slane %v15868_v19, 2 }
  0xb4   : > { %13461 = vmatmul.mubr.msk.bf16.gmra.mrb[28].mxu0 %vm631_vm1, %v16016_v43  ;;  %v1538_v43 = vrot.slane %v15689_v22, 2 }
  0xb5   : > { %13466 = vmatprep.mubr.msk.bf16.mxu0 %vm631_vm1, %v21328_v49  ;;  %v1542_v49 = vrot.slane %v15694_v26, 2  ;;  %v1546_v26 = vsel %vm1521_vm4, %v1543_v30, %v1545_v20  ;;  %v1570_v20 = vrot.slane %v15794_v7, 2 }
  0xb6   : > { %v1539_v16 = vsel %vm1521_vm4, %v1537_v63, %v1538_v43  ;;  %v1541_v22 = vsel %vm1521_vm4, %v1538_v43, %v1540_v56  ;;  %v1553_v43 = vrot.slane %v15723_v46, 2  ;;  %v1557_v46 = vrot.slane %v15748_v5, 2 }
  0xb7   : > { %v1544_v23 = vsel %vm1521_vm4, %v1542_v49, %v1543_v30  ;;  %v16060_v31 = vpack.c.bf16 %v1541_v22, %v1539_v16  ;;  %v1562_v63 = vrot.slane %v15757_v15, 2  ;;  %v1563_v56 = vrot.slane %v15759_v17, 2 }
  0xb8   : > { %v16062_v33 = vpack.c.bf16 %v1546_v26, %v1544_v23  ;;  %v1554_v39 = vsel %vm1521_vm4, %v1552_v8, %v1553_v43  ;;  %v1556_v40 = vsel %vm1521_vm4, %v1553_v43, %v1555_v51  ;;  %v1559_v49 = vsel %vm1521_vm4, %v1557_v46, %v1558_v47 }
  0xb9   : > { %v16080_v45 = vpack.c.bf16 %v1556_v40, %v1554_v39  ;;  %v1561_v5 = vsel %vm1521_vm4, %v1558_v47, %v1560_v61  ;;  %v1564_v12 = vsel %vm1521_vm4, %v1562_v63, %v1563_v56  ;;  %v1567_v17 = vrot.slane %v15779_v55, 2 }
  0xba   : > { %v16096_v30 = vpack.c.bf16 %v1561_v5, %v1559_v49  ;;  %v1572_v16 = vrot.slane %v15796_v14, 2  ;;  %v1573_v22 = vrot.slane %v15802_v29, 2  ;;  %v1575_v23 = vrot.slane %v15804_v34, 2  ;;  %v21332_v5 = vld [vmem:[#allocation25_spill] sm:$0xff] }
  0xbb   : > { %v1577_v29 = vrot.slane %v15834_v36, 2  ;;  %v1578_v34 = vrot.slane %v15836_v37, 2  ;;  %v1583_v8 = vrot.slane %v15842_v28, 2  ;;  %v1585_v43 = vrot.slane %v15844_v2, 2 }
  0xbc   : > { %13467 = vmatmul.mubr.msk.bf16.vlgmr.msra.gmra.mrb[0].mxu0 %vm631_vm1, %v16034_v27  ;;  %v1576_v7 = vsel %vm1521_vm4, %v1573_v22, %v1575_v23  ;;  %v1587_v2 = vrot.slane %v15864_v57, 2  ;;  %v1588_v28 = vrot.slane %v15866_v25, 2  ;;  %v1592_v39 = vrot.slane %v15870_v42, 2  ;;  %v21337_v23 = vld [vmem:[#allocation7_spill] sm:$0xff] }
  0xbd   : > { %13499 = vmatpush3.bf16.msra.mxu0 %v1899_v58  ;;  %13470 = vmatprep.mubr.msk.bf16.mxu0 %vm631_vm1, %v16036_v62  ;;  %v1565_v58 = vrot.slane %v15761_v18, 2  ;;  %v1568_v18 = vrot.slane %v15792_v6, 2  ;;  %v1574_v6 = vsel %vm1521_vm4, %v1572_v16, %v1573_v22  ;;  %v1579_v51 = vsel %vm1521_vm4, %v1577_v29, %v1578_v34  ;;  %v889_v16 = vld [vmem:[#allocation2 + $0x188] sm:$0xff]  ;;  %v21340_v29 = vld [vmem:[#allocation10_spill] sm:$0xff] }
  0xbe   : > { %15188 = vmatprep.subr.msk.bf16.mxu0 %vm1144_vm0, %v16048_v0  ;;  %v16116_v14 = vpack.c.bf16 %v1576_v7, %v1574_v6  ;;  %v1581_v36 = vsel %vm1521_vm4, %v1578_v34, %v1580_v50  ;;  %v1584_v37 = vsel %vm1521_vm4, %v1582_v3, %v1583_v8  ;;  %v1586_v41 = vsel %vm1521_vm4, %v1583_v8, %v1585_v43  ;;  %v21338_v6 = vld [vmem:[#allocation8_spill] sm:$0xff]  ;;  %v21339_v7 = vld [vmem:[#allocation9_spill] sm:$0xff]  ;;  %v21341_v34 = vld [vmem:[#allocation11_spill] sm:$0xff] }
  0xbf   : > { %v1566_v13 = vsel %vm1521_vm4, %v1563_v56, %v1565_v58  ;;  %v1569_v26 = vsel %vm1521_vm4, %v1567_v17, %v1568_v18  ;;  %v1571_v55 = vsel %vm1521_vm4, %v1568_v18, %v1570_v20  ;;  %v16132_v52 = vpack.c.bf16 %v1581_v36, %v1579_v51  ;;  %v21335_v17 = vld [vmem:[#allocation28_spill] sm:$0xff]  ;;  %v21336_v18 = vld [vmem:[#allocation29_spill] sm:$0xff]  ;;  %v21344_v8 = vld [vmem:[#allocation14_spill] sm:$0xff] }
  0xc0   : > { %v16098_v15 = vpack.c.bf16 %v1566_v13, %v1564_v12  ;;  %v16114_v1 = vpack.c.bf16 %v1571_v55, %v1569_v26  ;;  %v16134_v32 = vpack.c.bf16 %v1586_v41, %v1584_v37  ;;  %v1593_v40 = vrot.slane %v15872_v11, 2  ;;  %v21333_v12 = vld [vmem:[#allocation26_spill] sm:$0xff]  ;;  %v21334_v13 = vld [vmem:[#allocation27_spill] sm:$0xff]  ;;  %v888_v20 = vld [vmem:[#allocation2 + $0x180] sm:$0xff] }
  0xc1   : > { %v1595_v46 = vrot.slane %v15874_v35, 2  ;;  %v1589_v47 = vsel %vm1521_vm4, %v1587_v2, %v1588_v28  ;;  %v1591_v57 = vsel %vm1521_vm4, %v1588_v28, %v1590_v38  ;;  %v1597_v35 = vrot.slane %v15894_v24, 2  ;;  %v21329_v24 = vld [vmem:[#allocation22_spill] sm:$0xff]  ;;  %v900_v55 = vld [vmem:[%s21298_s2 + $0xc] sm:$0x3]  ;;  %v21342_v50 = vld [vmem:[#allocation12_spill] sm:$0xff] }
  0xc2   : > { %v1594_v25 = vsel %vm1521_vm4, %v1592_v39, %v1593_v40  ;;  %v16150_v61 = vpack.c.bf16 %v1591_v57, %v1589_v47  ;;  %v1598_v11 = vrot.slane %v15896_v54, 2  ;;  %v1600_v63 = vrot.slane %v15898_v48, 2  ;;  %v899_v54 = vld [vmem:[%s21298_s2 + $0xa] sm:$0x3]  ;;  %v21345_v43 = vld [vmem:[#allocation15_spill] sm:$0xff]  ;;  %v21346_v51 = vld [vmem:[#allocation16_spill] sm:$0xff] }
  0xc3   : > { %v1596_v19 = vsel %vm1521_vm4, %v1593_v40, %v1595_v46  ;;  %v2109_v48 = vsel %vm1144_vm0, %v16048_v0, 0  ;;  %v21331_v0 = vld [vmem:[#allocation24_spill] sm:$0xff]  ;;  %v16203_v22 = vpack.c.bf16 %v889_v16, %v888_v20  ;;  %v2316_v26 = vsel %vm1144_vm0, %v899_v54, 0  ;;  %v21343_v3 = vld [vmem:[#allocation13_spill] sm:$0xff]  ;;  %v21348_v37 = vld [vmem:[#allocation18_spill] sm:$0xff] }
  0xc4   : > { %13471 = vmatmul.mubr.msk.bf16.gmra.mrb[4].mxu0 %vm631_vm1, %v16060_v31  ;;  %v16152_v42 = vpack.c.bf16 %v1596_v19, %v1594_v25  ;;  %v1599_v56 = vsel %vm1521_vm4, %v1597_v35, %v1598_v11  ;;  %v1601_v58 = vsel %vm1521_vm4, %v1598_v11, %v1600_v63  ;;  %v21347_v36 = vld [vmem:[#allocation17_spill] sm:$0xff]  ;;  %v21349_v41 = vld [vmem:[#allocation19_spill] sm:$0xff]  ;;  %v890_v2 = vld [vmem:[#allocation2 + $0x190] sm:$0x3]  ;;  %v2097_v28 = vrot.slane %v888_v20, 1 }
  0xc5   : > { %13474 = vmatprep.mubr.msk.bf16.mxu0 %vm631_vm1, %v16062_v33  ;;  %v16163_v49 = vpack.c.bf16 %v1601_v58, %v1599_v56  ;;  %v2098_v38 = vrot.slane %v889_v16, 1  ;;  %v2100_v39 = vrot.slane %v890_v2, 1  ;;  %v21350_v40 = vld [vmem:[#allocation20_spill] sm:$0xff]  ;;  %v21351_v46 = vld [vmem:[#allocation21_spill] sm:$0xff]  ;;  %v2516_v19 = vsel %vm1144_vm0, %v900_v55, 0 }
  0xc6   : > { %v901_v35 = vld [vmem:[%s21298_s2 + $0xe] sm:$0x3]  ;;  %v2305_v11 = vrot.slane %v889_v16, 2  ;;  %v2307_v63 = vrot.slane %v890_v2, 2 }
  0xc7   : > { %v2099_v47 = vsel %vm967_vm3, %v2097_v28, %v2098_v38  ;;  %v2101_v57 = vsel %vm967_vm3, %v2098_v38, %v2100_v39 }
  0xc8   : > { %v16244_v25 = vpack.c.bf16 %v2101_v57, %v2099_v47  ;;  %v2308_v58 = vsel %vm1521_vm4, %v2305_v11, %v2307_v63 }
  0xcc   : > { %13475 = vmatmul.mubr.msk.bf16.gmra.mrb[8].mxu0 %vm631_vm1, %v16078_v53 }
  0xcd   : > { %13478 = vmatprep.mubr.msk.bf16.mxu0 %vm631_vm1, %v16080_v45 }
  0xd4   : > { %13479 = vmatmul.mubr.msk.bf16.gmra.mrb[12].mxu0 %vm631_vm1, %v16096_v30 }
  0xd5   : > { %13482 = vmatprep.mubr.msk.bf16.mxu0 %vm631_vm1, %v16098_v15 }
  0xdc   : > { %13483 = vmatmul.mubr.msk.bf16.gmra.mrb[16].mxu0 %vm631_vm1, %v16114_v1 }
  0xdd   : > { %13486 = vmatprep.mubr.msk.bf16.mxu0 %vm631_vm1, %v16116_v14 }
  0xe4   : > { %13487 = vmatmul.mubr.msk.bf16.gmra.mrb[20].mxu0 %vm631_vm1, %v16132_v52 }
  0xe5   : > { %13490 = vmatprep.mubr.msk.bf16.mxu0 %vm631_vm1, %v16134_v32 }
  0xec   : > { %13491 = vmatmul.mubr.msk.bf16.gmra.mrb[24].mxu0 %vm631_vm1, %v16150_v61 }
  0xed   : > { %13494 = vmatprep.mubr.msk.bf16.mxu0 %vm631_vm1, %v16152_v42 }
  0xf4   : > { %13495 = vmatmul.mubr.msk.bf16.gmra.mrb[28].mxu0 %vm631_vm1, %v16163_v49 }
  0xf5   : > { %13500 = vmatprep.mubr.msk.bf16.mxu0 %vm631_vm1, %v15923_v59  ;;  %v21330_v59 = vld [vmem:[#allocation23_spill] sm:$0xff] }
  0xfc   : > { %13501 = vmatmul.mubr.msk.bf16.vlgmr.msra.gmra.mrb[0].mxu0 %vm631_vm1, %v15927_v60 }
  0xfd   : > { %13533 = vmatpush3.bf16.msra.mxu0 %v2109_v48  ;;  %13504 = vmatprep.mubr.msk.bf16.mxu0 %vm631_vm1, %v15941_v9 }
  0xfe   : > { %15189 = vmatprep.subr.msk.bf16.mxu0 %vm1144_vm0, %v899_v54  ;;  %v2726_v54 = vsel %vm1144_vm0, %v901_v35, 0 }
 0x104   : > { %13505 = vmatmul.mubr.msk.bf16.gmra.mrb[4].mxu0 %vm631_vm1, %v15945_v10 }
 0x105   : > { %13508 = vmatprep.mubr.msk.bf16.mxu0 %vm631_vm1, %v15953_v21 }
 0x10c   : > { %13509 = vmatmul.mubr.msk.bf16.gmra.mrb[8].mxu0 %vm631_vm1, %v15957_v4 }
 0x10d   : > { %13512 = vmatprep.mubr.msk.bf16.mxu0 %vm631_vm1, %v15965_v44 }
 0x114   : > { %13513 = vmatmul.mubr.msk.bf16.gmra.mrb[12].mxu0 %vm631_vm1, %v21329_v24 }
 0x115   : > { %13516 = vmatprep.mubr.msk.bf16.mxu0 %vm631_vm1, %v21330_v59 }
 0x11c   : > { %13517 = vmatmul.mubr.msk.bf16.gmra.mrb[16].mxu0 %vm631_vm1, %v21331_v0 }
 0x11d   : > { %13520 = vmatprep.mubr.msk.bf16.mxu0 %vm631_vm1, %v21332_v5 }
 0x124   : > { %13521 = vmatmul.mubr.msk.bf16.gmra.mrb[20].mxu0 %vm631_vm1, %v21333_v12 }
 0x125   : > { %13524 = vmatprep.mubr.msk.bf16.mxu0 %vm631_vm1, %v21334_v13 }
 0x12c   : > { %13525 = vmatmul.mubr.msk.bf16.gmra.mrb[24].mxu0 %vm631_vm1, %v21335_v17 }
 0x12d   : > { %13528 = vmatprep.mubr.msk.bf16.mxu0 %vm631_vm1, %v21336_v18 }
 0x134   : > { %13529 = vmatmul.mubr.msk.bf16.gmra.mrb[28].mxu0 %vm631_vm1, %v16203_v22 }
 0x135   : > { %13534 = vmatprep.mubr.msk.bf16.mxu0 %vm631_vm1, %v21337_v23  ;;  %v16534_v23 = vld [vmem:[%s21169_s15 + $0x10] sm:$0xf] }
 0x136   : > { %21354 = vst [vmem:[#allocation23_spill] sm:$0xff] %v16534_v23  ;;  %15198 = vmatprep.subr.msk.bf16.mxu1 %vm3503_vm6, %v16534_v23 }
 0x13c   : > { %13535 = vmatmul.mubr.msk.bf16.vlgmr.msra.gmra.mrb[0].mxu0 %vm631_vm1, %v21338_v6 }
 0x13d   : > { %13567 = vmatpush3.bf16.msra.mxu0 %v2316_v26  ;;  %13538 = vmatprep.mubr.msk.bf16.mxu0 %vm631_vm1, %v21339_v7  ;;  %v16540_v26 = vsel %vm3503_vm6, %v16534_v23, 0 }
 0x13e   : > { %15190 = vmatprep.subr.msk.bf16.mxu0 %vm1144_vm0, %v900_v55  ;;  %21355 = vst [vmem:[#allocation24_spill] sm:$0xff] %v16540_v26  ;;  %14383 = vmatpush3.bf16.msra.mxu1 %v16540_v26  ;;  %v16546_v55 = vld [vmem:[%s21169_s15 + $0x14] sm:$0xf] }
 0x13f   : > { %15199 = vmatprep.subr.msk.bf16.mxu1 %vm3503_vm6, %v16546_v55 }
 0x144   : > { %13539 = vmatmul.mubr.msk.bf16.gmra.mrb[4].mxu0 %vm631_vm1, %v21340_v29 }
 0x145   : > { %13542 = vmatprep.mubr.msk.bf16.mxu0 %vm631_vm1, %v21341_v34 }
 0x14c   : > { %13543 = vmatmul.mubr.msk.bf16.gmra.mrb[8].mxu0 %vm631_vm1, %v21342_v50 }
 0x14d   : > { %13546 = vmatprep.mubr.msk.bf16.mxu0 %vm631_vm1, %v21343_v3 }
 0x154   : > { %13547 = vmatmul.mubr.msk.bf16.gmra.mrb[12].mxu0 %vm631_vm1, %v21344_v8 }
 0x155   : > { %13550 = vmatprep.mubr.msk.bf16.mxu0 %vm631_vm1, %v21345_v43 }
 0x15c   : > { %13551 = vmatmul.mubr.msk.bf16.gmra.mrb[16].mxu0 %vm631_vm1, %v21346_v51 }
 0x15d   : > { %13554 = vmatprep.mubr.msk.bf16.mxu0 %vm631_vm1, %v21347_v36 }
 0x164   : > { %13555 = vmatmul.mubr.msk.bf16.gmra.mrb[20].mxu0 %vm631_vm1, %v21348_v37 }
 0x165   : > { %13558 = vmatprep.mubr.msk.bf16.mxu0 %vm631_vm1, %v21349_v41 }
 0x16c   : > { %13559 = vmatmul.mubr.msk.bf16.gmra.mrb[24].mxu0 %vm631_vm1, %v21350_v40 }
 0x16d   : > { %13562 = vmatprep.mubr.msk.bf16.mxu0 %vm631_vm1, %v21351_v46 }
 0x174   : > { %13563 = vmatmul.mubr.msk.bf16.gmra.mrb[28].mxu0 %vm631_vm1, %v16244_v25 }
 0x175   : > { %13568 = vmatprep.mubr.msk.bf16.mxu0 %vm631_vm1, %v16034_v27  ;;  %v2304_v27 = vrot.slane %v888_v20, 2  ;;  %v902_v20 = vld [vmem:[%s21298_s2 + $0x10] sm:$0x3] }
 0x177   : > { %v2306_v56 = vsel %vm1521_vm4, %v2304_v27, %v2305_v11 }
 0x178   : > { %v16285_v48 = vpack.c.bf16 %v2308_v58, %v2306_v56 }
 0x17c   : > { %13569 = vmatmul.mubr.msk.bf16.vlgmr.msra.gmra.mrb[0].mxu0 %vm631_vm1, %v16036_v62 }
 0x17d   : > { %13601 = vmatpush3.bf16.msra.mxu0 %v2516_v19  ;;  %13572 = vmatprep.mubr.msk.bf16.mxu0 %vm631_vm1, %v16060_v31 }
 0x17e   : > { %15191 = vmatprep.subr.msk.bf16.mxu0 %vm1144_vm0, %v901_v35 }
 0x184   : > { %13573 = vmatmul.mubr.msk.bf16.gmra.mrb[4].mxu0 %vm631_vm1, %v16062_v33 }
 0x185   : > { %13576 = vmatprep.mubr.msk.bf16.mxu0 %vm631_vm1, %v16078_v53 }
 0x18c   : > { %13577 = vmatmul.mubr.msk.bf16.gmra.mrb[8].mxu0 %vm631_vm1, %v16080_v45 }
 0x18d   : > { %13580 = vmatprep.mubr.msk.bf16.mxu0 %vm631_vm1, %v16096_v30 }
 0x194   : > { %13581 = vmatmul.mubr.msk.bf16.gmra.mrb[12].mxu0 %vm631_vm1, %v16098_v15 }
 0x195   : > { %13584 = vmatprep.mubr.msk.bf16.mxu0 %vm631_vm1, %v16114_v1 }
 0x19c   : > { %13585 = vmatmul.mubr.msk.bf16.gmra.mrb[16].mxu0 %vm631_vm1, %v16116_v14 }
 0x19d   : > { %13588 = vmatprep.mubr.msk.bf16.mxu0 %vm631_vm1, %v16132_v52 }
 0x1a4   : > { %13589 = vmatmul.mubr.msk.bf16.gmra.mrb[20].mxu0 %vm631_vm1, %v16134_v32 }
 0x1a5   : > { %13592 = vmatprep.mubr.msk.bf16.mxu0 %vm631_vm1, %v16150_v61 }
 0x1ac   : > { %13593 = vmatmul.mubr.msk.bf16.gmra.mrb[24].mxu0 %vm631_vm1, %v16152_v42 }
 0x1ad   : > { %13596 = vmatprep.mubr.msk.bf16.mxu0 %vm631_vm1, %v16163_v49 }
 0x1b4   : > { %13597 = vmatmul.mubr.msk.bf16.gmra.mrb[28].mxu0 %vm631_vm1, %v16285_v48 }
 0x1b5   : > { %13602 = vmatprep.mubr.msk.bf16.mxu0 %vm631_vm1, %v15927_v60  ;;  %v16324_v60 = vld [vmem:[#allocation2 + $0x198] sm:$0xff] }
 0x1bc   : > { %13603 = vmatmul.mubr.msk.bf16.vlgmr.msra.gmra.mrb[0].mxu0 %vm631_vm1, %v15941_v9  ;;  %v16326_v9 = vld [vmem:[#allocation2 + $0x1a0] sm:$0xff] }
 0x1bd   : > { %13635 = vmatpush3.bf16.msra.mxu0 %v2726_v54  ;;  %13606 = vmatprep.mubr.msk.bf16.mxu0 %vm631_vm1, %v15945_v10  ;;  %v2511_v10 = vpack.c.bf16 %v16326_v9, %v16324_v60 }
 0x1be   : > { %15192 = vmatprep.subr.msk.bf16.mxu0 %vm1144_vm0, %v902_v20 }
 0x1c4   : > { %13607 = vmatmul.mubr.msk.bf16.gmra.mrb[4].mxu0 %vm631_vm1, %v15953_v21  ;;  %v21352_v21 = vmov 0.0  }
 0x1c5   : > { %13610 = vmatprep.mubr.msk.bf16.mxu0 %vm631_vm1, %v15957_v4  ;;  %695 = vst.msk [vmem:[#allocation3 + $0x30] sm:$0xff] %vm687_vm5, %v21352_v21  ;;  %696 = vst.msk [vmem:[#allocation3 + $0x38] sm:$0xff] %vm687_vm5, %v21352_v21  ;;  %v2933_v4 = vsel %vm1144_vm0, %v902_v20, 0 }
 0x1c6   : > { %688 = vst.msk [vmem:[#allocation3] sm:$0xff] %vm687_vm5, %v21352_v21  ;;  %689 = vst.msk [vmem:[#allocation3 + $0x8] sm:$0xff] %vm687_vm5, %v21352_v21 }
 0x1c7   : > { %692 = vst.msk [vmem:[#allocation3 + $0x18] sm:$0xff] %vm687_vm5, %v21352_v21  ;;  %693 = vst.msk [vmem:[#allocation3 + $0x20] sm:$0xff] %vm687_vm5, %v21352_v21 }
 0x1c8   : > { %698 = vst.msk [vmem:[#allocation3 + $0x48] sm:$0xff] %vm687_vm5, %v21352_v21  ;;  %699 = vst.msk [vmem:[#allocation3 + $0x50] sm:$0xff] %vm687_vm5, %v21352_v21 }
 0x1c9   : > { %701 = vst.msk [vmem:[#allocation3 + $0x60] sm:$0xff] %vm687_vm5, %v21352_v21  ;;  %702 = vst.msk [vmem:[#allocation3 + $0x68] sm:$0xff] %vm687_vm5, %v21352_v21 }
 0x1ca   : > { %704 = vst.msk [vmem:[#allocation3 + $0x78] sm:$0xff] %vm687_vm5, %v21352_v21  ;;  %705 = vst.msk [vmem:[#allocation3 + $0x80] sm:$0xff] %vm687_vm5, %v21352_v21 }
 0x1cb   : > { %707 = vst.msk [vmem:[#allocation3 + $0x90] sm:$0xff] %vm687_vm5, %v21352_v21  ;;  %708 = vst.msk [vmem:[#allocation3 + $0x98] sm:$0xff] %vm687_vm5, %v21352_v21 }
 0x1cc   : > { %13611 = vmatmul.mubr.msk.bf16.gmra.mrb[8].mxu0 %vm631_vm1, %v15965_v44  ;;  %710 = vst.msk [vmem:[#allocation3 + $0xa8] sm:$0xff] %vm687_vm5, %v21352_v21  ;;  %711 = vst.msk [vmem:[#allocation3 + $0xb0] sm:$0xff] %vm687_vm5, %v21352_v21  ;;  %v3255_v44 = vld [vmem:[%s21169_s15 + $0x4] sm:$0xf] }
 0x1cd   : > { %13614 = vmatprep.mubr.msk.bf16.mxu0 %vm631_vm1, %v21329_v24  ;;  %713 = vst.msk [vmem:[#allocation3 + $0xc0] sm:$0xff] %vm687_vm5, %v21352_v21  ;;  %714 = vst.msk [vmem:[#allocation3 + $0xc8] sm:$0xff] %vm687_vm5, %v21352_v21  ;;  %v893_v24 = vld [vmem:[#allocation2 + $0x1a8] sm:$0x3] }
 0x1ce   : > { %716 = vst.msk [vmem:[#allocation3 + $0xd8] sm:$0xff] %vm687_vm5, %v21352_v21  ;;  %717 = vst.msk [vmem:[#allocation3 + $0xe0] sm:$0xff] %vm687_vm5, %v21352_v21 }
 0x1cf   : > { %719 = vst.msk [vmem:[#allocation3 + $0xf0] sm:$0xff] %vm687_vm5, %v21352_v21  ;;  %720 = vst.msk [vmem:[#allocation3 + $0xf8] sm:$0xff] %vm687_vm5, %v21352_v21 }
 0x1d0   : > { %722 = vst.msk [vmem:[#allocation3 + $0x108] sm:$0xff] %vm687_vm5, %v21352_v21  ;;  %723 = vst.msk [vmem:[#allocation3 + $0x110] sm:$0xff] %vm687_vm5, %v21352_v21 }
 0x1d1   : > { %725 = vst.msk [vmem:[#allocation3 + $0x120] sm:$0xff] %vm687_vm5, %v21352_v21  ;;  %726 = vst.msk [vmem:[#allocation3 + $0x128] sm:$0xff] %vm687_vm5, %v21352_v21 }
 0x1d2   : > { %728 = vst.msk [vmem:[#allocation3 + $0x138] sm:$0xff] %vm687_vm5, %v21352_v21  ;;  %729 = vst.msk [vmem:[#allocation3 + $0x140] sm:$0xff] %vm687_vm5, %v21352_v21 }
 0x1d3   : > { %731 = vst.msk [vmem:[#allocation3 + $0x150] sm:$0xff] %vm687_vm5, %v21352_v21  ;;  %732 = vst.msk [vmem:[#allocation3 + $0x158] sm:$0xff] %vm687_vm5, %v21352_v21 }
 0x1d4   : > { %13615 = vmatmul.mubr.msk.bf16.gmra.mrb[12].mxu0 %vm631_vm1, %v21330_v59  ;;  %734 = vst.msk [vmem:[#allocation3 + $0x168] sm:$0xff] %vm687_vm5, %v21352_v21  ;;  %735 = vst.msk [vmem:[#allocation3 + $0x170] sm:$0xff] %vm687_vm5, %v21352_v21  ;;  %v2714_v59 = vrot.slane %v16324_v60, 1 }
 0x1d5   : > { %13618 = vmatprep.mubr.msk.bf16.mxu0 %vm631_vm1, %v21331_v0  ;;  %737 = vst.msk [vmem:[#allocation3 + $0x180] sm:$0xff] %vm687_vm5, %v21352_v21  ;;  %738 = vst.msk [vmem:[#allocation3 + $0x188] sm:$0xff] %vm687_vm5, %v21352_v21  ;;  %v2715_v0 = vrot.slane %v16326_v9, 1 }
 0x1d6   : > { %740 = vst.msk [vmem:[#allocation3 + $0x198] sm:$0xff] %vm687_vm5, %v21352_v21  ;;  %741 = vst.msk [vmem:[#allocation3 + $0x1a0] sm:$0xff] %vm687_vm5, %v21352_v21 }
 0x1d7   : > { %697 = vst.msk [vmem:[#allocation3 + $0x40] sm:$0x3] %vm690_vm7, %v21352_v21  ;;  %691 = vst.msk [vmem:[#allocation3 + $0x10] sm:$0x3] %vm690_vm7, %v21352_v21 }
 0x1d8   : > { %694 = vst.msk [vmem:[#allocation3 + $0x28] sm:$0x3] %vm690_vm7, %v21352_v21  ;;  %700 = vst.msk [vmem:[#allocation3 + $0x58] sm:$0x3] %vm690_vm7, %v21352_v21 }
 0x1d9   : > { %703 = vst.msk [vmem:[#allocation3 + $0x70] sm:$0x3] %vm690_vm7, %v21352_v21  ;;  %706 = vst.msk [vmem:[#allocation3 + $0x88] sm:$0x3] %vm690_vm7, %v21352_v21 }
 0x1da   : > { %709 = vst.msk [vmem:[#allocation3 + $0xa0] sm:$0x3] %vm690_vm7, %v21352_v21  ;;  %712 = vst.msk [vmem:[#allocation3 + $0xb8] sm:$0x3] %vm690_vm7, %v21352_v21 }
 0x1db   : > { %715 = vst.msk [vmem:[#allocation3 + $0xd0] sm:$0x3] %vm690_vm7, %v21352_v21  ;;  %718 = vst.msk [vmem:[#allocation3 + $0xe8] sm:$0x3] %vm690_vm7, %v21352_v21 }
 0x1dc   : > { %13619 = vmatmul.mubr.msk.bf16.gmra.mrb[16].mxu0 %vm631_vm1, %v21332_v5  ;;  %v2717_v5 = vrot.slane %v893_v24, 1  ;;  %721 = vst.msk [vmem:[#allocation3 + $0x100] sm:$0x3] %vm690_vm7, %v21352_v21  ;;  %724 = vst.msk [vmem:[#allocation3 + $0x118] sm:$0x3] %vm690_vm7, %v21352_v21 }
 0x1dd   : > { %13622 = vmatprep.mubr.msk.bf16.mxu0 %vm631_vm1, %v21333_v12  ;;  %v2716_v12 = vsel %vm967_vm3, %v2714_v59, %v2715_v0  ;;  %727 = vst.msk [vmem:[#allocation3 + $0x130] sm:$0x3] %vm690_vm7, %v21352_v21  ;;  %730 = vst.msk [vmem:[#allocation3 + $0x148] sm:$0x3] %vm690_vm7, %v21352_v21 }
 0x1de   : > { %733 = vst.msk [vmem:[#allocation3 + $0x160] sm:$0x3] %vm690_vm7, %v21352_v21  ;;  %736 = vst.msk [vmem:[#allocation3 + $0x178] sm:$0x3] %vm690_vm7, %v21352_v21 }
 0x1df   : > { %739 = vst.msk [vmem:[#allocation3 + $0x190] sm:$0x3] %vm690_vm7, %v21352_v21  ;;  %742 = vst.msk [vmem:[#allocation3 + $0x1a8] sm:$0x3] %vm690_vm7, %v21352_v21 }
 0x1e4   : > { %13623 = vmatmul.mubr.msk.bf16.gmra.mrb[20].mxu0 %vm631_vm1, %v21334_v13  ;;  %v2718_v13 = vsel %vm967_vm3, %v2715_v0, %v2717_v5 }
 0x1e5   : > { %13626 = vmatprep.mubr.msk.bf16.mxu0 %vm631_vm1, %v21335_v17  ;;  %v2721_v17 = vpack.c.bf16 %v2718_v13, %v2716_v12  ;;  %v16605_v13 = vld [vmem:[%s21169_s15 + $0x8] sm:$0xf] }
 0x1ec   : > { %13627 = vmatmul.mubr.msk.bf16.gmra.mrb[24].mxu0 %vm631_vm1, %v21336_v18  ;;  %v3505_v18 = vsel %vm3503_vm6, %v3255_v44, 0 }
 0x1ed   : > { %13630 = vmatprep.mubr.msk.bf16.mxu0 %vm631_vm1, %v16203_v22  ;;  %v3254_v22 = vld [vmem:[%s21169_s15] sm:$0xf] }
 0x1f4   : > { %13631 = vmatmul.mubr.msk.bf16.gmra.mrb[28].mxu0 %vm631_vm1, %v2511_v10 }
 0x1f5   : > { %13636 = vmatprep.mubr.msk.bf16.mxu0 %vm631_vm1, %v21338_v6  ;;  %v16553_v6 = vld [vmem:[%s21356_s28] ss:$0 sm:$0xff]  ;;  %s20966_s28 = scalar_lea.vmem %s21174_s20, %s12823_s23 }
 0x1fc   : > { %13637 = vmatmul.mubr.msk.bf16.vlgmr.msra.gmra.mrb[0].mxu0 %vm631_vm1, %v21339_v7 }
 0x1fd   : > { %13669 = vmatpush3.bf16.msra.mxu0 %v2933_v4  ;;  %13640 = vmatprep.mubr.msk.bf16.mxu0 %vm631_vm1, %v21340_v29 }
 0x1fe   : > { %15193 = vmatprep.subr.msk.bf16.mxu0 %vm3503_vm6, %v3255_v44 }
 0x204   : > { %13641 = vmatmul.mubr.msk.bf16.gmra.mrb[4].mxu0 %vm631_vm1, %v21341_v34 }
 0x205   : > { %13644 = vmatprep.mubr.msk.bf16.mxu0 %vm631_vm1, %v21342_v50 }
 0x20c   : > { %13645 = vmatmul.mubr.msk.bf16.gmra.mrb[8].mxu0 %vm631_vm1, %v21343_v3 }
 0x20d   : > { %13648 = vmatprep.mubr.msk.bf16.mxu0 %vm631_vm1, %v21344_v8 }
 0x214   : > { %13649 = vmatmul.mubr.msk.bf16.gmra.mrb[12].mxu0 %vm631_vm1, %v21345_v43 }
 0x215   : > { %13652 = vmatprep.mubr.msk.bf16.mxu0 %vm631_vm1, %v21346_v51 }
 0x21c   : > { %13653 = vmatmul.mubr.msk.bf16.gmra.mrb[16].mxu0 %vm631_vm1, %v21347_v36 }
 0x21d   : > { %13656 = vmatprep.mubr.msk.bf16.mxu0 %vm631_vm1, %v21348_v37 }
 0x224   : > { %13657 = vmatmul.mubr.msk.bf16.gmra.mrb[20].mxu0 %vm631_vm1, %v21349_v41 }
 0x225   : > { %13660 = vmatprep.mubr.msk.bf16.mxu0 %vm631_vm1, %v21350_v40 }
 0x22c   : > { %13661 = vmatmul.mubr.msk.bf16.gmra.mrb[24].mxu0 %vm631_vm1, %v21351_v46 }
 0x22d   : > { %13664 = vmatprep.mubr.msk.bf16.mxu0 %vm631_vm1, %v16244_v25 }
 0x234   : > { %13665 = vmatmul.mubr.msk.bf16.gmra.mrb[28].mxu0 %vm631_vm1, %v2721_v17 }
 0x235   : > { %13670 = vmatprep.mubr.msk.bf16.mxu0 %vm631_vm1, %v16036_v62  ;;  %v2921_v62 = vrot.slane %v16324_v60, 2 }
 0x23c   : > { %13671 = vmatmul.mubr.msk.bf16.vlgmr.msra.gmra.mrb[0].mxu0 %vm631_vm1, %v16060_v31  ;;  %v2922_v31 = vrot.slane %v16326_v9, 2 }
 0x23d   : > { %13674 = vmatprep.mubr.msk.bf16.mxu0 %vm631_vm1, %v16062_v33  ;;  %13703 = vmatpush3.bf16.msra.mxu0 %v3505_v18  ;;  %v2924_v33 = vrot.slane %v893_v24, 2  ;;  %v3717_v24 = vsel %vm3503_vm6, %v3254_v22, 0 }
 0x23e   : > { %15194 = vmatprep.subr.msk.bf16.mxu0 %vm3503_vm6, %v3254_v22 }
 0x244   : > { %13675 = vmatmul.mubr.msk.bf16.gmra.mrb[4].mxu0 %vm631_vm1, %v16078_v53  ;;  %v2923_v53 = vsel %vm1521_vm4, %v2921_v62, %v2922_v31 }
 0x245   : > { %13678 = vmatprep.mubr.msk.bf16.mxu0 %vm631_vm1, %v16080_v45  ;;  %v2925_v45 = vsel %vm1521_vm4, %v2922_v31, %v2924_v33 }
 0x24c   : > { %13679 = vmatmul.mubr.msk.bf16.gmra.mrb[8].mxu0 %vm631_vm1, %v16096_v30  ;;  %v2928_v30 = vpack.c.bf16 %v2925_v45, %v2923_v53 }
 0x24d   : > { %13682 = vmatprep.mubr.msk.bf16.mxu0 %vm631_vm1, %v16098_v15  ;;  %v16515_v15 = vld [vmem:[#allocation3] sm:$0xff] }
 0x254   : > { %13683 = vmatmul.mubr.msk.bf16.gmra.mrb[12].mxu0 %vm631_vm1, %v16114_v1  ;;  %v16517_v1 = vld [vmem:[#allocation3 + $0x8] sm:$0xff] }
 0x255   : > { %13686 = vmatprep.mubr.msk.bf16.mxu0 %vm631_vm1, %v16116_v14  ;;  %v16519_v14 = vld [vmem:[#allocation3 + $0x10] sm:$0x3]  ;;  %v3263_v23 = vpack.c.bf16 %v16517_v1, %v16515_v15 }
 0x256   : > { %21353 = vst [vmem:[#allocation22_spill] sm:$0xff] %v16519_v14 }
 0x25c   : > { %13687 = vmatmul.mubr.msk.bf16.gmra.mrb[16].mxu0 %vm631_vm1, %v16132_v52  ;;  %v3327_v52 = vrot.slane %v16515_v15, 1 }
 0x25d   : > { %13690 = vmatprep.mubr.msk.bf16.mxu0 %vm631_vm1, %v16134_v32  ;;  %v3328_v32 = vrot.slane %v16517_v1, 1 }
 0x264   : > { %13691 = vmatmul.mubr.msk.bf16.gmra.mrb[20].mxu0 %vm631_vm1, %v16150_v61  ;;  %v3330_v61 = vrot.slane %v16519_v14, 1 }
 0x265   : > { %13694 = vmatprep.mubr.msk.bf16.mxu0 %vm631_vm1, %v16152_v42  ;;  %v3329_v42 = vsel %vm967_vm3, %v3327_v52, %v3328_v32 }
 0x26c   : > { %13695 = vmatmul.mubr.msk.bf16.gmra.mrb[24].mxu0 %vm631_vm1, %v16163_v49  ;;  %v3331_v49 = vsel %vm967_vm3, %v3328_v32, %v3330_v61 }
 0x26d   : > { %13698 = vmatprep.mubr.msk.bf16.mxu0 %vm631_vm1, %v16285_v48  ;;  %v3439_v16 = vpack.c.bf16 %v3331_v49, %v3329_v42 }
 0x274   : > { %13699 = vmatmul.mubr.msk.bf16.gmra.mrb[28].mxu0 %vm631_vm1, %v2928_v30 }
 0x275   : > { %13704 = vmatprep.mubr.msk.bf16.mxu0 %vm687_vm5, %v3439_v16 }
 0x30f   : > { %v13672_v7 = vpop.f32.mrb[0].mxu0 }
 0x310   : > { %v3137_v29 = vadd.f32 %v13672_v7, %v16553_v6  ;;  %v2969_v34 = vpop.f32.mrb[1].mxu0 }
 0x311   : > { %v3135_v50 = vadd.f32 %v16553_v6, %v2969_v34  ;;  %v13673_v3 = vpop.f32.mrb[2].mxu0 }
 0x312   : > { %3170 = vst.msk [vmem:[#allocation3 + $0x31] sm:$0xff] %vm687_vm5, %v3137_v29  ;;  %v3138_v8 = vadd.f32 %v13673_v3, %v16553_v6  ;;  %v2972_v43 = vpop.f32.mrb[3].mxu0 }
 0x313   : > { %3168 = vst.msk [vmem:[#allocation3 + $0x19] sm:$0xff] %vm687_vm5, %v3135_v50  ;;  %v3136_v51 = vadd.f32 %v16553_v6, %v2972_v43 }
 0x314   : > { %3171 = vst.msk [vmem:[#allocation3 + $0x39] sm:$0xff] %vm687_vm5, %v3138_v8 }
 0x315   : > { %3169 = vst.msk [vmem:[#allocation3 + $0x21] sm:$0xff] %vm687_vm5, %v3136_v51 }
 0x317   : > { %v13676_v36 = vpop.f32.mrb[4].mxu0 }
 0x318   : > { %v3141_v37 = vadd.f32 %v13676_v36, %v16553_v6  ;;  %v2985_v41 = vpop.f32.mrb[5].mxu0 }
 0x319   : > { %v3139_v2 = vadd.f32 %v16553_v6, %v2985_v41  ;;  %v13677_v28 = vpop.f32.mrb[6].mxu0  ;;  %v16565_v38 = vld [vmem:[#allocation3 + $0x30] sm:$0xff] }
 0x31a   : > { %3174 = vst.msk [vmem:[#allocation3 + $0x61] sm:$0xff] %vm687_vm5, %v3141_v37  ;;  %v3142_v39 = vadd.f32 %v13677_v28, %v16553_v6  ;;  %v2988_v40 = vpop.f32.mrb[7].mxu0  ;;  %v16569_v46 = vld [vmem:[#allocation3 + $0x18] sm:$0xff]  ;;  %v3337_v27 = vrot.slane %v16565_v38, 1 }
 0x31b   : > { %3172 = vst.msk [vmem:[#allocation3 + $0x49] sm:$0xff] %vm687_vm5, %v3139_v2  ;;  %v3140_v47 = vadd.f32 %v16553_v6, %v2988_v40  ;;  %v16573_v57 = vld [vmem:[#allocation3 + $0x38] sm:$0xff]  ;;  %v16575_v25 = vld [vmem:[#allocation3 + $0x40] sm:$0x3]  ;;  %v3332_v56 = vrot.slane %v16569_v46, 1  ;;  %v3885_v26 = vrot.slane %v16569_v46, 2 }
 0x31c   : > { %3175 = vst.msk [vmem:[#allocation3 + $0x69] sm:$0xff] %vm687_vm5, %v3142_v39  ;;  %v16578_v19 = vld [vmem:[#allocation3 + $0x20] sm:$0xff]  ;;  %v16580_v35 = vld [vmem:[#allocation3 + $0x28] sm:$0x3]  ;;  %v3338_v11 = vrot.slane %v16573_v57, 1  ;;  %v3340_v63 = vrot.slane %v16575_v25, 1 }
 0x31d   : > { %3173 = vst.msk [vmem:[#allocation3 + $0x51] sm:$0xff] %vm687_vm5, %v3140_v47  ;;  %v3333_v58 = vrot.slane %v16578_v19, 1  ;;  %v3335_v48 = vrot.slane %v16580_v35, 1 }
 0x31e   : > { %v3339_v54 = vsel %vm967_vm3, %v3337_v27, %v3338_v11  ;;  %v3341_v20 = vsel %vm967_vm3, %v3338_v11, %v3340_v63 }
 0x31f   : > { %v13680_v60 = vpop.f32.mrb[8].mxu0  ;;  %v3334_v9 = vsel %vm967_vm3, %v3332_v56, %v3333_v58  ;;  %v3336_v10 = vsel %vm967_vm3, %v3333_v58, %v3335_v48  ;;  %v16598_v5 = vpack.c.bf16 %v3341_v20, %v3339_v54 }
 0x320   : > { %v3145_v21 = vadd.f32 %v13680_v60, %v16553_v6  ;;  %v3001_v4 = vpop.f32.mrb[9].mxu0  ;;  %v16594_v44 = vpack.c.bf16 %v3336_v10, %v3334_v9 }
 0x321   : > { %v3143_v59 = vadd.f32 %v16553_v6, %v3001_v4  ;;  %v13681_v0 = vpop.f32.mrb[10].mxu0  ;;  %21358 = vst [vmem:[#allocation26_spill] sm:$0xff] %v16598_v5  ;;  %v16600_v12 = vld [vmem:[#allocation3 + $0x60] sm:$0xff] }
 0x322   : > { %21357 = vst [vmem:[#allocation25_spill] sm:$0xff] %v16594_v44  ;;  %3178 = vst.msk [vmem:[#allocation3 + $0x91] sm:$0xff] %vm687_vm5, %v3145_v21  ;;  %v3146_v17 = vadd.f32 %v13681_v0, %v16553_v6  ;;  %v3004_v18 = vpop.f32.mrb[11].mxu0  ;;  %13705 = vmatmul.mubr.msk.bf16.vlgmr.msra.gmra.mrb[32].mxu0 %vm687_vm5, %v16594_v44  ;;  %v16611_v62 = vld [vmem:[#allocation3 + $0x48] sm:$0xff]  ;;  %v3347_v52 = vrot.slane %v16600_v12, 1 }
 0x323   : > { %3176 = vst.msk [vmem:[#allocation3 + $0x79] sm:$0xff] %vm687_vm5, %v3143_v59  ;;  %v3144_v31 = vadd.f32 %v16553_v6, %v3004_v18  ;;  %13737 = vmatpush3.bf16.msra.mxu0 %v3717_v24  ;;  %13708 = vmatprep.mubr.msk.bf16.mxu0 %vm687_vm5, %v16598_v5  ;;  %v16617_v33 = vld [vmem:[#allocation3 + $0x68] sm:$0xff]  ;;  %v16619_v53 = vld [vmem:[#allocation3 + $0x70] sm:$0x3]  ;;  %v3342_v42 = vrot.slane %v16611_v62, 1 }
 0x324   : > { %3179 = vst.msk [vmem:[#allocation3 + $0x99] sm:$0xff] %vm687_vm5, %v3146_v17  ;;  %v16622_v45 = vld [vmem:[#allocation3 + $0x50] sm:$0xff]  ;;  %v16624_v30 = vld [vmem:[#allocation3 + $0x58] sm:$0x3]  ;;  %v3348_v32 = vrot.slane %v16617_v33, 1  ;;  %v3350_v61 = vrot.slane %v16619_v53, 1  ;;  %15195 = vmatprep.subr.msk.bf16.mxu0 %vm3503_vm6, %v16605_v13 }
 0x325   : > { %3177 = vst.msk [vmem:[#allocation3 + $0x81] sm:$0xff] %vm687_vm5, %v3144_v31  ;;  %v3343_v49 = vrot.slane %v16622_v45, 1  ;;  %v3345_v16 = vrot.slane %v16624_v30, 1 }
 0x326   : > { %v3349_v22 = vsel %vm967_vm3, %v3347_v52, %v3348_v32  ;;  %v3351_v7 = vsel %vm967_vm3, %v3348_v32, %v3350_v61 }
 0x327   : > { %v13684_v29 = vpop.f32.mrb[12].mxu0  ;;  %v3344_v34 = vsel %vm967_vm3, %v3342_v42, %v3343_v49  ;;  %v3346_v50 = vsel %vm967_vm3, %v3343_v49, %v3345_v16  ;;  %v16643_v37 = vpack.c.bf16 %v3351_v7, %v3349_v22 }
 0x328   : > { %v3149_v3 = vadd.f32 %v13684_v29, %v16553_v6  ;;  %v3017_v8 = vpop.f32.mrb[13].mxu0  ;;  %v16640_v43 = vpack.c.bf16 %v3346_v50, %v3344_v34 }
 0x329   : > { %v3147_v51 = vadd.f32 %v16553_v6, %v3017_v8  ;;  %v13685_v36 = vpop.f32.mrb[14].mxu0  ;;  %21360 = vst [vmem:[#allocation28_spill] sm:$0xff] %v16643_v37  ;;  %v16645_v41 = vld [vmem:[#allocation3 + $0x90] sm:$0xff] }
 0x32a   : > { %21359 = vst [vmem:[#allocation27_spill] sm:$0xff] %v16640_v43  ;;  %3182 = vst.msk [vmem:[#allocation3 + $0xc1] sm:$0xff] %vm687_vm5, %v3149_v3  ;;  %v3150_v2 = vadd.f32 %v13685_v36, %v16553_v6  ;;  %v3020_v28 = vpop.f32.mrb[15].mxu0  ;;  %13709 = vmatmul.mubr.msk.bf16.gmra.mrb[36].mxu0 %vm687_vm5, %v16640_v43  ;;  %v16651_v39 = vld [vmem:[#allocation3 + $0x78] sm:$0xff]  ;;  %v3357_v56 = vrot.slane %v16645_v41, 1 }
 0x32b   : > { %3180 = vst.msk [vmem:[#allocation3 + $0xa9] sm:$0xff] %vm687_vm5, %v3147_v51  ;;  %v3148_v40 = vadd.f32 %v16553_v6, %v3020_v28  ;;  %13712 = vmatprep.mubr.msk.bf16.mxu0 %vm687_vm5, %v16643_v37  ;;  %v16657_v47 = vld [vmem:[#allocation3 + $0x98] sm:$0xff]  ;;  %v16659_v27 = vld [vmem:[#allocation3 + $0xa0] sm:$0x3]  ;;  %v3352_v54 = vrot.slane %v16651_v39, 1 }
 0x32c   : > { %3183 = vst.msk [vmem:[#allocation3 + $0xc9] sm:$0xff] %vm687_vm5, %v3150_v2  ;;  %v16662_v11 = vld [vmem:[#allocation3 + $0x80] sm:$0xff]  ;;  %v16664_v63 = vld [vmem:[#allocation3 + $0x88] sm:$0x3]  ;;  %v3358_v58 = vrot.slane %v16657_v47, 1  ;;  %v3360_v48 = vrot.slane %v16659_v27, 1 }
 0x32d   : > { %3181 = vst.msk [vmem:[#allocation3 + $0xb1] sm:$0xff] %vm687_vm5, %v3148_v40  ;;  %v3353_v20 = vrot.slane %v16662_v11, 1  ;;  %v3355_v60 = vrot.slane %v16664_v63, 1 }
 0x32e   : > { %v3359_v9 = vsel %vm967_vm3, %v3357_v56, %v3358_v58  ;;  %v3361_v10 = vsel %vm967_vm3, %v3358_v58, %v3360_v48 }
 0x32f   : > { %v13688_v21 = vpop.f32.mrb[16].mxu0  ;;  %v3354_v4 = vsel %vm967_vm3, %v3352_v54, %v3353_v20  ;;  %v3356_v24 = vsel %vm967_vm3, %v3353_v20, %v3355_v60  ;;  %v16681_v52 = vpack.c.bf16 %v3361_v10, %v3359_v9 }
 0x330   : > { %v3153_v59 = vadd.f32 %v13688_v21, %v16553_v6  ;;  %v3033_v0 = vpop.f32.mrb[17].mxu0  ;;  %v16678_v17 = vpack.c.bf16 %v3356_v24, %v3354_v4 }
 0x331   : > { %v3151_v18 = vadd.f32 %v16553_v6, %v3033_v0  ;;  %v13689_v31 = vpop.f32.mrb[18].mxu0  ;;  %21362 = vst [vmem:[#allocation7_spill] sm:$0xff] %v16681_v52  ;;  %v16683_v32 = vld [vmem:[#allocation3 + $0xc0] sm:$0xff] }
 0x332   : > { %21361 = vst [vmem:[#allocation29_spill] sm:$0xff] %v16678_v17  ;;  %3186 = vst.msk [vmem:[#allocation3 + $0xf1] sm:$0xff] %vm687_vm5, %v3153_v59  ;;  %v3154_v61 = vadd.f32 %v13689_v31, %v16553_v6  ;;  %v3036_v42 = vpop.f32.mrb[19].mxu0  ;;  %13713 = vmatmul.mubr.msk.bf16.gmra.mrb[40].mxu0 %vm687_vm5, %v16678_v17  ;;  %v16689_v49 = vld [vmem:[#allocation3 + $0xa8] sm:$0xff]  ;;  %v3367_v50 = vrot.slane %v16683_v32, 1 }
 0x333   : > { %3184 = vst.msk [vmem:[#allocation3 + $0xd9] sm:$0xff] %vm687_vm5, %v3151_v18  ;;  %v3152_v16 = vadd.f32 %v16553_v6, %v3036_v42  ;;  %13716 = vmatprep.mubr.msk.bf16.mxu0 %vm687_vm5, %v16681_v52  ;;  %v16695_v22 = vld [vmem:[#allocation3 + $0xc8] sm:$0xff]  ;;  %v16697_v7 = vld [vmem:[#allocation3 + $0xd0] sm:$0x3]  ;;  %v3362_v51 = vrot.slane %v16689_v49, 1 }
 0x334   : > { %3187 = vst.msk [vmem:[#allocation3 + $0xf9] sm:$0xff] %vm687_vm5, %v3154_v61  ;;  %v16700_v29 = vld [vmem:[#allocation3 + $0xb0] sm:$0xff]  ;;  %v16702_v34 = vld [vmem:[#allocation3 + $0xb8] sm:$0x3]  ;;  %v3368_v3 = vrot.slane %v16695_v22, 1  ;;  %v3370_v8 = vrot.slane %v16697_v7, 1 }
 0x335   : > { %3185 = vst.msk [vmem:[#allocation3 + $0xe1] sm:$0xff] %vm687_vm5, %v3152_v16  ;;  %v3363_v36 = vrot.slane %v16700_v29, 1  ;;  %v3365_v2 = vrot.slane %v16702_v34, 1 }
 0x336   : > { %v3369_v28 = vsel %vm967_vm3, %v3367_v50, %v3368_v3  ;;  %v3371_v40 = vsel %vm967_vm3, %v3368_v3, %v3370_v8 }
 0x337   : > { %v13692_v56 = vpop.f32.mrb[20].mxu0  ;;  %v3364_v58 = vsel %vm967_vm3, %v3362_v51, %v3363_v36  ;;  %v3366_v48 = vsel %vm967_vm3, %v3363_v36, %v3365_v2  ;;  %v16719_v21 = vpack.c.bf16 %v3371_v40, %v3369_v28 }
 0x338   : > { %v3157_v54 = vadd.f32 %v13692_v56, %v16553_v6  ;;  %v3049_v20 = vpop.f32.mrb[21].mxu0  ;;  %v16716_v60 = vpack.c.bf16 %v3366_v48, %v3364_v58 }
 0x339   : > { %v3155_v9 = vadd.f32 %v16553_v6, %v3049_v20  ;;  %v13693_v10 = vpop.f32.mrb[22].mxu0  ;;  %21364 = vst [vmem:[#allocation9_spill] sm:$0xff] %v16719_v21  ;;  %v16721_v4 = vld [vmem:[#allocation3 + $0xf0] sm:$0xff] }
 0x33a   : > { %21363 = vst [vmem:[#allocation8_spill] sm:$0xff] %v16716_v60  ;;  %3190 = vst.msk [vmem:[#allocation3 + $0x121] sm:$0xff] %vm687_vm5, %v3157_v54  ;;  %v3158_v24 = vadd.f32 %v13693_v10, %v16553_v6  ;;  %v3052_v59 = vpop.f32.mrb[23].mxu0  ;;  %13717 = vmatmul.mubr.msk.bf16.gmra.mrb[44].mxu0 %vm687_vm5, %v16716_v60  ;;  %v16727_v0 = vld [vmem:[#allocation3 + $0xd8] sm:$0xff]  ;;  %v3377_v50 = vrot.slane %v16721_v4, 1 }
 0x33b   : > { %3188 = vst.msk [vmem:[#allocation3 + $0x109] sm:$0xff] %vm687_vm5, %v3155_v9  ;;  %v3156_v18 = vadd.f32 %v16553_v6, %v3052_v59  ;;  %13720 = vmatprep.mubr.msk.bf16.mxu0 %vm687_vm5, %v16719_v21  ;;  %v16733_v31 = vld [vmem:[#allocation3 + $0xf8] sm:$0xff]  ;;  %v16735_v61 = vld [vmem:[#allocation3 + $0x100] sm:$0x3]  ;;  %v3372_v51 = vrot.slane %v16727_v0, 1 }
 0x33c   : > { %3191 = vst.msk [vmem:[#allocation3 + $0x129] sm:$0xff] %vm687_vm5, %v3158_v24  ;;  %v16738_v42 = vld [vmem:[#allocation3 + $0xe0] sm:$0xff]  ;;  %v16740_v16 = vld [vmem:[#allocation3 + $0xe8] sm:$0x3]  ;;  %v3378_v3 = vrot.slane %v16733_v31, 1  ;;  %v3380_v8 = vrot.slane %v16735_v61, 1 }
 0x33d   : > { %3189 = vst.msk [vmem:[#allocation3 + $0x111] sm:$0xff] %vm687_vm5, %v3156_v18  ;;  %v3373_v36 = vrot.slane %v16738_v42, 1  ;;  %v3375_v2 = vrot.slane %v16740_v16, 1 }
 0x33e   : > { %v3379_v28 = vsel %vm967_vm3, %v3377_v50, %v3378_v3  ;;  %v3381_v40 = vsel %vm967_vm3, %v3378_v3, %v3380_v8  ;;  %v4674_v50 = vsel %vm3503_vm6, %v16546_v55, 0 }
 0x33f   : > { %v13696_v56 = vpop.f32.mrb[24].mxu0  ;;  %v3374_v58 = vsel %vm967_vm3, %v3372_v51, %v3373_v36  ;;  %v3376_v48 = vsel %vm967_vm3, %v3373_v36, %v3375_v2  ;;  %v16757_v59 = vpack.c.bf16 %v3381_v40, %v3379_v28  ;;  %v16774_v36 = vld [vmem:[%s21169_s15 + $0x18] sm:$0xf] }
 0x340   : > { %v3161_v54 = vadd.f32 %v13696_v56, %v16553_v6  ;;  %v3065_v20 = vpop.f32.mrb[25].mxu0  ;;  %v16754_v9 = vpack.c.bf16 %v3376_v48, %v3374_v58 }
 0x341   : > { %v3159_v10 = vadd.f32 %v16553_v6, %v3065_v20  ;;  %v13697_v24 = vpop.f32.mrb[26].mxu0  ;;  %21366 = vst [vmem:[#allocation11_spill] sm:$0xff] %v16757_v59  ;;  %v16759_v18 = vld [vmem:[#allocation3 + $0x120] sm:$0xff] }
 0x342   : > { %21365 = vst [vmem:[#allocation10_spill] sm:$0xff] %v16754_v9  ;;  %3194 = vst.msk [vmem:[#allocation3 + $0x151] sm:$0xff] %vm687_vm5, %v3161_v54  ;;  %v3162_v3 = vadd.f32 %v13697_v24, %v16553_v6  ;;  %v3068_v8 = vpop.f32.mrb[27].mxu0  ;;  %13721 = vmatmul.mubr.msk.bf16.gmra.mrb[48].mxu0 %vm687_vm5, %v16754_v9  ;;  %13856 = vmatprep.mubr.msk.bf16.mxu1 %vm687_vm5, %v16754_v9  ;;  %v16769_v51 = vld [vmem:[#allocation3 + $0x108] sm:$0xff]  ;;  %v3387_v58 = vrot.slane %v16759_v18, 1 }
 0x343   : > { %3192 = vst.msk [vmem:[#allocation3 + $0x139] sm:$0xff] %vm687_vm5, %v3159_v10  ;;  %v3160_v55 = vadd.f32 %v16553_v6, %v3068_v8  ;;  %13724 = vmatprep.mubr.msk.bf16.mxu0 %vm687_vm5, %v16757_v59  ;;  %13857 = vmatmul.mubr.msk.bf16.vlgmr.msra.gmra.mrb[0].mxu1 %vm687_vm5, %v16757_v59  ;;  %v16782_v2 = vld [vmem:[#allocation3 + $0x128] sm:$0xff]  ;;  %v16784_v28 = vld [vmem:[#allocation3 + $0x130] sm:$0x3]  ;;  %v3382_v20 = vrot.slane %v16769_v51, 1 }
 0x344   : > { %3195 = vst.msk [vmem:[#allocation3 + $0x159] sm:$0xff] %vm687_vm5, %v3162_v3  ;;  %v16787_v40 = vld [vmem:[#allocation3 + $0x110] sm:$0xff]  ;;  %v16789_v56 = vld [vmem:[#allocation3 + $0x118] sm:$0x3]  ;;  %v3388_v48 = vrot.slane %v16782_v2, 1  ;;  %v3390_v54 = vrot.slane %v16784_v28, 1  ;;  %13873 = vmatpush3.bf16.msra.mxu1 %v4674_v50 }
 0x345   : > { %3193 = vst.msk [vmem:[#allocation3 + $0x141] sm:$0xff] %vm687_vm5, %v3160_v55  ;;  %v3383_v10 = vrot.slane %v16787_v40, 1  ;;  %v3385_v24 = vrot.slane %v16789_v56, 1  ;;  %15200 = vmatprep.subr.msk.bf16.mxu1 %vm3503_vm6, %v16774_v36 }
 0x346   : > { %v3389_v3 = vsel %vm967_vm3, %v3387_v58, %v3388_v48  ;;  %v3391_v8 = vsel %vm967_vm3, %v3388_v48, %v3390_v54 }
 0x347   : > { %v13700_v44 = vpop.f32.mrb[28].mxu0  ;;  %v3384_v59 = vsel %vm967_vm3, %v3382_v20, %v3383_v10  ;;  %v3386_v50 = vsel %vm967_vm3, %v3383_v10, %v3385_v24  ;;  %v16808_v17 = vpack.c.bf16 %v3391_v8, %v3389_v3 }
 0x348   : > { %v3165_v55 = vadd.f32 %v13700_v44, %v16553_v6  ;;  %v3081_v9 = vpop.f32.mrb[29].mxu0  ;;  %v16805_v21 = vpack.c.bf16 %v3386_v50, %v3384_v59 }
 0x349   : > { %v3163_v60 = vadd.f32 %v16553_v6, %v3081_v9  ;;  %v13701_v52 = vpop.f32.mrb[30].mxu0  ;;  %21368 = vst [vmem:[#allocation13_spill] sm:$0xff] %v16808_v17  ;;  %v16810_v37 = vld [vmem:[#allocation3 + $0x150] sm:$0xff] }
 0x34a   : > { %21367 = vst [vmem:[#allocation12_spill] sm:$0xff] %v16805_v21  ;;  %21369 = vst [vmem:[#allocation14_spill] sm:$0xff] %v16810_v37  ;;  %v3166_v58 = vadd.f32 %v13701_v52, %v16553_v6  ;;  %v3084_v48 = vpop.f32.mrb[31].mxu0  ;;  %13725 = vmatmul.mubr.msk.bf16.gmra.mrb[52].mxu0 %vm687_vm5, %v16805_v21  ;;  %13860 = vmatprep.mubr.msk.bf16.mxu1 %vm687_vm5, %v16805_v21  ;;  %v16818_v44 = vld [vmem:[#allocation3 + $0x138] sm:$0xff] }
 0x34b   : > { %3198 = vst.msk [vmem:[#allocation3 + $0x181] sm:$0xff] %vm687_vm5, %v3165_v55  ;;  %3196 = vst.msk [vmem:[#allocation3 + $0x169] sm:$0xff] %vm687_vm5, %v3163_v60  ;;  %v3164_v9 = vadd.f32 %v16553_v6, %v3084_v48  ;;  %13728 = vmatprep.mubr.msk.bf16.mxu0 %vm687_vm5, %v16808_v17  ;;  %13861 = vmatmul.mubr.msk.bf16.gmra.mrb[4].mxu1 %vm687_vm5, %v16808_v17  ;;  %v16826_v52 = vld [vmem:[#allocation3 + $0x158] sm:$0xff]  ;;  %v16828_v59 = vld [vmem:[#allocation3 + $0x160] sm:$0x3]  ;;  %v3397_v60 = vrot.slane %v16810_v37, 1 }
 0x34c   : > { %3199 = vst.msk [vmem:[#allocation3 + $0x189] sm:$0xff] %vm687_vm5, %v3166_v58  ;;  %v16831_v54 = vld [vmem:[#allocation3 + $0x140] sm:$0xff]  ;;  %v16833_v20 = vld [vmem:[#allocation3 + $0x148] sm:$0x3]  ;;  %v3398_v6 = vrot.slane %v16826_v52, 1  ;;  %v3400_v10 = vrot.slane %v16828_v59, 1 }
 0x34d   : > { %3197 = vst.msk [vmem:[#allocation3 + $0x171] sm:$0xff] %vm687_vm5, %v3164_v9  ;;  %v3392_v24 = vrot.slane %v16818_v44, 1  ;;  %v3393_v3 = vrot.slane %v16831_v54, 1  ;;  %v3395_v8 = vrot.slane %v16833_v20, 1 }
 0x34e   : > { %v3399_v50 = vsel %vm967_vm3, %v3397_v60, %v3398_v6  ;;  %v3401_v55 = vsel %vm967_vm3, %v3398_v6, %v3400_v10  ;;  %v3886_v10 = vrot.slane %v16578_v19, 2 }
 0x34f   : > { %v3394_v58 = vsel %vm967_vm3, %v3392_v24, %v3393_v3  ;;  %v3396_v48 = vsel %vm967_vm3, %v3393_v3, %v3395_v8  ;;  %v16848_v21 = vpack.c.bf16 %v3401_v55, %v3399_v50  ;;  %v3888_v24 = vrot.slane %v16580_v35, 2 }
 0x350   : > { %v16846_v17 = vpack.c.bf16 %v3396_v48, %v3394_v58 }
 0x351   : > { %21371 = vst [vmem:[#allocation16_spill] sm:$0xff] %v16848_v21  ;;  %v3889_v14 = vsel %vm1521_vm4, %v3886_v10, %v3888_v24  ;;  %v16925_v24 = vld [vmem:[%s21169_s15 + $0xc] sm:$0xf] }
 0x352   : > { %21370 = vst [vmem:[#allocation15_spill] sm:$0xff] %v16846_v17  ;;  %v16850_v43 = vld [vmem:[#allocation3 + $0x180] sm:$0xff]  ;;  %13729 = vmatmul.mubr.msk.bf16.gmra.mrb[56].mxu0 %vm687_vm5, %v16846_v17  ;;  %13864 = vmatprep.mubr.msk.bf16.mxu1 %vm687_vm5, %v16846_v17  ;;  %v16856_v9 = vld [vmem:[#allocation3 + $0x168] sm:$0xff] }
 0x353   : > { %21372 = vst [vmem:[#allocation17_spill] sm:$0xff] %v16850_v43  ;;  %21373 = vst [vmem:[#allocation18_spill] sm:$0xff] %v16856_v9  ;;  %13732 = vmatprep.mubr.msk.bf16.mxu0 %vm687_vm5, %v16848_v21  ;;  %13865 = vmatmul.mubr.msk.bf16.gmra.mrb[8].mxu1 %vm687_vm5, %v16848_v21  ;;  %v16862_v60 = vld [vmem:[#allocation3 + $0x188] sm:$0xff]  ;;  %v16864_v6 = vld [vmem:[#allocation3 + $0x190] sm:$0x3]  ;;  %v4455_v50 = vrot.slane %v16850_v43, 1 }
 0x354   : > { %21374 = vst [vmem:[#allocation19_spill] sm:$0xff] %v16862_v60  ;;  %21375 = vst [vmem:[#allocation20_spill] sm:$0xff] %v16864_v6  ;;  %v16868_v3 = vld [vmem:[#allocation3 + $0x170] sm:$0xff]  ;;  %v16870_v8 = vld [vmem:[#allocation3 + $0x178] sm:$0x3]  ;;  %v4456_v55 = vrot.slane %v16862_v60, 1 }
 0x355   : > { %v4458_v58 = vrot.slane %v16864_v6, 1  ;;  %v3402_v48 = vrot.slane %v16856_v9, 1  ;;  %v3403_v21 = vrot.slane %v16868_v3, 1  ;;  %v3405_v17 = vrot.slane %v16870_v8, 1 }
 0x356   : > { %v4457_v35 = vsel %vm967_vm3, %v4455_v50, %v4456_v55  ;;  %v3887_v6 = vsel %vm1521_vm4, %v3885_v26, %v3886_v10  ;;  %v3891_v26 = vrot.slane %v16573_v57, 2 }
 0x357   : > { %v4459_v5 = vsel %vm967_vm3, %v4456_v55, %v4458_v58  ;;  %v3404_v43 = vsel %vm967_vm3, %v3402_v48, %v3403_v21  ;;  %v3406_v60 = vsel %vm967_vm3, %v3403_v21, %v3405_v17  ;;  %v16895_v50 = vpack.c.bf16 %v3889_v14, %v3887_v6  ;;  %v16942_v58 = vld [vmem:[%s21169_s15 + $0x1c] sm:$0xf] }
 0x358   : > { %v16887_v9 = vpack.c.bf16 %v3406_v60, %v3404_v43  ;;  %v16889_v37 = vpack.c.bf16 %v4459_v5, %v4457_v35  ;;  %v3893_v55 = vrot.slane %v16575_v25, 2  ;;  %v3896_v5 = vrot.slane %v16622_v45, 2 }
 0x359   : > { %v3898_v43 = vrot.slane %v16624_v30, 2  ;;  %v3890_v17 = vrot.slane %v16565_v38, 2  ;;  %v3895_v14 = vrot.slane %v16611_v62, 2  ;;  %v4057_v60 = vsel %vm3503_vm6, %v16605_v13, 0 }
 0x35a   : > { %21376 = vst [vmem:[#allocation21_spill] sm:$0xff] %v16887_v9  ;;  %21377 = vst [vmem:[#allocation30_spill] sm:$0xff] %v16889_v37  ;;  %13733 = vmatmul.mubr.msk.bf16.gmra.mrb[60].mxu0 %vm687_vm5, %v16887_v9  ;;  %13868 = vmatprep.mubr.msk.bf16.mxu1 %vm687_vm5, %v16887_v9  ;;  %v3894_v21 = vsel %vm1521_vm4, %v3891_v26, %v3893_v55  ;;  %v16920_v30 = vpack.c.bf16 %v16573_v57, %v16565_v38  ;;  %v3901_v38 = vrot.slane %v16617_v33, 2 }
 0x35b   : > { %13869 = vmatmul.mubr.msk.bf16.gmra.mrb[12].mxu1 %vm687_vm5, %v16889_v37  ;;  %13738 = vmatprep.mubr.msk.bf16.mxu0 %vm687_vm5, %v3263_v23  ;;  %v3892_v25 = vsel %vm1521_vm4, %v3890_v17, %v3891_v26  ;;  %v16912_v23 = vpack.c.bf16 %v16578_v19, %v16569_v46  ;;  %v3897_v6 = vsel %vm1521_vm4, %v3895_v14, %v3896_v5  ;;  %v4874_v19 = vsel %vm3503_vm6, %v16774_v36, 0 }
 0x35c   : > { %13874 = vmatprep.mubr.msk.bf16.mxu1 %vm687_vm5, %v16895_v50  ;;  %v3899_v10 = vsel %vm1521_vm4, %v3896_v5, %v3898_v43  ;;  %v16929_v46 = vpack.c.bf16 %v3894_v21, %v3892_v25  ;;  %v3903_v57 = vrot.slane %v16619_v53, 2  ;;  %v3906_v36 = vrot.slane %v16662_v11, 2 }
 0x35d   : > { %v16935_v13 = vpack.c.bf16 %v3899_v10, %v3897_v6  ;;  %v3908_v48 = vrot.slane %v16664_v63, 2  ;;  %v3900_v53 = vrot.slane %v16600_v12, 2  ;;  %v3905_v35 = vrot.slane %v16651_v39, 2 }
 0x35e   : > { %21378 = vst [vmem:[#allocation31_spill] sm:$0xff] %v16929_v46  ;;  %v3904_v26 = vsel %vm1521_vm4, %v3901_v38, %v3903_v57  ;;  %v16960_v63 = vpack.c.bf16 %v16622_v45, %v16611_v62  ;;  %v16966_v17 = vpack.c.bf16 %v16617_v33, %v16600_v12  ;;  %v3911_v62 = vrot.slane %v16657_v47, 2 }
 0x35f   : > { %21379 = vst [vmem:[#allocation32_spill] sm:$0xff] %v16935_v13  ;;  %v3902_v55 = vsel %vm1521_vm4, %v3900_v53, %v3901_v38  ;;  %v3907_v5 = vsel %vm1521_vm4, %v3905_v35, %v3906_v36  ;;  %v3909_v43 = vsel %vm1521_vm4, %v3906_v36, %v3908_v48  ;;  %v3913_v45 = vrot.slane %v16659_v27, 2 }
 0x360   : > { %v16970_v14 = vpack.c.bf16 %v3904_v26, %v3902_v55  ;;  %v16974_v25 = vpack.c.bf16 %v3909_v43, %v3907_v5  ;;  %v3916_v12 = vrot.slane %v16700_v29, 2  ;;  %v3918_v33 = vrot.slane %v16702_v34, 2 }
 0x361   : > { %v3910_v21 = vrot.slane %v16645_v41, 2  ;;  %v3914_v10 = vsel %vm1521_vm4, %v3911_v62, %v3913_v45  ;;  %v16990_v27 = vpack.c.bf16 %v16662_v11, %v16651_v39  ;;  %v16996_v34 = vpack.c.bf16 %v16657_v47, %v16645_v41 }
 0x362   : > { %13739 = vmatmul.mubr.msk.bf16.vlgmr.msra.gmra.mrb[32].mxu0 %vm687_vm5, %v16912_v23  ;;  %21380 = vst [vmem:[#allocation33_spill] sm:$0xff] %v16970_v14  ;;  %21381 = vst [vmem:[#allocation34_spill] sm:$0xff] %v16974_v25  ;;  %v3919_v38 = vsel %vm1521_vm4, %v3916_v12, %v3918_v33  ;;  %v3921_v39 = vrot.slane %v16695_v22, 2  ;;  %v3923_v11 = vrot.slane %v16697_v7, 2  ;;  %v3926_v41 = vrot.slane %v16738_v42, 2 }
 0x363   : > { %13771 = vmatpush3.bf16.msra.mxu0 %v4057_v60  ;;  %13742 = vmatprep.mubr.msk.bf16.mxu0 %vm687_vm5, %v16920_v30  ;;  %v3915_v60 = vrot.slane %v16689_v49, 2  ;;  %v3912_v6 = vsel %vm1521_vm4, %v3910_v21, %v3911_v62  ;;  %v3928_v47 = vrot.slane %v16740_v16, 2  ;;  %v3920_v48 = vrot.slane %v16683_v32, 2 }
 0x364   : > { %13875 = vmatmul.mubr.msk.bf16.vlgmr.msra.gmra.mrb[16].mxu1 %vm687_vm5, %v16929_v46  ;;  %15196 = vmatprep.subr.msk.bf16.mxu0 %vm3503_vm6, %v16925_v24  ;;  %v17000_v57 = vpack.c.bf16 %v3914_v10, %v3912_v6  ;;  %v3925_v53 = vrot.slane %v16727_v0, 2  ;;  %v3924_v55 = vsel %vm1521_vm4, %v3921_v39, %v3923_v11  ;;  %v17020_v7 = vpack.c.bf16 %v16700_v29, %v16689_v49 }
 0x365   : > { %13878 = vmatprep.mubr.msk.bf16.mxu1 %vm687_vm5, %v16935_v13  ;;  %13907 = vmatpush3.bf16.msra.mxu1 %v4874_v19  ;;  %v3917_v19 = vsel %vm1521_vm4, %v3915_v60, %v3916_v12  ;;  %v3922_v35 = vsel %vm1521_vm4, %v3920_v48, %v3921_v39  ;;  %v3929_v5 = vsel %vm1521_vm4, %v3926_v41, %v3928_v47  ;;  %v3931_v49 = vrot.slane %v16733_v31, 2 }
 0x366   : > { %15201 = vmatprep.subr.msk.bf16.mxu1 %vm3503_vm6, %v16942_v58  ;;  %21382 = vst [vmem:[#allocation35_spill] sm:$0xff] %v17000_v57  ;;  %v17004_v36 = vpack.c.bf16 %v3919_v38, %v3917_v19  ;;  %v3927_v26 = vsel %vm1521_vm4, %v3925_v53, %v3926_v41  ;;  %v17026_v16 = vpack.c.bf16 %v16695_v22, %v16683_v32  ;;  %v3933_v29 = vrot.slane %v16735_v61, 2 }
 0x367   : > { %v17030_v43 = vpack.c.bf16 %v3924_v55, %v3922_v35  ;;  %v17034_v62 = vpack.c.bf16 %v3929_v5, %v3927_v26  ;;  %v3936_v32 = vrot.slane %v16787_v40, 2  ;;  %v3938_v22 = vrot.slane %v16789_v56, 2  ;;  %v21389_v55 = vld [vmem:[#allocation14_spill] sm:$0xff] }
 0x368   : > { %21383 = vst [vmem:[#allocation36_spill] sm:$0xff] %v17004_v36  ;;  %21384 = vst [vmem:[#allocation37_spill] sm:$0xff] %v17026_v16  ;;  %v3930_v45 = vrot.slane %v16721_v4, 2  ;;  %v3935_v12 = vrot.slane %v16769_v51, 2  ;;  %v3934_v21 = vsel %vm1521_vm4, %v3931_v49, %v3933_v29  ;;  %v17050_v61 = vpack.c.bf16 %v16738_v42, %v16727_v0  ;;  %v21390_v5 = vld [vmem:[#allocation18_spill] sm:$0xff] }
 0x369   : > { %21385 = vst [vmem:[#allocation38_spill] sm:$0xff] %v17030_v43  ;;  %v3939_v6 = vsel %vm1521_vm4, %v3936_v32, %v3938_v22  ;;  %v17056_v56 = vpack.c.bf16 %v16733_v31, %v16721_v4  ;;  %v3941_v0 = vrot.slane %v16782_v2, 2  ;;  %v3943_v42 = vrot.slane %v16784_v28, 2 }
 0x36a   : > { %13743 = vmatmul.mubr.msk.bf16.gmra.mrb[36].mxu0 %vm687_vm5, %v16960_v63  ;;  %v3932_v33 = vsel %vm1521_vm4, %v3930_v45, %v3931_v49  ;;  %21386 = vst [vmem:[#allocation39_spill] sm:$0xff] %v17050_v61  ;;  %v3937_v60 = vsel %vm1521_vm4, %v3935_v12, %v3936_v32  ;;  %v3946_v4 = vrot.slane %v16831_v54, 2  ;;  %v3948_v31 = vrot.slane %v16833_v20, 2 }
 0x36b   : > { %13746 = vmatprep.mubr.msk.bf16.mxu0 %vm687_vm5, %v16966_v17  ;;  %v17060_v10 = vpack.c.bf16 %v3934_v21, %v3932_v33  ;;  %v17064_v19 = vpack.c.bf16 %v3939_v6, %v3937_v60  ;;  %v3940_v38 = vrot.slane %v16759_v18, 2  ;;  %v3945_v39 = vrot.slane %v16818_v44, 2  ;;  %v21391_v33 = vld [vmem:[#allocation22_spill] sm:$0xff]  ;;  %v21395_v6 = vld [vmem:[#allocation20_spill] sm:$0xff] }
 0x36c   : > { %13879 = vmatmul.mubr.msk.bf16.gmra.mrb[20].mxu1 %vm687_vm5, %v16970_v14  ;;  %v3944_v41 = vsel %vm1521_vm4, %v3941_v0, %v3943_v42  ;;  %v17080_v28 = vpack.c.bf16 %v16787_v40, %v16769_v51  ;;  %v3949_v48 = vsel %vm1521_vm4, %v3946_v4, %v3948_v31  ;;  %v17086_v20 = vpack.c.bf16 %v16782_v2, %v16759_v18 }
 0x36d   : > { %13882 = vmatprep.mubr.msk.bf16.mxu1 %vm687_vm5, %v16974_v25  ;;  %21387 = vst [vmem:[#allocation40_spill] sm:$0xff] %v17060_v10  ;;  %v3942_v11 = vsel %vm1521_vm4, %v3940_v38, %v3941_v0  ;;  %v3947_v47 = vsel %vm1521_vm4, %v3945_v39, %v3946_v4  ;;  %v3951_v51 = vrot.slane %v16826_v52, 2  ;;  %v3953_v40 = vrot.slane %v16828_v59, 2  ;;  %v21396_v4 = vld [vmem:[#allocation17_spill] sm:$0xff] }
 0x36e   : > { %v17090_v53 = vpack.c.bf16 %v3944_v41, %v3942_v11  ;;  %v17094_v35 = vpack.c.bf16 %v3949_v48, %v3947_v47  ;;  %v3956_v18 = vrot.slane %v16868_v3, 2  ;;  %v3958_v2 = vrot.slane %v16870_v8, 2 }
 0x36f   : > { %v3950_v26 = vrot.slane %v21389_v55, 2  ;;  %v3955_v49 = vrot.slane %v21390_v5, 2  ;;  %v3954_v32 = vsel %vm1521_vm4, %v3951_v51, %v3953_v40  ;;  %v3880_v59 = vrot.slane %v16515_v15, 2  ;;  %v21398_v40 = vld [vmem:[#allocation23_spill] sm:$0xff] }
 0x370   : > { %21388 = vst [vmem:[#allocation41_spill] sm:$0xff] %v17094_v35  ;;  %v3881_v22 = vrot.slane %v16517_v1, 2  ;;  %v17112_v45 = vpack.c.bf16 %v16831_v54, %v16818_v44  ;;  %v3959_v12 = vsel %vm1521_vm4, %v3956_v18, %v3958_v2  ;;  %v3883_v21 = vrot.slane %v21391_v33, 2  ;;  %v21394_v44 = vld [vmem:[#allocation19_spill] sm:$0xff]  ;;  %v17179_v2 = vld [vmem:[#allocation2 + $0x28] sm:$0x3] }
 0x371   : > { %v3952_v29 = vsel %vm1521_vm4, %v3950_v26, %v3951_v51  ;;  %v3957_v8 = vsel %vm1521_vm4, %v3955_v49, %v3956_v18  ;;  %v17119_v60 = vpack.c.bf16 %v16826_v52, %v21389_v55  ;;  %v4663_v54 = vrot.slane %v21394_v44, 2  ;;  %v3262_v51 = vld [vmem:[%s21169_s15 + $0x20] sm:$0xf]  ;;  %v17184_v26 = vld [vmem:[#allocation3 + $0x198] sm:$0xff] }
 0x372   : > { %13747 = vmatmul.mubr.msk.bf16.gmra.mrb[40].mxu0 %vm687_vm5, %v16990_v27  ;;  %v17123_v15 = vpack.c.bf16 %v3954_v32, %v3952_v29  ;;  %v17127_v1 = vpack.c.bf16 %v3959_v12, %v3957_v8  ;;  %v4665_v0 = vrot.slane %v21395_v6, 2  ;;  %v3882_v52 = vsel %vm1521_vm4, %v3880_v59, %v3881_v22  ;;  %21399 = vst [vmem:[#allocation19_spill] sm:$0xff] %v17184_v26  ;;  %v15226_v49 = vld [vmem:[#allocation2] sm:$0xff] }
 0x373   : > { %13750 = vmatprep.mubr.msk.bf16.mxu0 %vm687_vm5, %v16996_v34  ;;  %v3884_v42 = vsel %vm1521_vm4, %v3881_v22, %v3883_v21  ;;  %v4662_v31 = vrot.slane %v21396_v4, 2  ;;  %v17142_v41 = vpack.c.bf16 %v16868_v3, %v21390_v5  ;;  %v4257_v48 = vsel %vm3503_vm6, %v16925_v24, 0  ;;  %v17173_v24 = vld [vmem:[%s21299_s4 + $0x1] ss:$0 sm:$0xff]  ;;  %v17186_v5 = vld [vmem:[#allocation3 + $0x1a0] sm:$0xff] }
 0x374   : > { %13883 = vmatmul.mubr.msk.bf16.gmra.mrb[24].mxu1 %vm687_vm5, %v17000_v57  ;;  %21392 = vst [vmem:[#allocation14_spill] sm:$0xff] %v17123_v15  ;;  %21393 = vst [vmem:[#allocation18_spill] sm:$0xff] %v17127_v1  ;;  %v4666_v39 = vsel %vm1521_vm4, %v4663_v54, %v4665_v0  ;;  %v3992_v11 = vpack.c.bf16 %v3884_v42, %v3882_v52  ;;  %v5084_v3 = vsel %vm3503_vm6, %v16942_v58, 0  ;;  %v17175_v58 = vld [vmem:[#allocation2 + $0x20] sm:$0xff]  ;;  %v5072_v32 = vrot.slane %v17184_v26, 1 }
 0x375   : > { %13886 = vmatprep.mubr.msk.bf16.mxu1 %vm687_vm5, %v17004_v36  ;;  %v4664_v38 = vsel %vm1521_vm4, %v4662_v31, %v4663_v54  ;;  %v5575_v18 = vmul.f32 %v17175_v58, %v17173_v24  ;;  %v5576_v55 = vmul.f32 %v17179_v2, %v17173_v24  ;;  %21400 = vst [vmem:[#allocation20_spill] sm:$0xff] %v17186_v5  ;;  %v5073_v59 = vrot.slane %v17186_v5, 1  ;;  %v17194_v8 = vld [vmem:[%s21299_s4 + $0x2] ss:$0 sm:$0xff]  ;;  %v17216_v42 = vld [vmem:[%s21299_s4] ss:$0 sm:$0xff] }
 0x376   : > { %v17146_v47 = vpack.c.bf16 %v4666_v39, %v4664_v38  ;;  %v5571_v29 = vmul.f32 %v15226_v49, %v17173_v24  ;;  %v5817_v12 = vmul.f32 %v17194_v8, %v15226_v49  ;;  %v17199_v33 = vmul.f32 %v17194_v8, %v17179_v2 }
 0x377   : > { %v5673_v21 = vrot.slane %v5575_v18, 1  ;;  %v5675_v54 = vrot.slane %v5576_v55, 1  ;;  %v17208_v0 = vsel %vm967_vm3, %v5072_v32, %v5073_v59  ;;  %v5501_v31 = vmul.f32 %v17216_v42, %v15226_v49 }
 0x378   : > { %21397 = vst [vmem:[#allocation22_spill] sm:$0xff] %v17146_v47  ;;  %v5667_v6 = vrot.slane %v5571_v29, 1  ;;  %21401 = vst [vmem:[#allocation17_spill] sm:$0xff] %v17208_v0  ;;  %v5913_v38 = vrot.slane %v5817_v12, 2  ;;  %v17236_v32 = vmul.f32 %v17194_v8, %v17175_v58 }
 0x37a   : > { %13751 = vmatmul.mubr.msk.bf16.gmra.mrb[44].mxu0 %vm687_vm5, %v17020_v7 }
 0x37b   : > { %13754 = vmatprep.mubr.msk.bf16.mxu0 %vm687_vm5, %v17026_v16 }
 0x37c   : > { %13887 = vmatmul.mubr.msk.bf16.gmra.mrb[28].mxu1 %vm687_vm5, %v17030_v43 }
 0x37d   : > { %13890 = vmatprep.mubr.msk.bf16.mxu1 %vm687_vm5, %v17034_v62 }
 0x382   : > { %13755 = vmatmul.mubr.msk.bf16.gmra.mrb[48].mxu0 %vm687_vm5, %v17050_v61 }
 0x383   : > { %13758 = vmatprep.mubr.msk.bf16.mxu0 %vm687_vm5, %v17056_v56 }
 0x384   : > { %13891 = vmatmul.mubr.msk.bf16.gmra.mrb[0].mxu1 %vm687_vm5, %v17060_v10 }
 0x385   : > { %13894 = vmatprep.mubr.msk.bf16.mxu1 %vm687_vm5, %v17064_v19 }
 0x38a   : > { %13759 = vmatmul.mubr.msk.bf16.gmra.mrb[52].mxu0 %vm687_vm5, %v17080_v28 }
 0x38b   : > { %13762 = vmatprep.mubr.msk.bf16.mxu0 %vm687_vm5, %v17086_v20 }
 0x38c   : > { %13895 = vmatmul.mubr.msk.bf16.gmra.mrb[4].mxu1 %vm687_vm5, %v17090_v53 }
 0x38d   : > { %13898 = vmatprep.mubr.msk.bf16.mxu1 %vm687_vm5, %v17094_v35 }
 0x392   : > { %13763 = vmatmul.mubr.msk.bf16.gmra.mrb[56].mxu0 %vm687_vm5, %v17112_v45 }
 0x393   : > { %13766 = vmatprep.mubr.msk.bf16.mxu0 %vm687_vm5, %v17119_v60 }
 0x394   : > { %13899 = vmatmul.mubr.msk.bf16.gmra.mrb[8].mxu1 %vm687_vm5, %v17123_v15 }
 0x395   : > { %13902 = vmatprep.mubr.msk.bf16.mxu1 %vm687_vm5, %v17127_v1 }
 0x39a   : > { %13767 = vmatmul.mubr.msk.bf16.gmra.mrb[60].mxu0 %vm687_vm5, %v17142_v41 }
 0x39b   : > { %13772 = vmatprep.mubr.msk.bf16.mxu0 %vm687_vm5, %v3992_v11  ;;  %v15229_v11 = vld [vmem:[#allocation2 + $0x18] sm:$0xff] }
 0x39c   : > { %13903 = vmatmul.mubr.msk.bf16.gmra.mrb[12].mxu1 %vm687_vm5, %v17146_v47  ;;  %v5820_v29 = vmul.f32 %v15229_v11, %v17194_v8  ;;  %v5503_v12 = vmul.f32 %v15229_v11, %v17216_v42 }
 0x39d   : > { %13908 = vmatprep.mubr.msk.bf16.mxu1 %vm687_vm5, %v16920_v30 }
 0x3a2   : > { %13773 = vmatmul.mubr.msk.bf16.vlgmr.msra.gmra.mrb[32].mxu0 %vm687_vm5, %v16895_v50  ;;  %v3253_v50 = vld [vmem:[#allocation3 + $0x1a8] sm:$0x3] }
 0x3a3   : > { %13805 = vmatpush3.bf16.msra.mxu0 %v4257_v48  ;;  %13776 = vmatprep.mubr.msk.bf16.mxu0 %vm687_vm5, %v16929_v46  ;;  %v5075_v22 = vrot.slane %v3253_v50, 1  ;;  %v5574_v48 = vmul.f32 %v15229_v11, %v17173_v24  ;;  %v5918_v50 = vrot.slane %v5820_v29, 2 }
 0x3a4   : > { %13909 = vmatmul.mubr.msk.bf16.vlgmr.msra.gmra.mrb[16].mxu1 %vm687_vm5, %v16960_v63  ;;  %15197 = vmatprep.subr.msk.bf16.mxu0 %vm3503_vm6, %v21398_v40  ;;  %v17226_v40 = vpack.c.bf16 %v21394_v44, %v21396_v4  ;;  %v21403_v44 = vld [vmem:[#allocation4_spill] sm:$0xff] }
 0x3a5   : > { %13912 = vmatprep.mubr.msk.bf16.mxu1 %vm687_vm5, %v16966_v17  ;;  %13941 = vmatpush3.bf16.msra.mxu1 %v5084_v3  ;;  %v17211_v52 = vsel %vm967_vm3, %v5073_v59, %v5075_v22  ;;  %v5676_v3 = vsel %vm967_vm3, %v5673_v21, %v5675_v54  ;;  %v5672_v49 = vrot.slane %v5574_v48, 1  ;;  %v17239_v59 = vsel %vm3503_vm6, %v3262_v51, 0  ;;  %v17250_v48 = vld [vmem:[%s21299_s4 + $0x4] ss:$0 sm:$0xff] }
 0x3a6   : > { %15202 = vmatprep.subr.msk.bf16.mxu1 %vm3503_vm6, %v3262_v51  ;;  %21402 = vst [vmem:[#allocation23_spill] sm:$0xff] %v17211_v52  ;;  %v21404_v4 = vrot.slane %v21403_v44, 1  ;;  %v5504_v54 = vmul.f32 %v17216_v42, %v17175_v58  ;;  %v5919_v51 = vrot.slane %v17236_v32, 2  ;;  %v21405_v44 = vld [vmem:[#allocation5_spill] sm:$0xff]  ;;  %v6133_v47 = vmul.f32 %v15229_v11, %v17250_v48 }
 0x3a7   : > { %v5674_v55 = vsel %vm967_vm3, %v5672_v49, %v5673_v21  ;;  %v6134_v21 = vmul.f32 %v17175_v58, %v17250_v48  ;;  %v17274_v49 = vld [vmem:[%s21299_s4 + $0x5] ss:$0 sm:$0xff] }
 0x3a8   : > { %v5669_v22 = vsel %vm967_vm3, %v5667_v6, %v21404_v4  ;;  %v17259_v6 = vld [vmem:[%s21299_s4 + $0x3] ss:$0 sm:$0xff]  ;;  %v21406_v4 = vrot.slane %v21405_v44, 2  ;;  %v6229_v44 = vrot.slane %v6133_v47, 1 }
 0x3a9   : > { %v5779_v18 = vadd.f32 %v5669_v22, %v5501_v31  ;;  %v6135_v31 = vmul.f32 %v17179_v2, %v17250_v48  ;;  %v6063_v32 = vmul.f32 %v15229_v11, %v17259_v6  ;;  %v5781_v22 = vadd.f32 %v5674_v55, %v5503_v12 }
 0x3aa   : > { %13777 = vmatmul.mubr.msk.bf16.gmra.mrb[36].mxu0 %vm687_vm5, %v16935_v13  ;;  %v5915_v39 = vsel %vm1521_vm4, %v5913_v38, %v21406_v4  ;;  %v6064_v38 = vmul.f32 %v17175_v58, %v17259_v6  ;;  %v6230_v4 = vrot.slane %v6134_v21, 1  ;;  %v21407_v13 = vld [vmem:[#allocation6_spill] sm:$0xff]  ;;  %v6381_v55 = vmul.f32 %v17179_v2, %v17274_v49 }
 0x3ab   : > { %13780 = vmatprep.mubr.msk.bf16.mxu0 %vm687_vm5, %v16970_v14  ;;  %v6025_v29 = vadd.f32 %v5915_v39, %v5779_v18  ;;  %v6380_v18 = vmul.f32 %v17175_v58, %v17274_v49  ;;  %v17299_v58 = vld [vmem:[%s21299_s4 + $0x6] ss:$0 sm:$0xff]  ;;  %v17301_v2 = vld [vmem:[#allocation2 + $0x30] sm:$0xff] }
 0x3ac   : > { %13913 = vmatmul.mubr.msk.bf16.gmra.mrb[20].mxu1 %vm687_vm5, %v16990_v27  ;;  %v6096_v39 = vadd.f32 %v6064_v38, %v21407_v13  ;;  %v6231_v12 = vsel %vm967_vm3, %v6229_v44, %v6230_v4  ;;  %v6478_v38 = vrot.slane %v6381_v55, 2  ;;  %v5920_v44 = vsel %vm1521_vm4, %v5918_v50, %v5919_v51 }
 0x3ad   : > { %13916 = vmatprep.mubr.msk.bf16.mxu1 %vm687_vm5, %v16996_v34  ;;  %v6095_v14 = vadd.f32 %v6063_v32, %v6025_v29  ;;  %v6476_v13 = vrot.slane %v6380_v18, 2  ;;  %v6625_v55 = vmul.f32 %v17301_v2, %v17299_v58 }
 0x3af   : > { %v6341_v29 = vadd.f32 %v6231_v12, %v6095_v14  ;;  %v6479_v18 = vsel %vm1521_vm4, %v6476_v13, %v6478_v38 }
 0x3b2   : > { %13781 = vmatmul.mubr.msk.bf16.gmra.mrb[40].mxu0 %vm687_vm5, %v16974_v25  ;;  %v6232_v25 = vrot.slane %v6135_v31, 1  ;;  %v5782_v31 = vadd.f32 %v5676_v3, %v5504_v54  ;;  %v17309_v54 = vld [vmem:[#allocation2 + $0x40] sm:$0x3] }
 0x3b3   : > { %13784 = vmatprep.mubr.msk.bf16.mxu0 %vm687_vm5, %v17000_v57  ;;  %v6379_v57 = vmul.f32 %v15229_v11, %v17274_v49  ;;  %v17294_v11 = vld [vmem:[%s21299_s4 + $0x7] ss:$0 sm:$0xff] }
 0x3b4   : > { %13917 = vmatmul.mubr.msk.bf16.gmra.mrb[24].mxu1 %vm687_vm5, %v17020_v7  ;;  %v6233_v47 = vsel %vm967_vm3, %v6230_v4, %v6232_v25  ;;  %v6695_v25 = vmul.f32 %v17301_v2, %v17294_v11  ;;  %v6697_v14 = vmul.f32 %v17309_v54, %v17294_v11  ;;  %v17317_v4 = vld [vmem:[%s21299_s4 + $0x8] ss:$0 sm:$0xff] }
 0x3b5   : > { %13920 = vmatprep.mubr.msk.bf16.mxu1 %vm687_vm5, %v17026_v16  ;;  %v6475_v21 = vrot.slane %v6379_v57, 2  ;;  %v6342_v32 = vadd.f32 %v6233_v47, %v6096_v39  ;;  %v17305_v57 = vld [vmem:[#allocation2 + $0x38] sm:$0xff]  ;;  %v6943_v38 = vmul.f32 %v17309_v54, %v17317_v4  ;;  %v6027_v16 = vadd.f32 %v5920_v44, %v5781_v22 }
 0x3b6   : > { %v6696_v3 = vmul.f32 %v17305_v57, %v17294_v11  ;;  %v6626_v12 = vmul.f32 %v17305_v57, %v17299_v58  ;;  %v6791_v46 = vrot.slane %v6695_v25, 1  ;;  %v6794_v52 = vrot.slane %v6697_v14, 1 }
 0x3b7   : > { %v6477_v39 = vsel %vm1521_vm4, %v6475_v21, %v6476_v13  ;;  %v6588_v50 = vadd.f32 %v6479_v18, %v6342_v32  ;;  %v6941_v21 = vmul.f32 %v17301_v2, %v17317_v4  ;;  %v6942_v13 = vmul.f32 %v17305_v57, %v17317_v4 }
 0x3b8   : > { %v6587_v47 = vadd.f32 %v6477_v39, %v6341_v29  ;;  %v6792_v0 = vrot.slane %v6696_v3, 1  ;;  %v21408_v3 = vrot.slane %v17199_v33, 2  ;;  %v17349_v33 = vld [vmem:[%s21409_s26] ss:$0 sm:$0xff]  ;;  %v6136_v22 = vmul.f32 %v17301_v2, %v17250_v48 }
 0x3b9   : > { %v6658_v32 = vadd.f32 %v6626_v12, %v6588_v50  ;;  %v7037_v18 = vrot.slane %v6941_v21, 2  ;;  %v6138_v44 = vmul.f32 %v17309_v54, %v17250_v48 }
 0x3ba   : > { %13785 = vmatmul.mubr.msk.bf16.gmra.mrb[44].mxu0 %vm687_vm5, %v17004_v36  ;;  %v6657_v29 = vadd.f32 %v6625_v55, %v6587_v47  ;;  %v6793_v25 = vsel %vm967_vm3, %v6791_v46, %v6792_v0  ;;  %v5922_v14 = vsel %vm1521_vm4, %v5919_v51, %v21408_v3  ;;  %v6795_v39 = vsel %vm967_vm3, %v6792_v0, %v6794_v52 }
 0x3bb   : > { %13788 = vmatprep.mubr.msk.bf16.mxu0 %vm687_vm5, %v17030_v43  ;;  %v7038_v43 = vrot.slane %v6942_v13, 2  ;;  %v7040_v36 = vrot.slane %v6943_v38, 2  ;;  %v6904_v9 = vadd.f32 %v6795_v39, %v6658_v32  ;;  %v6065_v51 = vmul.f32 %v17301_v2, %v17259_v6 }
 0x3bc   : > { %13921 = vmatmul.mubr.msk.bf16.gmra.mrb[28].mxu1 %vm687_vm5, %v17050_v61  ;;  %v6903_v37 = vadd.f32 %v6793_v25, %v6657_v29  ;;  %v6028_v61 = vadd.f32 %v5922_v14, %v5782_v31  ;;  %v6066_v0 = vmul.f32 %v17305_v57, %v17259_v6  ;;  %v6137_v31 = vmul.f32 %v17305_v57, %v17250_v48  ;;  %v17382_v25 = vld [vmem:[#allocation2 + $0x48] sm:$0xff]  ;;  %v17386_v14 = vld [vmem:[#allocation2 + $0x50] sm:$0xff] }
 0x3bd   : > { %13924 = vmatprep.mubr.msk.bf16.mxu1 %vm687_vm5, %v17056_v56  ;;  %v7039_v55 = vsel %vm1521_vm4, %v7037_v18, %v7038_v43  ;;  %v7041_v46 = vsel %vm1521_vm4, %v7038_v43, %v7040_v36  ;;  %v6097_v36 = vadd.f32 %v6065_v51, %v6027_v16  ;;  %v6382_v47 = vmul.f32 %v17301_v2, %v17274_v49 }
 0x3be   : > { %v7149_v52 = vadd.f32 %v7039_v55, %v6903_v37  ;;  %v7150_v12 = vadd.f32 %v7041_v46, %v6904_v9  ;;  %v6098_v43 = vadd.f32 %v6066_v0, %v6028_v61  ;;  %v6234_v50 = vrot.slane %v6136_v22, 1  ;;  %v17397_v22 = vld [vmem:[#allocation2 + $0x58] sm:$0x3] }
 0x3bf   : > { %v6235_v21 = vrot.slane %v6137_v31, 1  ;;  %v6237_v16 = vrot.slane %v6138_v44, 1  ;;  %v6383_v61 = vmul.f32 %v17305_v57, %v17274_v49  ;;  %v6384_v13 = vmul.f32 %v17309_v54, %v17274_v49 }
 0x3c0   : > { %v17366_v37 = vadd.f32 %v17349_v33, %v7149_v52  ;;  %v17369_v9 = vadd.f32 %v17349_v33, %v7150_v12  ;;  %v6480_v38 = vrot.slane %v6382_v47, 2  ;;  %v6627_v3 = vmul.f32 %v17382_v25, %v17299_v58 }
 0x3c1   : > { %v6236_v32 = vsel %vm967_vm3, %v6234_v50, %v6235_v21  ;;  %v6628_v39 = vmul.f32 %v17386_v14, %v17299_v58  ;;  %v6238_v18 = vsel %vm967_vm3, %v6235_v21, %v6237_v16  ;;  %v6481_v46 = vrot.slane %v6383_v61, 2 }
 0x3c2   : > { %13789 = vmatmul.mubr.msk.bf16.gmra.mrb[48].mxu0 %vm687_vm5, %v17034_v62  ;;  %v6343_v55 = vadd.f32 %v6236_v32, %v6097_v36  ;;  %v6483_v51 = vrot.slane %v6384_v13, 2  ;;  %v6344_v0 = vadd.f32 %v6238_v18, %v6098_v43  ;;  %v6698_v52 = vmul.f32 %v17382_v25, %v17294_v11 }
 0x3c3   : > { %13792 = vmatprep.mubr.msk.bf16.mxu0 %vm687_vm5, %v17060_v10  ;;  %v6699_v12 = vmul.f32 %v17386_v14, %v17294_v11  ;;  %v6700_v31 = vmul.f32 %v17397_v22, %v17294_v11  ;;  %v6482_v44 = vsel %vm1521_vm4, %v6480_v38, %v6481_v46  ;;  %v6944_v36 = vmul.f32 %v17382_v25, %v17317_v4 }
 0x3c4   : > { %13925 = vmatmul.mubr.msk.bf16.gmra.mrb[0].mxu1 %vm687_vm5, %v17080_v28  ;;  %v6484_v47 = vsel %vm1521_vm4, %v6481_v46, %v6483_v51  ;;  %v6945_v43 = vmul.f32 %v17386_v14, %v17317_v4  ;;  %v6589_v50 = vadd.f32 %v6482_v44, %v6343_v55  ;;  %v6796_v16 = vrot.slane %v6698_v52, 1 }
 0x3c5   : > { %13928 = vmatprep.mubr.msk.bf16.mxu1 %vm687_vm5, %v17086_v20  ;;  %v6590_v21 = vadd.f32 %v6484_v47, %v6344_v0  ;;  %v6797_v61 = vrot.slane %v6699_v12, 1  ;;  %v6799_v13 = vrot.slane %v6700_v31, 1  ;;  %v6946_v32 = vmul.f32 %v17397_v22, %v17317_v4 }
 0x3c6   : > { %v7042_v18 = vrot.slane %v6944_v36, 2  ;;  %v7043_v29 = vrot.slane %v6945_v43, 2  ;;  %v6659_v38 = vadd.f32 %v6627_v3, %v6589_v50  ;;  %v5505_v10 = vmul.f32 %v17301_v2, %v17216_v42 }
 0x3c7   : > { %v6660_v46 = vadd.f32 %v6628_v39, %v6590_v21  ;;  %v6798_v51 = vsel %vm967_vm3, %v6796_v16, %v6797_v61  ;;  %v6800_v55 = vsel %vm967_vm3, %v6797_v61, %v6799_v13  ;;  %v7045_v52 = vrot.slane %v6946_v32, 2 }
 0x3c8   : > { %v7044_v0 = vsel %vm1521_vm4, %v7042_v18, %v7043_v29  ;;  %v5506_v12 = vmul.f32 %v17305_v57, %v17216_v42  ;;  %v6905_v3 = vadd.f32 %v6798_v51, %v6659_v38  ;;  %v5577_v31 = vmul.f32 %v17301_v2, %v17173_v24 }
 0x3c9   : > { %v6906_v39 = vadd.f32 %v6800_v55, %v6660_v46  ;;  %v5578_v44 = vmul.f32 %v17305_v57, %v17173_v24  ;;  %v7046_v47 = vsel %vm1521_vm4, %v7043_v29, %v7045_v52  ;;  %v5579_v36 = vmul.f32 %v17309_v54, %v17173_v24 }
 0x3ca   : > { %13793 = vmatmul.mubr.msk.bf16.gmra.mrb[52].mxu0 %vm687_vm5, %v17064_v19  ;;  %v5823_v43 = vmul.f32 %v17301_v2, %v17194_v8  ;;  %v5824_v50 = vmul.f32 %v17305_v57, %v17194_v8  ;;  %v7151_v21 = vadd.f32 %v7044_v0, %v6905_v3  ;;  %v5677_v61 = vrot.slane %v5577_v31, 1 }
 0x3cb   : > { %13796 = vmatprep.mubr.msk.bf16.mxu0 %vm687_vm5, %v17090_v53  ;;  %v7152_v16 = vadd.f32 %v7046_v47, %v6906_v39  ;;  %v5678_v13 = vrot.slane %v5578_v44, 1  ;;  %v5680_v32 = vrot.slane %v5579_v36, 1  ;;  %v5825_v18 = vmul.f32 %v17309_v54, %v17194_v8 }
 0x3cc   : > { %13929 = vmatmul.mubr.msk.bf16.gmra.mrb[4].mxu1 %vm687_vm5, %v17112_v45  ;;  %v5923_v38 = vrot.slane %v5823_v43, 2  ;;  %v5924_v46 = vrot.slane %v5824_v50, 2  ;;  %v17438_v29 = vadd.f32 %v17349_v33, %v7151_v21  ;;  %v6067_v57 = vmul.f32 %v17382_v25, %v17259_v6 }
 0x3cd   : > { %13932 = vmatprep.mubr.msk.bf16.mxu1 %vm687_vm5, %v17119_v60  ;;  %v17441_v51 = vadd.f32 %v17349_v33, %v7152_v16  ;;  %v5679_v2 = vsel %vm967_vm3, %v5677_v61, %v5678_v13  ;;  %v5681_v55 = vsel %vm967_vm3, %v5678_v13, %v5680_v32  ;;  %v5926_v3 = vrot.slane %v5825_v18, 2 }
 0x3ce   : > { %v5783_v0 = vadd.f32 %v5679_v2, %v5505_v10  ;;  %v5925_v52 = vsel %vm1521_vm4, %v5923_v38, %v5924_v46  ;;  %v5784_v39 = vadd.f32 %v5681_v55, %v5506_v12  ;;  %v6068_v31 = vmul.f32 %v17386_v14, %v17259_v6  ;;  %v17473_v55 = vld [vmem:[#allocation2 + $0x60] sm:$0xff] }
 0x3cf   : > { %v6139_v44 = vmul.f32 %v17382_v25, %v17250_v48  ;;  %v5927_v10 = vsel %vm1521_vm4, %v5924_v46, %v5926_v3  ;;  %v6140_v36 = vmul.f32 %v17386_v14, %v17250_v48  ;;  %v6141_v43 = vmul.f32 %v17397_v22, %v17250_v48 }
 0x3d0   : > { %v6029_v47 = vadd.f32 %v5925_v52, %v5783_v0  ;;  %v6030_v12 = vadd.f32 %v5927_v10, %v5784_v39  ;;  %v6385_v21 = vmul.f32 %v17382_v25, %v17274_v49  ;;  %v6386_v16 = vmul.f32 %v17386_v14, %v17274_v49 }
 0x3d1   : > { %v6239_v50 = vrot.slane %v6139_v44, 1  ;;  %v6240_v13 = vrot.slane %v6140_v36, 1  ;;  %v6242_v32 = vrot.slane %v6141_v43, 1  ;;  %v6387_v18 = vmul.f32 %v17397_v22, %v17274_v49  ;;  %v17479_v44 = vld [vmem:[#allocation2 + $0x68] sm:$0xff] }
 0x3d2   : > { %13797 = vmatmul.mubr.msk.bf16.gmra.mrb[56].mxu0 %vm687_vm5, %v17094_v35  ;;  %v6099_v61 = vadd.f32 %v6067_v57, %v6029_v47  ;;  %v6100_v38 = vadd.f32 %v6068_v31, %v6030_v12  ;;  %v6485_v46 = vrot.slane %v6385_v21, 2  ;;  %v6486_v2 = vrot.slane %v6386_v16, 2 }
 0x3d3   : > { %13800 = vmatprep.mubr.msk.bf16.mxu0 %vm687_vm5, %v17123_v15  ;;  %v6629_v0 = vmul.f32 %v17473_v55, %v17299_v58  ;;  %v6241_v52 = vsel %vm967_vm3, %v6239_v50, %v6240_v13  ;;  %v6243_v3 = vsel %vm967_vm3, %v6240_v13, %v6242_v32  ;;  %v6488_v39 = vrot.slane %v6387_v18, 2  ;;  %v17489_v50 = vld [vmem:[#allocation2 + $0x70] sm:$0x3] }
 0x3d4   : > { %13933 = vmatmul.mubr.msk.bf16.gmra.mrb[8].mxu1 %vm687_vm5, %v17142_v41  ;;  %v6630_v57 = vmul.f32 %v17479_v44, %v17299_v58  ;;  %v6345_v10 = vadd.f32 %v6241_v52, %v6099_v61  ;;  %v6346_v47 = vadd.f32 %v6243_v3, %v6100_v38  ;;  %v6487_v31 = vsel %vm1521_vm4, %v6485_v46, %v6486_v2 }
 0x3d5   : > { %13936 = vmatprep.mubr.msk.bf16.mxu1 %vm687_vm5, %v17226_v40  ;;  %v6701_v36 = vmul.f32 %v17473_v55, %v17294_v11  ;;  %v6489_v43 = vsel %vm1521_vm4, %v6486_v2, %v6488_v39  ;;  %v6702_v12 = vmul.f32 %v17479_v44, %v17294_v11  ;;  %v6703_v21 = vmul.f32 %v17489_v50, %v17294_v11 }
 0x3d6   : > { %v6947_v16 = vmul.f32 %v17473_v55, %v17317_v4  ;;  %v6591_v61 = vadd.f32 %v6487_v31, %v6345_v10  ;;  %v6592_v13 = vadd.f32 %v6489_v43, %v6346_v47  ;;  %v6948_v18 = vmul.f32 %v17479_v44, %v17317_v4 }
 0x3d7   : > { %v6801_v32 = vrot.slane %v6701_v36, 1  ;;  %v6802_v38 = vrot.slane %v6702_v12, 1  ;;  %v6804_v46 = vrot.slane %v6703_v21, 1  ;;  %v6949_v2 = vmul.f32 %v17489_v50, %v17317_v4  ;;  %v21411_v36 = vld [vmem:[#allocation26_spill] sm:$0xff] }
 0x3d8   : > { %v7047_v52 = vrot.slane %v6947_v16, 2  ;;  %v21410_v3 = vpack.c.bf16 %v17186_v5, %v17184_v26  ;;  %v6661_v39 = vadd.f32 %v6629_v0, %v6591_v61  ;;  %v6662_v10 = vadd.f32 %v6630_v57, %v6592_v13 }
 0x3d9   : > { %v7048_v47 = vrot.slane %v6948_v18, 2  ;;  %v5507_v31 = vmul.f32 %v17382_v25, %v17216_v42  ;;  %v6805_v43 = vsel %vm967_vm3, %v6802_v38, %v6804_v46  ;;  %v7050_v12 = vrot.slane %v6949_v2, 2 }
 0x3da   : > { %13801 = vmatmul.mubr.msk.bf16.gmra.mrb[60].mxu0 %vm687_vm5, %v17127_v1  ;;  %v5508_v21 = vmul.f32 %v17386_v14, %v17216_v42  ;;  %v6908_v54 = vadd.f32 %v6805_v43, %v6662_v10  ;;  %v5580_v57 = vmul.f32 %v17382_v25, %v17173_v24  ;;  %v5581_v13 = vmul.f32 %v17386_v14, %v17173_v24 }
 0x3db   : > { %13806 = vmatprep.mubr.msk.bf16.mxu0 %vm687_vm5, %v16912_v23  ;;  %v6803_v23 = vsel %vm967_vm3, %v6801_v32, %v6802_v38  ;;  %v7049_v0 = vsel %vm1521_vm4, %v7047_v52, %v7048_v47  ;;  %v7051_v61 = vsel %vm1521_vm4, %v7048_v47, %v7050_v12  ;;  %v5582_v32 = vmul.f32 %v17397_v22, %v17173_v24  ;;  %v21412_v12 = vld [vmem:[#allocation24_spill] sm:$0xff] }
 0x3dc   : > { %13937 = vmatmul.mubr.msk.bf16.gmra.mrb[12].mxu1 %vm687_vm5, %v21410_v3  ;;  %v6907_v16 = vadd.f32 %v6803_v23, %v6661_v39  ;;  %v5826_v18 = vmul.f32 %v17382_v25, %v17194_v8  ;;  %v7154_v46 = vadd.f32 %v7051_v61, %v6908_v54  ;;  %v5682_v2 = vrot.slane %v5580_v57, 1  ;;  %v7236_v3 = vld [vmem:[%s21159_s5] sm:$0x3]  ;;  %v21413_v61 = vld [vmem:[#allocation27_spill] sm:$0xff] }
 0x3dd   : > { %13942 = vmatprep.mubr.msk.bf16.mxu1 %vm687_vm5, %v21411_v36  ;;  %v5827_v52 = vmul.f32 %v17386_v14, %v17194_v8  ;;  %v5683_v39 = vrot.slane %v5581_v13, 1  ;;  %v5685_v10 = vrot.slane %v5582_v32, 1  ;;  %v5828_v47 = vmul.f32 %v17397_v22, %v17194_v8  ;;  %v17583_v13 = vld [vmem:[#allocation2 + $0x80] sm:$0xff] }
 0x3de   : > { %v7153_v38 = vadd.f32 %v7049_v0, %v6907_v16  ;;  %v5928_v23 = vrot.slane %v5826_v18, 2  ;;  %v17538_v54 = vadd.f32 %v17349_v33, %v7154_v46  ;;  %v6069_v43 = vmul.f32 %v17473_v55, %v17259_v6  ;;  %v21414_v18 = vld [vmem:[#allocation28_spill] sm:$0xff] }
 0x3df   : > { %v5929_v14 = vrot.slane %v5827_v52, 2  ;;  %v5684_v22 = vsel %vm967_vm3, %v5682_v2, %v5683_v39  ;;  %v5686_v16 = vsel %vm967_vm3, %v5683_v39, %v5685_v10  ;;  %v6070_v0 = vmul.f32 %v17479_v44, %v17259_v6 }
 0x3e0   : > { %v17535_v25 = vadd.f32 %v17349_v33, %v7153_v38  ;;  %v5785_v32 = vadd.f32 %v5684_v22, %v5507_v31  ;;  %v17559_v38 = vsel %vm1144_vm0, %v7236_v3, 0  ;;  %v6142_v52 = vmul.f32 %v17473_v55, %v17250_v48 }
 0x3e1   : > { %v5930_v46 = vsel %vm1521_vm4, %v5928_v23, %v5929_v14  ;;  %v6143_v31 = vmul.f32 %v17479_v44, %v17250_v48  ;;  %v6390_v23 = vmul.f32 %v17489_v50, %v17274_v49 }
 0x3e2   : > { %13807 = vmatmul.mubr.msk.bf16.vlgmr.msra.gmra.mrb[32].mxu0 %vm687_vm5, %v16920_v30  ;;  %v5931_v30 = vrot.slane %v5828_v47, 2  ;;  %v6031_v39 = vadd.f32 %v5930_v46, %v5785_v32  ;;  %v6244_v47 = vrot.slane %v6142_v52, 1  ;;  %v17575_v46 = vld [vmem:[#allocation2 + $0x78] sm:$0xff] }
 0x3e3   : > { %13839 = vmatpush3.bf16.msra.mxu0 %v21412_v12  ;;  %13810 = vmatprep.mubr.msk.bf16.mxu0 %vm687_vm5, %v16960_v63  ;;  %v5786_v63 = vadd.f32 %v5686_v16, %v5508_v21  ;;  %v6144_v21 = vmul.f32 %v17489_v50, %v17250_v48  ;;  %v6245_v22 = vrot.slane %v6143_v31, 1  ;;  %v5511_v35 = vmul.f32 %v17575_v46, %v17216_v42 }
 0x3e4   : > { %13943 = vmatmul.mubr.msk.bf16.vlgmr.msra.gmra.mrb[16].mxu1 %vm687_vm5, %v21413_v61  ;;  %15203 = vmatprep.subr.msk.bf16.mxu0 %vm1144_vm0, %v7236_v3  ;;  %v5932_v2 = vsel %vm1521_vm4, %v5929_v14, %v5931_v30  ;;  %v6389_v3 = vmul.f32 %v17479_v44, %v17274_v49  ;;  %v6101_v14 = vadd.f32 %v6069_v43, %v6031_v39 }
 0x3e5   : > { %13946 = vmatprep.mubr.msk.bf16.mxu1 %vm687_vm5, %v21414_v18  ;;  %13975 = vmatpush3.bf16.msra.mxu1 %v17239_v59  ;;  %v6032_v10 = vadd.f32 %v5932_v2, %v5786_v63  ;;  %v6388_v59 = vmul.f32 %v17473_v55, %v17274_v49  ;;  %v6247_v16 = vrot.slane %v6144_v21, 1  ;;  %v6493_v63 = vrot.slane %v6390_v23, 2  ;;  %v21415_v21 = vld [vmem:[#allocation29_spill] sm:$0xff] }
 0x3e6   : > { %v6491_v32 = vrot.slane %v6389_v3, 2  ;;  %v6631_v2 = vmul.f32 %v17575_v46, %v17299_v58  ;;  %v6246_v52 = vsel %vm967_vm3, %v6244_v47, %v6245_v22  ;;  %v6632_v43 = vmul.f32 %v17583_v13, %v17299_v58 }
 0x3e7   : > { %v6102_v12 = vadd.f32 %v6070_v0, %v6032_v10  ;;  %v6490_v30 = vrot.slane %v6388_v59, 2  ;;  %v6248_v57 = vsel %vm967_vm3, %v6245_v22, %v6247_v16  ;;  %v6704_v0 = vmul.f32 %v17575_v46, %v17294_v11  ;;  %v17597_v59 = vld [vmem:[#allocation2 + $0x88] sm:$0x3] }
 0x3e8   : > { %v6347_v39 = vadd.f32 %v6246_v52, %v6101_v14  ;;  %v6705_v47 = vmul.f32 %v17583_v13, %v17294_v11  ;;  %v6706_v3 = vmul.f32 %v17597_v59, %v17294_v11  ;;  %v6951_v22 = vmul.f32 %v17583_v13, %v17317_v4 }
 0x3e9   : > { %v6348_v10 = vadd.f32 %v6248_v57, %v6102_v12  ;;  %v6492_v31 = vsel %vm1521_vm4, %v6490_v30, %v6491_v32  ;;  %v6806_v23 = vrot.slane %v6704_v0, 1  ;;  %v21416_v57 = vld [vmem:[#allocation7_spill] sm:$0xff]  ;;  %v6952_v16 = vmul.f32 %v17597_v59, %v17317_v4 }
 0x3ea   : > { %13811 = vmatmul.mubr.msk.bf16.gmra.mrb[36].mxu0 %vm687_vm5, %v16966_v17  ;;  %v6494_v17 = vsel %vm1521_vm4, %v6491_v32, %v6493_v63  ;;  %v6593_v14 = vadd.f32 %v6492_v31, %v6347_v39  ;;  %v6807_v30 = vrot.slane %v6705_v47, 1  ;;  %v6809_v32 = vrot.slane %v6706_v3, 1 }
 0x3eb   : > { %13814 = vmatprep.mubr.msk.bf16.mxu0 %vm687_vm5, %v16990_v27  ;;  %v6950_v27 = vmul.f32 %v17575_v46, %v17317_v4  ;;  %v6594_v12 = vadd.f32 %v6494_v17, %v6348_v10  ;;  %v5509_v52 = vmul.f32 %v17473_v55, %v17216_v42  ;;  %v7053_v5 = vrot.slane %v6951_v22, 2 }
 0x3ec   : > { %13947 = vmatmul.mubr.msk.bf16.gmra.mrb[20].mxu1 %vm687_vm5, %v21415_v21  ;;  %v6663_v0 = vadd.f32 %v6631_v2, %v6593_v14  ;;  %v7055_v1 = vrot.slane %v6952_v16, 2  ;;  %v6808_v15 = vsel %vm967_vm3, %v6806_v23, %v6807_v30  ;;  %v6810_v39 = vsel %vm967_vm3, %v6807_v30, %v6809_v32  ;;  %v21418_v30 = vld [vmem:[#allocation9_spill] sm:$0xff] }
 0x3ed   : > { %13950 = vmatprep.mubr.msk.bf16.mxu1 %vm687_vm5, %v21416_v57  ;;  %v7052_v63 = vrot.slane %v6950_v27, 2  ;;  %v6664_v26 = vadd.f32 %v6632_v43, %v6594_v12  ;;  %v5510_v10 = vmul.f32 %v17479_v44, %v17216_v42  ;;  %v5583_v31 = vmul.f32 %v17473_v55, %v17173_v24 }
 0x3ee   : > { %v6909_v17 = vadd.f32 %v6808_v15, %v6663_v0  ;;  %v7056_v27 = vsel %vm1521_vm4, %v7053_v5, %v7055_v1  ;;  %v5584_v2 = vmul.f32 %v17479_v44, %v17173_v24  ;;  %v5585_v43 = vmul.f32 %v17489_v50, %v17173_v24 }
 0x3ef   : > { %v6910_v47 = vadd.f32 %v6810_v39, %v6664_v26  ;;  %v7054_v3 = vsel %vm1521_vm4, %v7052_v63, %v7053_v5  ;;  %v5687_v23 = vrot.slane %v5583_v31, 1  ;;  %v5829_v14 = vmul.f32 %v17473_v55, %v17194_v8  ;;  %v21417_v5 = vld [vmem:[#allocation8_spill] sm:$0xff] }
 0x3f0   : > { %v7155_v15 = vadd.f32 %v7054_v3, %v6909_v17  ;;  %v5830_v1 = vmul.f32 %v17479_v44, %v17194_v8  ;;  %v5688_v12 = vrot.slane %v5584_v2, 1  ;;  %v5690_v22 = vrot.slane %v5585_v43, 1  ;;  %v21422_v17 = vld [vmem:[#allocation11_spill] sm:$0xff] }
 0x3f1   : > { %v7156_v26 = vadd.f32 %v7056_v27, %v6910_v47  ;;  %v5933_v16 = vrot.slane %v5829_v14, 2  ;;  %v6071_v55 = vmul.f32 %v17575_v46, %v17259_v6  ;;  %v6072_v39 = vmul.f32 %v17583_v13, %v17259_v6 }
 0x3f2   : > { %13815 = vmatmul.mubr.msk.bf16.gmra.mrb[40].mxu0 %vm687_vm5, %v16996_v34  ;;  %v5831_v34 = vmul.f32 %v17489_v50, %v17194_v8  ;;  %v5934_v32 = vrot.slane %v5830_v1, 2  ;;  %v5689_v63 = vsel %vm967_vm3, %v5687_v23, %v5688_v12  ;;  %v5691_v0 = vsel %vm967_vm3, %v5688_v12, %v5690_v22 }
 0x3f3   : > { %13818 = vmatprep.mubr.msk.bf16.mxu0 %vm687_vm5, %v17020_v7  ;;  %v17640_v7 = vadd.f32 %v17349_v33, %v7155_v15  ;;  %v17643_v44 = vadd.f32 %v17349_v33, %v7156_v26  ;;  %v6145_v31 = vmul.f32 %v17575_v46, %v17250_v48  ;;  %v5787_v47 = vadd.f32 %v5689_v63, %v5509_v52 }
 0x3f4   : > { %13951 = vmatmul.mubr.msk.bf16.gmra.mrb[24].mxu1 %vm687_vm5, %v21417_v5  ;;  %v5936_v50 = vrot.slane %v5831_v34, 2  ;;  %v5788_v3 = vadd.f32 %v5691_v0, %v5510_v10  ;;  %v5935_v27 = vsel %vm1521_vm4, %v5933_v16, %v5934_v32  ;;  %v6146_v43 = vmul.f32 %v17583_v13, %v17250_v48  ;;  %v21419_v10 = vld [vmem:[#allocation37_spill] sm:$0xff]  ;;  %v17667_v16 = vld [vmem:[#allocation2 + $0x90] sm:$0xff] }
 0x3f5   : > { %13954 = vmatprep.mubr.msk.bf16.mxu1 %vm687_vm5, %v21418_v30  ;;  %v6147_v23 = vmul.f32 %v17597_v59, %v17250_v48  ;;  %v6249_v14 = vrot.slane %v6145_v31, 1  ;;  %v6033_v15 = vadd.f32 %v5935_v27, %v5787_v47  ;;  %v6391_v1 = vmul.f32 %v17575_v46, %v17274_v49 }
 0x3f6   : > { %v5937_v2 = vsel %vm1521_vm4, %v5934_v32, %v5936_v50  ;;  %v6392_v52 = vmul.f32 %v17583_v13, %v17274_v49  ;;  %v6250_v34 = vrot.slane %v6146_v43, 1  ;;  %v6393_v22 = vmul.f32 %v17597_v59, %v17274_v49  ;;  %v21420_v50 = vld [vmem:[#allocation39_spill] sm:$0xff] }
 0x3f7   : > { %v6034_v26 = vadd.f32 %v5937_v2, %v5788_v3  ;;  %v6252_v12 = vrot.slane %v6147_v23, 1  ;;  %v6633_v32 = vmul.f32 %v17667_v16, %v17299_v58  ;;  %v6103_v63 = vadd.f32 %v6071_v55, %v6033_v15  ;;  %v21421_v3 = vld [vmem:[#allocation10_spill] sm:$0xff]  ;;  %v17677_v23 = vld [vmem:[#allocation2 + $0x98] sm:$0xff] }
 0x3f8   : > { %v6495_v31 = vrot.slane %v6391_v1, 2  ;;  %v6496_v47 = vrot.slane %v6392_v52, 2  ;;  %v6251_v27 = vsel %vm967_vm3, %v6249_v14, %v6250_v34  ;;  %v6498_v43 = vrot.slane %v6393_v22, 2  ;;  %v17689_v52 = vld [vmem:[#allocation2 + $0xa0] sm:$0x3] }
 0x3f9   : > { %v6104_v0 = vadd.f32 %v6072_v39, %v6034_v26  ;;  %v6253_v2 = vsel %vm967_vm3, %v6250_v34, %v6252_v12  ;;  %v6349_v55 = vadd.f32 %v6251_v27, %v6103_v63  ;;  %v6707_v26 = vmul.f32 %v17667_v16, %v17294_v11 }
 0x3fa   : > { %13819 = vmatmul.mubr.msk.bf16.gmra.mrb[44].mxu0 %vm687_vm5, %v21419_v10  ;;  %v6634_v10 = vmul.f32 %v17677_v23, %v17299_v58  ;;  %v6497_v15 = vsel %vm1521_vm4, %v6495_v31, %v6496_v47  ;;  %v6499_v14 = vsel %vm1521_vm4, %v6496_v47, %v6498_v43  ;;  %v6708_v1 = vmul.f32 %v17677_v23, %v17294_v11 }
 0x3fb   : > { %13822 = vmatprep.mubr.msk.bf16.mxu0 %vm687_vm5, %v21420_v50  ;;  %v6350_v39 = vadd.f32 %v6253_v2, %v6104_v0  ;;  %v6709_v34 = vmul.f32 %v17689_v52, %v17294_v11  ;;  %v6595_v12 = vadd.f32 %v6497_v15, %v6349_v55  ;;  %v6811_v50 = vrot.slane %v6707_v26, 1 }
 0x3fc   : > { %13955 = vmatmul.mubr.msk.bf16.gmra.mrb[28].mxu1 %vm687_vm5, %v21421_v3  ;;  %v6954_v63 = vmul.f32 %v17677_v23, %v17317_v4  ;;  %v6812_v0 = vrot.slane %v6708_v1, 1  ;;  %v6955_v47 = vmul.f32 %v17689_v52, %v17317_v4  ;;  %v5512_v26 = vmul.f32 %v17583_v13, %v17216_v42 }
 0x3fd   : > { %13958 = vmatprep.mubr.msk.bf16.mxu1 %vm687_vm5, %v21422_v17  ;;  %v6953_v17 = vmul.f32 %v17667_v16, %v17317_v4  ;;  %v6596_v22 = vadd.f32 %v6499_v14, %v6350_v39  ;;  %v6814_v31 = vrot.slane %v6709_v34, 1  ;;  %v6665_v27 = vadd.f32 %v6633_v32, %v6595_v12  ;;  %v21423_v34 = vld [vmem:[#allocation12_spill] sm:$0xff] }
 0x3fe   : > { %v7058_v43 = vrot.slane %v6954_v63, 2  ;;  %v6813_v55 = vsel %vm967_vm3, %v6811_v50, %v6812_v0  ;;  %v7060_v15 = vrot.slane %v6955_v47, 2  ;;  %v5586_v1 = vmul.f32 %v17575_v46, %v17173_v24 }
 0x3ff   : > { %v7057_v3 = vrot.slane %v6953_v17, 2  ;;  %v6666_v2 = vadd.f32 %v6634_v10, %v6596_v22  ;;  %v6815_v39 = vsel %vm967_vm3, %v6812_v0, %v6814_v31  ;;  %v6911_v32 = vadd.f32 %v6813_v55, %v6665_v27  ;;  %v21424_v22 = vld [vmem:[#allocation13_spill] sm:$0xff] }
 0x400   : > { %v5587_v17 = vmul.f32 %v17583_v13, %v17173_v24  ;;  %v5588_v12 = vmul.f32 %v17597_v59, %v17173_v24  ;;  %v5692_v0 = vrot.slane %v5586_v1, 1  ;;  %v5833_v31 = vmul.f32 %v17583_v13, %v17194_v8 }
 0x401   : > { %v6912_v10 = vadd.f32 %v6815_v39, %v6666_v2  ;;  %v7059_v14 = vsel %vm1521_vm4, %v7057_v3, %v7058_v43  ;;  %v5834_v27 = vmul.f32 %v17597_v59, %v17194_v8  ;;  %v6073_v39 = vmul.f32 %v17667_v16, %v17259_v6 }
 0x402   : > { %13823 = vmatmul.mubr.msk.bf16.gmra.mrb[48].mxu0 %vm687_vm5, %v17056_v56  ;;  %v7061_v56 = vsel %vm1521_vm4, %v7058_v43, %v7060_v15  ;;  %v7157_v50 = vadd.f32 %v7059_v14, %v6911_v32  ;;  %v5693_v47 = vrot.slane %v5587_v17, 1  ;;  %v5695_v3 = vrot.slane %v5588_v12, 1 }
 0x403   : > { %13826 = vmatprep.mubr.msk.bf16.mxu0 %vm687_vm5, %v17080_v28  ;;  %v5832_v28 = vmul.f32 %v17575_v46, %v17194_v8  ;;  %v7158_v63 = vadd.f32 %v7061_v56, %v6912_v10  ;;  %v5939_v55 = vrot.slane %v5833_v31, 2  ;;  %v5941_v32 = vrot.slane %v5834_v27, 2 }
 0x404   : > { %13959 = vmatmul.mubr.msk.bf16.gmra.mrb[0].mxu1 %vm687_vm5, %v21423_v34  ;;  %v17728_v43 = vadd.f32 %v17349_v33, %v7157_v50  ;;  %v5694_v15 = vsel %vm967_vm3, %v5692_v0, %v5693_v47  ;;  %v5696_v13 = vsel %vm967_vm3, %v5693_v47, %v5695_v3  ;;  %v6074_v10 = vmul.f32 %v17677_v23, %v17259_v6  ;;  %v21425_v50 = vld [vmem:[#allocation15_spill] sm:$0xff]  ;;  %v21426_v3 = vld [vmem:[#allocation16_spill] sm:$0xff] }
 0x405   : > { %13962 = vmatprep.mubr.msk.bf16.mxu1 %vm687_vm5, %v21424_v22  ;;  %v5938_v2 = vrot.slane %v5832_v28, 2  ;;  %v17731_v46 = vadd.f32 %v17349_v33, %v7158_v63  ;;  %v5789_v14 = vadd.f32 %v5694_v15, %v5511_v35  ;;  %v5790_v1 = vadd.f32 %v5696_v13, %v5512_v26 }
 0x406   : > { %v5942_v56 = vsel %vm1521_vm4, %v5939_v55, %v5941_v32  ;;  %v6148_v17 = vmul.f32 %v17667_v16, %v17250_v48  ;;  %v6149_v12 = vmul.f32 %v17677_v23, %v17250_v48  ;;  %v6150_v28 = vmul.f32 %v17689_v52, %v17250_v48 }
 0x407   : > { %v7224_v59 = vpack.c.bf16 %v17731_v46, %v17728_v43  ;;  %v5940_v34 = vsel %vm1521_vm4, %v5938_v2, %v5939_v55  ;;  %v6036_v26 = vadd.f32 %v5942_v56, %v5790_v1  ;;  %v6394_v22 = vmul.f32 %v17667_v16, %v17274_v49  ;;  %v21446_v46 = vld [vmem:[#allocation14_spill] sm:$0xff] }
 0x408   : > { %v6035_v35 = vadd.f32 %v5940_v34, %v5789_v14  ;;  %v6254_v63 = vrot.slane %v6148_v17, 1  ;;  %v6255_v0 = vrot.slane %v6149_v12, 1  ;;  %v6257_v31 = vrot.slane %v6150_v28, 1  ;;  %v17765_v14 = vld [vmem:[#allocation2 + $0xa8] sm:$0xff]  ;;  %v17770_v12 = vld [vmem:[#allocation2 + $0xb0] sm:$0xff] }
 0x409   : > { %v6396_v47 = vmul.f32 %v17689_v52, %v17274_v49  ;;  %v6106_v27 = vadd.f32 %v6074_v10, %v6036_v26  ;;  %v6500_v2 = vrot.slane %v6394_v22, 2  ;;  %v6635_v1 = vmul.f32 %v17765_v14, %v17299_v58  ;;  %v17779_v26 = vld [vmem:[#allocation2 + $0xb8] sm:$0x3] }
 0x40a   : > { %13827 = vmatmul.mubr.msk.bf16.gmra.mrb[52].mxu0 %vm687_vm5, %v17086_v20  ;;  %v6395_v20 = vmul.f32 %v17677_v23, %v17274_v49  ;;  %v6256_v15 = vsel %vm967_vm3, %v6254_v63, %v6255_v0  ;;  %v6258_v13 = vsel %vm967_vm3, %v6255_v0, %v6257_v31  ;;  %v6710_v28 = vmul.f32 %v17765_v14, %v17294_v11 }
 0x40b   : > { %13830 = vmatprep.mubr.msk.bf16.mxu0 %vm687_vm5, %v17112_v45  ;;  %v6105_v45 = vadd.f32 %v6073_v39, %v6035_v35  ;;  %v6503_v32 = vrot.slane %v6396_v47, 2  ;;  %v6352_v56 = vadd.f32 %v6258_v13, %v6106_v27  ;;  %v6636_v39 = vmul.f32 %v17770_v12, %v17299_v58  ;;  %v21427_v13 = vld [vmem:[#allocation21_spill] sm:$0xff] }
 0x40c   : > { %13963 = vmatmul.mubr.msk.bf16.gmra.mrb[4].mxu1 %vm687_vm5, %v21425_v50  ;;  %v6501_v55 = vrot.slane %v6395_v20, 2  ;;  %v6711_v35 = vmul.f32 %v17770_v12, %v17294_v11  ;;  %v6712_v22 = vmul.f32 %v17779_v26, %v17294_v11  ;;  %v6956_v63 = vmul.f32 %v17765_v14, %v17317_v4 }
 0x40d   : > { %13966 = vmatprep.mubr.msk.bf16.mxu1 %vm687_vm5, %v21426_v3  ;;  %v6351_v34 = vadd.f32 %v6256_v15, %v6105_v45  ;;  %v6957_v0 = vmul.f32 %v17770_v12, %v17317_v4  ;;  %v6816_v31 = vrot.slane %v6710_v28, 1  ;;  %v6958_v45 = vmul.f32 %v17779_v26, %v17317_v4 }
 0x40e   : > { %v6502_v17 = vsel %vm1521_vm4, %v6500_v2, %v6501_v55  ;;  %v6504_v10 = vsel %vm1521_vm4, %v6501_v55, %v6503_v32  ;;  %v6817_v47 = vrot.slane %v6711_v35, 1  ;;  %v6819_v3 = vrot.slane %v6712_v22, 1 }
 0x40f   : > { %v6597_v20 = vadd.f32 %v6502_v17, %v6351_v34  ;;  %v6598_v50 = vadd.f32 %v6504_v10, %v6352_v56  ;;  %v7062_v55 = vrot.slane %v6956_v63, 2  ;;  %v7063_v15 = vrot.slane %v6957_v0, 2  ;;  %v21428_v17 = vld [vmem:[#allocation30_spill] sm:$0xff] }
 0x410   : > { %v6818_v32 = vsel %vm967_vm3, %v6816_v31, %v6817_v47  ;;  %v7065_v34 = vrot.slane %v6958_v45, 2  ;;  %v5513_v56 = vmul.f32 %v17667_v16, %v17216_v42  ;;  %v5589_v35 = vmul.f32 %v17667_v16, %v17173_v24 }
 0x411   : > { %v6667_v27 = vadd.f32 %v6635_v1, %v6597_v20  ;;  %v6668_v2 = vadd.f32 %v6636_v39, %v6598_v50  ;;  %v7064_v1 = vsel %vm1521_vm4, %v7062_v55, %v7063_v15  ;;  %v5514_v39 = vmul.f32 %v17677_v23, %v17216_v42 }
 0x412   : > { %13831 = vmatmul.mubr.msk.bf16.gmra.mrb[56].mxu0 %vm687_vm5, %v17119_v60  ;;  %v6820_v60 = vsel %vm967_vm3, %v6817_v47, %v6819_v3  ;;  %v7066_v28 = vsel %vm1521_vm4, %v7063_v15, %v7065_v34  ;;  %v5590_v22 = vmul.f32 %v17677_v23, %v17173_v24  ;;  %v5591_v20 = vmul.f32 %v17689_v52, %v17173_v24 }
 0x413   : > { %13834 = vmatprep.mubr.msk.bf16.mxu0 %vm687_vm5, %v17142_v41  ;;  %v6913_v10 = vadd.f32 %v6818_v32, %v6667_v27  ;;  %v6914_v41 = vadd.f32 %v6820_v60, %v6668_v2  ;;  %v5835_v0 = vmul.f32 %v17667_v16, %v17194_v8  ;;  %v5836_v31 = vmul.f32 %v17677_v23, %v17194_v8 }
 0x414   : > { %13967 = vmatmul.mubr.msk.bf16.gmra.mrb[8].mxu1 %vm687_vm5, %v21427_v13  ;;  %v5697_v42 = vrot.slane %v5589_v35, 1  ;;  %v5698_v47 = vrot.slane %v5590_v22, 1  ;;  %v5700_v3 = vrot.slane %v5591_v20, 1  ;;  %v5837_v45 = vmul.f32 %v17689_v52, %v17194_v8  ;;  %v21429_v8 = vld [vmem:[#allocation25_spill] sm:$0xff] }
 0x415   : > { %13970 = vmatprep.mubr.msk.bf16.mxu1 %vm687_vm5, %v21428_v17  ;;  %v7159_v50 = vadd.f32 %v7064_v1, %v6913_v10  ;;  %v7160_v63 = vadd.f32 %v7066_v28, %v6914_v41  ;;  %v5943_v24 = vrot.slane %v5835_v0, 2  ;;  %v5944_v55 = vrot.slane %v5836_v31, 2  ;;  %v21430_v17 = vld [vmem:[#allocation23_spill] sm:$0xff] }
 0x416   : > { %v5699_v16 = vsel %vm967_vm3, %v5697_v42, %v5698_v47  ;;  %v5701_v23 = vsel %vm967_vm3, %v5698_v47, %v5700_v3  ;;  %v5946_v15 = vrot.slane %v5837_v45, 2  ;;  %v6075_v13 = vmul.f32 %v17765_v14, %v17259_v6 }
 0x417   : > { %v17818_v27 = vadd.f32 %v17349_v33, %v7159_v50  ;;  %v17821_v2 = vadd.f32 %v17349_v33, %v7160_v63  ;;  %v5791_v32 = vadd.f32 %v5699_v16, %v5513_v56  ;;  %v5792_v60 = vadd.f32 %v5701_v23, %v5514_v39  ;;  %v21433_v56 = vld [vmem:[#allocation31_spill] sm:$0xff] }
 0x418   : > { %v5945_v34 = vsel %vm1521_vm4, %v5943_v24, %v5944_v55  ;;  %v5947_v41 = vsel %vm1521_vm4, %v5944_v55, %v5946_v15  ;;  %v6076_v1 = vmul.f32 %v17770_v12, %v17259_v6  ;;  %v6151_v28 = vmul.f32 %v17765_v14, %v17250_v48 }
 0x419   : > { %v7225_v52 = vpack.c.bf16 %v17821_v2, %v17818_v27  ;;  %v6152_v35 = vmul.f32 %v17770_v12, %v17250_v48  ;;  %v6037_v39 = vadd.f32 %v5945_v34, %v5791_v32  ;;  %v6038_v22 = vadd.f32 %v5947_v41, %v5792_v60  ;;  %v17861_v32 = vld [vmem:[#allocation2 + $0xc8] sm:$0xff] }
 0x41a   : > { %13835 = vmatmul.mubr.msk.bf16.gmra.mrb[60].mxu0 %vm687_vm5, %v17226_v40  ;;  %v21431_v40 = vld [vmem:[#allocation17_spill] sm:$0xff]  ;;  %v6153_v20 = vmul.f32 %v17779_v26, %v17250_v48  ;;  %v6397_v50 = vmul.f32 %v17765_v14, %v17274_v49  ;;  %v6259_v63 = vrot.slane %v6151_v28, 1  ;;  %v6398_v6 = vmul.f32 %v17770_v12, %v17274_v49  ;;  %v17856_v48 = vld [vmem:[#allocation2 + $0xc0] sm:$0xff] }
 0x41b   : > { %13840 = vmatprep.mubr.msk.bf16.mxu0 %vm687_vm5, %v21429_v8  ;;  %v21432_v10 = vpack.c.bf16 %v21430_v17, %v21431_v40  ;;  %v6260_v0 = vrot.slane %v6152_v35, 1  ;;  %v6399_v31 = vmul.f32 %v17779_v26, %v17274_v49  ;;  %v6107_v42 = vadd.f32 %v6075_v13, %v6037_v39  ;;  %v21434_v28 = vld [vmem:[#allocation32_spill] sm:$0xff]  ;;  %v21435_v39 = vld [vmem:[#allocation33_spill] sm:$0xff] }
 0x41c   : > { %v6108_v47 = vadd.f32 %v6076_v1, %v6038_v22  ;;  %v6262_v3 = vrot.slane %v6153_v20, 1  ;;  %v6505_v45 = vrot.slane %v6397_v50, 2  ;;  %v6506_v55 = vrot.slane %v6398_v6, 2  ;;  %v17893_v50 = vld [vmem:[%s21299_s4] ss:$0 sm:$0xff] }
 0x41d   : > { %13971 = vmatmul.mubr.msk.bf16.gmra.mrb[12].mxu1 %vm687_vm5, %v21432_v10  ;;  %v6261_v24 = vsel %vm967_vm3, %v6259_v63, %v6260_v0  ;;  %v6508_v16 = vrot.slane %v6399_v31, 2  ;;  %v6637_v23 = vmul.f32 %v17856_v48, %v17299_v58  ;;  %v6638_v49 = vmul.f32 %v17861_v32, %v17299_v58  ;;  %v17876_v10 = vld [vmem:[#allocation2 + $0xd0] sm:$0x3] }
 0x41e   : > { %13976 = vmatprep.mubr.msk.bf16.mxu1 %vm687_vm5, %v21433_v56  ;;  %v6263_v15 = vsel %vm967_vm3, %v6260_v0, %v6262_v3  ;;  %v6353_v8 = vadd.f32 %v6261_v24, %v6107_v42  ;;  %v6713_v13 = vmul.f32 %v17856_v48, %v17294_v11  ;;  %v6507_v34 = vsel %vm1521_vm4, %v6505_v45, %v6506_v55  ;;  %v17904_v45 = vld [vmem:[%s21299_s4 + $0x1] ss:$0 sm:$0xff] }
 0x41f   : > { %v6354_v60 = vadd.f32 %v6263_v15, %v6108_v47  ;;  %v6509_v17 = vsel %vm1521_vm4, %v6506_v55, %v6508_v16  ;;  %v6714_v40 = vmul.f32 %v17861_v32, %v17294_v11  ;;  %v6715_v41 = vmul.f32 %v17876_v10, %v17294_v11 }
 0x420   : > { %v6599_v58 = vadd.f32 %v6507_v34, %v6353_v8  ;;  %v6959_v1 = vmul.f32 %v17856_v48, %v17317_v4  ;;  %v5515_v63 = vmul.f32 %v17893_v50, %v17765_v14  ;;  %v5516_v3 = vmul.f32 %v17893_v50, %v17770_v12 }
 0x421   : > { %v6600_v35 = vadd.f32 %v6509_v17, %v6354_v60  ;;  %v6822_v56 = vrot.slane %v6714_v40, 1  ;;  %v6824_v11 = vrot.slane %v6715_v41, 1  ;;  %v5592_v24 = vmul.f32 %v17904_v45, %v17765_v14  ;;  %v17917_v60 = vld [vmem:[%s21299_s4 + $0x2] ss:$0 sm:$0xff] }
 0x422   : > { %13841 = vmatmul.mubr.msk.bf16.vlgmr.msra.gmra.mrb[32].mxu0 %vm687_vm5, %v21411_v36  ;;  %v6821_v36 = vrot.slane %v6713_v13, 1  ;;  %v6669_v22 = vadd.f32 %v6637_v23, %v6599_v58  ;;  %v7067_v20 = vrot.slane %v6959_v1, 2  ;;  %v5593_v15 = vmul.f32 %v17904_v45, %v17770_v12 }
 0x423   : > { %14009 = vmatpush3.bf16.msra.mxu0 %v17559_v38  ;;  %13844 = vmatprep.mubr.msk.bf16.mxu0 %vm687_vm5, %v21413_v61  ;;  %v6960_v38 = vmul.f32 %v17861_v32, %v17317_v4  ;;  %v6961_v61 = vmul.f32 %v17876_v10, %v17317_v4  ;;  %v6670_v0 = vadd.f32 %v6638_v49, %v6600_v35  ;;  %v5702_v13 = vrot.slane %v5592_v24, 1 }
 0x424   : > { %v6823_v6 = vsel %vm967_vm3, %v6821_v36, %v6822_v56  ;;  %v6825_v4 = vsel %vm967_vm3, %v6822_v56, %v6824_v11  ;;  %v5594_v49 = vmul.f32 %v17904_v45, %v17779_v26  ;;  %v5838_v34 = vmul.f32 %v17917_v60, %v17765_v14  ;;  %v17953_v11 = vld [vmem:[%s21299_s4 + $0x4] ss:$0 sm:$0xff] }
 0x425   : > { %13977 = vmatmul.mubr.msk.bf16.vlgmr.msra.gmra.mrb[16].mxu1 %vm687_vm5, %v21434_v28  ;;  %v7068_v31 = vrot.slane %v6960_v38, 2  ;;  %v7070_v42 = vrot.slane %v6961_v61, 2  ;;  %v6915_v47 = vadd.f32 %v6823_v6, %v6669_v22  ;;  %v6916_v55 = vadd.f32 %v6825_v4, %v6670_v0  ;;  %v21437_v38 = vld [vmem:[#allocation35_spill] sm:$0xff] }
 0x426   : > { %13980 = vmatprep.mubr.msk.bf16.mxu1 %vm687_vm5, %v21435_v39  ;;  %v5703_v40 = vrot.slane %v5593_v15, 1  ;;  %v5839_v58 = vmul.f32 %v17917_v60, %v17770_v12  ;;  %v5840_v41 = vmul.f32 %v17917_v60, %v17779_v26  ;;  %v5705_v1 = vrot.slane %v5594_v49, 1  ;;  %v21436_v12 = vld [vmem:[#allocation34_spill] sm:$0xff] }
 0x427   : > { %v7069_v16 = vsel %vm1521_vm4, %v7067_v20, %v7068_v31  ;;  %v7071_v23 = vsel %vm1521_vm4, %v7068_v31, %v7070_v42  ;;  %v5948_v28 = vrot.slane %v5838_v34, 2  ;;  %v6155_v42 = vmul.f32 %v17953_v11, %v17861_v32  ;;  %v17981_v34 = vld [vmem:[%s21299_s4 + $0x6] ss:$0 sm:$0xff] }
 0x428   : > { %v7161_v8 = vadd.f32 %v7069_v16, %v6915_v47  ;;  %v7162_v17 = vadd.f32 %v7071_v23, %v6916_v55  ;;  %v5949_v35 = vrot.slane %v5839_v58, 2  ;;  %v5951_v56 = vrot.slane %v5840_v41, 2  ;;  %v17968_v55 = vld [vmem:[%s21299_s4 + $0x5] ss:$0 sm:$0xff] }
 0x429   : > { %v5706_v61 = vsel %vm967_vm3, %v5703_v40, %v5705_v1  ;;  %v6156_v4 = vmul.f32 %v17953_v11, %v17876_v10  ;;  %v6401_v16 = vmul.f32 %v17968_v55, %v17861_v32  ;;  %v6402_v23 = vmul.f32 %v17968_v55, %v17876_v10 }
 0x42a   : > { %13845 = vmatmul.mubr.msk.bf16.gmra.mrb[36].mxu0 %vm687_vm5, %v21414_v18  ;;  %v17930_v36 = vadd.f32 %v17349_v33, %v7161_v8  ;;  %v17935_v18 = vld [vmem:[%s21299_s4 + $0x3] ss:$0 sm:$0xff]  ;;  %v17942_v26 = vadd.f32 %v17349_v33, %v7162_v17  ;;  %v6154_v33 = vmul.f32 %v17953_v11, %v17856_v48  ;;  %v5794_v0 = vadd.f32 %v5706_v61, %v5516_v3 }
 0x42b   : > { %13848 = vmatprep.mubr.msk.bf16.mxu0 %vm687_vm5, %v21415_v21  ;;  %v6077_v14 = vmul.f32 %v17935_v18, %v17856_v48  ;;  %v5704_v21 = vsel %vm967_vm3, %v5702_v13, %v5703_v40  ;;  %v6078_v22 = vmul.f32 %v17935_v18, %v17861_v32  ;;  %v5950_v6 = vsel %vm1521_vm4, %v5948_v28, %v5949_v35  ;;  %v17976_v13 = vld [vmem:[#allocation2 + $0xd8] sm:$0xff] }
 0x42c   : > { %v5793_v39 = vadd.f32 %v5704_v21, %v5515_v63  ;;  %v7226_v20 = vpack.c.bf16 %v17942_v26, %v17930_v36  ;;  %v5952_v31 = vsel %vm1521_vm4, %v5949_v35, %v5951_v56  ;;  %v6264_v47 = vrot.slane %v6154_v33, 1  ;;  %v21438_v56 = vld [vmem:[#allocation36_spill] sm:$0xff] }
 0x42d   : > { %13981 = vmatmul.mubr.msk.bf16.gmra.mrb[20].mxu1 %vm687_vm5, %v21436_v12  ;;  %v6040_v24 = vadd.f32 %v5952_v31, %v5794_v0  ;;  %v6400_v3 = vmul.f32 %v17968_v55, %v17856_v48  ;;  %v6265_v8 = vrot.slane %v6155_v42, 1  ;;  %v6267_v49 = vrot.slane %v6156_v4, 1  ;;  %v17991_v12 = vld [vmem:[#allocation2 + $0xe0] sm:$0xff]  ;;  %v18010_v0 = vld [vmem:[#allocation2 + $0xe8] sm:$0x3] }
 0x42e   : > { %13984 = vmatprep.mubr.msk.bf16.mxu1 %vm687_vm5, %v21437_v38  ;;  %v6039_v63 = vadd.f32 %v5950_v6, %v5793_v39  ;;  %v6639_v17 = vmul.f32 %v17981_v34, %v17976_v13  ;;  %v6511_v41 = vrot.slane %v6401_v16, 2  ;;  %v6513_v1 = vrot.slane %v6402_v23, 2 }
 0x42f   : > { %v6110_v40 = vadd.f32 %v6078_v22, %v6040_v24  ;;  %v6510_v58 = vrot.slane %v6400_v3, 2  ;;  %v6266_v28 = vsel %vm967_vm3, %v6264_v47, %v6265_v8  ;;  %v6640_v21 = vmul.f32 %v17991_v12, %v17981_v34  ;;  %v21439_v22 = vld [vmem:[#allocation38_spill] sm:$0xff] }
 0x430   : > { %v6109_v15 = vadd.f32 %v6077_v14, %v6039_v63  ;;  %v6268_v14 = vsel %vm967_vm3, %v6265_v8, %v6267_v49  ;;  %v6514_v39 = vsel %vm1521_vm4, %v6511_v41, %v6513_v1  ;;  %v18017_v63 = vld [vmem:[%s21299_s4 + $0x8] ss:$0 sm:$0xff]  ;;  %v5517_v8 = vmul.f32 %v17893_v50, %v17856_v48 }
 0x431   : > { %v6356_v38 = vadd.f32 %v6268_v14, %v6110_v40  ;;  %v6512_v61 = vsel %vm1521_vm4, %v6510_v58, %v6511_v41  ;;  %v6962_v42 = vmul.f32 %v18017_v63, %v17976_v13  ;;  %v6963_v24 = vmul.f32 %v18017_v63, %v17991_v12 }
 0x432   : > { %13849 = vmatmul.mubr.msk.bf16.gmra.mrb[40].mxu0 %vm687_vm5, %v21416_v57  ;;  %v17998_v57 = vld [vmem:[%s21299_s4 + $0x7] ss:$0 sm:$0xff]  ;;  %v6964_v3 = vmul.f32 %v18017_v63, %v18010_v0  ;;  %v5518_v14 = vmul.f32 %v17893_v50, %v17861_v32  ;;  %v5598_v43 = vmul.f32 %v17976_v13, %v17904_v45 }
 0x433   : > { %13852 = vmatprep.mubr.msk.bf16.mxu0 %vm687_vm5, %v21417_v5  ;;  %v6716_v35 = vmul.f32 %v17998_v57, %v17976_v13  ;;  %v6355_v5 = vadd.f32 %v6266_v28, %v6109_v15  ;;  %v6717_v33 = vmul.f32 %v17998_v57, %v17991_v12  ;;  %v6718_v6 = vmul.f32 %v18010_v0, %v17998_v57 }
 0x434   : > { %v6602_v47 = vadd.f32 %v6514_v39, %v6356_v38  ;;  %v7072_v15 = vrot.slane %v6962_v42, 2  ;;  %v7073_v58 = vrot.slane %v6963_v24, 2  ;;  %v7075_v41 = vrot.slane %v6964_v3, 2 }
 0x435   : > { %13985 = vmatmul.mubr.msk.bf16.gmra.mrb[24].mxu1 %vm687_vm5, %v21438_v56  ;;  %v6826_v31 = vrot.slane %v6716_v35, 1  ;;  %v6601_v4 = vadd.f32 %v6512_v61, %v6355_v5  ;;  %v6827_v16 = vrot.slane %v6717_v33, 1  ;;  %v6829_v23 = vrot.slane %v6718_v6, 1 }
 0x436   : > { %13988 = vmatprep.mubr.msk.bf16.mxu1 %vm687_vm5, %v21439_v22  ;;  %v6672_v40 = vadd.f32 %v6640_v21, %v6602_v47  ;;  %v5595_v35 = vmul.f32 %v17904_v45, %v17856_v48  ;;  %v7076_v21 = vsel %vm1521_vm4, %v7073_v58, %v7075_v41  ;;  %v21440_v38 = vpack.c.bf16 %v17369_v9, %v17366_v37 }
 0x437   : > { %v6671_v49 = vadd.f32 %v6639_v17, %v6601_v4  ;;  %v6828_v1 = vsel %vm967_vm3, %v6826_v31, %v6827_v16  ;;  %v6830_v28 = vsel %vm967_vm3, %v6827_v16, %v6829_v23  ;;  %v7074_v17 = vsel %vm1521_vm4, %v7072_v15, %v7073_v58  ;;  %v21441_v31 = vld [vmem:[#allocation40_spill] sm:$0xff] }
 0x438   : > { %v6918_v5 = vadd.f32 %v6830_v28, %v6672_v40  ;;  %v5596_v61 = vmul.f32 %v17904_v45, %v17861_v32  ;;  %v5597_v39 = vmul.f32 %v17904_v45, %v17876_v10  ;;  %v5707_v22 = vrot.slane %v5595_v35, 1 }
 0x439   : > { %v6917_v56 = vadd.f32 %v6828_v1, %v6671_v49  ;;  %v5842_v37 = vmul.f32 %v17917_v60, %v17861_v32  ;;  %v5843_v9 = vmul.f32 %v17917_v60, %v17876_v10  ;;  %v6080_v15 = vmul.f32 %v17991_v12, %v17935_v18 }
 0x43a   : > { %13853 = vmatmul.mubr.msk.bf16.gmra.mrb[44].mxu0 %vm687_vm5, %v21418_v30  ;;  %v5841_v30 = vmul.f32 %v17917_v60, %v17856_v48  ;;  %v7164_v6 = vadd.f32 %v7076_v21, %v6918_v5  ;;  %v5708_v42 = vrot.slane %v5596_v61, 1  ;;  %v5710_v4 = vrot.slane %v5597_v39, 1 }
 0x43b   : > { %14010 = vmatprep.mubr.msk.bf16.mxu0 %vm631_vm1, %v21440_v38  ;;  %v7163_v33 = vadd.f32 %v7074_v17, %v6917_v56  ;;  %v6079_v48 = vmul.f32 %v17976_v13, %v17935_v18  ;;  %v5954_v10 = vrot.slane %v5842_v37, 2  ;;  %v5956_v3 = vrot.slane %v5843_v9, 2 }
 0x43c   : > { %v5953_v47 = vrot.slane %v5841_v30, 2  ;;  %v5709_v16 = vsel %vm967_vm3, %v5707_v22, %v5708_v42  ;;  %v5711_v23 = vsel %vm967_vm3, %v5708_v42, %v5710_v4  ;;  %v6157_v49 = vmul.f32 %v17976_v13, %v17953_v11  ;;  %v18106_v42 = vld [vmem:[#allocation2 + $0xf8] sm:$0xff] }
 0x43d   : > { %13989 = vmatmul.mubr.msk.bf16.gmra.mrb[28].mxu1 %vm687_vm5, %v17034_v62  ;;  %v18060_v62 = vld [vmem:[%s21409_s26] ss:$0 sm:$0xff]  ;;  %v5795_v58 = vadd.f32 %v5709_v16, %v5517_v8  ;;  %v5796_v41 = vadd.f32 %v5711_v23, %v5518_v14  ;;  %v5957_v28 = vsel %vm1521_vm4, %v5954_v10, %v5956_v3  ;;  %v6158_v35 = vmul.f32 %v17991_v12, %v17953_v11 }
 0x43e   : > { %13992 = vmatprep.mubr.msk.bf16.mxu1 %vm687_vm5, %v21441_v31  ;;  %v18063_v24 = vadd.f32 %v18060_v62, %v7163_v33  ;;  %v18066_v32 = vadd.f32 %v18060_v62, %v7164_v6  ;;  %v5955_v1 = vsel %vm1521_vm4, %v5953_v47, %v5954_v10  ;;  %v6159_v56 = vmul.f32 %v18010_v0, %v17953_v11  ;;  %v18116_v16 = vld [vmem:[#allocation2 + $0x100] sm:$0x3] }
 0x43f   : > { %v6269_v5 = vrot.slane %v6157_v49, 1  ;;  %v21442_v17 = vpack.c.bf16 %v17441_v51, %v17438_v29  ;;  %v6041_v21 = vadd.f32 %v5955_v1, %v5795_v58  ;;  %v6042_v38 = vadd.f32 %v5957_v28, %v5796_v41  ;;  %v18096_v51 = vld [vmem:[#allocation2 + $0xf0] sm:$0xff] }
 0x440   : > { %v7227_v40 = vpack.c.bf16 %v18066_v32, %v18063_v24  ;;  %v6403_v8 = vmul.f32 %v17976_v13, %v17968_v55  ;;  %v6404_v14 = vmul.f32 %v17991_v12, %v17968_v55  ;;  %v21443_v61 = vpack.c.bf16 %v17538_v54, %v17535_v25 }
 0x441   : > { %v6270_v39 = vrot.slane %v6158_v35, 1  ;;  %v6272_v22 = vrot.slane %v6159_v56, 1  ;;  %v6405_v29 = vmul.f32 %v18010_v0, %v17968_v55  ;;  %v6641_v30 = vmul.f32 %v18096_v51, %v17981_v34 }
 0x442   : > { %14011 = vmatmul.mubr.msk.bf16.vlgmr.msra.gmra.mrb[64].mxu0 %vm631_vm1, %v21442_v17  ;;  %v6111_v33 = vadd.f32 %v6079_v48, %v6041_v21  ;;  %v6112_v6 = vadd.f32 %v6080_v15, %v6042_v38  ;;  %v6515_v37 = vrot.slane %v6403_v8, 2  ;;  %v6516_v9 = vrot.slane %v6404_v14, 2 }
 0x443   : > { %14014 = vmatprep.mubr.msk.bf16.mxu0 %vm631_vm1, %v21443_v61  ;;  %v6271_v25 = vsel %vm967_vm3, %v6269_v5, %v6270_v39  ;;  %v6273_v54 = vsel %vm967_vm3, %v6270_v39, %v6272_v22  ;;  %v6518_v31 = vrot.slane %v6405_v29, 2  ;;  %v6642_v4 = vmul.f32 %v18106_v42, %v17981_v34 }
 0x444   : > { %v6357_v47 = vadd.f32 %v6271_v25, %v6111_v33  ;;  %v6358_v10 = vadd.f32 %v6273_v54, %v6112_v6  ;;  %v6719_v48 = vmul.f32 %v18096_v51, %v17998_v57  ;;  %v6721_v23 = vmul.f32 %v18116_v16, %v17998_v57 }
 0x445   : > { %13993 = vmatmul.mubr.msk.bf16.gmra.mrb[0].mxu1 %vm687_vm5, %v17064_v19  ;;  %v6517_v19 = vsel %vm1521_vm4, %v6515_v37, %v6516_v9  ;;  %v6519_v3 = vsel %vm1521_vm4, %v6516_v9, %v6518_v31  ;;  %v6965_v15 = vmul.f32 %v18096_v51, %v18017_v63  ;;  %v6966_v1 = vmul.f32 %v18106_v42, %v18017_v63 }
 0x446   : > { %13996 = vmatprep.mubr.msk.bf16.mxu1 %vm687_vm5, %v17090_v53  ;;  %v6720_v53 = vmul.f32 %v18106_v42, %v17998_v57  ;;  %v6603_v49 = vadd.f32 %v6517_v19, %v6357_v47  ;;  %v6604_v58 = vadd.f32 %v6519_v3, %v6358_v10  ;;  %v6831_v41 = vrot.slane %v6719_v48, 1 }
 0x447   : > { %v6834_v35 = vrot.slane %v6721_v23, 1  ;;  %v6967_v56 = vmul.f32 %v18116_v16, %v18017_v63  ;;  %v7077_v5 = vrot.slane %v6965_v15, 2  ;;  %v21444_v17 = vpack.c.bf16 %v17643_v44, %v17640_v7  ;;  %v21445_v44 = vld [vmem:[#allocation41_spill] sm:$0xff] }
 0x448   : > { %v6832_v28 = vrot.slane %v6720_v53, 1  ;;  %v6673_v21 = vadd.f32 %v6641_v30, %v6603_v49  ;;  %v6674_v38 = vadd.f32 %v6642_v4, %v6604_v58  ;;  %v7078_v8 = vrot.slane %v6966_v1, 2 }
 0x449   : > { %v5519_v14 = vmul.f32 %v17976_v13, %v17893_v50  ;;  %v7080_v22 = vrot.slane %v6967_v56, 2  ;;  %v5520_v7 = vmul.f32 %v17991_v12, %v17893_v50  ;;  %v5599_v6 = vmul.f32 %v17991_v12, %v17904_v45 }
 0x44a   : > { %14015 = vmatmul.mubr.msk.bf16.gmra.mrb[68].mxu0 %vm631_vm1, %v21444_v17  ;;  %v6833_v61 = vsel %vm967_vm3, %v6831_v41, %v6832_v28  ;;  %v6835_v39 = vsel %vm967_vm3, %v6832_v28, %v6834_v35  ;;  %v7079_v33 = vsel %vm1521_vm4, %v7077_v5, %v7078_v8  ;;  %v5600_v37 = vmul.f32 %v18010_v0, %v17904_v45 }
 0x44b   : > { %14018 = vmatprep.mubr.msk.bf16.mxu0 %vm631_vm1, %v7224_v59  ;;  %v6919_v29 = vadd.f32 %v6833_v61, %v6673_v21  ;;  %v6920_v30 = vadd.f32 %v6835_v39, %v6674_v38  ;;  %v7081_v59 = vsel %vm1521_vm4, %v7078_v8, %v7080_v22  ;;  %v5844_v9 = vmul.f32 %v17976_v13, %v17917_v60 }
 0x44c   : > { %v5712_v31 = vrot.slane %v5598_v43, 1  ;;  %v5845_v4 = vmul.f32 %v17991_v12, %v17917_v60  ;;  %v5713_v47 = vrot.slane %v5599_v6, 1  ;;  %v5715_v10 = vrot.slane %v5600_v37, 1  ;;  %v18199_v37 = vld [vmem:[#allocation2 + $0x110] sm:$0xff] }
 0x44d   : > { %13997 = vmatmul.mubr.msk.bf16.gmra.mrb[4].mxu1 %vm687_vm5, %v21445_v44  ;;  %v7165_v25 = vadd.f32 %v7079_v33, %v6919_v29  ;;  %v7166_v54 = vadd.f32 %v7081_v59, %v6920_v30  ;;  %v5846_v19 = vmul.f32 %v18010_v0, %v17917_v60  ;;  %v5958_v48 = vrot.slane %v5844_v9, 2  ;;  %v18194_v33 = vld [vmem:[#allocation2 + $0x108] sm:$0xff] }
 0x44e   : > { %14000 = vmatprep.mubr.msk.bf16.mxu1 %vm687_vm5, %v21446_v46  ;;  %v5959_v23 = vrot.slane %v5845_v4, 2  ;;  %v6081_v13 = vmul.f32 %v18096_v51, %v17935_v18  ;;  %v5714_v15 = vsel %vm967_vm3, %v5712_v31, %v5713_v47  ;;  %v5716_v49 = vsel %vm967_vm3, %v5713_v47, %v5715_v10  ;;  %v18208_v4 = vld [vmem:[#allocation2 + $0x118] sm:$0x3] }
 0x44f   : > { %v7204_v3 = vadd.f32 %v18060_v62, %v7165_v25  ;;  %v7205_v53 = vadd.f32 %v18060_v62, %v7166_v54  ;;  %v5961_v58 = vrot.slane %v5846_v19, 2  ;;  %v6082_v12 = vmul.f32 %v18106_v42, %v17935_v18 }
 0x450   : > { %v5797_v41 = vadd.f32 %v5714_v15, %v5519_v14  ;;  %v5798_v1 = vadd.f32 %v5716_v49, %v5520_v7  ;;  %v5960_v28 = vsel %vm1521_vm4, %v5958_v48, %v5959_v23  ;;  %v6160_v56 = vmul.f32 %v18096_v51, %v17953_v11 }
 0x451   : > { %v7228_v0 = vpack.c.bf16 %v7205_v53, %v7204_v3  ;;  %v5962_v35 = vsel %vm1521_vm4, %v5959_v23, %v5961_v58  ;;  %v6161_v27 = vmul.f32 %v18106_v42, %v17953_v11  ;;  %v6162_v2 = vmul.f32 %v18116_v16, %v17953_v11 }
 0x452   : > { %14019 = vmatmul.mubr.msk.bf16.gmra.mrb[72].mxu0 %vm631_vm1, %v7225_v52  ;;  %v21447_v52 = vld [vmem:[#allocation18_spill] sm:$0xff]  ;;  %v6043_v5 = vadd.f32 %v5960_v28, %v5797_v41  ;;  %v6044_v17 = vadd.f32 %v5962_v35, %v5798_v1  ;;  %v6406_v36 = vmul.f32 %v18096_v51, %v17968_v55  ;;  %v6407_v26 = vmul.f32 %v18106_v42, %v17968_v55 }
 0x453   : > { %14022 = vmatprep.mubr.msk.bf16.mxu0 %vm631_vm1, %v7226_v20  ;;  %v21448_v20 = vld [vmem:[#allocation22_spill] sm:$0xff]  ;;  %v6274_v21 = vrot.slane %v6160_v56, 1  ;;  %v6275_v38 = vrot.slane %v6161_v27, 1  ;;  %v6277_v8 = vrot.slane %v6162_v2, 1  ;;  %v6408_v14 = vmul.f32 %v18116_v16, %v17968_v55 }
 0x454   : > { %v6113_v61 = vadd.f32 %v6081_v13, %v6043_v5  ;;  %v6114_v39 = vadd.f32 %v6082_v12, %v6044_v17  ;;  %v6520_v22 = vrot.slane %v6406_v36, 2  ;;  %v6521_v7 = vrot.slane %v6407_v26, 2 }
 0x455   : > { %14001 = vmatmul.mubr.msk.bf16.gmra.mrb[8].mxu1 %vm687_vm5, %v21447_v52  ;;  %v6276_v44 = vsel %vm967_vm3, %v6274_v21, %v6275_v38  ;;  %v6278_v29 = vsel %vm967_vm3, %v6275_v38, %v6277_v8  ;;  %v6523_v30 = vrot.slane %v6408_v14, 2  ;;  %v6643_v43 = vmul.f32 %v18194_v33, %v17981_v34 }
 0x456   : > { %14004 = vmatprep.mubr.msk.bf16.mxu1 %vm687_vm5, %v21448_v20  ;;  %v6359_v46 = vadd.f32 %v6276_v44, %v6113_v61  ;;  %v6360_v59 = vadd.f32 %v6278_v29, %v6114_v39  ;;  %v6522_v6 = vsel %vm1521_vm4, %v6520_v22, %v6521_v7  ;;  %v6644_v9 = vmul.f32 %v18199_v37, %v17981_v34 }
 0x457   : > { %v6524_v25 = vsel %vm1521_vm4, %v6521_v7, %v6523_v30  ;;  %v6722_v54 = vmul.f32 %v18194_v33, %v17998_v57  ;;  %v6723_v31 = vmul.f32 %v18199_v37, %v17998_v57  ;;  %v6724_v47 = vmul.f32 %v18208_v4, %v17998_v57 }
 0x458   : > { %v6605_v10 = vadd.f32 %v6522_v6, %v6359_v46  ;;  %v6606_v19 = vadd.f32 %v6524_v25, %v6360_v59  ;;  %v6968_v48 = vmul.f32 %v18194_v33, %v18017_v63  ;;  %v6969_v3 = vmul.f32 %v18199_v37, %v18017_v63 }
 0x459   : > { %v6836_v53 = vrot.slane %v6722_v54, 1  ;;  %v6837_v23 = vrot.slane %v6723_v31, 1  ;;  %v6839_v13 = vrot.slane %v6724_v47, 1  ;;  %v6970_v15 = vmul.f32 %v18208_v4, %v18017_v63 }
 0x45a   : > { %14023 = vmatmul.mubr.msk.bf16.gmra.mrb[76].mxu0 %vm631_vm1, %v7227_v40  ;;  %v6675_v49 = vadd.f32 %v6643_v43, %v6605_v10  ;;  %v6676_v24 = vadd.f32 %v6644_v9, %v6606_v19  ;;  %v7082_v32 = vrot.slane %v6968_v48, 2  ;;  %v7083_v40 = vrot.slane %v6969_v3, 2 }
 0x45b   : > { %14026 = vmatprep.mubr.msk.bf16.mxu0 %vm631_vm1, %v7228_v0  ;;  %v6838_v58 = vsel %vm967_vm3, %v6836_v53, %v6837_v23  ;;  %v6840_v12 = vsel %vm967_vm3, %v6837_v23, %v6839_v13  ;;  %v7085_v41 = vrot.slane %v6970_v15, 2  ;;  %v5521_v1 = vmul.f32 %v18096_v51, %v17893_v50 }
 0x45c   : > { %v6921_v28 = vadd.f32 %v6838_v58, %v6675_v49  ;;  %v6922_v0 = vadd.f32 %v6840_v12, %v6676_v24  ;;  %v7084_v35 = vsel %vm1521_vm4, %v7082_v32, %v7083_v40  ;;  %v5522_v56 = vmul.f32 %v18106_v42, %v17893_v50  ;;  %v18267_v58 = vld [vmem:[#allocation2 + $0x120] sm:$0xff] }
 0x45d   : > { %v7086_v27 = vsel %vm1521_vm4, %v7083_v40, %v7085_v41  ;;  %v5601_v2 = vmul.f32 %v18096_v51, %v17904_v45  ;;  %v5602_v52 = vmul.f32 %v18106_v42, %v17904_v45  ;;  %v5603_v5 = vmul.f32 %v18116_v16, %v17904_v45 }
 0x45e   : > { %v7167_v17 = vadd.f32 %v7084_v35, %v6921_v28  ;;  %v7168_v36 = vadd.f32 %v7086_v27, %v6922_v0  ;;  %v5847_v26 = vmul.f32 %v18096_v51, %v17917_v60  ;;  %v5848_v20 = vmul.f32 %v18106_v42, %v17917_v60  ;;  %v18272_v28 = vld [vmem:[#allocation2 + $0x128] sm:$0xff] }
 0x45f   : > { %v5717_v21 = vrot.slane %v5601_v2, 1  ;;  %v5718_v38 = vrot.slane %v5602_v52, 1  ;;  %v5720_v8 = vrot.slane %v5603_v5, 1  ;;  %v5849_v14 = vmul.f32 %v18116_v16, %v17917_v60 }
 0x460   : > { %v7206_v61 = vadd.f32 %v18060_v62, %v7167_v17  ;;  %v7207_v39 = vadd.f32 %v18060_v62, %v7168_v36  ;;  %v5963_v22 = vrot.slane %v5847_v26, 2  ;;  %v5964_v7 = vrot.slane %v5848_v20, 2  ;;  %v18282_v17 = vld [vmem:[#allocation2 + $0x130] sm:$0x3] }
 0x461   : > { %v5719_v44 = vsel %vm967_vm3, %v5717_v21, %v5718_v38  ;;  %v5721_v29 = vsel %vm967_vm3, %v5718_v38, %v5720_v8  ;;  %v5966_v51 = vrot.slane %v5849_v14, 2  ;;  %v6083_v42 = vmul.f32 %v18194_v33, %v17935_v18 }
 0x462   : > { %v7229_v30 = vpack.c.bf16 %v7207_v39, %v7206_v61  ;;  %v5799_v43 = vadd.f32 %v5719_v44, %v5521_v1  ;;  %v5800_v46 = vadd.f32 %v5721_v29, %v5522_v56  ;;  %v5965_v59 = vsel %vm1521_vm4, %v5963_v22, %v5964_v7 }
 0x463   : > { %v5967_v16 = vsel %vm1521_vm4, %v5964_v7, %v5966_v51  ;;  %v6084_v6 = vmul.f32 %v18199_v37, %v17935_v18  ;;  %v6163_v9 = vmul.f32 %v18194_v33, %v17953_v11  ;;  %v6164_v25 = vmul.f32 %v18199_v37, %v17953_v11 }
 0x464   : > { %14027 = vmatmul.mubr.msk.bf16.gmra.mrb[80].mxu0 %vm631_vm1, %v7229_v30  ;;  %v6045_v54 = vadd.f32 %v5965_v59, %v5799_v43  ;;  %v6046_v31 = vadd.f32 %v5967_v16, %v5800_v46  ;;  %v6165_v47 = vmul.f32 %v18208_v4, %v17953_v11  ;;  %v6409_v10 = vmul.f32 %v18194_v33, %v17968_v55 }
 0x465   : > { %v6279_v19 = vrot.slane %v6163_v9, 1  ;;  %v6280_v48 = vrot.slane %v6164_v25, 1  ;;  %v6410_v3 = vmul.f32 %v18199_v37, %v17968_v55  ;;  %v6411_v53 = vmul.f32 %v18208_v4, %v17968_v55 }
 0x466   : > { %v6115_v23 = vadd.f32 %v6083_v42, %v6045_v54  ;;  %v6116_v13 = vadd.f32 %v6084_v6, %v6046_v31  ;;  %v6282_v15 = vrot.slane %v6165_v47, 1  ;;  %v6525_v49 = vrot.slane %v6409_v10, 2 }
 0x467   : > { %v6281_v24 = vsel %vm967_vm3, %v6279_v19, %v6280_v48  ;;  %v6526_v32 = vrot.slane %v6410_v3, 2  ;;  %v6528_v40 = vrot.slane %v6411_v53, 2  ;;  %v6645_v12 = vmul.f32 %v18267_v58, %v17981_v34 }
 0x468   : > { %v6283_v41 = vsel %vm967_vm3, %v6280_v48, %v6282_v15  ;;  %v6361_v1 = vadd.f32 %v6281_v24, %v6115_v23  ;;  %v6646_v0 = vmul.f32 %v18272_v28, %v17981_v34  ;;  %v6725_v35 = vmul.f32 %v18267_v58, %v17998_v57 }
 0x469   : > { %v6362_v56 = vadd.f32 %v6283_v41, %v6116_v13  ;;  %v6527_v27 = vsel %vm1521_vm4, %v6525_v49, %v6526_v32  ;;  %v6529_v2 = vsel %vm1521_vm4, %v6526_v32, %v6528_v40  ;;  %v6726_v52 = vmul.f32 %v18272_v28, %v17998_v57 }
 0x46a   : > { %v6607_v5 = vadd.f32 %v6527_v27, %v6361_v1  ;;  %v6727_v36 = vmul.f32 %v18282_v17, %v17998_v57  ;;  %v6841_v26 = vrot.slane %v6725_v35, 1  ;;  %v6971_v20 = vmul.f32 %v18267_v58, %v18017_v63 }
 0x46b   : > { %v6608_v21 = vadd.f32 %v6529_v2, %v6362_v56  ;;  %v6842_v38 = vrot.slane %v6726_v52, 1  ;;  %v6972_v8 = vmul.f32 %v18272_v28, %v18017_v63  ;;  %v6973_v14 = vmul.f32 %v18282_v17, %v18017_v63 }
 0x46c   : > { %v6677_v61 = vadd.f32 %v6645_v12, %v6607_v5  ;;  %v6844_v39 = vrot.slane %v6727_v36, 1  ;;  %v7087_v22 = vrot.slane %v6971_v20, 2  ;;  %v5523_v7 = vmul.f32 %v18194_v33, %v17893_v50 }
 0x46d   : > { %v6678_v44 = vadd.f32 %v6646_v0, %v6608_v21  ;;  %v6843_v29 = vsel %vm967_vm3, %v6841_v26, %v6842_v38  ;;  %v7088_v51 = vrot.slane %v6972_v8, 2  ;;  %v7090_v42 = vrot.slane %v6973_v14, 2 }
 0x46e   : > { %v6845_v30 = vsel %vm967_vm3, %v6842_v38, %v6844_v39  ;;  %v6923_v43 = vadd.f32 %v6843_v29, %v6677_v61  ;;  %v5524_v46 = vmul.f32 %v18199_v37, %v17893_v50  ;;  %v5604_v59 = vmul.f32 %v18194_v33, %v17904_v45  ;;  %v18335_v61 = vld [vmem:[#allocation2 + $0x138] sm:$0xff] }
 0x46f   : > { %v6924_v16 = vadd.f32 %v6845_v30, %v6678_v44  ;;  %v7089_v6 = vsel %vm1521_vm4, %v7087_v22, %v7088_v51  ;;  %v7091_v9 = vsel %vm1521_vm4, %v7088_v51, %v7090_v42  ;;  %v5605_v25 = vmul.f32 %v18199_v37, %v17904_v45  ;;  %v18341_v30 = vld [vmem:[#allocation2 + $0x140] sm:$0xff] }
 0x470   : > { %v7169_v54 = vadd.f32 %v7089_v6, %v6923_v43  ;;  %v5606_v31 = vmul.f32 %v18208_v4, %v17904_v45  ;;  %v5722_v47 = vrot.slane %v5604_v59, 1  ;;  %v5850_v10 = vmul.f32 %v18194_v33, %v17917_v60 }
 0x471   : > { %v7170_v19 = vadd.f32 %v7091_v9, %v6924_v16  ;;  %v5723_v48 = vrot.slane %v5605_v25, 1  ;;  %v5851_v3 = vmul.f32 %v18199_v37, %v17917_v60  ;;  %v5852_v53 = vmul.f32 %v18208_v4, %v17917_v60 }
 0x472   : > { %v7208_v23 = vadd.f32 %v18060_v62, %v7169_v54  ;;  %v5725_v13 = vrot.slane %v5606_v31, 1  ;;  %v5968_v15 = vrot.slane %v5850_v10, 2  ;;  %v6085_v49 = vmul.f32 %v18267_v58, %v17935_v18  ;;  %v18351_v54 = vld [vmem:[#allocation2 + $0x148] sm:$0x3] }
 0x473   : > { %v7209_v24 = vadd.f32 %v18060_v62, %v7170_v19  ;;  %v5724_v32 = vsel %vm967_vm3, %v5722_v47, %v5723_v48  ;;  %v5969_v33 = vrot.slane %v5851_v3, 2  ;;  %v5971_v40 = vrot.slane %v5852_v53, 2 }
 0x474   : > { %v5726_v12 = vsel %vm967_vm3, %v5723_v48, %v5725_v13  ;;  %v5801_v41 = vadd.f32 %v5724_v32, %v5523_v7  ;;  %v6086_v37 = vmul.f32 %v18272_v28, %v17935_v18  ;;  %v6166_v4 = vmul.f32 %v18267_v58, %v17953_v11 }
 0x475   : > { %v7230_v1 = vpack.c.bf16 %v7209_v24, %v7208_v23  ;;  %v5802_v0 = vadd.f32 %v5726_v12, %v5524_v46  ;;  %v5970_v35 = vsel %vm1521_vm4, %v5968_v15, %v5969_v33  ;;  %v5972_v56 = vsel %vm1521_vm4, %v5969_v33, %v5971_v40  ;;  %v18366_v24 = vld [vmem:[%s21165_s11] sm:$0xf] }
 0x476   : > { %v6047_v27 = vadd.f32 %v5970_v35, %v5801_v41  ;;  %v6167_v2 = vmul.f32 %v18272_v28, %v17953_v11  ;;  %v6168_v52 = vmul.f32 %v18282_v17, %v17953_v11  ;;  %v6284_v5 = vrot.slane %v6166_v4, 1  ;;  %15204 = vmatprep.subr.msk.bf16.mxu1 %vm3503_vm6, %v18366_v24 }
 0x477   : > { %14030 = vmatprep.mubr.msk.bf16.mxu0 %vm631_vm1, %v7230_v1  ;;  %v6048_v36 = vadd.f32 %v5972_v56, %v5802_v0  ;;  %v6412_v26 = vmul.f32 %v18267_v58, %v17968_v55  ;;  %v6413_v20 = vmul.f32 %v18272_v28, %v17968_v55  ;;  %v6414_v21 = vmul.f32 %v18282_v17, %v17968_v55 }
 0x478   : > { %v6117_v38 = vadd.f32 %v6085_v49, %v6047_v27  ;;  %v6285_v8 = vrot.slane %v6167_v2, 1  ;;  %v6287_v14 = vrot.slane %v6168_v52, 1  ;;  %v6647_v39 = vmul.f32 %v18335_v61, %v17981_v34 }
 0x479   : > { %v6118_v22 = vadd.f32 %v6086_v37, %v6048_v36  ;;  %v6530_v7 = vrot.slane %v6412_v26, 2  ;;  %v6531_v44 = vrot.slane %v6413_v20, 2  ;;  %v6533_v29 = vrot.slane %v6414_v21, 2 }
 0x47a   : > { %v6286_v51 = vsel %vm967_vm3, %v6284_v5, %v6285_v8  ;;  %v6288_v42 = vsel %vm967_vm3, %v6285_v8, %v6287_v14  ;;  %v6648_v43 = vmul.f32 %v18341_v30, %v17981_v34  ;;  %v6728_v46 = vmul.f32 %v18335_v61, %v17998_v57 }
 0x47b   : > { %v6363_v59 = vadd.f32 %v6286_v51, %v6117_v38  ;;  %v6364_v16 = vadd.f32 %v6288_v42, %v6118_v22  ;;  %v6532_v6 = vsel %vm1521_vm4, %v6530_v7, %v6531_v44  ;;  %v6534_v9 = vsel %vm1521_vm4, %v6531_v44, %v6533_v29 }
 0x47c   : > { %v6729_v25 = vmul.f32 %v18341_v30, %v17998_v57  ;;  %v6730_v31 = vmul.f32 %v18351_v54, %v17998_v57  ;;  %v6846_v47 = vrot.slane %v6728_v46, 1  ;;  %v6974_v10 = vmul.f32 %v18335_v61, %v18017_v63 }
 0x47d   : > { %v6609_v19 = vadd.f32 %v6532_v6, %v6363_v59  ;;  %v6610_v48 = vadd.f32 %v6534_v9, %v6364_v16  ;;  %v6975_v3 = vmul.f32 %v18341_v30, %v18017_v63  ;;  %v6976_v53 = vmul.f32 %v18351_v54, %v18017_v63 }
 0x47e   : > { %v6847_v23 = vrot.slane %v6729_v25, 1  ;;  %v6849_v13 = vrot.slane %v6730_v31, 1  ;;  %v7092_v15 = vrot.slane %v6974_v10, 2  ;;  %v5525_v49 = vmul.f32 %v18267_v58, %v17893_v50 }
 0x47f   : > { %v6679_v32 = vadd.f32 %v6647_v39, %v6609_v19  ;;  %v6680_v33 = vadd.f32 %v6648_v43, %v6610_v48  ;;  %v7093_v40 = vrot.slane %v6975_v3, 2  ;;  %v7095_v12 = vrot.slane %v6976_v53, 2 }
 0x480   : > { %v6848_v41 = vsel %vm967_vm3, %v6846_v47, %v6847_v23  ;;  %v6850_v37 = vsel %vm967_vm3, %v6847_v23, %v6849_v13  ;;  %v5526_v4 = vmul.f32 %v18272_v28, %v17893_v50  ;;  %v5607_v1 = vmul.f32 %v18267_v58, %v17904_v45  ;;  %v18411_v13 = vld [vmem:[#allocation2 + $0x150] sm:$0xff] }
 0x481   : > { %v6925_v0 = vadd.f32 %v6848_v41, %v6679_v32  ;;  %v6926_v35 = vadd.f32 %v6850_v37, %v6680_v33  ;;  %v7094_v56 = vsel %vm1521_vm4, %v7092_v15, %v7093_v40  ;;  %v7096_v27 = vsel %vm1521_vm4, %v7093_v40, %v7095_v12 }
 0x482   : > { %v5608_v2 = vmul.f32 %v18272_v28, %v17904_v45  ;;  %v5609_v52 = vmul.f32 %v18282_v17, %v17904_v45  ;;  %v5727_v5 = vrot.slane %v5607_v1, 1  ;;  %v5853_v36 = vmul.f32 %v18267_v58, %v17917_v60 }
 0x483   : > { %v7171_v26 = vadd.f32 %v7094_v56, %v6925_v0  ;;  %v7172_v20 = vadd.f32 %v7096_v27, %v6926_v35  ;;  %v5854_v21 = vmul.f32 %v18272_v28, %v17917_v60  ;;  %v5855_v38 = vmul.f32 %v18282_v17, %v17917_v60 }
 0x484   : > { %v5728_v8 = vrot.slane %v5608_v2, 1  ;;  %v5730_v14 = vrot.slane %v5609_v52, 1  ;;  %v5973_v39 = vrot.slane %v5853_v36, 2  ;;  %v6087_v22 = vmul.f32 %v18335_v61, %v17935_v18 }
 0x485   : > { %v7210_v7 = vadd.f32 %v18060_v62, %v7171_v26  ;;  %v7211_v44 = vadd.f32 %v18060_v62, %v7172_v20  ;;  %v5974_v29 = vrot.slane %v5854_v21, 2  ;;  %v5976_v58 = vrot.slane %v5855_v38, 2 }
 0x486   : > { %v5729_v51 = vsel %vm967_vm3, %v5727_v5, %v5728_v8  ;;  %v5731_v42 = vsel %vm967_vm3, %v5728_v8, %v5730_v14  ;;  %v6088_v28 = vmul.f32 %v18341_v30, %v17935_v18  ;;  %v6169_v17 = vmul.f32 %v18335_v61, %v17953_v11  ;;  %v18427_v5 = vld [vmem:[#allocation2 + $0x160] sm:$0x3] }
 0x487   : > { %v7231_v43 = vpack.c.bf16 %v7211_v44, %v7210_v7  ;;  %v5803_v46 = vadd.f32 %v5729_v51, %v5525_v49  ;;  %v5804_v59 = vadd.f32 %v5731_v42, %v5526_v4  ;;  %v5975_v16 = vsel %vm1521_vm4, %v5973_v39, %v5974_v29  ;;  %v18417_v4 = vld [vmem:[#allocation2 + $0x158] sm:$0xff] }
 0x488   : > { %v5977_v6 = vsel %vm1521_vm4, %v5974_v29, %v5976_v58  ;;  %v6170_v9 = vmul.f32 %v18341_v30, %v17953_v11  ;;  %v6171_v25 = vmul.f32 %v18351_v54, %v17953_v11  ;;  %v6289_v31 = vrot.slane %v6169_v17, 1 }
 0x489   : > { %14031 = vmatmul.mubr.msk.bf16.gmra.mrb[84].mxu0 %vm631_vm1, %v7231_v43  ;;  %v6049_v47 = vadd.f32 %v5975_v16, %v5803_v46  ;;  %v6050_v10 = vadd.f32 %v5977_v6, %v5804_v59  ;;  %v6415_v19 = vmul.f32 %v18335_v61, %v17968_v55  ;;  %v6416_v48 = vmul.f32 %v18341_v30, %v17968_v55 }
 0x48a   : > { %v6290_v3 = vrot.slane %v6170_v9, 1  ;;  %v6292_v53 = vrot.slane %v6171_v25, 1  ;;  %v6417_v23 = vmul.f32 %v18351_v54, %v17968_v55  ;;  %v6649_v15 = vmul.f32 %v18411_v13, %v17981_v34 }
 0x48b   : > { %v6119_v49 = vadd.f32 %v6087_v22, %v6049_v47  ;;  %v6120_v32 = vadd.f32 %v6088_v28, %v6050_v10  ;;  %v6535_v33 = vrot.slane %v6415_v19, 2  ;;  %v6536_v40 = vrot.slane %v6416_v48, 2 }
 0x48c   : > { %v6291_v12 = vsel %vm967_vm3, %v6289_v31, %v6290_v3  ;;  %v6293_v41 = vsel %vm967_vm3, %v6290_v3, %v6292_v53  ;;  %v6538_v37 = vrot.slane %v6417_v23, 2  ;;  %v6650_v1 = vmul.f32 %v18417_v4, %v17981_v34 }
 0x48d   : > { %v6365_v0 = vadd.f32 %v6291_v12, %v6119_v49  ;;  %v6366_v35 = vadd.f32 %v6293_v41, %v6120_v32  ;;  %v6537_v56 = vsel %vm1521_vm4, %v6535_v33, %v6536_v40  ;;  %v6731_v27 = vmul.f32 %v18411_v13, %v17998_v57 }
 0x48e   : > { %v6539_v2 = vsel %vm1521_vm4, %v6536_v40, %v6538_v37  ;;  %v6732_v52 = vmul.f32 %v18417_v4, %v17998_v57  ;;  %v6733_v36 = vmul.f32 %v18427_v5, %v17998_v57  ;;  %v6977_v26 = vmul.f32 %v18411_v13, %v18017_v63 }
 0x48f   : > { %v6611_v20 = vadd.f32 %v6537_v56, %v6365_v0  ;;  %v6612_v21 = vadd.f32 %v6539_v2, %v6366_v35  ;;  %v6851_v38 = vrot.slane %v6731_v27, 1  ;;  %v6978_v8 = vmul.f32 %v18417_v4, %v18017_v63 }
 0x490   : > { %v6852_v14 = vrot.slane %v6732_v52, 1  ;;  %v6854_v39 = vrot.slane %v6733_v36, 1  ;;  %v6979_v22 = vmul.f32 %v18427_v5, %v18017_v63  ;;  %v7097_v7 = vrot.slane %v6977_v26, 2 }
 0x491   : > { %v6681_v44 = vadd.f32 %v6649_v15, %v6611_v20  ;;  %v6682_v29 = vadd.f32 %v6650_v1, %v6612_v21  ;;  %v7098_v58 = vrot.slane %v6978_v8, 2  ;;  %v5527_v51 = vmul.f32 %v18335_v61, %v17893_v50 }
 0x492   : > { %v6853_v42 = vsel %vm967_vm3, %v6851_v38, %v6852_v14  ;;  %v6855_v28 = vsel %vm967_vm3, %v6852_v14, %v6854_v39  ;;  %v7100_v17 = vrot.slane %v6979_v22, 2  ;;  %v5528_v43 = vmul.f32 %v18341_v30, %v17893_v50 }
 0x493   : > { %v6927_v46 = vadd.f32 %v6853_v42, %v6681_v44  ;;  %v6928_v59 = vadd.f32 %v6855_v28, %v6682_v29  ;;  %v7099_v16 = vsel %vm1521_vm4, %v7097_v7, %v7098_v58  ;;  %v5610_v6 = vmul.f32 %v18335_v61, %v17904_v45  ;;  %v18482_v44 = vld [vmem:[#allocation2 + $0x168] sm:$0xff]  ;;  %v18487_v28 = vld [vmem:[#allocation2 + $0x170] sm:$0xff] }
 0x494   : > { %v7101_v9 = vsel %vm1521_vm4, %v7098_v58, %v7100_v17  ;;  %v5611_v25 = vmul.f32 %v18341_v30, %v17904_v45  ;;  %v5612_v31 = vmul.f32 %v18351_v54, %v17904_v45  ;;  %v5856_v47 = vmul.f32 %v18335_v61, %v17917_v60 }
 0x495   : > { %v7173_v10 = vadd.f32 %v7099_v16, %v6927_v46  ;;  %v7174_v50 = vadd.f32 %v7101_v9, %v6928_v59  ;;  %v5732_v19 = vrot.slane %v5610_v6, 1  ;;  %v5857_v48 = vmul.f32 %v18341_v30, %v17917_v60  ;;  %v18496_v59 = vld [vmem:[#allocation2 + $0x178] sm:$0x3] }
 0x496   : > { %v5733_v3 = vrot.slane %v5611_v25, 1  ;;  %v5735_v53 = vrot.slane %v5612_v31, 1  ;;  %v5858_v23 = vmul.f32 %v18351_v54, %v17917_v60  ;;  %v5978_v15 = vrot.slane %v5856_v47, 2 }
 0x497   : > { %v7212_v49 = vadd.f32 %v18060_v62, %v7173_v10  ;;  %v7213_v32 = vadd.f32 %v18060_v62, %v7174_v50  ;;  %v5979_v45 = vrot.slane %v5857_v48, 2  ;;  %v6089_v61 = vmul.f32 %v18411_v13, %v17935_v18 }
 0x498   : > { %v5734_v33 = vsel %vm967_vm3, %v5732_v19, %v5733_v3  ;;  %v5736_v40 = vsel %vm967_vm3, %v5733_v3, %v5735_v53  ;;  %v5981_v12 = vrot.slane %v5858_v23, 2  ;;  %v6090_v30 = vmul.f32 %v18417_v4, %v17935_v18 }
 0x499   : > { %v7232_v41 = vpack.c.bf16 %v7213_v32, %v7212_v49  ;;  %v5805_v37 = vadd.f32 %v5734_v33, %v5527_v51  ;;  %v5806_v60 = vadd.f32 %v5736_v40, %v5528_v43  ;;  %v5980_v54 = vsel %vm1521_vm4, %v5978_v15, %v5979_v45  ;;  %v18511_v49 = vld [vmem:[%s21299_s4] ss:$0 sm:$0xff] }
 0x49a   : > { %v5982_v1 = vsel %vm1521_vm4, %v5979_v45, %v5981_v12  ;;  %v6172_v0 = vmul.f32 %v18411_v13, %v17953_v11  ;;  %v6173_v35 = vmul.f32 %v18417_v4, %v17953_v11  ;;  %v6174_v56 = vmul.f32 %v18427_v5, %v17953_v11  ;;  %v18522_v12 = vld [vmem:[%s21299_s4 + $0x1] ss:$0 sm:$0xff] }
 0x49b   : > { %14034 = vmatprep.mubr.msk.bf16.mxu0 %vm631_vm1, %v7232_v41  ;;  %v6051_v27 = vadd.f32 %v5980_v54, %v5805_v37  ;;  %v6052_v18 = vadd.f32 %v5982_v1, %v5806_v60  ;;  %v6418_v2 = vmul.f32 %v18411_v13, %v17968_v55  ;;  %v6419_v52 = vmul.f32 %v18417_v4, %v17968_v55  ;;  %v18533_v1 = vld [vmem:[%s21299_s4 + $0x2] ss:$0 sm:$0xff] }
 0x49c   : > { %v6294_v36 = vrot.slane %v6172_v0, 1  ;;  %v6295_v26 = vrot.slane %v6173_v35, 1  ;;  %v6297_v20 = vrot.slane %v6174_v56, 1  ;;  %v6420_v21 = vmul.f32 %v18427_v5, %v17968_v55 }
 0x49d   : > { %v6121_v38 = vadd.f32 %v6089_v61, %v6051_v27  ;;  %v6122_v8 = vadd.f32 %v6090_v30, %v6052_v18  ;;  %v6540_v14 = vrot.slane %v6418_v2, 2  ;;  %v6541_v11 = vrot.slane %v6419_v52, 2 }
 0x49e   : > { %v6296_v39 = vsel %vm967_vm3, %v6294_v36, %v6295_v26  ;;  %v6298_v22 = vsel %vm967_vm3, %v6295_v26, %v6297_v20  ;;  %v6543_v7 = vrot.slane %v6420_v21, 2  ;;  %v6651_v29 = vmul.f32 %v18482_v44, %v17981_v34 }
 0x49f   : > { %v6367_v58 = vadd.f32 %v6296_v39, %v6121_v38  ;;  %v6368_v51 = vadd.f32 %v6298_v22, %v6122_v8  ;;  %v6542_v42 = vsel %vm1521_vm4, %v6540_v14, %v6541_v11  ;;  %v6652_v55 = vmul.f32 %v18487_v28, %v17981_v34 }
 0x4a0   : > { %v6544_v17 = vsel %vm1521_vm4, %v6541_v11, %v6543_v7  ;;  %v6734_v43 = vmul.f32 %v18482_v44, %v17998_v57  ;;  %v6735_v46 = vmul.f32 %v18487_v28, %v17998_v57  ;;  %v6736_v16 = vmul.f32 %v18496_v59, %v17998_v57  ;;  %v18559_v7 = vld [vmem:[%s21299_s4 + $0x4] ss:$0 sm:$0xff] }
 0x4a1   : > { %v6613_v6 = vadd.f32 %v6542_v42, %v6367_v58  ;;  %v6614_v9 = vadd.f32 %v6544_v17, %v6368_v51  ;;  %v6980_v25 = vmul.f32 %v18482_v44, %v18017_v63  ;;  %v6981_v34 = vmul.f32 %v18487_v28, %v18017_v63  ;;  %v18571_v17 = vld [vmem:[%s21299_s4 + $0x5] ss:$0 sm:$0xff] }
 0x4a2   : > { %v6856_v31 = vrot.slane %v6734_v43, 1  ;;  %v6857_v47 = vrot.slane %v6735_v46, 1  ;;  %v6859_v10 = vrot.slane %v6736_v16, 1  ;;  %v6982_v50 = vmul.f32 %v18496_v59, %v18017_v63 }
 0x4a3   : > { %v6683_v19 = vadd.f32 %v6651_v29, %v6613_v6  ;;  %v6684_v48 = vadd.f32 %v6652_v55, %v6614_v9  ;;  %v7102_v3 = vrot.slane %v6980_v25, 2  ;;  %v7103_v53 = vrot.slane %v6981_v34, 2 }
 0x4a4   : > { %v6858_v57 = vsel %vm967_vm3, %v6856_v31, %v6857_v47  ;;  %v6860_v23 = vsel %vm967_vm3, %v6857_v47, %v6859_v10  ;;  %v7105_v15 = vrot.slane %v6982_v50, 2  ;;  %v5529_v32 = vmul.f32 %v18511_v49, %v18411_v13 }
 0x4a5   : > { %v6929_v45 = vadd.f32 %v6858_v57, %v6683_v19  ;;  %v6930_v61 = vadd.f32 %v6860_v23, %v6684_v48  ;;  %v7104_v63 = vsel %vm1521_vm4, %v7102_v3, %v7103_v53  ;;  %v5530_v33 = vmul.f32 %v18511_v49, %v18417_v4  ;;  %v18580_v48 = vld [vmem:[#allocation2 + $0x180] sm:$0xff] }
 0x4a6   : > { %v7106_v40 = vsel %vm1521_vm4, %v7103_v53, %v7105_v15  ;;  %v5613_v30 = vmul.f32 %v18522_v12, %v18411_v13  ;;  %v5614_v41 = vmul.f32 %v18522_v12, %v18417_v4  ;;  %v5615_v37 = vmul.f32 %v18522_v12, %v18427_v5  ;;  %v18585_v3 = vld [vmem:[%s21299_s4 + $0x6] ss:$0 sm:$0xff]  ;;  %v18590_v15 = vld [vmem:[#allocation2 + $0x188] sm:$0xff] }
 0x4a7   : > { %v7175_v60 = vadd.f32 %v7104_v63, %v6929_v45  ;;  %v7176_v54 = vadd.f32 %v7106_v40, %v6930_v61  ;;  %v5859_v0 = vmul.f32 %v18533_v1, %v18411_v13  ;;  %v5860_v35 = vmul.f32 %v18533_v1, %v18417_v4  ;;  %v18548_v4 = vld [vmem:[%s21299_s4 + $0x3] ss:$0 sm:$0xff]  ;;  %v18597_v45 = vld [vmem:[%s21299_s4 + $0x7] ss:$0 sm:$0xff] }
 0x4a8   : > { %v5737_v56 = vrot.slane %v5613_v30, 1  ;;  %v5738_v27 = vrot.slane %v5614_v41, 1  ;;  %v5740_v18 = vrot.slane %v5615_v37, 1  ;;  %v5861_v2 = vmul.f32 %v18533_v1, %v18427_v5  ;;  %v15292_v37 = vld [vmem:[#allocation2 + $0x190] sm:$0x3] }
 0x4a9   : > { %v7214_v52 = vadd.f32 %v18060_v62, %v7175_v60  ;;  %v7215_v36 = vadd.f32 %v18060_v62, %v7176_v54  ;;  %v5983_v26 = vrot.slane %v5859_v0, 2  ;;  %v5984_v20 = vrot.slane %v5860_v35, 2  ;;  %v18609_v0 = vld [vmem:[%s21299_s4 + $0x8] ss:$0 sm:$0xff] }
 0x4aa   : > { %v5739_v21 = vsel %vm967_vm3, %v5737_v56, %v5738_v27  ;;  %v5741_v38 = vsel %vm967_vm3, %v5738_v27, %v5740_v18  ;;  %v5986_v13 = vrot.slane %v5861_v2, 2  ;;  %v6091_v8 = vmul.f32 %v18548_v4, %v18482_v44 }
 0x4ab   : > { %v7233_v5 = vpack.c.bf16 %v7215_v36, %v7214_v52  ;;  %v5807_v14 = vadd.f32 %v5739_v21, %v5529_v32  ;;  %v5808_v11 = vadd.f32 %v5741_v38, %v5530_v33  ;;  %v5985_v62 = vsel %vm1521_vm4, %v5983_v26, %v5984_v20 }
 0x4ac   : > { %v5987_v39 = vsel %vm1521_vm4, %v5984_v20, %v5986_v13  ;;  %v6092_v22 = vmul.f32 %v18548_v4, %v18487_v28  ;;  %v6175_v29 = vmul.f32 %v18559_v7, %v18482_v44  ;;  %v6176_v58 = vmul.f32 %v18559_v7, %v18487_v28 }
 0x4ad   : > { %14035 = vmatmul.mubr.msk.bf16.gmra.mrb[88].mxu0 %vm631_vm1, %v7233_v5  ;;  %v6053_v51 = vadd.f32 %v5985_v62, %v5807_v14  ;;  %v6054_v42 = vadd.f32 %v5987_v39, %v5808_v11  ;;  %v6177_v55 = vmul.f32 %v18559_v7, %v18496_v59  ;;  %v6421_v43 = vmul.f32 %v18571_v17, %v18482_v44 }
 0x4ae   : > { %v6299_v46 = vrot.slane %v6175_v29, 1  ;;  %v6300_v16 = vrot.slane %v6176_v58, 1  ;;  %v6422_v6 = vmul.f32 %v18571_v17, %v18487_v28  ;;  %v6423_v9 = vmul.f32 %v18571_v17, %v18496_v59 }
 0x4af   : > { %v6123_v25 = vadd.f32 %v6091_v8, %v6053_v51  ;;  %v6124_v34 = vadd.f32 %v6092_v22, %v6054_v42  ;;  %v6302_v31 = vrot.slane %v6177_v55, 1  ;;  %v6545_v47 = vrot.slane %v6421_v43, 2 }
 0x4b0   : > { %v6301_v10 = vsel %vm967_vm3, %v6299_v46, %v6300_v16  ;;  %v6546_v50 = vrot.slane %v6422_v6, 2  ;;  %v6548_v19 = vrot.slane %v6423_v9, 2  ;;  %v6653_v53 = vmul.f32 %v18585_v3, %v18580_v48  ;;  %v18639_v9 = vld [vmem:[%s21409_s26] ss:$0 sm:$0xff] }
 0x4b1   : > { %v6303_v57 = vsel %vm967_vm3, %v6300_v16, %v6302_v31  ;;  %v6369_v23 = vadd.f32 %v6301_v10, %v6123_v25  ;;  %v6654_v32 = vmul.f32 %v18590_v15, %v18585_v3  ;;  %v6737_v61 = vmul.f32 %v18597_v45, %v18580_v48 }
 0x4b2   : > { %v6370_v63 = vadd.f32 %v6303_v57, %v6124_v34  ;;  %v6547_v33 = vsel %vm1521_vm4, %v6545_v47, %v6546_v50  ;;  %v6549_v40 = vsel %vm1521_vm4, %v6546_v50, %v6548_v19  ;;  %v6738_v30 = vmul.f32 %v18597_v45, %v18590_v15 }
 0x4b3   : > { %v6615_v41 = vadd.f32 %v6547_v33, %v6369_v23  ;;  %v6739_v60 = vmul.f32 %v15292_v37, %v18597_v45  ;;  %v6861_v54 = vrot.slane %v6737_v61, 1  ;;  %v6983_v35 = vmul.f32 %v18609_v0, %v18580_v48 }
 0x4b4   : > { %v6616_v56 = vadd.f32 %v6549_v40, %v6370_v63  ;;  %v6862_v27 = vrot.slane %v6738_v30, 1  ;;  %v6984_v18 = vmul.f32 %v18609_v0, %v18590_v15  ;;  %v6985_v2 = vmul.f32 %v18609_v0, %v15292_v37 }
 0x4b5   : > { %v6685_v52 = vadd.f32 %v6653_v53, %v6615_v41  ;;  %v6864_v36 = vrot.slane %v6739_v60, 1  ;;  %v7107_v26 = vrot.slane %v6983_v35, 2  ;;  %v5531_v20 = vmul.f32 %v18511_v49, %v18482_v44 }
 0x4b6   : > { %v6686_v21 = vadd.f32 %v6654_v32, %v6616_v56  ;;  %v6863_v38 = vsel %vm967_vm3, %v6861_v54, %v6862_v27  ;;  %v7108_v13 = vrot.slane %v6984_v18, 2  ;;  %v7110_v8 = vrot.slane %v6985_v2, 2 }
 0x4b7   : > { %v6865_v5 = vsel %vm967_vm3, %v6862_v27, %v6864_v36  ;;  %v6931_v14 = vadd.f32 %v6863_v38, %v6685_v52  ;;  %v5532_v11 = vmul.f32 %v18511_v49, %v18487_v28  ;;  %v5616_v62 = vmul.f32 %v18522_v12, %v18482_v44  ;;  %v15295_v27 = vld [vmem:[#allocation2 + $0x198] sm:$0xff] }
 0x4b8   : > { %v6932_v39 = vadd.f32 %v6865_v5, %v6686_v21  ;;  %v7109_v22 = vsel %vm1521_vm4, %v7107_v26, %v7108_v13  ;;  %v7111_v29 = vsel %vm1521_vm4, %v7108_v13, %v7110_v8  ;;  %v5617_v58 = vmul.f32 %v18522_v12, %v18487_v28  ;;  %v15297_v5 = vld [vmem:[#allocation2 + $0x1a8] sm:$0x3] }
 0x4b9   : > { %v7177_v51 = vadd.f32 %v7109_v22, %v6931_v14  ;;  %v5618_v42 = vmul.f32 %v18522_v12, %v18496_v59  ;;  %v5742_v55 = vrot.slane %v5616_v62, 1  ;;  %v5862_v43 = vmul.f32 %v18533_v1, %v18482_v44 }
 0x4ba   : > { %v7178_v49 = vadd.f32 %v7111_v29, %v6932_v39  ;;  %v5743_v46 = vrot.slane %v5617_v58, 1  ;;  %v5863_v16 = vmul.f32 %v18533_v1, %v18487_v28  ;;  %v5864_v6 = vmul.f32 %v18533_v1, %v18496_v59 }
 0x4bb   : > { %v7216_v25 = vadd.f32 %v18639_v9, %v7177_v51  ;;  %v5745_v12 = vrot.slane %v5618_v42, 1  ;;  %v5988_v34 = vrot.slane %v5862_v43, 2  ;;  %v6093_v44 = vmul.f32 %v18580_v48, %v18548_v4 }
 0x4bc   : > { %v7217_v31 = vadd.f32 %v18639_v9, %v7178_v49  ;;  %v5744_v47 = vsel %vm967_vm3, %v5742_v55, %v5743_v46  ;;  %v5989_v28 = vrot.slane %v5863_v16, 2  ;;  %v5991_v10 = vrot.slane %v5864_v6, 2 }
 0x4bd   : > { %v5746_v59 = vsel %vm967_vm3, %v5743_v46, %v5745_v12  ;;  %v5809_v1 = vadd.f32 %v5744_v47, %v5531_v20  ;;  %v6094_v50 = vmul.f32 %v18590_v15, %v18548_v4  ;;  %v6178_v19 = vmul.f32 %v18580_v48, %v18559_v7 }
 0x4be   : > { %v7234_v53 = vpack.c.bf16 %v7217_v31, %v7216_v25  ;;  %v5810_v57 = vadd.f32 %v5746_v59, %v5532_v11  ;;  %v5990_v23 = vsel %vm1521_vm4, %v5988_v34, %v5989_v28  ;;  %v5992_v32 = vsel %vm1521_vm4, %v5989_v28, %v5991_v10  ;;  %v21449_v25 = vld [vmem:[#allocation20_spill] sm:$0xff]  ;;  %v21451_v34 = vld [vmem:[#allocation19_spill] sm:$0xff] }
 0x4bf   : > { %v6055_v61 = vadd.f32 %v5990_v23, %v5809_v1  ;;  %v6179_v63 = vmul.f32 %v18590_v15, %v18559_v7  ;;  %v6180_v33 = vmul.f32 %v15292_v37, %v18559_v7  ;;  %v6304_v40 = vrot.slane %v6178_v19, 1  ;;  %v15298_v31 = vld [vmem:[#allocation3 + $0x1a8] sm:$0x3] }
 0x4c0   : > { %14038 = vmatprep.mubr.msk.bf16.mxu0 %vm631_vm1, %v7234_v53  ;;  %v6056_v30 = vadd.f32 %v5992_v32, %v5810_v57  ;;  %v6424_v4 = vmul.f32 %v18580_v48, %v18571_v17  ;;  %v6425_v41 = vmul.f32 %v18590_v15, %v18571_v17  ;;  %v6426_v60 = vmul.f32 %v15292_v37, %v18571_v17  ;;  %v15296_v48 = vld [vmem:[#allocation2 + $0x1a0] sm:$0xff] }
 0x4c1   : > { %v6125_v54 = vadd.f32 %v6093_v44, %v6055_v61  ;;  %v6305_v35 = vrot.slane %v6179_v63, 1  ;;  %v6307_v56 = vrot.slane %v6180_v33, 1  ;;  %v6655_v18 = vmul.f32 %v15295_v27, %v18585_v3 }
 0x4c2   : > { %v6126_v2 = vadd.f32 %v6094_v50, %v6056_v30  ;;  %v6550_v7 = vrot.slane %v6424_v4, 2  ;;  %v6551_v52 = vrot.slane %v6425_v41, 2  ;;  %v6553_v36 = vrot.slane %v6426_v60, 2 }
 0x4c3   : > { %v6306_v26 = vsel %vm967_vm3, %v6304_v40, %v6305_v35  ;;  %v6308_v20 = vsel %vm967_vm3, %v6305_v35, %v6307_v56  ;;  %v6656_v21 = vmul.f32 %v15296_v48, %v18585_v3  ;;  %v6740_v15 = vmul.f32 %v15295_v27, %v18597_v45 }
 0x4c4   : > { %v6371_v17 = vadd.f32 %v6306_v26, %v6125_v54  ;;  %v6372_v37 = vadd.f32 %v6308_v20, %v6126_v2  ;;  %v6552_v38 = vsel %vm1521_vm4, %v6550_v7, %v6551_v52  ;;  %v6554_v13 = vsel %vm1521_vm4, %v6551_v52, %v6553_v36 }
 0x4c5   : > { %v6741_v8 = vmul.f32 %v15296_v48, %v18597_v45  ;;  %v6742_v14 = vmul.f32 %v15297_v5, %v18597_v45  ;;  %v6866_v11 = vrot.slane %v6740_v15, 1  ;;  %v6986_v62 = vmul.f32 %v15295_v27, %v18609_v0 }
 0x4c6   : > { %v6617_v39 = vadd.f32 %v6552_v38, %v6371_v17  ;;  %v6618_v22 = vadd.f32 %v6554_v13, %v6372_v37  ;;  %v6987_v3 = vmul.f32 %v15296_v48, %v18609_v0  ;;  %v6988_v29 = vmul.f32 %v15297_v5, %v18609_v0 }
 0x4c7   : > { %v6867_v58 = vrot.slane %v6741_v8, 1  ;;  %v6869_v51 = vrot.slane %v6742_v14, 1  ;;  %v7112_v42 = vrot.slane %v6986_v62, 2  ;;  %v9459_v55 = vsel %vm3503_vm6, %v18366_v24, 0 }
 0x4c8   : > { %v6687_v43 = vadd.f32 %v6655_v18, %v6617_v39  ;;  %v6688_v49 = vadd.f32 %v6656_v21, %v6618_v22  ;;  %v7113_v46 = vrot.slane %v6987_v3, 2  ;;  %v7115_v16 = vrot.slane %v6988_v29, 2  ;;  %14043 = vmatpush3.bf16.msra.mxu1 %v9459_v55  ;;  %v7598_v22 = vld [vmem:[#allocation3] sm:$0xff]  ;;  %v18759_v3 = vld [vmem:[%s21163_s9 + $0x1] ss:$0 sm:$0xff]  ;;  %v7599_v29 = vld [vmem:[#allocation3 + $0x8] sm:$0xff] }
 0x4c9   : > { %v6868_v45 = vsel %vm967_vm3, %v6866_v11, %v6867_v58  ;;  %v6870_v6 = vsel %vm967_vm3, %v6867_v58, %v6869_v51  ;;  %v21450_v12 = vrot.slane %v21449_v25, 2  ;;  %v21452_v44 = vrot.slane %v21451_v34, 2  ;;  %v18764_v58 = vld [vmem:[%s21160_s6] ss:$0 sm:$0xff] }
 0x4ca   : > { %v5282_v47 = vrot.slane %v15298_v31, 2  ;;  %v6933_v28 = vadd.f32 %v6868_v45, %v6687_v43  ;;  %v6934_v10 = vadd.f32 %v6870_v6, %v6688_v49  ;;  %v7114_v24 = vsel %vm1521_vm4, %v7112_v42, %v7113_v46  ;;  %v7600_v51 = vld [vmem:[#allocation3 + $0x10] sm:$0x3]  ;;  %v18770_v43 = vld [vmem:[%s21163_s9 + $0x2] ss:$0 sm:$0xff] }
 0x4cb   : > { %v5281_v0 = vsel %vm1521_vm4, %v21452_v44, %v21450_v12  ;;  %v7116_v59 = vsel %vm1521_vm4, %v7113_v46, %v7115_v16  ;;  %v21453_v1 = vmov %v21450_v12  ;;  %v7737_v42 = vmul.f32 %v18759_v3, %v7598_v22  ;;  %v18778_v6 = vld [vmem:[%s21161_s7] ss:$0 sm:$0xff] }
 0x4cc   : > { %v5283_v50 = vsel %vm1521_vm4, %v21453_v1, %v5282_v47  ;;  %v7179_v19 = vadd.f32 %v7114_v24, %v6933_v28  ;;  %v7180_v53 = vadd.f32 %v7116_v59, %v6934_v10  ;;  %v7738_v49 = vmul.f32 %v18759_v3, %v7599_v29  ;;  %v18785_v31 = vld [vmem:[%s21163_s9] ss:$0 sm:$0xff] }
 0x4cd   : > { %v5286_v57 = vpack.c.bf16 %v5283_v50, %v5281_v0  ;;  %v7739_v45 = vmul.f32 %v18759_v3, %v7600_v51  ;;  %v7833_v47 = vrot.slane %v7737_v42, 1  ;;  %v7983_v28 = vmul.f32 %v18770_v43, %v7598_v22  ;;  %v18791_v10 = vld [vmem:[%s21162_s8] ss:$0 sm:$0xff] }
 0x4ce   : > { %v7218_v23 = vadd.f32 %v18639_v9, %v7179_v19  ;;  %v7219_v32 = vadd.f32 %v18639_v9, %v7180_v53  ;;  %v7834_v1 = vrot.slane %v7738_v49, 1  ;;  %v7984_v50 = vmul.f32 %v18770_v43, %v7599_v29 }
 0x4cf   : > { %14005 = vmatmul.mubr.msk.bf16.gmra.mrb[12].mxu1 %vm687_vm5, %v5286_v57  ;;  %v7836_v57 = vrot.slane %v7739_v45, 1  ;;  %v7667_v42 = vmul.f32 %v18785_v31, %v7598_v22  ;;  %v8079_v49 = vrot.slane %v7983_v28, 2 }
 0x4d0   : > { %v7235_v61 = vpack.c.bf16 %v7219_v32, %v7218_v23  ;;  %v7985_v23 = vmul.f32 %v18770_v43, %v7600_v51  ;;  %v7835_v45 = vsel %vm967_vm3, %v7833_v47, %v7834_v1  ;;  %v8080_v51 = vrot.slane %v7984_v50, 2 }
 0x4d2   : > { %14039 = vmatmul.mubr.msk.bf16.gmra.mrb[92].mxu0 %vm631_vm1, %v7235_v61 }
 0x4d5   : > { %v18692_v63 = vpop.f32.mrb[48].mxu0 }
 0x4d6   : > { %21454 = vst [vmem:[#allocation4_spill] sm:$0xff] %v18692_v63  ;;  %v18694_v33 = vpop.f32.mrb[49].mxu0 }
 0x4d7   : > { %21455 = vst [vmem:[#allocation5_spill] sm:$0xff] %v18694_v33  ;;  %v18696_v40 = vpop.f32.mrb[50].mxu0 }
 0x4d8   : > { %21456 = vst [vmem:[#allocation6_spill] sm:$0xff] %v18696_v40  ;;  %v18698_v30 = vpop.f32.mrb[51].mxu0 }
 0x4d9   : > { %21457 = vst [vmem:[#allocation26_spill] sm:$0xff] %v18698_v30 }
 0x4dd   : > { %v18700_v4 = vpop.f32.mrb[52].mxu0 }
 0x4de   : > { %21458 = vst [vmem:[#allocation24_spill] sm:$0xff] %v18700_v4  ;;  %v18702_v41 = vpop.f32.mrb[53].mxu0 }
 0x4df   : > { %21459 = vst [vmem:[#allocation27_spill] sm:$0xff] %v18702_v41  ;;  %v18704_v60 = vpop.f32.mrb[54].mxu0 }
 0x4e0   : > { %21460 = vst [vmem:[#allocation28_spill] sm:$0xff] %v18704_v60  ;;  %v18706_v9 = vpop.f32.mrb[55].mxu0 }
 0x4e1   : > { %21461 = vst [vmem:[#allocation29_spill] sm:$0xff] %v18706_v9 }
 0x4e5   : > { %v18708_v54 = vpop.f32.mrb[56].mxu0 }
 0x4e6   : > { %21462 = vst [vmem:[#allocation7_spill] sm:$0xff] %v18708_v54  ;;  %v18710_v35 = vpop.f32.mrb[57].mxu0 }
 0x4e7   : > { %21463 = vst [vmem:[#allocation8_spill] sm:$0xff] %v18710_v35  ;;  %v18712_v56 = vpop.f32.mrb[58].mxu0 }
 0x4e8   : > { %21464 = vst [vmem:[#allocation9_spill] sm:$0xff] %v18712_v56  ;;  %v18714_v27 = vpop.f32.mrb[59].mxu0 }
 0x4e9   : > { %21465 = vst [vmem:[#allocation37_spill] sm:$0xff] %v18714_v27 }
 0x4ed   : > { %v18716_v18 = vpop.f32.mrb[60].mxu0 }
 0x4ee   : > { %21466 = vst [vmem:[#allocation39_spill] sm:$0xff] %v18716_v18  ;;  %v18718_v2 = vpop.f32.mrb[61].mxu0 }
 0x4ef   : > { %21467 = vst [vmem:[#allocation10_spill] sm:$0xff] %v18718_v2  ;;  %v18720_v7 = vpop.f32.mrb[62].mxu0 }
 0x4f0   : > { %21468 = vst [vmem:[#allocation11_spill] sm:$0xff] %v18720_v7  ;;  %v18722_v52 = vpop.f32.mrb[63].mxu0 }
 0x4f1   : > { %21469 = vst [vmem:[#allocation12_spill] sm:$0xff] %v18722_v52 }
 0x4f5   : > { %v18724_v36 = vpop.f32.mrb[32].mxu0 }
 0x4f6   : > { %21470 = vst [vmem:[#allocation13_spill] sm:$0xff] %v18724_v36  ;;  %v18726_v26 = vpop.f32.mrb[33].mxu0 }
 0x4f7   : > { %21471 = vst [vmem:[#allocation15_spill] sm:$0xff] %v18726_v26  ;;  %v18728_v20 = vpop.f32.mrb[34].mxu0 }
 0x4f8   : > { %21472 = vst [vmem:[#allocation16_spill] sm:$0xff] %v18728_v20  ;;  %v18730_v48 = vpop.f32.mrb[35].mxu0 }
 0x4f9   : > { %21473 = vst [vmem:[#allocation21_spill] sm:$0xff] %v18730_v48 }
 0x4fd   : > { %v18732_v21 = vpop.f32.mrb[36].mxu0 }
 0x4fe   : > { %21474 = vst [vmem:[#allocation30_spill] sm:$0xff] %v18732_v21  ;;  %v18734_v15 = vpop.f32.mrb[37].mxu0 }
 0x4ff   : > { %21475 = vst [vmem:[#allocation25_spill] sm:$0xff] %v18734_v15  ;;  %v18736_v17 = vpop.f32.mrb[38].mxu0 }
 0x500   : > { %21476 = vst [vmem:[#allocation23_spill] sm:$0xff] %v18736_v17  ;;  %v18738_v37 = vpop.f32.mrb[39].mxu0 }
 0x501   : > { %21477 = vst [vmem:[#allocation17_spill] sm:$0xff] %v18738_v37 }
 0x505   : > { %v18740_v38 = vpop.f32.mrb[40].mxu0 }
 0x506   : > { %21478 = vst [vmem:[#allocation31_spill] sm:$0xff] %v18740_v38  ;;  %v18742_v13 = vpop.f32.mrb[41].mxu0 }
 0x507   : > { %21479 = vst [vmem:[#allocation32_spill] sm:$0xff] %v18742_v13  ;;  %v18744_v8 = vpop.f32.mrb[42].mxu0 }
 0x508   : > { %21480 = vst [vmem:[#allocation33_spill] sm:$0xff] %v18744_v8  ;;  %v18746_v5 = vpop.f32.mrb[43].mxu0 }
 0x509   : > { %21481 = vst [vmem:[#allocation34_spill] sm:$0xff] %v18746_v5 }
 0x50d   : > { %v18748_v14 = vpop.f32.mrb[44].mxu0 }
 0x50e   : > { %21482 = vst [vmem:[#allocation35_spill] sm:$0xff] %v18748_v14  ;;  %v18750_v11 = vpop.f32.mrb[45].mxu0 }
 0x50f   : > { %21483 = vst [vmem:[#allocation36_spill] sm:$0xff] %v18750_v11  ;;  %v18752_v62 = vpop.f32.mrb[46].mxu0 }
 0x510   : > { %21484 = vst [vmem:[#allocation38_spill] sm:$0xff] %v18752_v62  ;;  %v18754_v39 = vpop.f32.mrb[47].mxu0 }
 0x511   : > { %21485 = vst [vmem:[#allocation40_spill] sm:$0xff] %v18754_v39 }
 0x515   : > { %v14012_v55 = vpop.f32.mrb[64].mxu0 }
 0x516   : > { %v7338_v46 = vadd.f32 %v14012_v55, %v18764_v58  ;;  %v7329_v16 = vpop.f32.mrb[65].mxu0 }
 0x517   : > { %v7330_v25 = vadd.f32 %v18764_v58, %v7329_v16  ;;  %v14013_v12 = vpop.f32.mrb[66].mxu0  ;;  %v7668_v16 = vmul.f32 %v18785_v31, %v7599_v29 }
 0x518   : > { %v7458_v34 = vmax.f32 %v7338_v46, 0.0  ;;  %v7341_v44 = vadd.f32 %v14013_v12, %v18764_v58  ;;  %v7332_v0 = vpop.f32.mrb[67].mxu0 }
 0x519   : > { %v7456_v24 = vmax.f32 %v7330_v25, 0.0  ;;  %v7333_v59 = vadd.f32 %v18764_v58, %v7332_v0 }
 0x51a   : > { %v7497_v19 = vmul.f32 %v18778_v6, %v7458_v34  ;;  %v7459_v53 = vmax.f32 %v7341_v44, 0.0 }
 0x51b   : > { %v7495_v32 = vmul.f32 %v18778_v6, %v7456_v24  ;;  %v7457_v61 = vmax.f32 %v7333_v59, 0.0  ;;  %v7837_v24 = vsel %vm967_vm3, %v7834_v1, %v7836_v57  ;;  %v8082_v59 = vrot.slane %v7985_v23, 2 }
 0x51c   : > { %v7536_v55 = vadd.f32 %v18791_v10, %v7497_v19  ;;  %v7498_v46 = vmul.f32 %v18778_v6, %v7459_v53  ;;  %v7945_v1 = vadd.f32 %v7835_v45, %v7667_v42  ;;  %v7946_v57 = vadd.f32 %v7837_v24, %v7668_v16  ;;  %v18828_v42 = vld [vmem:[%s21163_s9 + $0x7] ss:$0 sm:$0xff] }
 0x51d   : > { %v7534_v25 = vadd.f32 %v18791_v10, %v7495_v32  ;;  %v7496_v12 = vmul.f32 %v18778_v6, %v7457_v61  ;;  %v14016_v34 = vpop.f32.mrb[68].mxu0 }
 0x51e   : > { %7568 = vst.msk [vmem:[#allocation3 + $0x31] sm:$0xff] %vm687_vm5, %v7536_v55  ;;  %v7537_v44 = vadd.f32 %v18791_v10, %v7498_v46  ;;  %v7354_v22 = vadd.f32 %v14016_v34, %v18764_v58  ;;  %v7345_v0 = vpop.f32.mrb[69].mxu0  ;;  %v8081_v46 = vsel %vm1521_vm4, %v8079_v49, %v8080_v51  ;;  %v18835_v49 = vld [vmem:[%s21163_s9 + $0x3] ss:$0 sm:$0xff] }
 0x51f   : > { %7566 = vst.msk [vmem:[#allocation3 + $0x19] sm:$0xff] %vm687_vm5, %v7534_v25  ;;  %v7535_v29 = vadd.f32 %v18791_v10, %v7496_v12  ;;  %v7346_v28 = vadd.f32 %v18764_v58, %v7345_v0  ;;  %v14017_v19 = vpop.f32.mrb[70].mxu0  ;;  %v8083_v25 = vsel %vm1521_vm4, %v8080_v51, %v8082_v59  ;;  %v18840_v51 = vld [vmem:[%s21163_s9 + $0x4] ss:$0 sm:$0xff] }
 0x520   : > { %7569 = vst.msk [vmem:[#allocation3 + $0x39] sm:$0xff] %vm687_vm5, %v7537_v44  ;;  %v7462_v47 = vmax.f32 %v7354_v22, 0.0  ;;  %v7357_v50 = vadd.f32 %v14017_v19, %v18764_v58  ;;  %v7348_v53 = vpop.f32.mrb[71].mxu0  ;;  %v18823_v44 = vld [vmem:[%s21163_s9 + $0x6] ss:$0 sm:$0xff]  ;;  %v8192_v19 = vadd.f32 %v8083_v25, %v7946_v57 }
 0x521   : > { %7567 = vst.msk [vmem:[#allocation3 + $0x21] sm:$0xff] %vm687_vm5, %v7535_v29  ;;  %v7460_v32 = vmax.f32 %v7346_v28, 0.0  ;;  %v7349_v61 = vadd.f32 %v18764_v58, %v7348_v53  ;;  %v18849_v29 = vld [vmem:[%s21163_s9 + $0x5] ss:$0 sm:$0xff]  ;;  %v8191_v28 = vadd.f32 %v8081_v46, %v7945_v1 }
 0x522   : > { %v7501_v23 = vmul.f32 %v18778_v6, %v7462_v47  ;;  %v7463_v55 = vmax.f32 %v7357_v50, 0.0 }
 0x523   : > { %v7499_v12 = vmul.f32 %v18778_v6, %v7460_v32  ;;  %v7461_v34 = vmax.f32 %v7349_v61, 0.0 }
 0x524   : > { %v7540_v16 = vadd.f32 %v18791_v10, %v7501_v23  ;;  %v7502_v45 = vmul.f32 %v18778_v6, %v7463_v55 }
 0x525   : > { %v7538_v22 = vadd.f32 %v18791_v10, %v7499_v12  ;;  %v7500_v0 = vmul.f32 %v18778_v6, %v7461_v34  ;;  %v14020_v24 = vpop.f32.mrb[72].mxu0  ;;  %v18844_v59 = vld [vmem:[#allocation3 + $0x30] sm:$0xff] }
 0x526   : > { %7572 = vst.msk [vmem:[#allocation3 + $0x61] sm:$0xff] %vm687_vm5, %v7540_v16  ;;  %v7541_v47 = vadd.f32 %v18791_v10, %v7502_v45  ;;  %v7370_v50 = vadd.f32 %v14020_v24, %v18764_v58  ;;  %v7361_v53 = vpop.f32.mrb[73].mxu0  ;;  %v18854_v32 = vld [vmem:[#allocation3 + $0x18] sm:$0xff]  ;;  %v18858_v61 = vmul.f32 %v18823_v44, %v18844_v59  ;;  %v18862_v23 = vmul.f32 %v18828_v42, %v18844_v59 }
 0x527   : > { %7570 = vst.msk [vmem:[#allocation3 + $0x49] sm:$0xff] %vm687_vm5, %v7538_v22  ;;  %v7539_v1 = vadd.f32 %v18791_v10, %v7500_v0  ;;  %v7362_v57 = vadd.f32 %v18764_v58, %v7361_v53  ;;  %v14021_v55 = vpop.f32.mrb[74].mxu0  ;;  %v18867_v46 = vld [vmem:[#allocation3 + $0x38] sm:$0xff]  ;;  %v8229_v25 = vmul.f32 %v18835_v49, %v18854_v32  ;;  %v8299_v12 = vmul.f32 %v18840_v51, %v18854_v32  ;;  %v18918_v4 = vld [vmem:[#allocation3 + $0x40] sm:$0x3] }
 0x528   : > { %7573 = vst.msk [vmem:[#allocation3 + $0x69] sm:$0xff] %vm687_vm5, %v7541_v47  ;;  %v7466_v34 = vmax.f32 %v7370_v50, 0.0  ;;  %v7373_v16 = vadd.f32 %v14021_v55, %v18764_v58  ;;  %v7364_v45 = vpop.f32.mrb[75].mxu0  ;;  %v18875_v22 = vld [vmem:[#allocation3 + $0x20] sm:$0xff]  ;;  %v7603_v0 = vld [vmem:[#allocation3 + $0x28] sm:$0x3]  ;;  %v8545_v24 = vmul.f32 %v18849_v29, %v18854_v32  ;;  %v18881_v53 = vmul.f32 %v18823_v44, %v18867_v46 }
 0x529   : > { %7571 = vst.msk [vmem:[#allocation3 + $0x51] sm:$0xff] %vm687_vm5, %v7539_v1  ;;  %v7464_v52 = vmax.f32 %v7362_v57, 0.0  ;;  %v7365_v7 = vadd.f32 %v18764_v58, %v7364_v45  ;;  %v18886_v47 = vmul.f32 %v18759_v3, %v7603_v0  ;;  %v18889_v50 = vmul.f32 %v18770_v43, %v7603_v0 }
 0x52a   : > { %v7505_v55 = vmul.f32 %v18778_v6, %v7466_v34  ;;  %v7467_v2 = vmax.f32 %v7373_v16, 0.0  ;;  %v8230_v18 = vmul.f32 %v18835_v49, %v18875_v22  ;;  %v8261_v27 = vadd.f32 %v8229_v25, %v8191_v28 }
 0x52b   : > { %v7503_v56 = vmul.f32 %v18778_v6, %v7464_v52  ;;  %v7465_v35 = vmax.f32 %v7365_v7, 0.0  ;;  %v8300_v34 = vmul.f32 %v18840_v51, %v18875_v22  ;;  %v8301_v52 = vmul.f32 %v18840_v51, %v7603_v0 }
 0x52c   : > { %v7544_v45 = vadd.f32 %v18791_v10, %v7505_v55  ;;  %v7506_v54 = vmul.f32 %v18778_v6, %v7467_v2  ;;  %v8262_v9 = vadd.f32 %v8230_v18, %v8192_v19  ;;  %v8395_v7 = vrot.slane %v8299_v12, 1 }
 0x52d   : > { %v7542_v16 = vadd.f32 %v18791_v10, %v7503_v56  ;;  %v7504_v60 = vmul.f32 %v18778_v6, %v7465_v35  ;;  %v14024_v28 = vpop.f32.mrb[76].mxu0  ;;  %v8396_v2 = vrot.slane %v8300_v34, 1  ;;  %v8546_v18 = vmul.f32 %v18849_v29, %v18875_v22 }
 0x52e   : > { %7576 = vst.msk [vmem:[#allocation3 + $0x91] sm:$0xff] %vm687_vm5, %v7544_v45  ;;  %v7545_v25 = vadd.f32 %v18791_v10, %v7506_v54  ;;  %v7386_v55 = vadd.f32 %v14024_v28, %v18764_v58  ;;  %v7377_v57 = vpop.f32.mrb[77].mxu0  ;;  %v8398_v1 = vrot.slane %v8301_v52, 1  ;;  %v8547_v12 = vmul.f32 %v18849_v29, %v7603_v0 }
 0x52f   : > { %7574 = vst.msk [vmem:[#allocation3 + $0x79] sm:$0xff] %vm687_vm5, %v7542_v16  ;;  %v7543_v56 = vadd.f32 %v18791_v10, %v7504_v60  ;;  %v7378_v35 = vadd.f32 %v18764_v58, %v7377_v57  ;;  %v14025_v19 = vpop.f32.mrb[78].mxu0  ;;  %v8397_v34 = vsel %vm967_vm3, %v8395_v7, %v8396_v2  ;;  %v8641_v41 = vrot.slane %v8545_v24, 2 }
 0x530   : > { %7577 = vst.msk [vmem:[#allocation3 + $0x99] sm:$0xff] %vm687_vm5, %v7545_v25  ;;  %v7470_v54 = vmax.f32 %v7386_v55, 0.0  ;;  %v7389_v45 = vadd.f32 %v14025_v19, %v18764_v58  ;;  %v7380_v28 = vpop.f32.mrb[79].mxu0  ;;  %v8399_v57 = vsel %vm967_vm3, %v8396_v2, %v8398_v1  ;;  %v8507_v52 = vadd.f32 %v8397_v34, %v8261_v27  ;;  %v18930_v27 = vld [vmem:[%s21163_s9 + $0x8] ss:$0 sm:$0xff] }
 0x531   : > { %7575 = vst.msk [vmem:[#allocation3 + $0x81] sm:$0xff] %vm687_vm5, %v7543_v56  ;;  %v7468_v16 = vmax.f32 %v7378_v35, 0.0  ;;  %v7381_v60 = vadd.f32 %v18764_v58, %v7380_v28  ;;  %v8508_v55 = vadd.f32 %v8399_v57, %v8262_v9  ;;  %v8642_v30 = vrot.slane %v8546_v18, 2 }
 0x532   : > { %v7509_v0 = vmul.f32 %v18778_v6, %v7470_v54  ;;  %v7471_v25 = vmax.f32 %v7389_v45, 0.0  ;;  %v8644_v7 = vrot.slane %v8547_v12, 2  ;;  %v8862_v24 = vmul.f32 %v18828_v42, %v18867_v46 }
 0x533   : > { %v7507_v19 = vmul.f32 %v18778_v6, %v7468_v16  ;;  %v7469_v40 = vmax.f32 %v7381_v60, 0.0  ;;  %v8643_v1 = vsel %vm1521_vm4, %v8641_v41, %v8642_v30  ;;  %v8863_v9 = vmul.f32 %v18828_v42, %v18918_v4 }
 0x534   : > { %v7548_v56 = vadd.f32 %v18791_v10, %v7509_v0  ;;  %v7510_v35 = vmul.f32 %v18778_v6, %v7471_v25  ;;  %v8645_v12 = vsel %vm1521_vm4, %v8642_v30, %v8644_v7  ;;  %v8753_v54 = vadd.f32 %v8643_v1, %v8507_v52 }
 0x535   : > { %v7546_v2 = vadd.f32 %v18791_v10, %v7507_v19  ;;  %v7508_v18 = vmul.f32 %v18778_v6, %v7469_v40  ;;  %v8754_v28 = vadd.f32 %v8645_v12, %v8508_v55  ;;  %v8957_v34 = vrot.slane %v18862_v23, 1 }
 0x536   : > { %7580 = vst.msk [vmem:[#allocation3 + $0xc1] sm:$0xff] %vm687_vm5, %v7548_v56  ;;  %v7549_v45 = vadd.f32 %v18791_v10, %v7510_v35  ;;  %v8958_v16 = vrot.slane %v8862_v24, 1  ;;  %v8823_v60 = vadd.f32 %v18858_v61, %v8753_v54  ;;  %v8960_v57 = vrot.slane %v8863_v9, 1 }
 0x537   : > { %7578 = vst.msk [vmem:[#allocation3 + $0xa9] sm:$0xff] %vm687_vm5, %v7546_v2  ;;  %v7547_v41 = vadd.f32 %v18791_v10, %v7508_v18  ;;  %v9107_v40 = vmul.f32 %v18930_v27, %v18844_v59  ;;  %v8824_v30 = vadd.f32 %v18881_v53, %v8754_v28  ;;  %v9108_v23 = vmul.f32 %v18930_v27, %v18867_v46  ;;  %v14028_v25 = vpop.f32.mrb[80].mxu0 }
 0x538   : > { %7581 = vst.msk [vmem:[#allocation3 + $0xc9] sm:$0xff] %vm687_vm5, %v7549_v45  ;;  %v8959_v52 = vsel %vm967_vm3, %v8957_v34, %v8958_v16  ;;  %v9109_v0 = vmul.f32 %v18930_v27, %v18918_v4  ;;  %v8961_v61 = vsel %vm967_vm3, %v8958_v16, %v8960_v57  ;;  %v7669_v7 = vmul.f32 %v18785_v31, %v18854_v32  ;;  %v7393_v24 = vpop.f32.mrb[81].mxu0 }
 0x539   : > { %7579 = vst.msk [vmem:[#allocation3 + $0xb1] sm:$0xff] %vm687_vm5, %v7547_v41  ;;  %v9069_v55 = vadd.f32 %v8959_v52, %v8823_v60  ;;  %v9203_v19 = vrot.slane %v9107_v40, 2  ;;  %v7402_v53 = vadd.f32 %v14028_v25, %v18764_v58  ;;  %v9070_v56 = vadd.f32 %v8961_v61, %v8824_v30  ;;  %v14029_v2 = vpop.f32.mrb[82].mxu0  ;;  %v18971_v60 = vld [vmem:[%s21164_s10] ss:$0 sm:$0xff] }
 0x53a   : > { %v9204_v35 = vrot.slane %v9108_v23, 2  ;;  %v9206_v1 = vrot.slane %v9109_v0, 2  ;;  %v7394_v9 = vadd.f32 %v18764_v58, %v7393_v24  ;;  %v7670_v18 = vmul.f32 %v18785_v31, %v18875_v22  ;;  %v7396_v34 = vpop.f32.mrb[83].mxu0 }
 0x53b   : > { %v7740_v12 = vmul.f32 %v18759_v3, %v18854_v32  ;;  %v7741_v54 = vmul.f32 %v18759_v3, %v18875_v22  ;;  %v7474_v45 = vmax.f32 %v7402_v53, 0.0  ;;  %v7405_v28 = vadd.f32 %v14029_v2, %v18764_v58 }
 0x53c   : > { %v9205_v16 = vsel %vm1521_vm4, %v9203_v19, %v9204_v35  ;;  %v9207_v41 = vsel %vm1521_vm4, %v9204_v35, %v9206_v1  ;;  %v7472_v57 = vmax.f32 %v7394_v9, 0.0  ;;  %v7397_v40 = vadd.f32 %v18764_v58, %v7396_v34 }
 0x53d   : > { %v9315_v30 = vadd.f32 %v9205_v16, %v9069_v55  ;;  %v9316_v52 = vadd.f32 %v9207_v41, %v9070_v56  ;;  %v7513_v23 = vmul.f32 %v18778_v6, %v7474_v45  ;;  %v7475_v0 = vmax.f32 %v7405_v28, 0.0 }
 0x53e   : > { %v7838_v25 = vrot.slane %v7740_v12, 1  ;;  %v7839_v61 = vrot.slane %v7741_v54, 1  ;;  %v7511_v53 = vmul.f32 %v18778_v6, %v7472_v57  ;;  %v7473_v19 = vmax.f32 %v7397_v40, 0.0 }
 0x53f   : > { %v9354_v24 = vadd.f32 %v18971_v60, %v9315_v30  ;;  %v9355_v35 = vadd.f32 %v18971_v60, %v9316_v52  ;;  %v7552_v1 = vadd.f32 %v18791_v10, %v7513_v23  ;;  %v7514_v9 = vmul.f32 %v18778_v6, %v7475_v0  ;;  %v19006_v23 = vld [vmem:[#allocation3 + $0x48] sm:$0xff] }
 0x540   : > { %v7840_v2 = vsel %vm967_vm3, %v7838_v25, %v7839_v61  ;;  %v21486_v55 = vrot.slane %v18886_v47, 1  ;;  %v7550_v12 = vadd.f32 %v18791_v10, %v7511_v53  ;;  %v7512_v54 = vmul.f32 %v18778_v6, %v7473_v19  ;;  %v19015_v19 = vld [vmem:[#allocation3 + $0x50] sm:$0xff] }
 0x541   : > { %v9386_v45 = vpack.c.bf16 %v9355_v35, %v9354_v24  ;;  %v7947_v28 = vadd.f32 %v7840_v2, %v7669_v7  ;;  %7584 = vst.msk [vmem:[#allocation3 + $0xf1] sm:$0xff] %vm687_vm5, %v7552_v1  ;;  %v7553_v34 = vadd.f32 %v18791_v10, %v7514_v9  ;;  %v7986_v41 = vmul.f32 %v18770_v43, %v18854_v32 }
 0x542   : > { %v7842_v56 = vsel %vm967_vm3, %v7839_v61, %v21486_v55  ;;  %v7987_v57 = vmul.f32 %v18770_v43, %v18875_v22  ;;  %7582 = vst.msk [vmem:[#allocation3 + $0xd9] sm:$0xff] %vm687_vm5, %v7550_v12  ;;  %v7551_v47 = vadd.f32 %v18791_v10, %v7512_v54  ;;  %v8231_v7 = vmul.f32 %v18835_v49, %v18844_v59  ;;  %v19021_v55 = vld [vmem:[#allocation3 + $0x58] sm:$0x3] }
 0x543   : > { %v7948_v16 = vadd.f32 %v7842_v56, %v7670_v18  ;;  %14044 = vmatprep.mubr.msk.bf16.mxu1 %vm687_vm5, %v9386_v45  ;;  %v8232_v40 = vmul.f32 %v18835_v49, %v18867_v46  ;;  %v8302_v18 = vmul.f32 %v18840_v51, %v18844_v59  ;;  %7585 = vst.msk [vmem:[#allocation3 + $0xf9] sm:$0xff] %vm687_vm5, %v7553_v34  ;;  %v8084_v32 = vrot.slane %v7986_v41, 2 }
 0x544   : > { %v8085_v30 = vrot.slane %v7987_v57, 2  ;;  %v8303_v22 = vmul.f32 %v18840_v51, %v18867_v46  ;;  %v8304_v52 = vmul.f32 %v18840_v51, %v18918_v4  ;;  %7583 = vst.msk [vmem:[#allocation3 + $0xe1] sm:$0xff] %vm687_vm5, %v7551_v47  ;;  %v8548_v25 = vmul.f32 %v18849_v29, %v18844_v59 }
 0x545   : > { %v8400_v0 = vrot.slane %v8302_v18, 1  ;;  %v8549_v61 = vmul.f32 %v18849_v29, %v18867_v46  ;;  %v8550_v53 = vmul.f32 %v18849_v29, %v18918_v4  ;;  %v21487_v35 = vrot.slane %v18889_v50, 2 }
 0x546   : > { %v8086_v24 = vsel %vm1521_vm4, %v8084_v32, %v8085_v30  ;;  %v8401_v9 = vrot.slane %v8303_v22, 1  ;;  %v8403_v2 = vrot.slane %v8304_v52, 1  ;;  %v8646_v54 = vrot.slane %v8548_v25, 2 }
 0x547   : > { %v8088_v1 = vsel %vm1521_vm4, %v8085_v30, %v21487_v35  ;;  %v8193_v56 = vadd.f32 %v8086_v24, %v7947_v28  ;;  %v8647_v45 = vrot.slane %v8549_v61, 2  ;;  %v8649_v57 = vrot.slane %v8550_v53, 2 }
 0x548   : > { %v8194_v12 = vadd.f32 %v8088_v1, %v7948_v16  ;;  %v8402_v34 = vsel %vm967_vm3, %v8400_v0, %v8401_v9  ;;  %v8404_v41 = vsel %vm967_vm3, %v8401_v9, %v8403_v2  ;;  %v8793_v47 = vmul.f32 %v18823_v44, %v19006_v23 }
 0x549   : > { %v8263_v18 = vadd.f32 %v8231_v7, %v8193_v56  ;;  %v8648_v32 = vsel %vm1521_vm4, %v8646_v54, %v8647_v45  ;;  %v8794_v30 = vmul.f32 %v18823_v44, %v19015_v19  ;;  %v8650_v28 = vsel %vm1521_vm4, %v8647_v45, %v8649_v57 }
 0x54a   : > { %v8264_v50 = vadd.f32 %v8232_v40, %v8194_v12  ;;  %v8864_v16 = vmul.f32 %v18828_v42, %v19006_v23  ;;  %v8865_v22 = vmul.f32 %v18828_v42, %v19015_v19  ;;  %v8866_v52 = vmul.f32 %v18828_v42, %v19021_v55 }
 0x54b   : > { %v8509_v0 = vadd.f32 %v8402_v34, %v8263_v18  ;;  %v9110_v7 = vmul.f32 %v18930_v27, %v19006_v23  ;;  %v9111_v40 = vmul.f32 %v18930_v27, %v19015_v19  ;;  %v9112_v35 = vmul.f32 %v18930_v27, %v19021_v55 }
 0x54c   : > { %v8510_v25 = vadd.f32 %v8404_v41, %v8264_v50  ;;  %v8962_v61 = vrot.slane %v8864_v16, 1  ;;  %v8963_v53 = vrot.slane %v8865_v22, 1  ;;  %v8965_v24 = vrot.slane %v8866_v52, 1 }
 0x54d   : > { %v8755_v1 = vadd.f32 %v8648_v32, %v8509_v0  ;;  %v9208_v2 = vrot.slane %v9110_v7, 2  ;;  %v9209_v56 = vrot.slane %v9111_v40, 2  ;;  %v9211_v45 = vrot.slane %v9112_v35, 2 }
 0x54e   : > { %v8756_v9 = vadd.f32 %v8650_v28, %v8510_v25  ;;  %v8964_v12 = vsel %vm967_vm3, %v8962_v61, %v8963_v53  ;;  %v8966_v54 = vsel %vm967_vm3, %v8963_v53, %v8965_v24  ;;  %v7671_v34 = vmul.f32 %v18785_v31, %v18844_v59 }
 0x54f   : > { %v8825_v41 = vadd.f32 %v8793_v47, %v8755_v1  ;;  %v9210_v18 = vsel %vm1521_vm4, %v9208_v2, %v9209_v56  ;;  %v7672_v50 = vmul.f32 %v18785_v31, %v18867_v46  ;;  %v9212_v32 = vsel %vm1521_vm4, %v9209_v56, %v9211_v45 }
 0x550   : > { %v8826_v57 = vadd.f32 %v8794_v30, %v8756_v9  ;;  %v7743_v28 = vmul.f32 %v18759_v3, %v18844_v59  ;;  %v7744_v16 = vmul.f32 %v18759_v3, %v18867_v46  ;;  %v7745_v22 = vmul.f32 %v18759_v3, %v18918_v4 }
 0x551   : > { %v9071_v52 = vadd.f32 %v8964_v12, %v8825_v41  ;;  %v7989_v47 = vmul.f32 %v18770_v43, %v18844_v59  ;;  %v7990_v30 = vmul.f32 %v18770_v43, %v18867_v46  ;;  %v7991_v61 = vmul.f32 %v18770_v43, %v18918_v4 }
 0x552   : > { %v9072_v0 = vadd.f32 %v8966_v54, %v8826_v57  ;;  %v7843_v25 = vrot.slane %v7743_v28, 1  ;;  %v7844_v7 = vrot.slane %v7744_v16, 1  ;;  %v7846_v40 = vrot.slane %v7745_v22, 1  ;;  %v19075_v28 = vld [vmem:[#allocation3 + $0x60] sm:$0xff] }
 0x553   : > { %v9317_v53 = vadd.f32 %v9210_v18, %v9071_v52  ;;  %v8089_v35 = vrot.slane %v7989_v47, 2  ;;  %v8090_v1 = vrot.slane %v7990_v30, 2  ;;  %v8092_v56 = vrot.slane %v7991_v61, 2 }
 0x554   : > { %v9318_v24 = vadd.f32 %v9212_v32, %v9072_v0  ;;  %v7845_v9 = vsel %vm967_vm3, %v7843_v25, %v7844_v7  ;;  %v7847_v2 = vsel %vm967_vm3, %v7844_v7, %v7846_v40  ;;  %v8233_v59 = vmul.f32 %v18835_v49, %v19006_v23 }
 0x555   : > { %v9356_v46 = vadd.f32 %v18971_v60, %v9317_v53  ;;  %v7949_v54 = vadd.f32 %v7845_v9, %v7671_v34  ;;  %v7950_v45 = vadd.f32 %v7847_v2, %v7672_v50  ;;  %v8091_v4 = vsel %vm1521_vm4, %v8089_v35, %v8090_v1  ;;  %v19079_v34 = vld [vmem:[#allocation3 + $0x68] sm:$0xff]  ;;  %v19090_v53 = vld [vmem:[#allocation3 + $0x70] sm:$0x3] }
 0x556   : > { %v9357_v12 = vadd.f32 %v18971_v60, %v9318_v24  ;;  %v8093_v41 = vsel %vm1521_vm4, %v8090_v1, %v8092_v56  ;;  %v8234_v57 = vmul.f32 %v18835_v49, %v19015_v19  ;;  %v8305_v18 = vmul.f32 %v18840_v51, %v19006_v23 }
 0x557   : > { %v8195_v16 = vadd.f32 %v8091_v4, %v7949_v54  ;;  %v8196_v22 = vadd.f32 %v8093_v41, %v7950_v45  ;;  %v8306_v52 = vmul.f32 %v18840_v51, %v19015_v19  ;;  %v8307_v50 = vmul.f32 %v18840_v51, %v19021_v55 }
 0x558   : > { %v9387_v32 = vpack.c.bf16 %v9357_v12, %v9356_v46  ;;  %v8405_v0 = vrot.slane %v8305_v18, 1  ;;  %v8551_v47 = vmul.f32 %v18849_v29, %v19006_v23  ;;  %v8552_v30 = vmul.f32 %v18849_v29, %v19015_v19 }
 0x559   : > { %v8265_v25 = vadd.f32 %v8233_v59, %v8195_v16  ;;  %v8266_v7 = vadd.f32 %v8234_v57, %v8196_v22  ;;  %v8406_v40 = vrot.slane %v8306_v52, 1  ;;  %v8553_v61 = vmul.f32 %v18849_v29, %v19021_v55 }
 0x55a   : > { %14045 = vmatmul.mubr.msk.bf16.vlgmr.msra.gmra.mrb[32].mxu1 %vm687_vm5, %v9387_v32  ;;  %v8408_v24 = vrot.slane %v8307_v50, 1  ;;  %v8651_v35 = vrot.slane %v8551_v47, 2  ;;  %v8652_v1 = vrot.slane %v8552_v30, 2  ;;  %v8795_v9 = vmul.f32 %v18823_v44, %v19075_v28 }
 0x55b   : > { %v8407_v2 = vsel %vm967_vm3, %v8405_v0, %v8406_v40  ;;  %v8654_v56 = vrot.slane %v8553_v61, 2  ;;  %v8796_v46 = vmul.f32 %v18823_v44, %v19079_v34  ;;  %v8867_v59 = vmul.f32 %v18828_v42, %v19075_v28 }
 0x55c   : > { %v8409_v12 = vsel %vm967_vm3, %v8406_v40, %v8408_v24  ;;  %v8511_v54 = vadd.f32 %v8407_v2, %v8265_v25  ;;  %v8653_v45 = vsel %vm1521_vm4, %v8651_v35, %v8652_v1  ;;  %v8868_v4 = vmul.f32 %v18828_v42, %v19079_v34  ;;  %v14032_v16 = vpop.f32.mrb[84].mxu0 }
 0x55d   : > { %v8512_v41 = vadd.f32 %v8409_v12, %v8266_v7  ;;  %v8655_v57 = vsel %vm1521_vm4, %v8652_v1, %v8654_v56  ;;  %v8869_v18 = vmul.f32 %v18828_v42, %v19090_v53  ;;  %v8967_v32 = vrot.slane %v8867_v59, 1  ;;  %v7409_v30 = vpop.f32.mrb[85].mxu0 }
 0x55e   : > { %v8757_v22 = vadd.f32 %v8653_v45, %v8511_v54  ;;  %v8968_v52 = vrot.slane %v8868_v4, 1  ;;  %v9113_v50 = vmul.f32 %v18930_v27, %v19075_v28  ;;  %v9114_v0 = vmul.f32 %v18930_v27, %v19079_v34  ;;  %v14033_v24 = vpop.f32.mrb[86].mxu0 }
 0x55f   : > { %v7418_v47 = vadd.f32 %v14032_v16, %v18764_v58  ;;  %v8758_v25 = vadd.f32 %v8655_v57, %v8512_v41  ;;  %v8970_v7 = vrot.slane %v8869_v18, 1  ;;  %v9115_v40 = vmul.f32 %v18930_v27, %v19090_v53  ;;  %v7412_v12 = vpop.f32.mrb[87].mxu0 }
 0x560   : > { %v7410_v61 = vadd.f32 %v18764_v58, %v7409_v30  ;;  %v8827_v35 = vadd.f32 %v8795_v9, %v8757_v22  ;;  %v8969_v1 = vsel %vm967_vm3, %v8967_v32, %v8968_v52  ;;  %v9213_v2 = vrot.slane %v9113_v50, 2 }
 0x561   : > { %v7478_v56 = vmax.f32 %v7418_v47, 0.0  ;;  %v7421_v59 = vadd.f32 %v14033_v24, %v18764_v58  ;;  %v8828_v54 = vadd.f32 %v8796_v46, %v8758_v25  ;;  %v8971_v45 = vsel %vm967_vm3, %v8968_v52, %v8970_v7 }
 0x562   : > { %v7476_v4 = vmax.f32 %v7410_v61, 0.0  ;;  %v7413_v41 = vadd.f32 %v18764_v58, %v7412_v12  ;;  %v9073_v57 = vadd.f32 %v8969_v1, %v8827_v35  ;;  %v9214_v18 = vrot.slane %v9114_v0, 2 }
 0x563   : > { %v7517_v16 = vmul.f32 %v18778_v6, %v7478_v56  ;;  %v7479_v30 = vmax.f32 %v7421_v59, 0.0  ;;  %v9074_v33 = vadd.f32 %v8971_v45, %v8828_v54  ;;  %v9216_v9 = vrot.slane %v9115_v40, 2 }
 0x564   : > { %v7515_v32 = vmul.f32 %v18778_v6, %v7476_v4  ;;  %v7477_v22 = vmax.f32 %v7413_v41, 0.0  ;;  %v9215_v50 = vsel %vm1521_vm4, %v9213_v2, %v9214_v18  ;;  %v7673_v46 = vmul.f32 %v18785_v31, %v19006_v23 }
 0x565   : > { %v7556_v52 = vadd.f32 %v18791_v10, %v7517_v16  ;;  %v7518_v47 = vmul.f32 %v18778_v6, %v7479_v30  ;;  %v9217_v25 = vsel %vm1521_vm4, %v9214_v18, %v9216_v9  ;;  %v9319_v0 = vadd.f32 %v9215_v50, %v9073_v57 }
 0x566   : > { %v7554_v7 = vadd.f32 %v18791_v10, %v7515_v32  ;;  %v7516_v61 = vmul.f32 %v18778_v6, %v7477_v22  ;;  %v9320_v40 = vadd.f32 %v9217_v25, %v9074_v33  ;;  %v7674_v24 = vmul.f32 %v18785_v31, %v19015_v19 }
 0x567   : > { %7588 = vst.msk [vmem:[#allocation3 + $0x121] sm:$0xff] %vm687_vm5, %v7556_v52  ;;  %v7557_v35 = vadd.f32 %v18791_v10, %v7518_v47  ;;  %v9358_v1 = vadd.f32 %v18971_v60, %v9319_v0  ;;  %v7746_v2 = vmul.f32 %v18759_v3, %v19006_v23  ;;  %v7747_v56 = vmul.f32 %v18759_v3, %v19015_v19  ;;  %v19161_v52 = vld [vmem:[#allocation3 + $0x78] sm:$0xff] }
 0x568   : > { %7586 = vst.msk [vmem:[#allocation3 + $0x109] sm:$0xff] %vm687_vm5, %v7554_v7  ;;  %v7555_v6 = vadd.f32 %v18791_v10, %v7516_v61  ;;  %v9359_v33 = vadd.f32 %v18971_v60, %v9320_v40  ;;  %v7748_v59 = vmul.f32 %v18759_v3, %v19021_v55  ;;  %v7992_v12 = vmul.f32 %v18770_v43, %v19006_v23 }
 0x569   : > { %7589 = vst.msk [vmem:[#allocation3 + $0x129] sm:$0xff] %vm687_vm5, %v7557_v35  ;;  %v7848_v54 = vrot.slane %v7746_v2, 1  ;;  %v7849_v45 = vrot.slane %v7747_v56, 1  ;;  %v7993_v4 = vmul.f32 %v18770_v43, %v19015_v19  ;;  %v7994_v41 = vmul.f32 %v18770_v43, %v19021_v55 }
 0x56a   : > { %7587 = vst.msk [vmem:[#allocation3 + $0x111] sm:$0xff] %vm687_vm5, %v7555_v6  ;;  %v9388_v10 = vpack.c.bf16 %v9359_v33, %v9358_v1  ;;  %v7851_v57 = vrot.slane %v7748_v59, 1  ;;  %v8094_v18 = vrot.slane %v7992_v12, 2  ;;  %v8235_v16 = vmul.f32 %v18835_v49, %v19075_v28  ;;  %v19169_v1 = vld [vmem:[#allocation3 + $0x80] sm:$0xff]  ;;  %v19175_v33 = vld [vmem:[#allocation3 + $0x88] sm:$0x3] }
 0x56b   : > { %v7850_v23 = vsel %vm967_vm3, %v7848_v54, %v7849_v45  ;;  %v8095_v30 = vrot.slane %v7993_v4, 2  ;;  %v8097_v9 = vrot.slane %v7994_v41, 2  ;;  %v8236_v32 = vmul.f32 %v18835_v49, %v19079_v34 }
 0x56c   : > { %14048 = vmatprep.mubr.msk.bf16.mxu1 %vm687_vm5, %v9388_v10  ;;  %v7852_v19 = vsel %vm967_vm3, %v7849_v45, %v7851_v57  ;;  %v7951_v55 = vadd.f32 %v7850_v23, %v7673_v46  ;;  %v8308_v22 = vmul.f32 %v18840_v51, %v19075_v28  ;;  %v8309_v50 = vmul.f32 %v18840_v51, %v19079_v34 }
 0x56d   : > { %v7952_v47 = vadd.f32 %v7852_v19, %v7674_v24  ;;  %v8096_v25 = vsel %vm1521_vm4, %v8094_v18, %v8095_v30  ;;  %v8098_v0 = vsel %vm1521_vm4, %v8095_v30, %v8097_v9  ;;  %v8310_v7 = vmul.f32 %v18840_v51, %v19090_v53 }
 0x56e   : > { %v8197_v61 = vadd.f32 %v8096_v25, %v7951_v55  ;;  %v8410_v40 = vrot.slane %v8308_v22, 1  ;;  %v8411_v35 = vrot.slane %v8309_v50, 1  ;;  %v8554_v46 = vmul.f32 %v18849_v29, %v19075_v28 }
 0x56f   : > { %v8198_v2 = vadd.f32 %v8098_v0, %v7952_v47  ;;  %v8413_v56 = vrot.slane %v8310_v7, 1  ;;  %v8555_v24 = vmul.f32 %v18849_v29, %v19079_v34  ;;  %v8556_v6 = vmul.f32 %v18849_v29, %v19090_v53 }
 0x570   : > { %v8267_v59 = vadd.f32 %v8235_v16, %v8197_v61  ;;  %v8412_v12 = vsel %vm967_vm3, %v8410_v40, %v8411_v35  ;;  %v8656_v54 = vrot.slane %v8554_v46, 2  ;;  %v8797_v45 = vmul.f32 %v18823_v44, %v19161_v52 }
 0x571   : > { %v8268_v4 = vadd.f32 %v8236_v32, %v8198_v2  ;;  %v8414_v41 = vsel %vm967_vm3, %v8411_v35, %v8413_v56  ;;  %v8657_v10 = vrot.slane %v8555_v24, 2  ;;  %v8659_v57 = vrot.slane %v8556_v6, 2 }
 0x572   : > { %v8513_v18 = vadd.f32 %v8412_v12, %v8267_v59  ;;  %v8798_v23 = vmul.f32 %v18823_v44, %v19169_v1  ;;  %v8870_v30 = vmul.f32 %v18828_v42, %v19161_v52  ;;  %v8871_v16 = vmul.f32 %v18828_v42, %v19169_v1 }
 0x573   : > { %v8514_v9 = vadd.f32 %v8414_v41, %v8268_v4  ;;  %v8658_v19 = vsel %vm1521_vm4, %v8656_v54, %v8657_v10  ;;  %v8660_v55 = vsel %vm1521_vm4, %v8657_v10, %v8659_v57  ;;  %v8872_v32 = vmul.f32 %v18828_v42, %v19175_v33 }
 0x574   : > { %v8759_v22 = vadd.f32 %v8658_v19, %v8513_v18  ;;  %v8972_v50 = vrot.slane %v8870_v30, 1  ;;  %v8973_v47 = vrot.slane %v8871_v16, 1  ;;  %v9116_v25 = vmul.f32 %v18930_v27, %v19161_v52 }
 0x575   : > { %v8760_v0 = vadd.f32 %v8660_v55, %v8514_v9  ;;  %v8975_v7 = vrot.slane %v8872_v32, 1  ;;  %v9117_v61 = vmul.f32 %v18930_v27, %v19169_v1  ;;  %v9118_v40 = vmul.f32 %v18930_v27, %v19175_v33 }
 0x576   : > { %v8829_v35 = vadd.f32 %v8797_v45, %v8759_v22  ;;  %v8974_v46 = vsel %vm967_vm3, %v8972_v50, %v8973_v47  ;;  %v9218_v2 = vrot.slane %v9116_v25, 2  ;;  %v7675_v56 = vmul.f32 %v18785_v31, %v19075_v28 }
 0x577   : > { %v8830_v24 = vadd.f32 %v8798_v23, %v8760_v0  ;;  %v8976_v6 = vsel %vm967_vm3, %v8973_v47, %v8975_v7  ;;  %v9219_v59 = vrot.slane %v9117_v61, 2  ;;  %v9221_v12 = vrot.slane %v9118_v40, 2 }
 0x578   : > { %v9075_v54 = vadd.f32 %v8974_v46, %v8829_v35  ;;  %v7676_v4 = vmul.f32 %v18785_v31, %v19079_v34  ;;  %v7749_v41 = vmul.f32 %v18759_v3, %v19075_v28  ;;  %v7750_v45 = vmul.f32 %v18759_v3, %v19079_v34  ;;  %v19227_v46 = vld [vmem:[#allocation3 + $0x90] sm:$0xff] }
 0x579   : > { %v9076_v10 = vadd.f32 %v8976_v6, %v8830_v24  ;;  %v9220_v57 = vsel %vm1521_vm4, %v9218_v2, %v9219_v59  ;;  %v9222_v18 = vsel %vm1521_vm4, %v9219_v59, %v9221_v12  ;;  %v7751_v23 = vmul.f32 %v18759_v3, %v19090_v53 }
 0x57a   : > { %v9321_v30 = vadd.f32 %v9220_v57, %v9075_v54  ;;  %v7853_v16 = vrot.slane %v7749_v41, 1  ;;  %v7854_v9 = vrot.slane %v7750_v45, 1  ;;  %v7995_v31 = vmul.f32 %v18770_v43, %v19075_v28 }
 0x57b   : > { %v9322_v19 = vadd.f32 %v9222_v18, %v9076_v10  ;;  %v7856_v55 = vrot.slane %v7751_v23, 1  ;;  %v7996_v32 = vmul.f32 %v18770_v43, %v19079_v34  ;;  %v7997_v22 = vmul.f32 %v18770_v43, %v19090_v53  ;;  %v19240_v18 = vld [vmem:[#allocation3 + $0x98] sm:$0xff] }
 0x57c   : > { %v9360_v50 = vadd.f32 %v18971_v60, %v9321_v30  ;;  %v7855_v47 = vsel %vm967_vm3, %v7853_v16, %v7854_v9  ;;  %v8099_v25 = vrot.slane %v7995_v31, 2  ;;  %v8237_v3 = vmul.f32 %v18835_v49, %v19161_v52 }
 0x57d   : > { %v9361_v0 = vadd.f32 %v18971_v60, %v9322_v19  ;;  %v7857_v28 = vsel %vm967_vm3, %v7854_v9, %v7856_v55  ;;  %v7953_v7 = vadd.f32 %v7855_v47, %v7675_v56  ;;  %v8100_v61 = vrot.slane %v7996_v32, 2 }
 0x57e   : > { %v7954_v40 = vadd.f32 %v7857_v28, %v7676_v4  ;;  %v8102_v35 = vrot.slane %v7997_v22, 2  ;;  %v8238_v34 = vmul.f32 %v18835_v49, %v19169_v1  ;;  %v8311_v43 = vmul.f32 %v18840_v51, %v19161_v52  ;;  %v19252_v22 = vld [vmem:[%s21160_s6] ss:$0 sm:$0xff] }
 0x57f   : > { %v9389_v53 = vpack.c.bf16 %v9361_v0, %v9360_v50  ;;  %v8101_v2 = vsel %vm1521_vm4, %v8099_v25, %v8100_v61  ;;  %v8312_v24 = vmul.f32 %v18840_v51, %v19169_v1  ;;  %v8313_v56 = vmul.f32 %v18840_v51, %v19175_v33 }
 0x580   : > { %v8103_v6 = vsel %vm1521_vm4, %v8100_v61, %v8102_v35  ;;  %v8199_v59 = vadd.f32 %v8101_v2, %v7953_v7  ;;  %v8415_v12 = vrot.slane %v8311_v43, 1  ;;  %v8557_v54 = vmul.f32 %v18849_v29, %v19161_v52  ;;  %v14036_v57 = vpop.f32.mrb[88].mxu0 }
 0x581   : > { %14049 = vmatmul.mubr.msk.bf16.gmra.mrb[36].mxu1 %vm687_vm5, %v9389_v53  ;;  %v8200_v4 = vadd.f32 %v8103_v6, %v7954_v40  ;;  %v8416_v41 = vrot.slane %v8312_v24, 1  ;;  %v8418_v45 = vrot.slane %v8313_v56, 1  ;;  %v8558_v10 = vmul.f32 %v18849_v29, %v19169_v1  ;;  %v7425_v31 = vpop.f32.mrb[89].mxu0  ;;  %v19264_v53 = vld [vmem:[%s21161_s7] ss:$0 sm:$0xff] }
 0x582   : > { %v8269_v23 = vadd.f32 %v8237_v3, %v8199_v59  ;;  %v8559_v51 = vmul.f32 %v18849_v29, %v19175_v33  ;;  %v8661_v30 = vrot.slane %v8557_v54, 2  ;;  %v8799_v16 = vmul.f32 %v18823_v44, %v19227_v46  ;;  %v14037_v29 = vpop.f32.mrb[90].mxu0  ;;  %v19267_v56 = vld [vmem:[#allocation3 + $0xa0] sm:$0x3] }
 0x583   : > { %v7434_v9 = vadd.f32 %v14036_v57, %v18764_v58  ;;  %v8270_v19 = vadd.f32 %v8238_v34, %v8200_v4  ;;  %v8417_v55 = vsel %vm967_vm3, %v8415_v12, %v8416_v41  ;;  %v8419_v32 = vsel %vm967_vm3, %v8416_v41, %v8418_v45  ;;  %v7428_v28 = vpop.f32.mrb[91].mxu0  ;;  %v19277_v41 = vld [vmem:[%s21162_s8] ss:$0 sm:$0xff] }
 0x584   : > { %v7426_v50 = vadd.f32 %v19252_v22, %v7425_v31  ;;  %v8515_v47 = vadd.f32 %v8417_v55, %v8269_v23  ;;  %v8662_v25 = vrot.slane %v8558_v10, 2  ;;  %v8664_v3 = vrot.slane %v8559_v51, 2 }
 0x585   : > { %v7482_v0 = vmax.f32 %v7434_v9, 0.0  ;;  %v7437_v58 = vadd.f32 %v19252_v22, %v14037_v29  ;;  %v8516_v7 = vadd.f32 %v8419_v32, %v8270_v19  ;;  %v8800_v61 = vmul.f32 %v18823_v44, %v19240_v18 }
 0x586   : > { %v7480_v40 = vmax.f32 %v7426_v50, 0.0  ;;  %v7429_v35 = vadd.f32 %v19252_v22, %v7428_v28  ;;  %v8663_v34 = vsel %vm1521_vm4, %v8661_v30, %v8662_v25  ;;  %v8665_v43 = vsel %vm1521_vm4, %v8662_v25, %v8664_v3 }
 0x587   : > { %v7521_v2 = vmul.f32 %v19264_v53, %v7482_v0  ;;  %v7483_v24 = vmax.f32 %v7437_v58, 0.0  ;;  %v8761_v6 = vadd.f32 %v8663_v34, %v8515_v47  ;;  %v8762_v59 = vadd.f32 %v8665_v43, %v8516_v7  ;;  %v19298_v47 = vld [vmem:[%s21163_s9] ss:$0 sm:$0xff] }
 0x588   : > { %v7519_v44 = vmul.f32 %v19264_v53, %v7480_v40  ;;  %v7481_v12 = vmax.f32 %v7429_v35, 0.0  ;;  %v8873_v54 = vmul.f32 %v18828_v42, %v19227_v46  ;;  %v8874_v4 = vmul.f32 %v18828_v42, %v19240_v18  ;;  %v19311_v35 = vld [vmem:[%s21163_s9 + $0x1] ss:$0 sm:$0xff] }
 0x589   : > { %v7560_v45 = vadd.f32 %v19277_v41, %v7521_v2  ;;  %v7522_v10 = vmul.f32 %v19264_v53, %v7483_v24  ;;  %v8831_v57 = vadd.f32 %v8799_v16, %v8761_v6  ;;  %v8832_v23 = vadd.f32 %v8800_v61, %v8762_v59 }
 0x58a   : > { %v7558_v51 = vadd.f32 %v19277_v41, %v7519_v44  ;;  %v7520_v30 = vmul.f32 %v19264_v53, %v7481_v12  ;;  %v8875_v9 = vmul.f32 %v18828_v42, %v19267_v56  ;;  %v8977_v31 = vrot.slane %v8873_v54, 1  ;;  %v19324_v54 = vld [vmem:[%s21163_s9 + $0x2] ss:$0 sm:$0xff] }
 0x58b   : > { %7592 = vst.msk [vmem:[#allocation3 + $0x151] sm:$0xff] %vm687_vm5, %v7560_v45  ;;  %v7561_v19 = vadd.f32 %v19277_v41, %v7522_v10  ;;  %v8978_v55 = vrot.slane %v8874_v4, 1  ;;  %v9119_v32 = vmul.f32 %v18930_v27, %v19227_v46  ;;  %v9120_v16 = vmul.f32 %v18930_v27, %v19240_v18 }
 0x58c   : > { %7590 = vst.msk [vmem:[#allocation3 + $0x139] sm:$0xff] %vm687_vm5, %v7558_v51  ;;  %v7559_v50 = vadd.f32 %v19277_v41, %v7520_v30  ;;  %v8980_v29 = vrot.slane %v8875_v9, 1  ;;  %v9121_v42 = vmul.f32 %v18930_v27, %v19267_v56  ;;  %v7677_v25 = vmul.f32 %v19298_v47, %v19161_v52 }
 0x58d   : > { %7593 = vst.msk [vmem:[#allocation3 + $0x159] sm:$0xff] %vm687_vm5, %v7561_v19  ;;  %v8979_v3 = vsel %vm967_vm3, %v8977_v31, %v8978_v55  ;;  %v9223_v0 = vrot.slane %v9119_v32, 2  ;;  %v9224_v58 = vrot.slane %v9120_v16, 2  ;;  %v7678_v28 = vmul.f32 %v19298_v47, %v19169_v1 }
 0x58e   : > { %7591 = vst.msk [vmem:[#allocation3 + $0x141] sm:$0xff] %vm687_vm5, %v7559_v50  ;;  %v8981_v7 = vsel %vm967_vm3, %v8978_v55, %v8980_v29  ;;  %v9077_v61 = vadd.f32 %v8979_v3, %v8831_v57  ;;  %v9226_v40 = vrot.slane %v9121_v42, 2  ;;  %v7752_v34 = vmul.f32 %v19311_v35, %v19161_v52  ;;  %v19349_v3 = vld [vmem:[%s21163_s9 + $0x4] ss:$0 sm:$0xff] }
 0x58f   : > { %v9078_v43 = vadd.f32 %v8981_v7, %v8832_v23  ;;  %v9225_v2 = vsel %vm1521_vm4, %v9223_v0, %v9224_v58  ;;  %v7753_v24 = vmul.f32 %v19311_v35, %v19169_v1  ;;  %v7754_v6 = vmul.f32 %v19311_v35, %v19175_v33 }
 0x590   : > { %v9227_v59 = vsel %vm1521_vm4, %v9224_v58, %v9226_v40  ;;  %v9323_v44 = vadd.f32 %v9225_v2, %v9077_v61  ;;  %v7858_v12 = vrot.slane %v7752_v34, 1  ;;  %v7998_v4 = vmul.f32 %v19324_v54, %v19161_v52  ;;  %v19355_v58 = vld [vmem:[#allocation3 + $0xa8] sm:$0xff]  ;;  %v19363_v40 = vld [vmem:[%s21163_s9 + $0x5] ss:$0 sm:$0xff] }
 0x591   : > { %v9324_v45 = vadd.f32 %v9227_v59, %v9078_v43  ;;  %v7859_v10 = vrot.slane %v7753_v24, 1  ;;  %v7861_v57 = vrot.slane %v7754_v6, 1  ;;  %v7999_v23 = vmul.f32 %v19324_v54, %v19169_v1  ;;  %v19341_v1 = vld [vmem:[%s21163_s9 + $0x3] ss:$0 sm:$0xff] }
 0x592   : > { %v9362_v51 = vadd.f32 %v18971_v60, %v9323_v44  ;;  %v8000_v30 = vmul.f32 %v19324_v54, %v19175_v33  ;;  %v8104_v9 = vrot.slane %v7998_v4, 2  ;;  %v8239_v31 = vmul.f32 %v18835_v49, %v19227_v46  ;;  %v19368_v43 = vld [vmem:[#allocation3 + $0xb0] sm:$0xff] }
 0x593   : > { %v9363_v19 = vadd.f32 %v18971_v60, %v9324_v45  ;;  %v7860_v55 = vsel %vm967_vm3, %v7858_v12, %v7859_v10  ;;  %v7862_v52 = vsel %vm967_vm3, %v7859_v10, %v7861_v57  ;;  %v8105_v32 = vrot.slane %v7999_v23, 2  ;;  %v19374_v10 = vld [vmem:[#allocation3 + $0xb8] sm:$0x3] }
 0x594   : > { %v7955_v16 = vadd.f32 %v7860_v55, %v7677_v25  ;;  %v7956_v50 = vadd.f32 %v7862_v52, %v7678_v28  ;;  %v8107_v29 = vrot.slane %v8000_v30, 2  ;;  %v8240_v33 = vmul.f32 %v19341_v1, %v19240_v18  ;;  %v19380_v30 = vld [vmem:[%s21163_s9 + $0x6] ss:$0 sm:$0xff] }
 0x595   : > { %v9390_v42 = vpack.c.bf16 %v9363_v19, %v9362_v51  ;;  %v8106_v49 = vsel %vm1521_vm4, %v8104_v9, %v8105_v32  ;;  %v8314_v25 = vmul.f32 %v19349_v3, %v19227_v46  ;;  %v8315_v0 = vmul.f32 %v19349_v3, %v19240_v18 }
 0x596   : > { %v8108_v28 = vsel %vm1521_vm4, %v8105_v32, %v8107_v29  ;;  %v8201_v7 = vadd.f32 %v8106_v49, %v7955_v16  ;;  %v8316_v61 = vmul.f32 %v19349_v3, %v19267_v56  ;;  %v8560_v34 = vmul.f32 %v19363_v40, %v19227_v46 }
 0x597   : > { %14052 = vmatprep.mubr.msk.bf16.mxu1 %vm687_vm5, %v9390_v42  ;;  %v8202_v2 = vadd.f32 %v8108_v28, %v7956_v50  ;;  %v8420_v24 = vrot.slane %v8314_v25, 1  ;;  %v8421_v6 = vrot.slane %v8315_v0, 1  ;;  %v8561_v59 = vmul.f32 %v19363_v40, %v19240_v18  ;;  %v19391_v50 = vld [vmem:[%s21163_s9 + $0x7] ss:$0 sm:$0xff] }
 0x598   : > { %v8271_v44 = vadd.f32 %v8239_v31, %v8201_v7  ;;  %v8423_v12 = vrot.slane %v8316_v61, 1  ;;  %v8562_v4 = vmul.f32 %v19363_v40, %v19267_v56  ;;  %v8666_v45 = vrot.slane %v8560_v34, 2 }
 0x599   : > { %v8272_v57 = vadd.f32 %v8240_v33, %v8202_v2  ;;  %v8422_v23 = vsel %vm967_vm3, %v8420_v24, %v8421_v6  ;;  %v8667_v51 = vrot.slane %v8561_v59, 2  ;;  %v8801_v9 = vmul.f32 %v19380_v30, %v19355_v58 }
 0x59a   : > { %v8424_v31 = vsel %vm967_vm3, %v8421_v6, %v8423_v12  ;;  %v8517_v19 = vadd.f32 %v8422_v23, %v8271_v44  ;;  %v8669_v55 = vrot.slane %v8562_v4, 2  ;;  %v8802_v52 = vmul.f32 %v19380_v30, %v19368_v43 }
 0x59b   : > { %v8518_v32 = vadd.f32 %v8424_v31, %v8272_v57  ;;  %v8668_v16 = vsel %vm1521_vm4, %v8666_v45, %v8667_v51  ;;  %v8876_v29 = vmul.f32 %v19391_v50, %v19355_v58  ;;  %v8877_v33 = vmul.f32 %v19391_v50, %v19368_v43 }
 0x59c   : > { %v8670_v42 = vsel %vm1521_vm4, %v8667_v51, %v8669_v55  ;;  %v8763_v49 = vadd.f32 %v8668_v16, %v8517_v19  ;;  %v8878_v25 = vmul.f32 %v19391_v50, %v19374_v10  ;;  %v9122_v0 = vmul.f32 %v18930_v27, %v19355_v58 }
 0x59d   : > { %v8764_v28 = vadd.f32 %v8670_v42, %v8518_v32  ;;  %v8982_v7 = vrot.slane %v8876_v29, 1  ;;  %v8983_v61 = vrot.slane %v8877_v33, 1  ;;  %v9123_v34 = vmul.f32 %v18930_v27, %v19368_v43 }
 0x59e   : > { %v8833_v2 = vadd.f32 %v8801_v9, %v8763_v49  ;;  %v8985_v24 = vrot.slane %v8878_v25, 1  ;;  %v9124_v6 = vmul.f32 %v18930_v27, %v19374_v10  ;;  %v9228_v59 = vrot.slane %v9122_v0, 2 }
 0x59f   : > { %v8834_v44 = vadd.f32 %v8802_v52, %v8764_v28  ;;  %v8984_v12 = vsel %vm967_vm3, %v8982_v7, %v8983_v61  ;;  %v9229_v4 = vrot.slane %v9123_v34, 2  ;;  %v7679_v45 = vmul.f32 %v19298_v47, %v19227_v46 }
 0x5a0   : > { %v8986_v57 = vsel %vm967_vm3, %v8983_v61, %v8985_v24  ;;  %v9079_v23 = vadd.f32 %v8984_v12, %v8833_v2  ;;  %v9231_v51 = vrot.slane %v9124_v6, 2  ;;  %v7680_v31 = vmul.f32 %v19298_v47, %v19240_v18 }
 0x5a1   : > { %v9080_v9 = vadd.f32 %v8986_v57, %v8834_v44  ;;  %v9230_v19 = vsel %vm1521_vm4, %v9228_v59, %v9229_v4  ;;  %v7755_v27 = vmul.f32 %v19311_v35, %v19227_v46  ;;  %v7756_v55 = vmul.f32 %v19311_v35, %v19240_v18 }
 0x5a2   : > { %v9232_v52 = vsel %vm1521_vm4, %v9229_v4, %v9231_v51  ;;  %v9325_v32 = vadd.f32 %v9230_v19, %v9079_v23  ;;  %v7757_v16 = vmul.f32 %v19311_v35, %v19267_v56  ;;  %v8001_v29 = vmul.f32 %v19324_v54, %v19227_v46 }
 0x5a3   : > { %v9326_v33 = vadd.f32 %v9232_v52, %v9080_v9  ;;  %v7863_v42 = vrot.slane %v7755_v27, 1  ;;  %v7864_v49 = vrot.slane %v7756_v55, 1  ;;  %v8002_v25 = vmul.f32 %v19324_v54, %v19240_v18 }
 0x5a4   : > { %v9364_v0 = vadd.f32 %v18971_v60, %v9325_v32  ;;  %v7866_v28 = vrot.slane %v7757_v16, 1  ;;  %v8003_v7 = vmul.f32 %v19324_v54, %v19267_v56  ;;  %v8109_v61 = vrot.slane %v8001_v29, 2 }
 0x5a5   : > { %v9365_v34 = vadd.f32 %v18971_v60, %v9326_v33  ;;  %v7865_v2 = vsel %vm967_vm3, %v7863_v42, %v7864_v49  ;;  %v8110_v24 = vrot.slane %v8002_v25, 2  ;;  %v8241_v46 = vmul.f32 %v19341_v1, %v19355_v58  ;;  %v14040_v12 = vpop.f32.mrb[92].mxu0 }
 0x5a6   : > { %v7867_v6 = vsel %vm967_vm3, %v7864_v49, %v7866_v28  ;;  %v7957_v59 = vadd.f32 %v7865_v2, %v7679_v45  ;;  %v8112_v44 = vrot.slane %v8003_v7, 2  ;;  %v8242_v18 = vmul.f32 %v19341_v1, %v19368_v43  ;;  %v7441_v51 = vpop.f32.mrb[93].mxu0 }
 0x5a7   : > { %v9391_v4 = vpack.c.bf16 %v9365_v34, %v9364_v0  ;;  %v7958_v57 = vadd.f32 %v7867_v6, %v7680_v31  ;;  %v8111_v56 = vsel %vm1521_vm4, %v8109_v61, %v8110_v24  ;;  %v8317_v60 = vmul.f32 %v19349_v3, %v19355_v58  ;;  %v14041_v55 = vpop.f32.mrb[94].mxu0 }
 0x5a8   : > { %v7450_v23 = vadd.f32 %v19252_v22, %v14040_v12  ;;  %v8113_v9 = vsel %vm1521_vm4, %v8110_v24, %v8112_v44  ;;  %v8203_v19 = vadd.f32 %v8111_v56, %v7957_v59  ;;  %v8318_v45 = vmul.f32 %v19349_v3, %v19368_v43  ;;  %v7444_v33 = vpop.f32.mrb[95].mxu0  ;;  %v19452_v44 = vld [vmem:[#allocation3 + $0xc0] sm:$0xff] }
 0x5a9   : > { %v7442_v27 = vadd.f32 %v19252_v22, %v7441_v51  ;;  %14053 = vmatmul.mubr.msk.bf16.gmra.mrb[40].mxu1 %vm687_vm5, %v9391_v4  ;;  %v8204_v31 = vadd.f32 %v8113_v9, %v7958_v57  ;;  %v8319_v52 = vmul.f32 %v19349_v3, %v19374_v10  ;;  %v8425_v32 = vrot.slane %v8317_v60, 1  ;;  %v19463_v51 = vld [vmem:[#allocation3 + $0xd0] sm:$0x3] }
 0x5aa   : > { %v7486_v16 = vmax.f32 %v7450_v23, 0.0  ;;  %v7453_v29 = vadd.f32 %v19252_v22, %v14041_v55  ;;  %v8273_v42 = vadd.f32 %v8241_v46, %v8203_v19  ;;  %v8426_v49 = vrot.slane %v8318_v45, 1  ;;  %v19454_v46 = vld [vmem:[#allocation3 + $0xc8] sm:$0xff] }
 0x5ab   : > { %v7484_v25 = vmax.f32 %v7442_v27, 0.0  ;;  %v7445_v0 = vadd.f32 %v19252_v22, %v7444_v33  ;;  %v8274_v28 = vadd.f32 %v8242_v18, %v8204_v31  ;;  %v8428_v7 = vrot.slane %v8319_v52, 1 }
 0x5ac   : > { %v7525_v61 = vmul.f32 %v19264_v53, %v7486_v16  ;;  %v7487_v34 = vmax.f32 %v7453_v29, 0.0  ;;  %v8427_v2 = vsel %vm967_vm3, %v8425_v32, %v8426_v49  ;;  %v8563_v24 = vmul.f32 %v19363_v40, %v19355_v58 }
 0x5ad   : > { %v7523_v6 = vmul.f32 %v19264_v53, %v7484_v25  ;;  %v7485_v59 = vmax.f32 %v7445_v0, 0.0  ;;  %v8429_v12 = vsel %vm967_vm3, %v8426_v49, %v8428_v7  ;;  %v8519_v22 = vadd.f32 %v8427_v2, %v8273_v42  ;;  %v19486_v42 = vld [vmem:[%s21163_s9 + $0x8] ss:$0 sm:$0xff] }
 0x5ae   : > { %v7564_v18 = vadd.f32 %v19277_v41, %v7525_v61  ;;  %v7526_v4 = vmul.f32 %v19264_v53, %v7487_v34  ;;  %v8520_v57 = vadd.f32 %v8429_v12, %v8274_v28  ;;  %v8564_v56 = vmul.f32 %v19363_v40, %v19368_v43 }
 0x5af   : > { %v7562_v60 = vadd.f32 %v19277_v41, %v7523_v6  ;;  %v7524_v23 = vmul.f32 %v19264_v53, %v7485_v59  ;;  %v8565_v9 = vmul.f32 %v19363_v40, %v19374_v10  ;;  %v8671_v19 = vrot.slane %v8563_v24, 2 }
 0x5b0   : > { %7596 = vst.msk [vmem:[#allocation3 + $0x181] sm:$0xff] %vm687_vm5, %v7564_v18  ;;  %v7565_v45 = vadd.f32 %v19277_v41, %v7526_v4  ;;  %v8672_v27 = vrot.slane %v8564_v56, 2  ;;  %v8803_v55 = vmul.f32 %v19380_v30, %v19452_v44  ;;  %v8804_v31 = vmul.f32 %v19380_v30, %v19454_v46 }
 0x5b1   : > { %7594 = vst.msk [vmem:[#allocation3 + $0x169] sm:$0xff] %vm687_vm5, %v7562_v60  ;;  %v7563_v53 = vadd.f32 %v19277_v41, %v7524_v23  ;;  %v8674_v52 = vrot.slane %v8565_v9, 2  ;;  %v8879_v32 = vmul.f32 %v19391_v50, %v19452_v44  ;;  %v8880_v16 = vmul.f32 %v19391_v50, %v19454_v46 }
 0x5b2   : > { %7597 = vst.msk [vmem:[#allocation3 + $0x189] sm:$0xff] %vm687_vm5, %v7565_v45  ;;  %v8673_v29 = vsel %vm1521_vm4, %v8671_v19, %v8672_v27  ;;  %v8881_v33 = vmul.f32 %v19391_v50, %v19463_v51  ;;  %v9125_v41 = vmul.f32 %v19486_v42, %v19452_v44  ;;  %v9126_v49 = vmul.f32 %v19486_v42, %v19454_v46 }
 0x5b3   : > { %7595 = vst.msk [vmem:[#allocation3 + $0x171] sm:$0xff] %vm687_vm5, %v7563_v53  ;;  %v8675_v25 = vsel %vm1521_vm4, %v8672_v27, %v8674_v52  ;;  %v8765_v0 = vadd.f32 %v8673_v29, %v8519_v22  ;;  %v8987_v28 = vrot.slane %v8879_v32, 1  ;;  %v8988_v7 = vrot.slane %v8880_v16, 1 }
 0x5b4   : > { %v8766_v61 = vadd.f32 %v8675_v25, %v8520_v57  ;;  %v8990_v34 = vrot.slane %v8881_v33, 1  ;;  %v9127_v2 = vmul.f32 %v19486_v42, %v19463_v51  ;;  %v9233_v24 = vrot.slane %v9125_v41, 2  ;;  %v19519_v25 = vld [vmem:[%s21164_s10] ss:$0 sm:$0xff] }
 0x5b5   : > { %v8835_v6 = vadd.f32 %v8803_v55, %v8765_v0  ;;  %v8989_v59 = vsel %vm967_vm3, %v8987_v28, %v8988_v7  ;;  %v9234_v12 = vrot.slane %v9126_v49, 2  ;;  %v7681_v18 = vmul.f32 %v19298_v47, %v19355_v58 }
 0x5b6   : > { %v8836_v4 = vadd.f32 %v8804_v31, %v8766_v61  ;;  %v8991_v56 = vsel %vm967_vm3, %v8988_v7, %v8990_v34  ;;  %v9236_v60 = vrot.slane %v9127_v2, 2  ;;  %v7682_v22 = vmul.f32 %v19298_v47, %v19368_v43 }
 0x5b7   : > { %v9081_v57 = vadd.f32 %v8989_v59, %v8835_v6  ;;  %v9235_v23 = vsel %vm1521_vm4, %v9233_v24, %v9234_v12  ;;  %v7758_v9 = vmul.f32 %v19311_v35, %v19355_v58  ;;  %v7759_v19 = vmul.f32 %v19311_v35, %v19368_v43 }
 0x5b8   : > { %v9082_v45 = vadd.f32 %v8991_v56, %v8836_v4  ;;  %v9237_v27 = vsel %vm1521_vm4, %v9234_v12, %v9236_v60  ;;  %v7760_v55 = vmul.f32 %v19311_v35, %v19374_v10  ;;  %v8004_v31 = vmul.f32 %v19324_v54, %v19355_v58  ;;  %v19532_v4 = vld [vmem:[#allocation3 + $0xd8] sm:$0xff] }
 0x5b9   : > { %v9327_v53 = vadd.f32 %v9235_v23, %v9081_v57  ;;  %v7868_v52 = vrot.slane %v7758_v9, 1  ;;  %v7869_v32 = vrot.slane %v7759_v19, 1  ;;  %v8005_v16 = vmul.f32 %v19324_v54, %v19368_v43 }
 0x5ba   : > { %v9328_v29 = vadd.f32 %v9237_v27, %v9082_v45  ;;  %v7871_v33 = vrot.slane %v7760_v55, 1  ;;  %v8006_v41 = vmul.f32 %v19324_v54, %v19374_v10  ;;  %v8114_v49 = vrot.slane %v8004_v31, 2 }
 0x5bb   : > { %v9366_v0 = vadd.f32 %v19519_v25, %v9327_v53  ;;  %v7870_v58 = vsel %vm967_vm3, %v7868_v52, %v7869_v32  ;;  %v8115_v28 = vrot.slane %v8005_v16, 2  ;;  %v8243_v7 = vmul.f32 %v19341_v1, %v19452_v44  ;;  %v19548_v53 = vld [vmem:[#allocation3 + $0xe8] sm:$0x3] }
 0x5bc   : > { %v9367_v43 = vadd.f32 %v19519_v25, %v9328_v29  ;;  %v7872_v61 = vsel %vm967_vm3, %v7869_v32, %v7871_v33  ;;  %v7959_v34 = vadd.f32 %v7870_v58, %v7681_v18  ;;  %v8117_v10 = vrot.slane %v8006_v41, 2  ;;  %v19537_v18 = vld [vmem:[#allocation3 + $0xe0] sm:$0xff] }
 0x5bd   : > { %v7960_v2 = vadd.f32 %v7872_v61, %v7682_v22  ;;  %v8116_v24 = vsel %vm1521_vm4, %v8114_v49, %v8115_v28  ;;  %v8244_v6 = vmul.f32 %v19341_v1, %v19454_v46  ;;  %v8320_v59 = vmul.f32 %v19349_v3, %v19452_v44 }
 0x5be   : > { %v9392_v12 = vpack.c.bf16 %v9367_v43, %v9366_v0  ;;  %v8118_v56 = vsel %vm1521_vm4, %v8115_v28, %v8117_v10  ;;  %v8205_v60 = vadd.f32 %v8116_v24, %v7959_v34  ;;  %v8321_v57 = vmul.f32 %v19349_v3, %v19454_v46 }
 0x5bf   : > { %v8206_v22 = vadd.f32 %v8118_v56, %v7960_v2  ;;  %v8322_v23 = vmul.f32 %v19349_v3, %v19463_v51  ;;  %v8430_v9 = vrot.slane %v8320_v59, 1  ;;  %v8566_v19 = vmul.f32 %v19363_v40, %v19452_v44 }
 0x5c0   : > { %14056 = vmatprep.mubr.msk.bf16.mxu1 %vm687_vm5, %v9392_v12  ;;  %v8275_v45 = vadd.f32 %v8243_v7, %v8205_v60  ;;  %v8431_v27 = vrot.slane %v8321_v57, 1  ;;  %v8567_v55 = vmul.f32 %v19363_v40, %v19454_v46  ;;  %v8568_v31 = vmul.f32 %v19363_v40, %v19463_v51 }
 0x5c1   : > { %v8276_v52 = vadd.f32 %v8244_v6, %v8206_v22  ;;  %v8433_v32 = vrot.slane %v8322_v23, 1  ;;  %v8676_v16 = vrot.slane %v8566_v19, 2  ;;  %v8805_v29 = vmul.f32 %v19380_v30, %v19532_v4 }
 0x5c2   : > { %v8432_v33 = vsel %vm967_vm3, %v8430_v9, %v8431_v27  ;;  %v8677_v41 = vrot.slane %v8567_v55, 2  ;;  %v8679_v49 = vrot.slane %v8568_v31, 2  ;;  %v8806_v0 = vmul.f32 %v19380_v30, %v19537_v18 }
 0x5c3   : > { %v8434_v58 = vsel %vm967_vm3, %v8431_v27, %v8433_v32  ;;  %v8521_v28 = vadd.f32 %v8432_v33, %v8275_v45  ;;  %v8882_v7 = vmul.f32 %v19391_v50, %v19532_v4  ;;  %v8883_v43 = vmul.f32 %v19391_v50, %v19537_v18 }
 0x5c4   : > { %v8522_v61 = vadd.f32 %v8434_v58, %v8276_v52  ;;  %v8678_v34 = vsel %vm1521_vm4, %v8676_v16, %v8677_v41  ;;  %v8680_v10 = vsel %vm1521_vm4, %v8677_v41, %v8679_v49  ;;  %v8884_v2 = vmul.f32 %v19391_v50, %v19548_v53 }
 0x5c5   : > { %v8767_v24 = vadd.f32 %v8678_v34, %v8521_v28  ;;  %v8992_v6 = vrot.slane %v8882_v7, 1  ;;  %v8993_v59 = vrot.slane %v8883_v43, 1  ;;  %v9128_v12 = vmul.f32 %v19486_v42, %v19532_v4 }
 0x5c6   : > { %v8768_v56 = vadd.f32 %v8680_v10, %v8522_v61  ;;  %v8995_v60 = vrot.slane %v8884_v2, 1  ;;  %v9129_v57 = vmul.f32 %v19486_v42, %v19537_v18  ;;  %v9130_v22 = vmul.f32 %v19486_v42, %v19548_v53 }
 0x5c7   : > { %v8837_v23 = vadd.f32 %v8805_v29, %v8767_v24  ;;  %v8994_v9 = vsel %vm967_vm3, %v8992_v6, %v8993_v59  ;;  %v9238_v19 = vrot.slane %v9128_v12, 2  ;;  %v7683_v45 = vmul.f32 %v19298_v47, %v19452_v44 }
 0x5c8   : > { %v8838_v27 = vadd.f32 %v8806_v0, %v8768_v56  ;;  %v8996_v55 = vsel %vm967_vm3, %v8993_v59, %v8995_v60  ;;  %v9239_v31 = vrot.slane %v9129_v57, 2  ;;  %v9241_v52 = vrot.slane %v9130_v22, 2 }
 0x5c9   : > { %v9083_v32 = vadd.f32 %v8994_v9, %v8837_v23  ;;  %v7684_v16 = vmul.f32 %v19298_v47, %v19454_v46  ;;  %v7761_v33 = vmul.f32 %v19311_v35, %v19452_v44  ;;  %v7762_v29 = vmul.f32 %v19311_v35, %v19454_v46 }
 0x5ca   : > { %v9084_v41 = vadd.f32 %v8996_v55, %v8838_v27  ;;  %v9240_v49 = vsel %vm1521_vm4, %v9238_v19, %v9239_v31  ;;  %v9242_v58 = vsel %vm1521_vm4, %v9239_v31, %v9241_v52  ;;  %v7763_v0 = vmul.f32 %v19311_v35, %v19463_v51  ;;  %v19600_v27 = vld [vmem:[#allocation3 + $0xf0] sm:$0xff] }
 0x5cb   : > { %v9329_v28 = vadd.f32 %v9240_v49, %v9083_v32  ;;  %v7873_v7 = vrot.slane %v7761_v33, 1  ;;  %v7874_v43 = vrot.slane %v7762_v29, 1  ;;  %v8007_v61 = vmul.f32 %v19324_v54, %v19452_v44  ;;  %v19611_v29 = vld [vmem:[#allocation3 + $0xf8] sm:$0xff] }
 0x5cc   : > { %v9330_v34 = vadd.f32 %v9242_v58, %v9084_v41  ;;  %v7876_v10 = vrot.slane %v7763_v0, 1  ;;  %v8008_v2 = vmul.f32 %v19324_v54, %v19454_v46  ;;  %v8009_v24 = vmul.f32 %v19324_v54, %v19463_v51 }
 0x5cd   : > { %v9368_v6 = vadd.f32 %v19519_v25, %v9329_v28  ;;  %v7875_v59 = vsel %vm967_vm3, %v7873_v7, %v7874_v43  ;;  %v8119_v12 = vrot.slane %v8007_v61, 2  ;;  %v8245_v56 = vmul.f32 %v19341_v1, %v19532_v4  ;;  %v19615_v28 = vld [vmem:[#allocation3 + $0x100] sm:$0x3] }
 0x5ce   : > { %v9369_v60 = vadd.f32 %v19519_v25, %v9330_v34  ;;  %v7877_v44 = vsel %vm967_vm3, %v7874_v43, %v7876_v10  ;;  %v7961_v57 = vadd.f32 %v7875_v59, %v7683_v45  ;;  %v8120_v22 = vrot.slane %v8008_v2, 2 }
 0x5cf   : > { %v7962_v23 = vadd.f32 %v7877_v44, %v7684_v16  ;;  %v8122_v9 = vrot.slane %v8009_v24, 2  ;;  %v8246_v46 = vmul.f32 %v19341_v1, %v19537_v18  ;;  %v8323_v51 = vmul.f32 %v19349_v3, %v19532_v4 }
 0x5d0   : > { %v9393_v19 = vpack.c.bf16 %v9369_v60, %v9368_v6  ;;  %v8121_v55 = vsel %vm1521_vm4, %v8119_v12, %v8120_v22  ;;  %v8324_v31 = vmul.f32 %v19349_v3, %v19537_v18  ;;  %v8325_v45 = vmul.f32 %v19349_v3, %v19548_v53 }
 0x5d1   : > { %v8123_v52 = vsel %vm1521_vm4, %v8120_v22, %v8122_v9  ;;  %v8207_v32 = vadd.f32 %v8121_v55, %v7961_v57  ;;  %v8435_v16 = vrot.slane %v8323_v51, 1  ;;  %v8569_v33 = vmul.f32 %v19363_v40, %v19532_v4 }
 0x5d2   : > { %14057 = vmatmul.mubr.msk.bf16.gmra.mrb[44].mxu1 %vm687_vm5, %v9393_v19  ;;  %v8208_v41 = vadd.f32 %v8123_v52, %v7962_v23  ;;  %v8436_v49 = vrot.slane %v8324_v31, 1  ;;  %v8438_v58 = vrot.slane %v8325_v45, 1  ;;  %v8570_v0 = vmul.f32 %v19363_v40, %v19537_v18 }
 0x5d3   : > { %v8277_v7 = vadd.f32 %v8245_v56, %v8207_v32  ;;  %v8571_v43 = vmul.f32 %v19363_v40, %v19548_v53  ;;  %v8681_v61 = vrot.slane %v8569_v33, 2  ;;  %v8807_v34 = vmul.f32 %v19380_v30, %v19600_v27 }
 0x5d4   : > { %v8278_v10 = vadd.f32 %v8246_v46, %v8208_v41  ;;  %v8437_v2 = vsel %vm967_vm3, %v8435_v16, %v8436_v49  ;;  %v8439_v24 = vsel %vm967_vm3, %v8436_v49, %v8438_v58  ;;  %v8682_v6 = vrot.slane %v8570_v0, 2 }
 0x5d5   : > { %v8523_v59 = vadd.f32 %v8437_v2, %v8277_v7  ;;  %v8684_v12 = vrot.slane %v8571_v43, 2  ;;  %v8808_v60 = vmul.f32 %v19380_v30, %v19611_v29  ;;  %v8885_v56 = vmul.f32 %v19391_v50, %v19600_v27 }
 0x5d6   : > { %v8524_v44 = vadd.f32 %v8439_v24, %v8278_v10  ;;  %v8683_v57 = vsel %vm1521_vm4, %v8681_v61, %v8682_v6  ;;  %v8886_v22 = vmul.f32 %v19391_v50, %v19611_v29  ;;  %v8887_v23 = vmul.f32 %v19391_v50, %v19615_v28 }
 0x5d7   : > { %v8685_v9 = vsel %vm1521_vm4, %v8682_v6, %v8684_v12  ;;  %v8769_v46 = vadd.f32 %v8683_v57, %v8523_v59  ;;  %v8997_v51 = vrot.slane %v8885_v56, 1  ;;  %v9131_v19 = vmul.f32 %v19486_v42, %v19600_v27 }
 0x5d8   : > { %v8770_v55 = vadd.f32 %v8685_v9, %v8524_v44  ;;  %v8998_v31 = vrot.slane %v8886_v22, 1  ;;  %v9000_v45 = vrot.slane %v8887_v23, 1  ;;  %v9132_v52 = vmul.f32 %v19486_v42, %v19611_v29 }
 0x5d9   : > { %v8839_v32 = vadd.f32 %v8807_v34, %v8769_v46  ;;  %v9133_v16 = vmul.f32 %v19486_v42, %v19615_v28  ;;  %v9243_v33 = vrot.slane %v9131_v19, 2  ;;  %v7685_v41 = vmul.f32 %v19298_v47, %v19532_v4 }
 0x5da   : > { %v8840_v49 = vadd.f32 %v8808_v60, %v8770_v55  ;;  %v8999_v58 = vsel %vm967_vm3, %v8997_v51, %v8998_v31  ;;  %v9001_v0 = vsel %vm967_vm3, %v8998_v31, %v9000_v45  ;;  %v9244_v7 = vrot.slane %v9132_v52, 2 }
 0x5db   : > { %v9085_v43 = vadd.f32 %v8999_v58, %v8839_v32  ;;  %v9246_v61 = vrot.slane %v9133_v16, 2  ;;  %v7686_v10 = vmul.f32 %v19298_v47, %v19537_v18  ;;  %v7764_v34 = vmul.f32 %v19311_v35, %v19532_v4 }
 0x5dc   : > { %v9086_v2 = vadd.f32 %v9001_v0, %v8840_v49  ;;  %v9245_v24 = vsel %vm1521_vm4, %v9243_v33, %v9244_v7  ;;  %v7765_v6 = vmul.f32 %v19311_v35, %v19537_v18  ;;  %v7766_v59 = vmul.f32 %v19311_v35, %v19548_v53 }
 0x5dd   : > { %v9247_v12 = vsel %vm1521_vm4, %v9244_v7, %v9246_v61  ;;  %v9331_v60 = vadd.f32 %v9245_v24, %v9085_v43  ;;  %v7878_v56 = vrot.slane %v7764_v34, 1  ;;  %v8010_v44 = vmul.f32 %v19324_v54, %v19532_v4  ;;  %v19672_v7 = vld [vmem:[#allocation3 + $0x108] sm:$0xff]  ;;  %v9819_v34 = vld [vmem:[%s21170_s16 + $0x4] sm:$0xf] }
 0x5de   : > { %v9332_v57 = vadd.f32 %v9247_v12, %v9086_v2  ;;  %v7879_v22 = vrot.slane %v7765_v6, 1  ;;  %v7881_v23 = vrot.slane %v7766_v59, 1  ;;  %v8011_v9 = vmul.f32 %v19324_v54, %v19537_v18  ;;  %v19683_v2 = vld [vmem:[#allocation3 + $0x110] sm:$0xff]  ;;  %15205 = vmatprep.subr.msk.bf16.mxu1 %vm3503_vm6, %v9819_v34 }
 0x5df   : > { %v9370_v46 = vadd.f32 %v19519_v25, %v9331_v60  ;;  %v8012_v51 = vmul.f32 %v19324_v54, %v19548_v53  ;;  %v8124_v19 = vrot.slane %v8010_v44, 2  ;;  %v8247_v55 = vmul.f32 %v19341_v1, %v19600_v27 }
 0x5e0   : > { %v9371_v31 = vadd.f32 %v19519_v25, %v9332_v57  ;;  %v7880_v45 = vsel %vm967_vm3, %v7878_v56, %v7879_v22  ;;  %v7882_v4 = vsel %vm967_vm3, %v7879_v22, %v7881_v23  ;;  %v8125_v52 = vrot.slane %v8011_v9, 2  ;;  %v19690_v22 = vld [vmem:[#allocation3 + $0x118] sm:$0x3] }
 0x5e1   : > { %v7963_v32 = vadd.f32 %v7880_v45, %v7685_v41  ;;  %v7964_v16 = vadd.f32 %v7882_v4, %v7686_v10  ;;  %v8127_v33 = vrot.slane %v8012_v51, 2  ;;  %v8248_v18 = vmul.f32 %v19341_v1, %v19611_v29 }
 0x5e2   : > { %v9394_v49 = vpack.c.bf16 %v9371_v31, %v9370_v46  ;;  %v8126_v53 = vsel %vm1521_vm4, %v8124_v19, %v8125_v52  ;;  %v8326_v58 = vmul.f32 %v19349_v3, %v19600_v27  ;;  %v8327_v0 = vmul.f32 %v19349_v3, %v19611_v29 }
 0x5e3   : > { %v8128_v43 = vsel %vm1521_vm4, %v8125_v52, %v8127_v33  ;;  %v8209_v61 = vadd.f32 %v8126_v53, %v7963_v32  ;;  %v8328_v41 = vmul.f32 %v19349_v3, %v19615_v28  ;;  %v8572_v10 = vmul.f32 %v19363_v40, %v19600_v27 }
 0x5e4   : > { %14060 = vmatprep.mubr.msk.bf16.mxu1 %vm687_vm5, %v9394_v49  ;;  %v8210_v24 = vadd.f32 %v8128_v43, %v7964_v16  ;;  %v8440_v6 = vrot.slane %v8326_v58, 1  ;;  %v8441_v59 = vrot.slane %v8327_v0, 1  ;;  %v8573_v12 = vmul.f32 %v19363_v40, %v19611_v29 }
 0x5e5   : > { %v8279_v60 = vadd.f32 %v8247_v55, %v8209_v61  ;;  %v8443_v56 = vrot.slane %v8328_v41, 1  ;;  %v8574_v44 = vmul.f32 %v19363_v40, %v19615_v28  ;;  %v8686_v57 = vrot.slane %v8572_v10, 2 }
 0x5e6   : > { %v8280_v23 = vadd.f32 %v8248_v18, %v8210_v24  ;;  %v8442_v9 = vsel %vm967_vm3, %v8440_v6, %v8441_v59  ;;  %v8687_v46 = vrot.slane %v8573_v12, 2  ;;  %v8809_v51 = vmul.f32 %v19380_v30, %v19672_v7 }
 0x5e7   : > { %v8444_v19 = vsel %vm967_vm3, %v8441_v59, %v8443_v56  ;;  %v8525_v31 = vadd.f32 %v8442_v9, %v8279_v60  ;;  %v8689_v45 = vrot.slane %v8574_v44, 2  ;;  %v8810_v55 = vmul.f32 %v19380_v30, %v19683_v2 }
 0x5e8   : > { %v8526_v4 = vadd.f32 %v8444_v19, %v8280_v23  ;;  %v8688_v52 = vsel %vm1521_vm4, %v8686_v57, %v8687_v46  ;;  %v8888_v32 = vmul.f32 %v19391_v50, %v19672_v7  ;;  %v8889_v16 = vmul.f32 %v19391_v50, %v19683_v2 }
 0x5e9   : > { %v8690_v33 = vsel %vm1521_vm4, %v8687_v46, %v8689_v45  ;;  %v8771_v18 = vadd.f32 %v8688_v52, %v8525_v31  ;;  %v8890_v49 = vmul.f32 %v19391_v50, %v19690_v22  ;;  %v9134_v53 = vmul.f32 %v19486_v42, %v19672_v7 }
 0x5ea   : > { %v8772_v58 = vadd.f32 %v8690_v33, %v8526_v4  ;;  %v9002_v0 = vrot.slane %v8888_v32, 1  ;;  %v9003_v43 = vrot.slane %v8889_v16, 1  ;;  %v9135_v61 = vmul.f32 %v19486_v42, %v19683_v2 }
 0x5eb   : > { %v8841_v41 = vadd.f32 %v8809_v51, %v8771_v18  ;;  %v9005_v10 = vrot.slane %v8890_v49, 1  ;;  %v9136_v34 = vmul.f32 %v19486_v42, %v19690_v22  ;;  %v9248_v24 = vrot.slane %v9134_v53, 2 }
 0x5ec   : > { %v8842_v6 = vadd.f32 %v8810_v55, %v8772_v58  ;;  %v9004_v59 = vsel %vm967_vm3, %v9002_v0, %v9003_v43  ;;  %v9249_v12 = vrot.slane %v9135_v61, 2  ;;  %v7687_v60 = vmul.f32 %v19298_v47, %v19600_v27 }
 0x5ed   : > { %v9006_v56 = vsel %vm967_vm3, %v9003_v43, %v9005_v10  ;;  %v9087_v44 = vadd.f32 %v9004_v59, %v8841_v41  ;;  %v9251_v57 = vrot.slane %v9136_v34, 2  ;;  %v7688_v23 = vmul.f32 %v19298_v47, %v19611_v29 }
 0x5ee   : > { %v9088_v9 = vadd.f32 %v9006_v56, %v8842_v6  ;;  %v9250_v46 = vsel %vm1521_vm4, %v9248_v24, %v9249_v12  ;;  %v7767_v51 = vmul.f32 %v19311_v35, %v19600_v27  ;;  %v7768_v19 = vmul.f32 %v19311_v35, %v19611_v29 }
 0x5ef   : > { %v9252_v31 = vsel %vm1521_vm4, %v9249_v12, %v9251_v57  ;;  %v9333_v45 = vadd.f32 %v9250_v46, %v9087_v44  ;;  %v7769_v55 = vmul.f32 %v19311_v35, %v19615_v28  ;;  %v8013_v4 = vmul.f32 %v19324_v54, %v19600_v27  ;;  %v19743_v12 = vld [vmem:[#allocation3 + $0x120] sm:$0xff] }
 0x5f0   : > { %v9334_v52 = vadd.f32 %v9252_v31, %v9088_v9  ;;  %v7883_v32 = vrot.slane %v7767_v51, 1  ;;  %v7884_v16 = vrot.slane %v7768_v19, 1  ;;  %v8014_v33 = vmul.f32 %v19324_v54, %v19611_v29  ;;  %v19751_v9 = vld [vmem:[#allocation3 + $0x128] sm:$0xff] }
 0x5f1   : > { %v9372_v18 = vadd.f32 %v19519_v25, %v9333_v45  ;;  %v7886_v49 = vrot.slane %v7769_v55, 1  ;;  %v8015_v53 = vmul.f32 %v19324_v54, %v19615_v28  ;;  %v8129_v58 = vrot.slane %v8013_v4, 2 }
 0x5f2   : > { %v9373_v0 = vadd.f32 %v19519_v25, %v9334_v52  ;;  %v7885_v43 = vsel %vm967_vm3, %v7883_v32, %v7884_v16  ;;  %v8130_v61 = vrot.slane %v8014_v33, 2  ;;  %v8249_v27 = vmul.f32 %v19341_v1, %v19672_v7  ;;  %v19759_v52 = vld [vmem:[#allocation3 + $0x130] sm:$0x3] }
 0x5f3   : > { %v7887_v41 = vsel %vm967_vm3, %v7884_v16, %v7886_v49  ;;  %v7965_v10 = vadd.f32 %v7885_v43, %v7687_v60  ;;  %v8132_v34 = vrot.slane %v8015_v53, 2  ;;  %v8250_v29 = vmul.f32 %v19341_v1, %v19683_v2 }
 0x5f4   : > { %v9395_v24 = vpack.c.bf16 %v9373_v0, %v9372_v18  ;;  %v7966_v6 = vadd.f32 %v7887_v41, %v7688_v23  ;;  %v8131_v28 = vsel %vm1521_vm4, %v8129_v58, %v8130_v61  ;;  %v8329_v59 = vmul.f32 %v19349_v3, %v19672_v7 }
 0x5f5   : > { %v8133_v56 = vsel %vm1521_vm4, %v8130_v61, %v8132_v34  ;;  %v8211_v44 = vadd.f32 %v8131_v28, %v7965_v10  ;;  %v8330_v57 = vmul.f32 %v19349_v3, %v19683_v2  ;;  %v8331_v60 = vmul.f32 %v19349_v3, %v19690_v22 }
 0x5f6   : > { %14061 = vmatmul.mubr.msk.bf16.gmra.mrb[48].mxu1 %vm687_vm5, %v9395_v24  ;;  %v8212_v23 = vadd.f32 %v8133_v56, %v7966_v6  ;;  %v8445_v46 = vrot.slane %v8329_v59, 1  ;;  %v8575_v51 = vmul.f32 %v19363_v40, %v19672_v7  ;;  %v8576_v19 = vmul.f32 %v19363_v40, %v19683_v2 }
 0x5f7   : > { %v8281_v31 = vadd.f32 %v8249_v27, %v8211_v44  ;;  %v8446_v45 = vrot.slane %v8330_v57, 1  ;;  %v8448_v55 = vrot.slane %v8331_v60, 1  ;;  %v8577_v4 = vmul.f32 %v19363_v40, %v19690_v22 }
 0x5f8   : > { %v8282_v32 = vadd.f32 %v8250_v29, %v8212_v23  ;;  %v8691_v16 = vrot.slane %v8575_v51, 2  ;;  %v8692_v33 = vrot.slane %v8576_v19, 2  ;;  %v8811_v18 = vmul.f32 %v19380_v30, %v19743_v12 }
 0x5f9   : > { %v8447_v49 = vsel %vm967_vm3, %v8445_v46, %v8446_v45  ;;  %v8449_v53 = vsel %vm967_vm3, %v8446_v45, %v8448_v55  ;;  %v8694_v58 = vrot.slane %v8577_v4, 2  ;;  %v8812_v0 = vmul.f32 %v19380_v30, %v19751_v9 }
 0x5fa   : > { %v8527_v43 = vadd.f32 %v8447_v49, %v8281_v31  ;;  %v8528_v61 = vadd.f32 %v8449_v53, %v8282_v32  ;;  %v8693_v27 = vsel %vm1521_vm4, %v8691_v16, %v8692_v33  ;;  %v8891_v41 = vmul.f32 %v19391_v50, %v19743_v12 }
 0x5fb   : > { %v8695_v10 = vsel %vm1521_vm4, %v8692_v33, %v8694_v58  ;;  %v8892_v34 = vmul.f32 %v19391_v50, %v19751_v9  ;;  %v8893_v29 = vmul.f32 %v19391_v50, %v19759_v52  ;;  %v9137_v24 = vmul.f32 %v19486_v42, %v19743_v12 }
 0x5fc   : > { %v8773_v6 = vadd.f32 %v8693_v27, %v8527_v43  ;;  %v8774_v28 = vadd.f32 %v8695_v10, %v8528_v61  ;;  %v9007_v59 = vrot.slane %v8891_v41, 1  ;;  %v9138_v56 = vmul.f32 %v19486_v42, %v19751_v9 }
 0x5fd   : > { %v9008_v44 = vrot.slane %v8892_v34, 1  ;;  %v9010_v57 = vrot.slane %v8893_v29, 1  ;;  %v9139_v60 = vmul.f32 %v19486_v42, %v19759_v52  ;;  %v9253_v23 = vrot.slane %v9137_v24, 2 }
 0x5fe   : > { %v8843_v46 = vadd.f32 %v8811_v18, %v8773_v6  ;;  %v8844_v51 = vadd.f32 %v8812_v0, %v8774_v28  ;;  %v9254_v19 = vrot.slane %v9138_v56, 2  ;;  %v7689_v31 = vmul.f32 %v19298_v47, %v19672_v7 }
 0x5ff   : > { %v9009_v45 = vsel %vm967_vm3, %v9007_v59, %v9008_v44  ;;  %v9011_v55 = vsel %vm967_vm3, %v9008_v44, %v9010_v57  ;;  %v9256_v4 = vrot.slane %v9139_v60, 2  ;;  %v7690_v32 = vmul.f32 %v19298_v47, %v19683_v2 }
 0x600   : > { %v9089_v16 = vadd.f32 %v9009_v45, %v8843_v46  ;;  %v9090_v33 = vadd.f32 %v9011_v55, %v8844_v51  ;;  %v9255_v49 = vsel %vm1521_vm4, %v9253_v23, %v9254_v19  ;;  %v7770_v18 = vmul.f32 %v19311_v35, %v19672_v7  ;;  %v19818_v45 = vld [vmem:[#allocation3 + $0x138] sm:$0xff] }
 0x601   : > { %v9257_v53 = vsel %vm1521_vm4, %v9254_v19, %v9256_v4  ;;  %v7771_v58 = vmul.f32 %v19311_v35, %v19683_v2  ;;  %v7772_v0 = vmul.f32 %v19311_v35, %v19690_v22  ;;  %v8016_v43 = vmul.f32 %v19324_v54, %v19672_v7 }
 0x602   : > { %v9335_v61 = vadd.f32 %v9255_v49, %v9089_v16  ;;  %v9336_v47 = vadd.f32 %v9257_v53, %v9090_v33  ;;  %v7888_v27 = vrot.slane %v7770_v18, 1  ;;  %v8017_v41 = vmul.f32 %v19324_v54, %v19683_v2  ;;  %v19828_v18 = vld [vmem:[#allocation3 + $0x148] sm:$0x3] }
 0x603   : > { %v7889_v10 = vrot.slane %v7771_v58, 1  ;;  %v7891_v34 = vrot.slane %v7772_v0, 1  ;;  %v8018_v29 = vmul.f32 %v19324_v54, %v19690_v22  ;;  %v8134_v24 = vrot.slane %v8016_v43, 2 }
 0x604   : > { %v9374_v6 = vadd.f32 %v19519_v25, %v9335_v61  ;;  %v9375_v28 = vadd.f32 %v19519_v25, %v9336_v47  ;;  %v8135_v35 = vrot.slane %v8017_v41, 2  ;;  %v8251_v7 = vmul.f32 %v19341_v1, %v19743_v12 }
 0x605   : > { %v7890_v59 = vsel %vm967_vm3, %v7888_v27, %v7889_v10  ;;  %v7892_v56 = vsel %vm967_vm3, %v7889_v10, %v7891_v34  ;;  %v8137_v44 = vrot.slane %v8018_v29, 2  ;;  %v8252_v2 = vmul.f32 %v19341_v1, %v19751_v9 }
 0x606   : > { %v9396_v57 = vpack.c.bf16 %v9375_v28, %v9374_v6  ;;  %v7967_v60 = vadd.f32 %v7890_v59, %v7689_v31  ;;  %v7968_v54 = vadd.f32 %v7892_v56, %v7690_v32  ;;  %v8136_v22 = vsel %vm1521_vm4, %v8134_v24, %v8135_v35  ;;  %v19824_v32 = vld [vmem:[#allocation3 + $0x140] sm:$0xff] }
 0x607   : > { %v8138_v23 = vsel %vm1521_vm4, %v8135_v35, %v8137_v44  ;;  %v8332_v46 = vmul.f32 %v19349_v3, %v19743_v12  ;;  %v8333_v51 = vmul.f32 %v19349_v3, %v19751_v9  ;;  %v8334_v19 = vmul.f32 %v19349_v3, %v19759_v52 }
 0x608   : > { %14064 = vmatprep.mubr.msk.bf16.mxu1 %vm687_vm5, %v9396_v57  ;;  %v8213_v1 = vadd.f32 %v8136_v22, %v7967_v60  ;;  %v8214_v31 = vadd.f32 %v8138_v23, %v7968_v54  ;;  %v8578_v55 = vmul.f32 %v19363_v40, %v19743_v12  ;;  %v8579_v4 = vmul.f32 %v19363_v40, %v19751_v9 }
 0x609   : > { %v8450_v16 = vrot.slane %v8332_v46, 1  ;;  %v8451_v33 = vrot.slane %v8333_v51, 1  ;;  %v8453_v49 = vrot.slane %v8334_v19, 1  ;;  %v8580_v3 = vmul.f32 %v19363_v40, %v19759_v52 }
 0x60a   : > { %v8283_v53 = vadd.f32 %v8251_v7, %v8213_v1  ;;  %v8284_v58 = vadd.f32 %v8252_v2, %v8214_v31  ;;  %v8696_v0 = vrot.slane %v8578_v55, 2  ;;  %v8697_v43 = vrot.slane %v8579_v4, 2  ;;  %v19855_v1 = vld [vmem:[%s21163_s9] ss:$0 sm:$0xff] }
 0x60b   : > { %v8452_v61 = vsel %vm967_vm3, %v8450_v16, %v8451_v33  ;;  %v8454_v47 = vsel %vm967_vm3, %v8451_v33, %v8453_v49  ;;  %v8699_v27 = vrot.slane %v8580_v3, 2  ;;  %v8813_v41 = vmul.f32 %v19380_v30, %v19818_v45  ;;  %v19866_v3 = vld [vmem:[%s21163_s9 + $0x1] ss:$0 sm:$0xff] }
 0x60c   : > { %v8529_v10 = vadd.f32 %v8452_v61, %v8283_v53  ;;  %v8530_v34 = vadd.f32 %v8454_v47, %v8284_v58  ;;  %v8698_v29 = vsel %vm1521_vm4, %v8696_v0, %v8697_v43  ;;  %v8814_v40 = vmul.f32 %v19380_v30, %v19824_v32  ;;  %v19877_v47 = vld [vmem:[%s21163_s9 + $0x2] ss:$0 sm:$0xff] }
 0x60d   : > { %v8700_v24 = vsel %vm1521_vm4, %v8697_v43, %v8699_v27  ;;  %v8894_v6 = vmul.f32 %v19391_v50, %v19818_v45  ;;  %v8895_v28 = vmul.f32 %v19391_v50, %v19824_v32  ;;  %v8896_v35 = vmul.f32 %v19391_v50, %v19828_v18 }
 0x60e   : > { %v8775_v7 = vadd.f32 %v8698_v29, %v8529_v10  ;;  %v8776_v59 = vadd.f32 %v8700_v24, %v8530_v34  ;;  %v9140_v56 = vmul.f32 %v19486_v42, %v19818_v45  ;;  %v9141_v44 = vmul.f32 %v19486_v42, %v19824_v32 }
 0x60f   : > { %v9012_v30 = vrot.slane %v8894_v6, 1  ;;  %v9013_v2 = vrot.slane %v8895_v28, 1  ;;  %v9015_v57 = vrot.slane %v8896_v35, 1  ;;  %v9142_v60 = vmul.f32 %v19486_v42, %v19828_v18 }
 0x610   : > { %v8845_v54 = vadd.f32 %v8813_v41, %v8775_v7  ;;  %v8846_v22 = vadd.f32 %v8814_v40, %v8776_v59  ;;  %v9258_v23 = vrot.slane %v9140_v56, 2  ;;  %v9259_v46 = vrot.slane %v9141_v44, 2 }
 0x611   : > { %v9014_v50 = vsel %vm967_vm3, %v9012_v30, %v9013_v2  ;;  %v9016_v51 = vsel %vm967_vm3, %v9013_v2, %v9015_v57  ;;  %v9261_v19 = vrot.slane %v9142_v60, 2  ;;  %v7691_v31 = vmul.f32 %v19855_v1, %v19743_v12 }
 0x612   : > { %v9091_v55 = vadd.f32 %v9014_v50, %v8845_v54  ;;  %v9092_v4 = vadd.f32 %v9016_v51, %v8846_v22  ;;  %v9260_v16 = vsel %vm1521_vm4, %v9258_v23, %v9259_v46  ;;  %v7692_v33 = vmul.f32 %v19855_v1, %v19751_v9  ;;  %v19903_v54 = vld [vmem:[%s21163_s9 + $0x4] ss:$0 sm:$0xff] }
 0x613   : > { %v9262_v49 = vsel %vm1521_vm4, %v9259_v46, %v9261_v19  ;;  %v7773_v53 = vmul.f32 %v19866_v3, %v19743_v12  ;;  %v7774_v58 = vmul.f32 %v19866_v3, %v19751_v9  ;;  %v7775_v0 = vmul.f32 %v19866_v3, %v19759_v52  ;;  %v19910_v46 = vld [vmem:[#allocation3 + $0x150] sm:$0xff] }
 0x614   : > { %v9337_v43 = vadd.f32 %v9260_v16, %v9091_v55  ;;  %v9338_v61 = vadd.f32 %v9262_v49, %v9092_v4  ;;  %v8019_v27 = vmul.f32 %v19877_v47, %v19743_v12  ;;  %v8020_v41 = vmul.f32 %v19877_v47, %v19751_v9  ;;  %v19892_v9 = vld [vmem:[%s21163_s9 + $0x3] ss:$0 sm:$0xff]  ;;  %v19921_v4 = vld [vmem:[#allocation3 + $0x158] sm:$0xff] }
 0x615   : > { %v7893_v10 = vrot.slane %v7773_v53, 1  ;;  %v7894_v34 = vrot.slane %v7774_v58, 1  ;;  %v7896_v29 = vrot.slane %v7775_v0, 1  ;;  %v8021_v40 = vmul.f32 %v19877_v47, %v19759_v52 }
 0x616   : > { %v9376_v24 = vadd.f32 %v19519_v25, %v9337_v43  ;;  %v9377_v6 = vadd.f32 %v19519_v25, %v9338_v61  ;;  %v8139_v28 = vrot.slane %v8019_v27, 2  ;;  %v8140_v35 = vrot.slane %v8020_v41, 2  ;;  %v19927_v27 = vld [vmem:[#allocation3 + $0x160] sm:$0x3] }
 0x617   : > { %v7895_v7 = vsel %vm967_vm3, %v7893_v10, %v7894_v34  ;;  %v7897_v59 = vsel %vm967_vm3, %v7894_v34, %v7896_v29  ;;  %v8142_v12 = vrot.slane %v8021_v40, 2  ;;  %v8253_v56 = vmul.f32 %v19892_v9, %v19818_v45  ;;  %v19933_v29 = vld [vmem:[%s21163_s9 + $0x6] ss:$0 sm:$0xff] }
 0x618   : > { %v9397_v52 = vpack.c.bf16 %v9377_v6, %v9376_v24  ;;  %v7969_v44 = vadd.f32 %v7895_v7, %v7691_v31  ;;  %v7970_v30 = vadd.f32 %v7897_v59, %v7692_v33  ;;  %v8141_v2 = vsel %vm1521_vm4, %v8139_v28, %v8140_v35  ;;  %v19917_v31 = vld [vmem:[%s21163_s9 + $0x5] ss:$0 sm:$0xff] }
 0x619   : > { %v8143_v57 = vsel %vm1521_vm4, %v8140_v35, %v8142_v12  ;;  %v8254_v60 = vmul.f32 %v19892_v9, %v19824_v32  ;;  %v8335_v22 = vmul.f32 %v19903_v54, %v19818_v45  ;;  %v8336_v23 = vmul.f32 %v19903_v54, %v19824_v32  ;;  %v19943_v35 = vld [vmem:[%s21163_s9 + $0x7] ss:$0 sm:$0xff] }
 0x61a   : > { %14065 = vmatmul.mubr.msk.bf16.gmra.mrb[52].mxu1 %vm687_vm5, %v9397_v52  ;;  %v8215_v50 = vadd.f32 %v8141_v2, %v7969_v44  ;;  %v8216_v51 = vadd.f32 %v8143_v57, %v7970_v30  ;;  %v8337_v19 = vmul.f32 %v19903_v54, %v19828_v18  ;;  %v8581_v55 = vmul.f32 %v19917_v31, %v19818_v45 }
 0x61b   : > { %v8455_v16 = vrot.slane %v8335_v22, 1  ;;  %v8456_v33 = vrot.slane %v8336_v23, 1  ;;  %v8582_v49 = vmul.f32 %v19917_v31, %v19824_v32  ;;  %v8583_v53 = vmul.f32 %v19917_v31, %v19828_v18 }
 0x61c   : > { %v8285_v58 = vadd.f32 %v8253_v56, %v8215_v50  ;;  %v8286_v0 = vadd.f32 %v8254_v60, %v8216_v51  ;;  %v8458_v43 = vrot.slane %v8337_v19, 1  ;;  %v8701_v61 = vrot.slane %v8581_v55, 2 }
 0x61d   : > { %v8457_v41 = vsel %vm967_vm3, %v8455_v16, %v8456_v33  ;;  %v8702_v10 = vrot.slane %v8582_v49, 2  ;;  %v8704_v34 = vrot.slane %v8583_v53, 2  ;;  %v8815_v40 = vmul.f32 %v19933_v29, %v19910_v46 }
 0x61e   : > { %v8459_v24 = vsel %vm967_vm3, %v8456_v33, %v8458_v43  ;;  %v8531_v6 = vadd.f32 %v8457_v41, %v8285_v58  ;;  %v8816_v28 = vmul.f32 %v19933_v29, %v19921_v4  ;;  %v8897_v7 = vmul.f32 %v19943_v35, %v19910_v46 }
 0x61f   : > { %v8532_v59 = vadd.f32 %v8459_v24, %v8286_v0  ;;  %v8703_v12 = vsel %vm1521_vm4, %v8701_v61, %v8702_v10  ;;  %v8705_v56 = vsel %vm1521_vm4, %v8702_v10, %v8704_v34  ;;  %v8898_v52 = vmul.f32 %v19943_v35, %v19921_v4 }
 0x620   : > { %v8777_v44 = vadd.f32 %v8703_v12, %v8531_v6  ;;  %v8899_v30 = vmul.f32 %v19943_v35, %v19927_v27  ;;  %v9017_v2 = vrot.slane %v8897_v7, 1  ;;  %v9143_v57 = vmul.f32 %v19486_v42, %v19910_v46 }
 0x621   : > { %v8778_v60 = vadd.f32 %v8705_v56, %v8532_v59  ;;  %v9018_v22 = vrot.slane %v8898_v52, 1  ;;  %v9144_v23 = vmul.f32 %v19486_v42, %v19921_v4  ;;  %v9145_v50 = vmul.f32 %v19486_v42, %v19927_v27 }
 0x622   : > { %v8847_v51 = vadd.f32 %v8815_v40, %v8777_v44  ;;  %v9020_v19 = vrot.slane %v8899_v30, 1  ;;  %v9263_v55 = vrot.slane %v9143_v57, 2  ;;  %v7693_v16 = vmul.f32 %v19855_v1, %v19818_v45 }
 0x623   : > { %v8848_v33 = vadd.f32 %v8816_v28, %v8778_v60  ;;  %v9019_v49 = vsel %vm967_vm3, %v9017_v2, %v9018_v22  ;;  %v9264_v53 = vrot.slane %v9144_v23, 2  ;;  %v9266_v58 = vrot.slane %v9145_v50, 2 }
 0x624   : > { %v9021_v0 = vsel %vm967_vm3, %v9018_v22, %v9020_v19  ;;  %v9093_v43 = vadd.f32 %v9019_v49, %v8847_v51  ;;  %v7694_v61 = vmul.f32 %v19855_v1, %v19824_v32  ;;  %v7776_v42 = vmul.f32 %v19866_v3, %v19818_v45 }
 0x625   : > { %v9094_v41 = vadd.f32 %v9021_v0, %v8848_v33  ;;  %v9265_v10 = vsel %vm1521_vm4, %v9263_v55, %v9264_v53  ;;  %v9267_v34 = vsel %vm1521_vm4, %v9264_v53, %v9266_v58  ;;  %v7777_v40 = vmul.f32 %v19866_v3, %v19824_v32  ;;  %v19989_v55 = vld [vmem:[#allocation3 + $0x168] sm:$0xff] }
 0x626   : > { %v9339_v24 = vadd.f32 %v9265_v10, %v9093_v43  ;;  %v7778_v6 = vmul.f32 %v19866_v3, %v19828_v18  ;;  %v7898_v28 = vrot.slane %v7776_v42, 1  ;;  %v8022_v7 = vmul.f32 %v19877_v47, %v19818_v45  ;;  %v20000_v42 = vld [vmem:[#allocation3 + $0x170] sm:$0xff] }
 0x627   : > { %v9340_v59 = vadd.f32 %v9267_v34, %v9094_v41  ;;  %v7899_v12 = vrot.slane %v7777_v40, 1  ;;  %v8023_v56 = vmul.f32 %v19877_v47, %v19824_v32  ;;  %v8024_v52 = vmul.f32 %v19877_v47, %v19828_v18 }
 0x628   : > { %v9378_v44 = vadd.f32 %v19519_v25, %v9339_v24  ;;  %v7901_v30 = vrot.slane %v7778_v6, 1  ;;  %v8144_v2 = vrot.slane %v8022_v7, 2  ;;  %v8255_v57 = vmul.f32 %v19892_v9, %v19910_v46 }
 0x629   : > { %v9379_v60 = vadd.f32 %v19519_v25, %v9340_v59  ;;  %v7900_v22 = vsel %vm967_vm3, %v7898_v28, %v7899_v12  ;;  %v8145_v45 = vrot.slane %v8023_v56, 2  ;;  %v8147_v23 = vrot.slane %v8024_v52, 2 }
 0x62a   : > { %v7902_v50 = vsel %vm967_vm3, %v7899_v12, %v7901_v30  ;;  %v7971_v51 = vadd.f32 %v7900_v22, %v7693_v16  ;;  %v8256_v32 = vmul.f32 %v19892_v9, %v19921_v4  ;;  %v8338_v18 = vmul.f32 %v19903_v54, %v19910_v46  ;;  %v20014_v12 = vld [vmem:[#allocation3 + $0x178] sm:$0x3] }
 0x62b   : > { %v9398_v19 = vpack.c.bf16 %v9379_v60, %v9378_v44  ;;  %v7972_v33 = vadd.f32 %v7902_v50, %v7694_v61  ;;  %v8146_v49 = vsel %vm1521_vm4, %v8144_v2, %v8145_v45  ;;  %v8148_v25 = vsel %vm1521_vm4, %v8145_v45, %v8147_v23 }
 0x62c   : > { %v8217_v53 = vadd.f32 %v8146_v49, %v7971_v51  ;;  %v8339_v58 = vmul.f32 %v19903_v54, %v19921_v4  ;;  %v8340_v16 = vmul.f32 %v19903_v54, %v19927_v27  ;;  %v8460_v0 = vrot.slane %v8338_v18, 1  ;;  %v20033_v49 = vld [vmem:[%s21163_s9 + $0x8] ss:$0 sm:$0xff] }
 0x62d   : > { %v19997_v43 = vpop.f32.mrb[32].mxu1  ;;  %14068 = vmatprep.mubr.msk.bf16.mxu1 %vm687_vm5, %v9398_v19  ;;  %v8218_v41 = vadd.f32 %v8148_v25, %v7972_v33  ;;  %v8584_v61 = vmul.f32 %v19917_v31, %v19910_v46  ;;  %v8585_v10 = vmul.f32 %v19917_v31, %v19921_v4  ;;  %v8586_v34 = vmul.f32 %v19917_v31, %v19927_v27 }
 0x62e   : > { %v20008_v40 = vpop.f32.mrb[33].mxu1  ;;  %v8287_v24 = vadd.f32 %v8255_v57, %v8217_v53  ;;  %v8461_v6 = vrot.slane %v8339_v58, 1  ;;  %v8463_v28 = vrot.slane %v8340_v16, 1  ;;  %v8817_v7 = vmul.f32 %v19933_v29, %v19989_v55 }
 0x62f   : > { %v20012_v59 = vpop.f32.mrb[34].mxu1  ;;  %v8288_v56 = vadd.f32 %v8256_v32, %v8218_v41  ;;  %v8706_v52 = vrot.slane %v8584_v61, 2  ;;  %v8707_v44 = vrot.slane %v8585_v10, 2  ;;  %v8709_v30 = vrot.slane %v8586_v34, 2 }
 0x630   : > { %v20016_v2 = vpop.f32.mrb[35].mxu1  ;;  %v8462_v60 = vsel %vm967_vm3, %v8460_v0, %v8461_v6  ;;  %v8464_v22 = vsel %vm967_vm3, %v8461_v6, %v8463_v28  ;;  %v8818_v57 = vmul.f32 %v19933_v29, %v20000_v42  ;;  %v8900_v45 = vmul.f32 %v19943_v35, %v19989_v55 }
 0x631   : > { %v8533_v23 = vadd.f32 %v8462_v60, %v8287_v24  ;;  %v8534_v50 = vadd.f32 %v8464_v22, %v8288_v56  ;;  %v8708_v51 = vsel %vm1521_vm4, %v8706_v52, %v8707_v44  ;;  %v8710_v32 = vsel %vm1521_vm4, %v8707_v44, %v8709_v30 }
 0x632   : > { %v8901_v18 = vmul.f32 %v19943_v35, %v20000_v42  ;;  %v8902_v19 = vmul.f32 %v19943_v35, %v20014_v12  ;;  %v9022_v33 = vrot.slane %v8900_v45, 1  ;;  %v9146_v25 = vmul.f32 %v20033_v49, %v19989_v55 }
 0x633   : > { %v8779_v53 = vadd.f32 %v8708_v51, %v8533_v23  ;;  %v8780_v58 = vadd.f32 %v8710_v32, %v8534_v50  ;;  %v9147_v16 = vmul.f32 %v20033_v49, %v20000_v42  ;;  %v9148_v0 = vmul.f32 %v20033_v49, %v20014_v12 }
 0x634   : > { %v9023_v41 = vrot.slane %v8901_v18, 1  ;;  %v9025_v61 = vrot.slane %v8902_v19, 1  ;;  %v9268_v10 = vrot.slane %v9146_v25, 2  ;;  %v7695_v34 = vmul.f32 %v19855_v1, %v19910_v46 }
 0x635   : > { %v8849_v24 = vadd.f32 %v8817_v7, %v8779_v53  ;;  %v8850_v6 = vadd.f32 %v8818_v57, %v8780_v58  ;;  %v9269_v28 = vrot.slane %v9147_v16, 2  ;;  %v9271_v56 = vrot.slane %v9148_v0, 2 }
 0x636   : > { %v9024_v52 = vsel %vm967_vm3, %v9022_v33, %v9023_v41  ;;  %v9026_v44 = vsel %vm967_vm3, %v9023_v41, %v9025_v61  ;;  %v7696_v30 = vmul.f32 %v19855_v1, %v19921_v4  ;;  %v7779_v60 = vmul.f32 %v19866_v3, %v19910_v46  ;;  %v20066_v41 = vld [vmem:[%s21164_s10] ss:$0 sm:$0xff] }
 0x637   : > { %v9095_v22 = vadd.f32 %v9024_v52, %v8849_v24  ;;  %v9096_v45 = vadd.f32 %v9026_v44, %v8850_v6  ;;  %v9270_v23 = vsel %vm1521_vm4, %v9268_v10, %v9269_v28  ;;  %v9272_v50 = vsel %vm1521_vm4, %v9269_v28, %v9271_v56  ;;  %v20076_v52 = vld [vmem:[#allocation3 + $0x180] sm:$0xff] }
 0x638   : > { %v7780_v7 = vmul.f32 %v19866_v3, %v19921_v4  ;;  %v7781_v57 = vmul.f32 %v19866_v3, %v19927_v27  ;;  %v7903_v51 = vrot.slane %v7779_v60, 1  ;;  %v8025_v32 = vmul.f32 %v19877_v47, %v19910_v46 }
 0x639   : > { %v9341_v18 = vadd.f32 %v9270_v23, %v9095_v22  ;;  %v9342_v19 = vadd.f32 %v9272_v50, %v9096_v45  ;;  %v8026_v33 = vmul.f32 %v19877_v47, %v19921_v4  ;;  %v8027_v25 = vmul.f32 %v19877_v47, %v19927_v27 }
 0x63a   : > { %v7904_v53 = vrot.slane %v7780_v7, 1  ;;  %v7906_v58 = vrot.slane %v7781_v57, 1  ;;  %v8149_v16 = vrot.slane %v8025_v32, 2  ;;  %v8257_v0 = vmul.f32 %v19892_v9, %v19989_v55  ;;  %v20085_v57 = vld [vmem:[#allocation3 + $0x188] sm:$0xff] }
 0x63b   : > { %v9380_v46 = vadd.f32 %v20066_v41, %v9341_v18  ;;  %v9381_v61 = vadd.f32 %v20066_v41, %v9342_v19  ;;  %v8150_v10 = vrot.slane %v8026_v33, 2  ;;  %v8152_v4 = vrot.slane %v8027_v25, 2 }
 0x63c   : > { %v7905_v24 = vsel %vm967_vm3, %v7903_v51, %v7904_v53  ;;  %v7907_v27 = vsel %vm967_vm3, %v7904_v53, %v7906_v58  ;;  %v8258_v6 = vmul.f32 %v19892_v9, %v20000_v42  ;;  %v8341_v28 = vmul.f32 %v19903_v54, %v19989_v55  ;;  %v20095_v53 = vld [vmem:[#allocation3 + $0x190] sm:$0x3] }
 0x63d   : > { %v9399_v56 = vpack.c.bf16 %v9381_v61, %v9380_v46  ;;  %v7973_v44 = vadd.f32 %v7905_v24, %v7695_v34  ;;  %v7974_v60 = vadd.f32 %v7907_v27, %v7696_v30  ;;  %v8151_v22 = vsel %vm1521_vm4, %v8149_v16, %v8150_v10 }
 0x63e   : > { %v8153_v45 = vsel %vm1521_vm4, %v8150_v10, %v8152_v4  ;;  %v8342_v23 = vmul.f32 %v19903_v54, %v20000_v42  ;;  %v8343_v50 = vmul.f32 %v19903_v54, %v20014_v12  ;;  %v8465_v7 = vrot.slane %v8341_v28, 1 }
 0x63f   : > { %14069 = vmatmul.mubr.msk.bf16.gmra.mrb[56].mxu1 %vm687_vm5, %v9399_v56  ;;  %v8219_v51 = vadd.f32 %v8151_v22, %v7973_v44  ;;  %v8220_v32 = vadd.f32 %v8153_v45, %v7974_v60  ;;  %v8587_v34 = vmul.f32 %v19917_v31, %v19989_v55  ;;  %v8588_v30 = vmul.f32 %v19917_v31, %v20000_v42 }
 0x640   : > { %v8466_v18 = vrot.slane %v8342_v23, 1  ;;  %v8468_v19 = vrot.slane %v8343_v50, 1  ;;  %v8589_v33 = vmul.f32 %v19917_v31, %v20014_v12  ;;  %v8819_v25 = vmul.f32 %v19933_v29, %v20076_v52 }
 0x641   : > { %v8289_v58 = vadd.f32 %v8257_v0, %v8219_v51  ;;  %v8290_v16 = vadd.f32 %v8258_v6, %v8220_v32  ;;  %v8711_v46 = vrot.slane %v8587_v34, 2  ;;  %v8712_v61 = vrot.slane %v8588_v30, 2 }
 0x642   : > { %v8467_v10 = vsel %vm967_vm3, %v8465_v7, %v8466_v18  ;;  %v8469_v4 = vsel %vm967_vm3, %v8466_v18, %v8468_v19  ;;  %v8714_v24 = vrot.slane %v8589_v33, 2  ;;  %v8820_v27 = vmul.f32 %v19933_v29, %v20085_v57 }
 0x643   : > { %v8535_v28 = vadd.f32 %v8467_v10, %v8289_v58  ;;  %v8536_v56 = vadd.f32 %v8469_v4, %v8290_v16  ;;  %v8713_v44 = vsel %vm1521_vm4, %v8711_v46, %v8712_v61  ;;  %v8903_v60 = vmul.f32 %v19943_v35, %v20076_v52 }
 0x644   : > { %v8715_v0 = vsel %vm1521_vm4, %v8712_v61, %v8714_v24  ;;  %v8904_v6 = vmul.f32 %v19943_v35, %v20085_v57  ;;  %v8905_v22 = vmul.f32 %v19943_v35, %v20095_v53  ;;  %v9149_v45 = vmul.f32 %v20033_v49, %v20076_v52 }
 0x645   : > { %v8781_v23 = vadd.f32 %v8713_v44, %v8535_v28  ;;  %v8782_v50 = vadd.f32 %v8715_v0, %v8536_v56  ;;  %v9027_v7 = vrot.slane %v8903_v60, 1  ;;  %v9150_v51 = vmul.f32 %v20033_v49, %v20085_v57 }
 0x646   : > { %v9028_v32 = vrot.slane %v8904_v6, 1  ;;  %v9030_v34 = vrot.slane %v8905_v22, 1  ;;  %v9151_v30 = vmul.f32 %v20033_v49, %v20095_v53  ;;  %v9273_v18 = vrot.slane %v9149_v45, 2 }
 0x647   : > { %v8851_v19 = vadd.f32 %v8819_v25, %v8781_v23  ;;  %v8852_v33 = vadd.f32 %v8820_v27, %v8782_v50  ;;  %v9274_v58 = vrot.slane %v9150_v51, 2  ;;  %v7697_v16 = vmul.f32 %v19855_v1, %v19989_v55 }
 0x648   : > { %v9029_v46 = vsel %vm967_vm3, %v9027_v7, %v9028_v32  ;;  %v9031_v61 = vsel %vm967_vm3, %v9028_v32, %v9030_v34  ;;  %v9276_v10 = vrot.slane %v9151_v30, 2  ;;  %v7698_v4 = vmul.f32 %v19855_v1, %v20000_v42 }
 0x649   : > { %v9097_v24 = vadd.f32 %v9029_v46, %v8851_v19  ;;  %v9098_v28 = vadd.f32 %v9031_v61, %v8852_v33  ;;  %v9275_v56 = vsel %vm1521_vm4, %v9273_v18, %v9274_v58  ;;  %v7782_v25 = vmul.f32 %v19866_v3, %v19989_v55 }
 0x64a   : > { %v9277_v27 = vsel %vm1521_vm4, %v9274_v58, %v9276_v10  ;;  %v7783_v44 = vmul.f32 %v19866_v3, %v20000_v42  ;;  %v7784_v60 = vmul.f32 %v19866_v3, %v20014_v12  ;;  %v8028_v0 = vmul.f32 %v19877_v47, %v19989_v55 }
 0x64b   : > { %v9343_v6 = vadd.f32 %v9275_v56, %v9097_v24  ;;  %v9344_v1 = vadd.f32 %v9277_v27, %v9098_v28  ;;  %v7908_v22 = vrot.slane %v7782_v25, 1  ;;  %v8029_v45 = vmul.f32 %v19877_v47, %v20000_v42  ;;  %v7649_v28 = vld [vmem:[#allocation3 + $0x198] sm:$0xff]  ;;  %v7650_v25 = vld [vmem:[#allocation3 + $0x1a0] sm:$0xff] }
 0x64c   : > { %v7909_v23 = vrot.slane %v7783_v44, 1  ;;  %v7911_v50 = vrot.slane %v7784_v60, 1  ;;  %v8030_v7 = vmul.f32 %v19877_v47, %v20014_v12  ;;  %v8154_v51 = vrot.slane %v8028_v0, 2 }
 0x64d   : > { %v9382_v32 = vadd.f32 %v20066_v41, %v9343_v6  ;;  %v9383_v34 = vadd.f32 %v20066_v41, %v9344_v1  ;;  %v8155_v3 = vrot.slane %v8029_v45, 2  ;;  %v8259_v55 = vmul.f32 %v19892_v9, %v20076_v52  ;;  %v7651_v6 = vld [vmem:[#allocation3 + $0x1a8] sm:$0x3] }
 0x64e   : > { %v7910_v30 = vsel %vm967_vm3, %v7908_v22, %v7909_v23  ;;  %v7912_v18 = vsel %vm967_vm3, %v7909_v23, %v7911_v50  ;;  %v8157_v19 = vrot.slane %v8030_v7, 2  ;;  %v8260_v42 = vmul.f32 %v19892_v9, %v20085_v57 }
 0x64f   : > { %v9400_v33 = vpack.c.bf16 %v9383_v34, %v9382_v32  ;;  %v7975_v58 = vadd.f32 %v7910_v30, %v7697_v16  ;;  %v7976_v47 = vadd.f32 %v7912_v18, %v7698_v4  ;;  %v8156_v12 = vsel %vm1521_vm4, %v8154_v51, %v8155_v3 }
 0x650   : > { %v8158_v46 = vsel %vm1521_vm4, %v8155_v3, %v8157_v19  ;;  %v8344_v61 = vmul.f32 %v19903_v54, %v20076_v52  ;;  %v8345_v10 = vmul.f32 %v19903_v54, %v20085_v57  ;;  %v8346_v24 = vmul.f32 %v19903_v54, %v20095_v53 }
 0x651   : > { %14072 = vmatprep.mubr.msk.bf16.mxu1 %vm687_vm5, %v9400_v33  ;;  %v8221_v9 = vadd.f32 %v8156_v12, %v7975_v58  ;;  %v8222_v56 = vadd.f32 %v8158_v46, %v7976_v47  ;;  %v8590_v16 = vmul.f32 %v19917_v31, %v20076_v52  ;;  %v8591_v4 = vmul.f32 %v19917_v31, %v20085_v57 }
 0x652   : > { %v8470_v27 = vrot.slane %v8344_v61, 1  ;;  %v8471_v44 = vrot.slane %v8345_v10, 1  ;;  %v8473_v60 = vrot.slane %v8346_v24, 1  ;;  %v8592_v0 = vmul.f32 %v19917_v31, %v20095_v53  ;;  %v20173_v24 = vld [vmem:[%s21166_s12] ss:$0 sm:$0xff] }
 0x653   : > { %v8291_v54 = vadd.f32 %v8259_v55, %v8221_v9  ;;  %v8292_v1 = vadd.f32 %v8260_v42, %v8222_v56  ;;  %v8716_v22 = vrot.slane %v8590_v16, 2  ;;  %v8717_v45 = vrot.slane %v8591_v4, 2 }
 0x654   : > { %v8472_v23 = vsel %vm967_vm3, %v8470_v27, %v8471_v44  ;;  %v8474_v50 = vsel %vm967_vm3, %v8471_v44, %v8473_v60  ;;  %v8719_v52 = vrot.slane %v8592_v0, 2  ;;  %v8821_v7 = vmul.f32 %v19933_v29, %v7649_v28  ;;  %v14050_v57 = vpop.f32.mrb[36].mxu1 }
 0x655   : > { %v8537_v51 = vadd.f32 %v8472_v23, %v8291_v54  ;;  %v8538_v32 = vadd.f32 %v8474_v50, %v8292_v1  ;;  %v8718_v34 = vsel %vm1521_vm4, %v8716_v22, %v8717_v45  ;;  %v8822_v3 = vmul.f32 %v19933_v29, %v7650_v25  ;;  %v9511_v31 = vpop.f32.mrb[37].mxu1  ;;  %v20193_v22 = vld [vmem:[%s21167_s13] ss:$0 sm:$0xff] }
 0x656   : > { %v8720_v53 = vsel %vm1521_vm4, %v8717_v45, %v8719_v52  ;;  %v8906_v55 = vmul.f32 %v19943_v35, %v7649_v28  ;;  %v8907_v30 = vmul.f32 %v19943_v35, %v7650_v25  ;;  %v8908_v18 = vmul.f32 %v19943_v35, %v7651_v6  ;;  %v14051_v19 = vpop.f32.mrb[38].mxu1 }
 0x657   : > { %v8783_v42 = vadd.f32 %v8718_v34, %v8537_v51  ;;  %v8784_v33 = vadd.f32 %v8720_v53, %v8538_v32  ;;  %v9152_v58 = vmul.f32 %v20033_v49, %v7649_v28  ;;  %v9153_v47 = vmul.f32 %v20033_v49, %v7650_v25  ;;  %v9514_v12 = vpop.f32.mrb[39].mxu1  ;;  %v20178_v28 = vld [vmem:[%s21170_s16] sm:$0xf] }
 0x658   : > { %v9032_v46 = vrot.slane %v8906_v55, 1  ;;  %v9033_v61 = vrot.slane %v8907_v30, 1  ;;  %v9035_v29 = vrot.slane %v8908_v18, 1  ;;  %v9154_v10 = vmul.f32 %v20033_v49, %v7651_v6  ;;  %v15322_v49 = vld [vmem:[%s21170_s16 + $0x4] sm:$0xf] }
 0x659   : > { %v8853_v9 = vadd.f32 %v8821_v7, %v8783_v42  ;;  %v8854_v35 = vadd.f32 %v8822_v3, %v8784_v33  ;;  %v9278_v56 = vrot.slane %v9152_v58, 2  ;;  %v9279_v16 = vrot.slane %v9153_v47, 2  ;;  %v20207_v32 = vld [vmem:[%s21168_s14] ss:$0 sm:$0xff]  ;;  %v20216_v58 = vld [vmem:[#allocation3] sm:$0xff] }
 0x65a   : > { %v9034_v4 = vsel %vm967_vm3, %v9032_v46, %v9033_v61  ;;  %v9036_v25 = vsel %vm967_vm3, %v9033_v61, %v9035_v29  ;;  %v9281_v27 = vrot.slane %v9154_v10, 2  ;;  %v10068_v44 = vsel %vm3503_vm6, %v15322_v49, 0  ;;  %v20223_v29 = vld [vmem:[#allocation3 + $0x10] sm:$0x3] }
 0x65b   : > { %v9099_v60 = vadd.f32 %v9034_v4, %v8853_v9  ;;  %v9100_v0 = vadd.f32 %v9036_v25, %v8854_v35  ;;  %v9280_v6 = vsel %vm1521_vm4, %v9278_v56, %v9279_v16  ;;  %14077 = vmatpush3.bf16.msra.mxu1 %v10068_v44  ;;  %v9504_v54 = vadd.f32 %v19997_v43, %v20173_v24 }
 0x65c   : > { %v9282_v1 = vsel %vm1521_vm4, %v9279_v16, %v9281_v27  ;;  %v9496_v45 = vadd.f32 %v20173_v24, %v20008_v40  ;;  %v9507_v23 = vadd.f32 %v20012_v59, %v20173_v24  ;;  %v9499_v50 = vadd.f32 %v20173_v24, %v20016_v2  ;;  %15206 = vmatprep.subr.msk.bf16.mxu1 %vm3503_vm6, %v20178_v28 }
 0x65d   : > { %v9345_v43 = vadd.f32 %v9280_v6, %v9099_v60  ;;  %v9346_v52 = vadd.f32 %v9282_v1, %v9100_v0  ;;  %v9624_v7 = vmax.f32 %v9504_v54, 0.0  ;;  %v9520_v51 = vadd.f32 %v14050_v57, %v20173_v24 }
 0x65e   : > { %v9622_v40 = vmax.f32 %v9496_v45, 0.0  ;;  %v9625_v34 = vmax.f32 %v9507_v23, 0.0  ;;  %v9623_v3 = vmax.f32 %v9499_v50, 0.0  ;;  %v9512_v59 = vadd.f32 %v20173_v24, %v9511_v31 }
 0x65f   : > { %v9384_v2 = vadd.f32 %v20066_v41, %v9345_v43  ;;  %v9385_v53 = vadd.f32 %v20066_v41, %v9346_v52  ;;  %v9663_v55 = vmul.f32 %v20193_v22, %v9624_v7  ;;  %v9628_v30 = vmax.f32 %v9520_v51, 0.0  ;;  %v20221_v41 = vld [vmem:[#allocation3 + $0x8] sm:$0xff] }
 0x660   : > { %v9661_v18 = vmul.f32 %v20193_v22, %v9622_v40  ;;  %v9664_v57 = vmul.f32 %v20193_v22, %v9625_v34  ;;  %v9662_v42 = vmul.f32 %v20193_v22, %v9623_v3  ;;  %v9626_v33 = vmax.f32 %v9512_v59, 0.0 }
 0x661   : > { %v9401_v47 = vpack.c.bf16 %v9385_v53, %v9384_v2  ;;  %v9702_v46 = vadd.f32 %v20207_v32, %v9663_v55  ;;  %v9667_v31 = vmul.f32 %v20193_v22, %v9628_v30  ;;  %v9523_v61 = vadd.f32 %v14051_v19, %v20173_v24 }
 0x662   : > { %v9700_v10 = vadd.f32 %v20207_v32, %v9661_v18  ;;  %v9703_v9 = vadd.f32 %v20207_v32, %v9664_v57  ;;  %v9701_v35 = vadd.f32 %v20207_v32, %v9662_v42  ;;  %v9665_v56 = vmul.f32 %v20193_v22, %v9626_v33 }
 0x663   : > { %14073 = vmatmul.mubr.msk.bf16.gmra.mrb[60].mxu1 %vm687_vm5, %v9401_v47  ;;  %9734 = vst.msk [vmem:[#allocation3 + $0x31] sm:$0xff] %vm687_vm5, %v9702_v46  ;;  %v9706_v16 = vadd.f32 %v20207_v32, %v9667_v31  ;;  %v9629_v4 = vmax.f32 %v9523_v61, 0.0  ;;  %v9515_v19 = vadd.f32 %v20173_v24, %v9514_v12  ;;  %v9891_v25 = vrot.slane %v20216_v58, 1 }
 0x664   : > { %9732 = vst.msk [vmem:[#allocation3 + $0x19] sm:$0xff] %vm687_vm5, %v9700_v10  ;;  %9735 = vst.msk [vmem:[#allocation3 + $0x39] sm:$0xff] %vm687_vm5, %v9703_v9  ;;  %v9704_v27 = vadd.f32 %v20207_v32, %v9665_v56  ;;  %v9892_v49 = vrot.slane %v20221_v41, 1  ;;  %v9894_v44 = vrot.slane %v20223_v29, 1  ;;  %v10280_v42 = vsel %vm3503_vm6, %v20178_v28, 0 }
 0x665   : > { %9733 = vst.msk [vmem:[#allocation3 + $0x21] sm:$0xff] %vm687_vm5, %v9701_v35  ;;  %9738 = vst.msk [vmem:[#allocation3 + $0x61] sm:$0xff] %vm687_vm5, %v9706_v16  ;;  %v9668_v60 = vmul.f32 %v20193_v22, %v9629_v4  ;;  %v9627_v0 = vmax.f32 %v9515_v19, 0.0 }
 0x666   : > { %9736 = vst.msk [vmem:[#allocation3 + $0x49] sm:$0xff] %vm687_vm5, %v9704_v27  ;;  %v9893_v12 = vsel %vm967_vm3, %v9891_v25, %v9892_v49  ;;  %v9895_v6 = vsel %vm967_vm3, %v9892_v49, %v9894_v44 }
 0x667   : > { %v9707_v54 = vadd.f32 %v20207_v32, %v9668_v60  ;;  %v9666_v1 = vmul.f32 %v20193_v22, %v9627_v0  ;;  %v10003_v45 = vpack.c.bf16 %v9895_v6, %v9893_v12 }
 0x669   : > { %9739 = vst.msk [vmem:[#allocation3 + $0x69] sm:$0xff] %vm687_vm5, %v9707_v54  ;;  %v9705_v23 = vadd.f32 %v20207_v32, %v9666_v1  ;;  %14078 = vmatprep.mubr.msk.bf16.mxu1 %vm687_vm5, %v10003_v45 }
 0x66a   : > { %v20250_v50 = vld [vmem:[#allocation3 + $0x30] sm:$0xff] }
 0x66b   : > { %9737 = vst.msk [vmem:[#allocation3 + $0x51] sm:$0xff] %vm687_vm5, %v9705_v23  ;;  %v20253_v43 = vld [vmem:[#allocation3 + $0x18] sm:$0xff]  ;;  %v20264_v59 = vld [vmem:[#allocation3 + $0x40] sm:$0x3]  ;;  %v9901_v2 = vrot.slane %v20250_v50, 1 }
 0x66c   : > { %v20255_v52 = vld [vmem:[#allocation3 + $0x20] sm:$0xff]  ;;  %v20257_v7 = vld [vmem:[#allocation3 + $0x28] sm:$0x3]  ;;  %v9896_v51 = vrot.slane %v20253_v43, 1  ;;  %v20262_v3 = vld [vmem:[#allocation3 + $0x38] sm:$0xff]  ;;  %v9904_v55 = vrot.slane %v20264_v59, 1 }
 0x66d   : > { %v9897_v40 = vrot.slane %v20255_v52, 1  ;;  %v9899_v34 = vrot.slane %v20257_v7, 1  ;;  %v9902_v53 = vrot.slane %v20262_v3, 1  ;;  %v20277_v46 = vld [vmem:[#allocation3 + $0x48] sm:$0xff]  ;;  %v20281_v61 = vld [vmem:[#allocation3 + $0x60] sm:$0xff] }
 0x66e   : > { %v9906_v4 = vrot.slane %v20277_v46, 1  ;;  %v9911_v27 = vrot.slane %v20281_v61, 1 }
 0x66f   : > { %v9898_v30 = vsel %vm967_vm3, %v9896_v51, %v9897_v40  ;;  %v9900_v18 = vsel %vm967_vm3, %v9897_v40, %v9899_v34  ;;  %v9903_v33 = vsel %vm967_vm3, %v9901_v2, %v9902_v53  ;;  %v9905_v47 = vsel %vm967_vm3, %v9902_v53, %v9904_v55 }
 0x670   : > { %v20271_v57 = vpack.c.bf16 %v9900_v18, %v9898_v30  ;;  %v20279_v31 = vpack.c.bf16 %v9905_v47, %v9903_v33  ;;  %v20283_v10 = vld [vmem:[#allocation3 + $0x68] sm:$0xff]  ;;  %v20285_v9 = vld [vmem:[#allocation3 + $0x70] sm:$0x3] }
 0x671   : > { %v9912_v35 = vrot.slane %v20283_v10, 1  ;;  %v9914_v28 = vrot.slane %v20285_v9, 1 }
 0x672   : > { %14079 = vmatmul.mubr.msk.bf16.vlgmr.msra.gmra.mrb[16].mxu1 %vm687_vm5, %v20271_v57  ;;  %v20293_v56 = vld [vmem:[#allocation3 + $0x50] sm:$0xff]  ;;  %v20295_v16 = vld [vmem:[#allocation3 + $0x58] sm:$0x3] }
 0x673   : > { %14111 = vmatpush3.bf16.msra.mxu1 %v10280_v42  ;;  %14082 = vmatprep.mubr.msk.bf16.mxu1 %vm687_vm5, %v20279_v31  ;;  %v9907_v19 = vrot.slane %v20293_v56, 1  ;;  %v9909_v25 = vrot.slane %v20295_v16, 1  ;;  %v9913_v60 = vsel %vm967_vm3, %v9911_v27, %v9912_v35  ;;  %v9915_v0 = vsel %vm967_vm3, %v9912_v35, %v9914_v28 }
 0x674   : > { %v20307_v6 = vpack.c.bf16 %v9915_v0, %v9913_v60 }
 0x675   : > { %v9908_v49 = vsel %vm967_vm3, %v9906_v4, %v9907_v19  ;;  %v9910_v44 = vsel %vm967_vm3, %v9907_v19, %v9909_v25 }
 0x676   : > { %v20305_v12 = vpack.c.bf16 %v9910_v44, %v9908_v49 }
 0x67a   : > { %14083 = vmatmul.mubr.msk.bf16.gmra.mrb[20].mxu1 %vm687_vm5, %v20305_v12 }
 0x67b   : > { %14086 = vmatprep.mubr.msk.bf16.mxu1 %vm687_vm5, %v20307_v6 }
 0x67c   : > { %v14054_v54 = vpop.f32.mrb[40].mxu1 }
 0x67d   : > { %v9536_v1 = vadd.f32 %v14054_v54, %v20173_v24  ;;  %v9527_v45 = vpop.f32.mrb[41].mxu1 }
 0x67e   : > { %v9528_v23 = vadd.f32 %v20173_v24, %v9527_v45  ;;  %v14055_v51 = vpop.f32.mrb[42].mxu1 }
 0x67f   : > { %v9632_v40 = vmax.f32 %v9536_v1, 0.0  ;;  %v9539_v34 = vadd.f32 %v14055_v51, %v20173_v24  ;;  %v9530_v2 = vpop.f32.mrb[43].mxu1 }
 0x680   : > { %v9630_v53 = vmax.f32 %v9528_v23, 0.0  ;;  %v9531_v55 = vadd.f32 %v20173_v24, %v9530_v2 }
 0x681   : > { %v9671_v30 = vmul.f32 %v20193_v22, %v9632_v40  ;;  %v9633_v18 = vmax.f32 %v9539_v34, 0.0 }
 0x682   : > { %v9669_v42 = vmul.f32 %v20193_v22, %v9630_v53  ;;  %v9631_v33 = vmax.f32 %v9531_v55, 0.0 }
 0x683   : > { %v9710_v47 = vadd.f32 %v20207_v32, %v9671_v30  ;;  %v9672_v35 = vmul.f32 %v20193_v22, %v9633_v18 }
 0x684   : > { %v9708_v28 = vadd.f32 %v20207_v32, %v9669_v42  ;;  %v9670_v4 = vmul.f32 %v20193_v22, %v9631_v33  ;;  %v20361_v33 = vpack.c.bf16 %v20262_v3, %v20250_v50 }
 0x685   : > { %9742 = vst.msk [vmem:[#allocation3 + $0x91] sm:$0xff] %vm687_vm5, %v9710_v47  ;;  %v9711_v19 = vadd.f32 %v20207_v32, %v9672_v35  ;;  %v10453_v47 = vrot.slane %v20250_v50, 2  ;;  %v10454_v35 = vrot.slane %v20262_v3, 2 }
 0x686   : > { %9740 = vst.msk [vmem:[#allocation3 + $0x79] sm:$0xff] %vm687_vm5, %v9708_v28  ;;  %v9709_v25 = vadd.f32 %v20207_v32, %v9670_v4  ;;  %v10456_v28 = vrot.slane %v20264_v59, 2  ;;  %v20368_v4 = vpack.c.bf16 %v20255_v52, %v20253_v43 }
 0x687   : > { %9743 = vst.msk [vmem:[#allocation3 + $0x99] sm:$0xff] %vm687_vm5, %v9711_v19  ;;  %v10448_v19 = vrot.slane %v20253_v43, 2  ;;  %v10463_v43 = vrot.slane %v20281_v61, 2 }
 0x688   : > { %9741 = vst.msk [vmem:[#allocation3 + $0x81] sm:$0xff] %vm687_vm5, %v9709_v25  ;;  %v10449_v25 = vrot.slane %v20255_v52, 2  ;;  %v10464_v52 = vrot.slane %v20283_v10, 2 }
 0x68a   : > { %v10450_v50 = vsel %vm1521_vm4, %v10448_v19, %v10449_v25 }
 0x68c   : > { %v20329_v27 = vld [vmem:[#allocation3 + $0x90] sm:$0xff] }
 0x68d   : > { %v20331_v49 = vld [vmem:[#allocation3 + $0x78] sm:$0xff]  ;;  %v9921_v1 = vrot.slane %v20329_v27, 1 }
 0x68e   : > { %v20333_v44 = vld [vmem:[#allocation3 + $0x98] sm:$0xff]  ;;  %v20335_v60 = vld [vmem:[#allocation3 + $0xa0] sm:$0x3]  ;;  %v9916_v51 = vrot.slane %v20331_v49, 1 }
 0x68f   : > { %v20337_v0 = vld [vmem:[#allocation3 + $0x80] sm:$0xff]  ;;  %v20339_v54 = vld [vmem:[#allocation3 + $0x88] sm:$0x3]  ;;  %v9922_v45 = vrot.slane %v20333_v44, 1  ;;  %v9924_v23 = vrot.slane %v20335_v60, 1 }
 0x690   : > { %v9917_v40 = vrot.slane %v20337_v0, 1  ;;  %v9919_v34 = vrot.slane %v20339_v54, 1 }
 0x691   : > { %v9923_v2 = vsel %vm967_vm3, %v9921_v1, %v9922_v45  ;;  %v9925_v53 = vsel %vm967_vm3, %v9922_v45, %v9924_v23  ;;  %v10451_v1 = vrot.slane %v20257_v7, 2  ;;  %v10455_v45 = vsel %vm1521_vm4, %v10453_v47, %v10454_v35 }
 0x692   : > { %v9918_v55 = vsel %vm967_vm3, %v9916_v51, %v9917_v40  ;;  %v9920_v30 = vsel %vm967_vm3, %v9917_v40, %v9919_v34  ;;  %v20353_v42 = vpack.c.bf16 %v9925_v53, %v9923_v2  ;;  %v10457_v23 = vsel %vm1521_vm4, %v10454_v35, %v10456_v28 }
 0x693   : > { %v20351_v18 = vpack.c.bf16 %v9920_v30, %v9918_v55  ;;  %v10452_v3 = vsel %vm1521_vm4, %v10449_v25, %v10451_v1  ;;  %v20377_v51 = vpack.c.bf16 %v10457_v23, %v10455_v45  ;;  %v20383_v40 = vpack.c.bf16 %v20283_v10, %v20281_v61 }
 0x694   : > { %v20379_v59 = vpack.c.bf16 %v10452_v3, %v10450_v50  ;;  %v10466_v7 = vrot.slane %v20285_v9, 2  ;;  %v20390_v34 = vpack.c.bf16 %v20293_v56, %v20277_v46  ;;  %v10458_v2 = vrot.slane %v20277_v46, 2 }
 0x695   : > { %14087 = vmatmul.mubr.msk.bf16.gmra.mrb[24].mxu1 %vm687_vm5, %v20351_v18  ;;  %v10459_v53 = vrot.slane %v20293_v56, 2  ;;  %v10461_v55 = vrot.slane %v20295_v16, 2  ;;  %v10465_v47 = vsel %vm1521_vm4, %v10463_v43, %v10464_v52 }
 0x696   : > { %14090 = vmatprep.mubr.msk.bf16.mxu1 %vm687_vm5, %v20353_v42  ;;  %v10467_v35 = vsel %vm1521_vm4, %v10464_v52, %v10466_v7  ;;  %v10468_v52 = vrot.slane %v20331_v49, 2  ;;  %v10473_v7 = vrot.slane %v20329_v27, 2 }
 0x697   : > { %v10460_v9 = vsel %vm1521_vm4, %v10458_v2, %v10459_v53  ;;  %v10462_v28 = vsel %vm1521_vm4, %v10459_v53, %v10461_v55  ;;  %v20400_v19 = vpack.c.bf16 %v10467_v35, %v10465_v47  ;;  %v20413_v55 = vpack.c.bf16 %v20333_v44, %v20329_v27 }
 0x698   : > { %v20403_v56 = vpack.c.bf16 %v10462_v28, %v10460_v9 }
 0x6a5   : > { %v14058_v30 = vpop.f32.mrb[44].mxu1 }
 0x6a6   : > { %v9552_v61 = vadd.f32 %v14058_v30, %v20173_v24  ;;  %v9543_v10 = vpop.f32.mrb[45].mxu1  ;;  %v10474_v30 = vrot.slane %v20333_v44, 2 }
 0x6a7   : > { %v9544_v46 = vadd.f32 %v20173_v24, %v9543_v10  ;;  %v14059_v25 = vpop.f32.mrb[46].mxu1  ;;  %v10469_v10 = vrot.slane %v20337_v0, 2 }
 0x6a8   : > { %v9636_v16 = vmax.f32 %v9552_v61, 0.0  ;;  %v9555_v1 = vadd.f32 %v14059_v25, %v20173_v24  ;;  %v9546_v45 = vpop.f32.mrb[47].mxu1  ;;  %v20420_v61 = vpack.c.bf16 %v20337_v0, %v20331_v49  ;;  %v10475_v27 = vsel %vm1521_vm4, %v10473_v7, %v10474_v30 }
 0x6a9   : > { %v9634_v23 = vmax.f32 %v9544_v46, 0.0  ;;  %v9547_v50 = vadd.f32 %v20173_v24, %v9546_v45  ;;  %v10471_v46 = vrot.slane %v20339_v54, 2  ;;  %v10470_v25 = vsel %vm1521_vm4, %v10468_v52, %v10469_v10 }
 0x6aa   : > { %v9675_v3 = vmul.f32 %v20193_v22, %v9636_v16  ;;  %v9637_v43 = vmax.f32 %v9555_v1, 0.0  ;;  %v10476_v16 = vrot.slane %v20335_v60, 2 }
 0x6ab   : > { %v9673_v2 = vmul.f32 %v20193_v22, %v9634_v23  ;;  %v9635_v53 = vmax.f32 %v9547_v50, 0.0  ;;  %v10472_v0 = vsel %vm1521_vm4, %v10469_v10, %v10471_v46 }
 0x6ac   : > { %v9714_v47 = vadd.f32 %v20207_v32, %v9675_v3  ;;  %v9676_v35 = vmul.f32 %v20193_v22, %v9637_v43  ;;  %v20435_v1 = vpack.c.bf16 %v10472_v0, %v10470_v25  ;;  %v10477_v54 = vsel %vm1521_vm4, %v10474_v30, %v10476_v16 }
 0x6ad   : > { %v9712_v9 = vadd.f32 %v20207_v32, %v9673_v2  ;;  %v9674_v28 = vmul.f32 %v20193_v22, %v9635_v53  ;;  %v20439_v45 = vpack.c.bf16 %v10477_v54, %v10475_v27 }
 0x6ae   : > { %9746 = vst.msk [vmem:[#allocation3 + $0xc1] sm:$0xff] %vm687_vm5, %v9714_v47  ;;  %v9715_v44 = vadd.f32 %v20207_v32, %v9676_v35 }
 0x6af   : > { %9744 = vst.msk [vmem:[#allocation3 + $0xa9] sm:$0xff] %vm687_vm5, %v9712_v9  ;;  %v9713_v49 = vadd.f32 %v20207_v32, %v9674_v28 }
 0x6b0   : > { %9747 = vst.msk [vmem:[#allocation3 + $0xc9] sm:$0xff] %vm687_vm5, %v9715_v44 }
 0x6b1   : > { %9745 = vst.msk [vmem:[#allocation3 + $0xb1] sm:$0xff] %vm687_vm5, %v9713_v49 }
 0x6b5   : > { %v9788_v23 = vld [vmem:[#allocation3 + $0xc0] sm:$0xff] }
 0x6b6   : > { %v9785_v50 = vld [vmem:[#allocation3 + $0xa8] sm:$0xff]  ;;  %v9931_v3 = vrot.slane %v9788_v23, 1  ;;  %v10483_v2 = vrot.slane %v9788_v23, 2 }
 0x6b7   : > { %v9926_v60 = vrot.slane %v9785_v50, 1  ;;  %v9789_v43 = vld [vmem:[#allocation3 + $0xc8] sm:$0xff]  ;;  %v9790_v52 = vld [vmem:[#allocation3 + $0xd0] sm:$0x3]  ;;  %v10478_v7 = vrot.slane %v9785_v50, 2 }
 0x6b8   : > { %v9786_v53 = vld [vmem:[#allocation3 + $0xb0] sm:$0xff]  ;;  %v9787_v47 = vld [vmem:[#allocation3 + $0xb8] sm:$0x3]  ;;  %v9932_v35 = vrot.slane %v9789_v43, 1  ;;  %v9934_v10 = vrot.slane %v9790_v52, 1  ;;  %v20441_v9 = vpack.c.bf16 %v9789_v43, %v9788_v23  ;;  %v10484_v28 = vrot.slane %v9789_v43, 2 }
 0x6b9   : > { %v9927_v30 = vrot.slane %v9786_v53, 1  ;;  %v9929_v46 = vrot.slane %v9787_v47, 1  ;;  %v20443_v44 = vpack.c.bf16 %v9786_v53, %v9785_v50  ;;  %v10479_v27 = vrot.slane %v9786_v53, 2 }
 0x6ba   : > { %v9933_v25 = vsel %vm967_vm3, %v9931_v3, %v9932_v35  ;;  %v9935_v16 = vsel %vm967_vm3, %v9932_v35, %v9934_v10  ;;  %v10481_v49 = vrot.slane %v9787_v47, 2  ;;  %v10485_v0 = vsel %vm1521_vm4, %v10483_v2, %v10484_v28 }
 0x6bb   : > { %v9928_v54 = vsel %vm967_vm3, %v9926_v60, %v9927_v30  ;;  %v9930_v63 = vsel %vm967_vm3, %v9927_v30, %v9929_v46  ;;  %v10480_v23 = vsel %vm1521_vm4, %v10478_v7, %v10479_v27  ;;  %v10486_v50 = vrot.slane %v9790_v52, 2 }
 0x6bc   : > { %v20451_v39 = vpack.c.bf16 %v9930_v63, %v9928_v54  ;;  %v10482_v43 = vsel %vm1521_vm4, %v10479_v27, %v10481_v49  ;;  %v20454_v62 = vpack.c.bf16 %v9935_v16, %v9933_v25 }
 0x6bd   : > { %v20456_v53 = vpack.c.bf16 %v10482_v43, %v10480_v23  ;;  %v10487_v3 = vsel %vm1521_vm4, %v10484_v28, %v10486_v50  ;;  %v20476_v23 = vld [vmem:[%s21170_s16 + $0x8] sm:$0xf] }
 0x6be   : > { %21488 = vst [vmem:[#allocation41_spill] sm:$0xff] %v20454_v62  ;;  %14091 = vmatmul.mubr.msk.bf16.gmra.mrb[28].mxu1 %vm687_vm5, %v20451_v39  ;;  %v20463_v60 = vpack.c.bf16 %v10487_v3, %v10485_v0  ;;  %15207 = vmatprep.subr.msk.bf16.mxu1 %vm3503_vm6, %v20476_v23 }
 0x6bf   : > { %14094 = vmatprep.mubr.msk.bf16.mxu1 %vm687_vm5, %v20454_v62 }
 0x6c9   : > { %v14062_v7 = vpop.f32.mrb[48].mxu1 }
 0x6ca   : > { %v9568_v63 = vadd.f32 %v14062_v7, %v20173_v24  ;;  %v9559_v2 = vpop.f32.mrb[49].mxu1 }
 0x6cb   : > { %v9560_v52 = vadd.f32 %v20173_v24, %v9559_v2  ;;  %v14063_v47 = vpop.f32.mrb[50].mxu1 }
 0x6cc   : > { %v9640_v35 = vmax.f32 %v9568_v63, 0.0  ;;  %v9571_v10 = vadd.f32 %v14063_v47, %v20173_v24  ;;  %v9562_v30 = vpop.f32.mrb[51].mxu1 }
 0x6cd   : > { %v9638_v46 = vmax.f32 %v9560_v52, 0.0  ;;  %v9563_v27 = vadd.f32 %v20173_v24, %v9562_v30 }
 0x6ce   : > { %v9679_v28 = vmul.f32 %v20193_v22, %v9640_v35  ;;  %v9641_v25 = vmax.f32 %v9571_v10, 0.0 }
 0x6cf   : > { %v9677_v16 = vmul.f32 %v20193_v22, %v9638_v46  ;;  %v9639_v49 = vmax.f32 %v9563_v27, 0.0 }
 0x6d0   : > { %v9718_v0 = vadd.f32 %v20207_v32, %v9679_v28  ;;  %v9680_v54 = vmul.f32 %v20193_v22, %v9641_v25 }
 0x6d1   : > { %v9716_v43 = vadd.f32 %v20207_v32, %v9677_v16  ;;  %v9678_v50 = vmul.f32 %v20193_v22, %v9639_v49 }
 0x6d2   : > { %9750 = vst.msk [vmem:[#allocation3 + $0xf1] sm:$0xff] %vm687_vm5, %v9718_v0  ;;  %v9719_v3 = vadd.f32 %v20207_v32, %v9680_v54 }
 0x6d3   : > { %9748 = vst.msk [vmem:[#allocation3 + $0xd9] sm:$0xff] %vm687_vm5, %v9716_v43  ;;  %v9717_v7 = vadd.f32 %v20207_v32, %v9678_v50 }
 0x6d4   : > { %9751 = vst.msk [vmem:[#allocation3 + $0xf9] sm:$0xff] %vm687_vm5, %v9719_v3 }
 0x6d5   : > { %9749 = vst.msk [vmem:[#allocation3 + $0xe1] sm:$0xff] %vm687_vm5, %v9717_v7 }
 0x6d9   : > { %v9794_v63 = vld [vmem:[#allocation3 + $0xf0] sm:$0xff] }
 0x6da   : > { %v9791_v2 = vld [vmem:[#allocation3 + $0xd8] sm:$0xff]  ;;  %v9941_v52 = vrot.slane %v9794_v63, 1  ;;  %v10493_v46 = vrot.slane %v9794_v63, 2 }
 0x6db   : > { %v9936_v47 = vrot.slane %v9791_v2, 1  ;;  %v9795_v35 = vld [vmem:[#allocation3 + $0xf8] sm:$0xff]  ;;  %v9796_v10 = vld [vmem:[#allocation3 + $0x100] sm:$0x3]  ;;  %v10488_v30 = vrot.slane %v9791_v2, 2 }
 0x6dc   : > { %v9792_v27 = vld [vmem:[#allocation3 + $0xe0] sm:$0xff]  ;;  %v9793_v28 = vld [vmem:[#allocation3 + $0xe8] sm:$0x3]  ;;  %v9942_v25 = vrot.slane %v9795_v35, 1  ;;  %v9944_v16 = vrot.slane %v9796_v10, 1  ;;  %v20488_v49 = vpack.c.bf16 %v9795_v35, %v9794_v63  ;;  %v10494_v0 = vrot.slane %v9795_v35, 2 }
 0x6dd   : > { %v9937_v54 = vrot.slane %v9792_v27, 1  ;;  %v9939_v43 = vrot.slane %v9793_v28, 1  ;;  %v20490_v50 = vpack.c.bf16 %v9792_v27, %v9791_v2  ;;  %v10489_v3 = vrot.slane %v9792_v27, 2 }
 0x6de   : > { %v9943_v7 = vsel %vm967_vm3, %v9941_v52, %v9942_v25  ;;  %v9945_v11 = vsel %vm967_vm3, %v9942_v25, %v9944_v16  ;;  %v10491_v14 = vrot.slane %v9793_v28, 2  ;;  %v10495_v5 = vsel %vm1521_vm4, %v10493_v46, %v10494_v0 }
 0x6df   : > { %v9938_v8 = vsel %vm967_vm3, %v9936_v47, %v9937_v54  ;;  %v9940_v13 = vsel %vm967_vm3, %v9937_v54, %v9939_v43  ;;  %v10490_v63 = vsel %vm1521_vm4, %v10488_v30, %v10489_v3  ;;  %v10496_v2 = vrot.slane %v9796_v10, 2 }
 0x6e0   : > { %v20498_v38 = vpack.c.bf16 %v9940_v13, %v9938_v8  ;;  %v10492_v35 = vsel %vm1521_vm4, %v10489_v3, %v10491_v14  ;;  %v20501_v37 = vpack.c.bf16 %v9945_v11, %v9943_v7 }
 0x6e1   : > { %v20503_v27 = vpack.c.bf16 %v10492_v35, %v10490_v63  ;;  %v10497_v52 = vsel %vm1521_vm4, %v10494_v0, %v10496_v2 }
 0x6e2   : > { %21489 = vst [vmem:[#allocation14_spill] sm:$0xff] %v20498_v38  ;;  %21490 = vst [vmem:[#allocation18_spill] sm:$0xff] %v20501_v37  ;;  %14095 = vmatmul.mubr.msk.bf16.gmra.mrb[0].mxu1 %vm687_vm5, %v20498_v38  ;;  %v20510_v47 = vpack.c.bf16 %v10497_v52, %v10495_v5 }
 0x6e3   : > { %14098 = vmatprep.mubr.msk.bf16.mxu1 %vm687_vm5, %v20501_v37 }
 0x6ed   : > { %v14066_v30 = vpop.f32.mrb[52].mxu1 }
 0x6ee   : > { %v9584_v13 = vadd.f32 %v14066_v30, %v20173_v24  ;;  %v9575_v8 = vpop.f32.mrb[53].mxu1 }
 0x6ef   : > { %v9576_v14 = vadd.f32 %v20173_v24, %v9575_v8  ;;  %v14067_v11 = vpop.f32.mrb[54].mxu1 }
 0x6f0   : > { %v9644_v10 = vmax.f32 %v9584_v13, 0.0  ;;  %v9587_v46 = vadd.f32 %v14067_v11, %v20173_v24  ;;  %v9578_v28 = vpop.f32.mrb[55].mxu1 }
 0x6f1   : > { %v9642_v25 = vmax.f32 %v9576_v14, 0.0  ;;  %v9579_v16 = vadd.f32 %v20173_v24, %v9578_v28 }
 0x6f2   : > { %v9683_v0 = vmul.f32 %v20193_v22, %v9644_v10  ;;  %v9645_v54 = vmax.f32 %v9587_v46, 0.0 }
 0x6f3   : > { %v9681_v5 = vmul.f32 %v20193_v22, %v9642_v25  ;;  %v9643_v43 = vmax.f32 %v9579_v16, 0.0 }
 0x6f4   : > { %v9722_v3 = vadd.f32 %v20207_v32, %v9683_v0  ;;  %v9684_v7 = vmul.f32 %v20193_v22, %v9645_v54 }
 0x6f5   : > { %v9720_v63 = vadd.f32 %v20207_v32, %v9681_v5  ;;  %v9682_v35 = vmul.f32 %v20193_v22, %v9643_v43 }
 0x6f6   : > { %9754 = vst.msk [vmem:[#allocation3 + $0x121] sm:$0xff] %vm687_vm5, %v9722_v3  ;;  %v9723_v2 = vadd.f32 %v20207_v32, %v9684_v7 }
 0x6f7   : > { %9752 = vst.msk [vmem:[#allocation3 + $0x109] sm:$0xff] %vm687_vm5, %v9720_v63  ;;  %v9721_v52 = vadd.f32 %v20207_v32, %v9682_v35 }
 0x6f8   : > { %9755 = vst.msk [vmem:[#allocation3 + $0x129] sm:$0xff] %vm687_vm5, %v9723_v2 }
 0x6f9   : > { %9753 = vst.msk [vmem:[#allocation3 + $0x111] sm:$0xff] %vm687_vm5, %v9721_v52 }
 0x6fd   : > { %v9800_v30 = vld [vmem:[#allocation3 + $0x120] sm:$0xff] }
 0x6fe   : > { %v9797_v13 = vld [vmem:[#allocation3 + $0x108] sm:$0xff]  ;;  %v9951_v8 = vrot.slane %v9800_v30, 1  ;;  %v10503_v28 = vrot.slane %v9800_v30, 2 }
 0x6ff   : > { %v9946_v14 = vrot.slane %v9797_v13, 1  ;;  %v9801_v11 = vld [vmem:[#allocation3 + $0x128] sm:$0xff]  ;;  %v9802_v10 = vld [vmem:[#allocation3 + $0x130] sm:$0x3]  ;;  %v10498_v46 = vrot.slane %v9797_v13, 2 }
 0x700   : > { %v9798_v25 = vld [vmem:[#allocation3 + $0x110] sm:$0xff]  ;;  %v9799_v16 = vld [vmem:[#allocation3 + $0x118] sm:$0x3]  ;;  %v9952_v0 = vrot.slane %v9801_v11, 1  ;;  %v9954_v54 = vrot.slane %v9802_v10, 1  ;;  %v20528_v5 = vpack.c.bf16 %v9801_v11, %v9800_v30  ;;  %v10504_v43 = vrot.slane %v9801_v11, 2 }
 0x701   : > { %v9947_v3 = vrot.slane %v9798_v25, 1  ;;  %v9949_v7 = vrot.slane %v9799_v16, 1  ;;  %v20530_v63 = vpack.c.bf16 %v9798_v25, %v9797_v13  ;;  %v10499_v35 = vrot.slane %v9798_v25, 2 }
 0x702   : > { %v9953_v2 = vsel %vm967_vm3, %v9951_v8, %v9952_v0  ;;  %v9955_v52 = vsel %vm967_vm3, %v9952_v0, %v9954_v54  ;;  %v10501_v17 = vrot.slane %v9799_v16, 2  ;;  %v10505_v15 = vsel %vm1521_vm4, %v10503_v28, %v10504_v43 }
 0x703   : > { %v9948_v21 = vsel %vm967_vm3, %v9946_v14, %v9947_v3  ;;  %v9950_v48 = vsel %vm967_vm3, %v9947_v3, %v9949_v7  ;;  %v10500_v30 = vsel %vm1521_vm4, %v10498_v46, %v10499_v35  ;;  %v10506_v13 = vrot.slane %v9802_v10, 2 }
 0x704   : > { %v20538_v20 = vpack.c.bf16 %v9950_v48, %v9948_v21  ;;  %v10502_v11 = vsel %vm1521_vm4, %v10499_v35, %v10501_v17  ;;  %v20541_v26 = vpack.c.bf16 %v9955_v52, %v9953_v2 }
 0x705   : > { %v20543_v25 = vpack.c.bf16 %v10502_v11, %v10500_v30  ;;  %v10507_v8 = vsel %vm1521_vm4, %v10504_v43, %v10506_v13 }
 0x706   : > { %21491 = vst [vmem:[#allocation22_spill] sm:$0xff] %v20538_v20  ;;  %21492 = vst [vmem:[#allocation20_spill] sm:$0xff] %v20541_v26  ;;  %14099 = vmatmul.mubr.msk.bf16.gmra.mrb[4].mxu1 %vm687_vm5, %v20538_v20  ;;  %v20550_v14 = vpack.c.bf16 %v10507_v8, %v10505_v15 }
 0x707   : > { %14102 = vmatprep.mubr.msk.bf16.mxu1 %vm687_vm5, %v20541_v26 }
 0x712   : > { %v14070_v46 = vpop.f32.mrb[56].mxu1 }
 0x713   : > { %v9600_v48 = vadd.f32 %v14070_v46, %v20173_v24  ;;  %v9591_v21 = vpop.f32.mrb[57].mxu1 }
 0x714   : > { %v9592_v17 = vadd.f32 %v20173_v24, %v9591_v21  ;;  %v14071_v10 = vpop.f32.mrb[58].mxu1 }
 0x715   : > { %v9648_v28 = vmax.f32 %v9600_v48, 0.0  ;;  %v9603_v16 = vadd.f32 %v14071_v10, %v20173_v24  ;;  %v9594_v0 = vpop.f32.mrb[59].mxu1 }
 0x716   : > { %v9646_v54 = vmax.f32 %v9592_v17, 0.0  ;;  %v9595_v3 = vadd.f32 %v20173_v24, %v9594_v0 }
 0x717   : > { %v9687_v43 = vmul.f32 %v20193_v22, %v9648_v28  ;;  %v9649_v7 = vmax.f32 %v9603_v16, 0.0 }
 0x718   : > { %v9685_v15 = vmul.f32 %v20193_v22, %v9646_v54  ;;  %v9647_v35 = vmax.f32 %v9595_v3, 0.0 }
 0x719   : > { %v9726_v2 = vadd.f32 %v20207_v32, %v9687_v43  ;;  %v9688_v52 = vmul.f32 %v20193_v22, %v9649_v7 }
 0x71a   : > { %v9724_v30 = vadd.f32 %v20207_v32, %v9685_v15  ;;  %v9686_v11 = vmul.f32 %v20193_v22, %v9647_v35 }
 0x71b   : > { %9758 = vst.msk [vmem:[#allocation3 + $0x151] sm:$0xff] %vm687_vm5, %v9726_v2  ;;  %v9727_v13 = vadd.f32 %v20207_v32, %v9688_v52 }
 0x71c   : > { %9756 = vst.msk [vmem:[#allocation3 + $0x139] sm:$0xff] %vm687_vm5, %v9724_v30  ;;  %v9725_v8 = vadd.f32 %v20207_v32, %v9686_v11 }
 0x71d   : > { %9759 = vst.msk [vmem:[#allocation3 + $0x159] sm:$0xff] %vm687_vm5, %v9727_v13 }
 0x71e   : > { %9757 = vst.msk [vmem:[#allocation3 + $0x141] sm:$0xff] %vm687_vm5, %v9725_v8 }
 0x722   : > { %v9806_v46 = vld [vmem:[#allocation3 + $0x150] sm:$0xff] }
 0x723   : > { %v9803_v48 = vld [vmem:[#allocation3 + $0x138] sm:$0xff]  ;;  %v9961_v21 = vrot.slane %v9806_v46, 1  ;;  %v10513_v0 = vrot.slane %v9806_v46, 2 }
 0x724   : > { %v9956_v17 = vrot.slane %v9803_v48, 1  ;;  %v9807_v10 = vld [vmem:[#allocation3 + $0x158] sm:$0xff]  ;;  %v9808_v28 = vld [vmem:[#allocation3 + $0x160] sm:$0x3]  ;;  %v10508_v16 = vrot.slane %v9803_v48, 2 }
 0x725   : > { %v9804_v54 = vld [vmem:[#allocation3 + $0x140] sm:$0xff]  ;;  %v9805_v3 = vld [vmem:[#allocation3 + $0x148] sm:$0x3]  ;;  %v9962_v43 = vrot.slane %v9807_v10, 1  ;;  %v9964_v7 = vrot.slane %v9808_v28, 1  ;;  %v20568_v15 = vpack.c.bf16 %v9807_v10, %v9806_v46  ;;  %v10514_v35 = vrot.slane %v9807_v10, 2 }
 0x726   : > { %v9957_v2 = vrot.slane %v9804_v54, 1  ;;  %v9959_v52 = vrot.slane %v9805_v3, 1  ;;  %v20570_v30 = vpack.c.bf16 %v9804_v54, %v9803_v48  ;;  %v10509_v11 = vrot.slane %v9804_v54, 2 }
 0x727   : > { %v9963_v13 = vsel %vm967_vm3, %v9961_v21, %v9962_v43  ;;  %v9965_v8 = vsel %vm967_vm3, %v9962_v43, %v9964_v7  ;;  %v10511_v36 = vrot.slane %v9805_v3, 2  ;;  %v10515_v26 = vsel %vm1521_vm4, %v10513_v0, %v10514_v35 }
 0x728   : > { %v9958_v20 = vsel %vm967_vm3, %v9956_v17, %v9957_v2  ;;  %v9960_v37 = vsel %vm967_vm3, %v9957_v2, %v9959_v52  ;;  %v10510_v46 = vsel %vm1521_vm4, %v10508_v16, %v10509_v11  ;;  %v10516_v48 = vrot.slane %v9808_v28, 2 }
 0x729   : > { %v20578_v38 = vpack.c.bf16 %v9960_v37, %v9958_v20  ;;  %v10512_v10 = vsel %vm1521_vm4, %v10509_v11, %v10511_v36  ;;  %v20581_v62 = vpack.c.bf16 %v9965_v8, %v9963_v13 }
 0x72a   : > { %v20583_v54 = vpack.c.bf16 %v10512_v10, %v10510_v46  ;;  %v10517_v21 = vsel %vm1521_vm4, %v10514_v35, %v10516_v48 }
 0x72b   : > { %14103 = vmatmul.mubr.msk.bf16.gmra.mrb[8].mxu1 %vm687_vm5, %v20578_v38  ;;  %v20590_v17 = vpack.c.bf16 %v10517_v21, %v10515_v26 }
 0x72c   : > { %14106 = vmatprep.mubr.msk.bf16.mxu1 %vm687_vm5, %v20581_v62 }
 0x736   : > { %v14074_v16 = vpop.f32.mrb[60].mxu1 }
 0x737   : > { %v9616_v20 = vadd.f32 %v14074_v16, %v20173_v24  ;;  %v9607_v37 = vpop.f32.mrb[61].mxu1 }
 0x738   : > { %v9608_v36 = vadd.f32 %v20173_v24, %v9607_v37  ;;  %v14075_v28 = vpop.f32.mrb[62].mxu1 }
 0x739   : > { %v9652_v0 = vmax.f32 %v9616_v20, 0.0  ;;  %v9619_v3 = vadd.f32 %v14075_v28, %v20173_v24  ;;  %v9610_v43 = vpop.f32.mrb[63].mxu1 }
 0x73a   : > { %v9650_v7 = vmax.f32 %v9608_v36, 0.0  ;;  %v9611_v2 = vadd.f32 %v20173_v24, %v9610_v43 }
 0x73b   : > { %v9691_v35 = vmul.f32 %v20193_v22, %v9652_v0  ;;  %v9653_v52 = vmax.f32 %v9619_v3, 0.0 }
 0x73c   : > { %v9689_v26 = vmul.f32 %v20193_v22, %v9650_v7  ;;  %v9651_v11 = vmax.f32 %v9611_v2, 0.0 }
 0x73d   : > { %v9730_v13 = vadd.f32 %v20207_v32, %v9691_v35  ;;  %v9692_v8 = vmul.f32 %v20193_v22, %v9653_v52 }
 0x73e   : > { %v9728_v46 = vadd.f32 %v20207_v32, %v9689_v26  ;;  %v9690_v10 = vmul.f32 %v20193_v22, %v9651_v11 }
 0x73f   : > { %9762 = vst.msk [vmem:[#allocation3 + $0x181] sm:$0xff] %vm687_vm5, %v9730_v13  ;;  %v9731_v48 = vadd.f32 %v20207_v32, %v9692_v8  ;;  %v9827_v8 = vpack.c.bf16 %v20221_v41, %v20216_v58 }
 0x740   : > { %9760 = vst.msk [vmem:[#allocation3 + $0x169] sm:$0xff] %vm687_vm5, %v9728_v46  ;;  %v9729_v24 = vadd.f32 %v20207_v32, %v9690_v10 }
 0x741   : > { %9763 = vst.msk [vmem:[#allocation3 + $0x189] sm:$0xff] %vm687_vm5, %v9731_v48 }
 0x742   : > { %9761 = vst.msk [vmem:[#allocation3 + $0x171] sm:$0xff] %vm687_vm5, %v9729_v24 }
 0x746   : > { %v20608_v21 = vld [vmem:[#allocation3 + $0x180] sm:$0xff] }
 0x747   : > { %v9809_v16 = vld [vmem:[#allocation3 + $0x168] sm:$0xff]  ;;  %v11225_v37 = vrot.slane %v20608_v21, 2 }
 0x748   : > { %v20610_v20 = vld [vmem:[#allocation3 + $0x188] sm:$0xff]  ;;  %v9966_v28 = vrot.slane %v9809_v16, 1  ;;  %v10518_v0 = vrot.slane %v9809_v16, 2  ;;  %v20616_v35 = vld [vmem:[#allocation3 + $0x190] sm:$0x3] }
 0x749   : > { %v9810_v22 = vld [vmem:[#allocation3 + $0x170] sm:$0xff]  ;;  %v9811_v36 = vld [vmem:[#allocation3 + $0x178] sm:$0x3]  ;;  %v11226_v3 = vrot.slane %v20610_v20, 2  ;;  %v11228_v24 = vrot.slane %v20616_v35, 2 }
 0x74a   : > { %v9967_v43 = vrot.slane %v9810_v22, 1  ;;  %v9969_v7 = vrot.slane %v9811_v36, 1  ;;  %v20614_v32 = vpack.c.bf16 %v9810_v22, %v9809_v16  ;;  %v10519_v2 = vrot.slane %v9810_v22, 2 }
 0x74b   : > { %v10521_v52 = vrot.slane %v9811_v36, 2  ;;  %v11227_v26 = vsel %vm1521_vm4, %v11225_v37, %v11226_v3  ;;  %v11229_v37 = vsel %vm1521_vm4, %v11226_v3, %v11228_v24  ;;  %v10620_v36 = vsel %vm3503_vm6, %v20476_v23, 0 }
 0x74c   : > { %v9968_v11 = vsel %vm967_vm3, %v9966_v28, %v9967_v43  ;;  %v9970_v13 = vsel %vm967_vm3, %v9967_v43, %v9969_v7  ;;  %v10520_v46 = vsel %vm1521_vm4, %v10518_v0, %v10519_v2  ;;  %v20634_v22 = vpack.c.bf16 %v11229_v37, %v11227_v26  ;;  %v9821_v28 = vld [vmem:[%s21170_s16 + $0xc] sm:$0xf] }
 0x74d   : > { %v20624_v10 = vpack.c.bf16 %v9970_v13, %v9968_v11  ;;  %v10522_v48 = vsel %vm1521_vm4, %v10519_v2, %v10521_v52  ;;  %v10443_v23 = vrot.slane %v20216_v58, 2  ;;  %v10444_v0 = vrot.slane %v20221_v41, 2  ;;  %v9822_v41 = vld [vmem:[%s21170_s16 + $0x10] sm:$0xf]  ;;  %v9823_v52 = vld [vmem:[%s21170_s16 + $0x14] sm:$0xf] }
 0x74e   : > { %v20628_v16 = vpack.c.bf16 %v10522_v48, %v10520_v46  ;;  %v10446_v3 = vrot.slane %v20223_v29, 2  ;;  %v10820_v58 = vsel %vm3503_vm6, %v9821_v28, 0  ;;  %v11030_v29 = vsel %vm3503_vm6, %v9822_v41, 0  ;;  %v9824_v11 = vld [vmem:[%s21170_s16 + $0x18] sm:$0xf]  ;;  %v21494_v13 = vld [vmem:[#allocation14_spill] sm:$0xff] }
 0x74f   : > { %14107 = vmatmul.mubr.msk.bf16.gmra.mrb[12].mxu1 %vm687_vm5, %v20624_v10  ;;  %v10445_v43 = vsel %vm1521_vm4, %v10443_v23, %v10444_v0  ;;  %v11237_v26 = vsel %vm3503_vm6, %v9823_v52, 0  ;;  %v21496_v46 = vld [vmem:[#allocation22_spill] sm:$0xff]  ;;  %v21497_v48 = vld [vmem:[#allocation20_spill] sm:$0xff]  ;;  %v11019_v24 = vrot.slane %v20610_v20, 1  ;;  %v11021_v37 = vrot.slane %v20616_v35, 1 }
 0x750   : > { %14112 = vmatprep.mubr.msk.bf16.mxu1 %vm687_vm5, %v9827_v8  ;;  %v10447_v7 = vsel %vm1521_vm4, %v10444_v0, %v10446_v3  ;;  %v21495_v8 = vld [vmem:[#allocation18_spill] sm:$0xff]  ;;  %v9826_v35 = vld [vmem:[%s21170_s16 + $0x20] sm:$0xf] }
 0x751   : > { %v10555_v2 = vpack.c.bf16 %v10447_v7, %v10445_v43  ;;  %v11022_v23 = vsel %vm967_vm3, %v11019_v24, %v11021_v37  ;;  %v21504_v37 = vld [vmem:[#allocation23_spill] sm:$0xff] }
 0x757   : > { %14113 = vmatmul.mubr.msk.bf16.vlgmr.msra.gmra.mrb[16].mxu1 %vm687_vm5, %v20368_v4 }
 0x758   : > { %14145 = vmatpush3.bf16.msra.mxu1 %v10620_v36  ;;  %14116 = vmatprep.mubr.msk.bf16.mxu1 %vm687_vm5, %v20361_v33  ;;  %v11018_v36 = vrot.slane %v20608_v21, 1 }
 0x759   : > { %15208 = vmatprep.subr.msk.bf16.mxu1 %vm3503_vm6, %v9821_v28 }
 0x75a   : > { %v11020_v28 = vsel %vm967_vm3, %v11018_v36, %v11019_v24 }
 0x75b   : > { %v20794_v0 = vpack.c.bf16 %v11022_v23, %v11020_v28 }
 0x75f   : > { %14117 = vmatmul.mubr.msk.bf16.gmra.mrb[20].mxu1 %vm687_vm5, %v20390_v34 }
 0x760   : > { %14120 = vmatprep.mubr.msk.bf16.mxu1 %vm687_vm5, %v20383_v40 }
 0x767   : > { %14121 = vmatmul.mubr.msk.bf16.gmra.mrb[24].mxu1 %vm687_vm5, %v20420_v61 }
 0x768   : > { %14124 = vmatprep.mubr.msk.bf16.mxu1 %vm687_vm5, %v20413_v55 }
 0x76f   : > { %14125 = vmatmul.mubr.msk.bf16.gmra.mrb[28].mxu1 %vm687_vm5, %v20443_v44 }
 0x770   : > { %14128 = vmatprep.mubr.msk.bf16.mxu1 %vm687_vm5, %v20441_v9 }
 0x777   : > { %14129 = vmatmul.mubr.msk.bf16.gmra.mrb[0].mxu1 %vm687_vm5, %v20490_v50 }
 0x778   : > { %14132 = vmatprep.mubr.msk.bf16.mxu1 %vm687_vm5, %v20488_v49 }
 0x77f   : > { %14133 = vmatmul.mubr.msk.bf16.gmra.mrb[4].mxu1 %vm687_vm5, %v20530_v63 }
 0x780   : > { %14136 = vmatprep.mubr.msk.bf16.mxu1 %vm687_vm5, %v20528_v5 }
 0x787   : > { %14137 = vmatmul.mubr.msk.bf16.gmra.mrb[8].mxu1 %vm687_vm5, %v20570_v30 }
 0x788   : > { %14140 = vmatprep.mubr.msk.bf16.mxu1 %vm687_vm5, %v20568_v15 }
 0x78f   : > { %14141 = vmatmul.mubr.msk.bf16.gmra.mrb[12].mxu1 %vm687_vm5, %v20614_v32 }
 0x790   : > { %14146 = vmatprep.mubr.msk.bf16.mxu1 %vm687_vm5, %v10555_v2 }
 0x797   : > { %14147 = vmatmul.mubr.msk.bf16.vlgmr.msra.gmra.mrb[16].mxu1 %vm687_vm5, %v20379_v59 }
 0x798   : > { %14179 = vmatpush3.bf16.msra.mxu1 %v10820_v58  ;;  %14150 = vmatprep.mubr.msk.bf16.mxu1 %vm687_vm5, %v20377_v51 }
 0x799   : > { %15209 = vmatprep.subr.msk.bf16.mxu1 %vm3503_vm6, %v9822_v41 }
 0x79f   : > { %14151 = vmatmul.mubr.msk.bf16.gmra.mrb[20].mxu1 %vm687_vm5, %v20403_v56 }
 0x7a0   : > { %14154 = vmatprep.mubr.msk.bf16.mxu1 %vm687_vm5, %v20400_v19 }
 0x7a7   : > { %14155 = vmatmul.mubr.msk.bf16.gmra.mrb[24].mxu1 %vm687_vm5, %v20435_v1 }
 0x7a8   : > { %14158 = vmatprep.mubr.msk.bf16.mxu1 %vm687_vm5, %v20439_v45 }
 0x7af   : > { %14159 = vmatmul.mubr.msk.bf16.gmra.mrb[28].mxu1 %vm687_vm5, %v20456_v53 }
 0x7b0   : > { %14162 = vmatprep.mubr.msk.bf16.mxu1 %vm687_vm5, %v20463_v60 }
 0x7b7   : > { %14163 = vmatmul.mubr.msk.bf16.gmra.mrb[0].mxu1 %vm687_vm5, %v20503_v27 }
 0x7b8   : > { %14166 = vmatprep.mubr.msk.bf16.mxu1 %vm687_vm5, %v20510_v47 }
 0x7bf   : > { %14167 = vmatmul.mubr.msk.bf16.gmra.mrb[4].mxu1 %vm687_vm5, %v20543_v25 }
 0x7c0   : > { %14170 = vmatprep.mubr.msk.bf16.mxu1 %vm687_vm5, %v20550_v14 }
 0x7c7   : > { %14171 = vmatmul.mubr.msk.bf16.gmra.mrb[8].mxu1 %vm687_vm5, %v20583_v54 }
 0x7c8   : > { %14174 = vmatprep.mubr.msk.bf16.mxu1 %vm687_vm5, %v20590_v17 }
 0x7cf   : > { %14175 = vmatmul.mubr.msk.bf16.gmra.mrb[12].mxu1 %vm687_vm5, %v20628_v16 }
 0x7d0   : > { %14180 = vmatprep.mubr.msk.bf16.mxu1 %vm687_vm5, %v20368_v4  ;;  %v20750_v4 = vpack.c.bf16 %v20610_v20, %v20608_v21  ;;  %v11437_v20 = vsel %vm3503_vm6, %v9824_v11, 0  ;;  %v9825_v21 = vld [vmem:[%s21170_s16 + $0x1c] sm:$0xf] }
 0x7d7   : > { %14181 = vmatmul.mubr.msk.bf16.vlgmr.msra.gmra.mrb[16].mxu1 %vm687_vm5, %v20361_v33 }
 0x7d8   : > { %14213 = vmatpush3.bf16.msra.mxu1 %v11030_v29  ;;  %14184 = vmatprep.mubr.msk.bf16.mxu1 %vm687_vm5, %v20390_v34 }
 0x7d9   : > { %15210 = vmatprep.subr.msk.bf16.mxu1 %vm3503_vm6, %v9823_v52  ;;  %v21502_v52 = vld [vmem:[#allocation30_spill] sm:$0xff] }
 0x7df   : > { %14185 = vmatmul.mubr.msk.bf16.gmra.mrb[20].mxu1 %vm687_vm5, %v20383_v40 }
 0x7e0   : > { %14188 = vmatprep.mubr.msk.bf16.mxu1 %vm687_vm5, %v20420_v61 }
 0x7e7   : > { %14189 = vmatmul.mubr.msk.bf16.gmra.mrb[24].mxu1 %vm687_vm5, %v20413_v55 }
 0x7e8   : > { %14192 = vmatprep.mubr.msk.bf16.mxu1 %vm687_vm5, %v20443_v44 }
 0x7ef   : > { %14193 = vmatmul.mubr.msk.bf16.gmra.mrb[28].mxu1 %vm687_vm5, %v20441_v9 }
 0x7f0   : > { %14196 = vmatprep.mubr.msk.bf16.mxu1 %vm687_vm5, %v20490_v50 }
 0x7f7   : > { %14197 = vmatmul.mubr.msk.bf16.gmra.mrb[0].mxu1 %vm687_vm5, %v20488_v49 }
 0x7f8   : > { %14200 = vmatprep.mubr.msk.bf16.mxu1 %vm687_vm5, %v20530_v63 }
 0x7ff   : > { %14201 = vmatmul.mubr.msk.bf16.gmra.mrb[4].mxu1 %vm687_vm5, %v20528_v5 }
 0x800   : > { %14204 = vmatprep.mubr.msk.bf16.mxu1 %vm687_vm5, %v20570_v30 }
 0x807   : > { %14205 = vmatmul.mubr.msk.bf16.gmra.mrb[8].mxu1 %vm687_vm5, %v20568_v15 }
 0x808   : > { %14208 = vmatprep.mubr.msk.bf16.mxu1 %vm687_vm5, %v20614_v32 }
 0x80f   : > { %14209 = vmatmul.mubr.msk.bf16.gmra.mrb[12].mxu1 %vm687_vm5, %v20750_v4 }
 0x810   : > { %14214 = vmatprep.mubr.msk.bf16.mxu1 %vm687_vm5, %v20271_v57  ;;  %v21493_v57 = vld [vmem:[#allocation41_spill] sm:$0xff] }
 0x817   : > { %14215 = vmatmul.mubr.msk.bf16.vlgmr.msra.gmra.mrb[16].mxu1 %vm687_vm5, %v20279_v31 }
 0x818   : > { %14247 = vmatpush3.bf16.msra.mxu1 %v11237_v26  ;;  %14218 = vmatprep.mubr.msk.bf16.mxu1 %vm687_vm5, %v20305_v12 }
 0x819   : > { %15211 = vmatprep.subr.msk.bf16.mxu1 %vm3503_vm6, %v9824_v11 }
 0x81f   : > { %14219 = vmatmul.mubr.msk.bf16.gmra.mrb[20].mxu1 %vm687_vm5, %v20307_v6 }
 0x820   : > { %14222 = vmatprep.mubr.msk.bf16.mxu1 %vm687_vm5, %v20351_v18 }
 0x827   : > { %14223 = vmatmul.mubr.msk.bf16.gmra.mrb[24].mxu1 %vm687_vm5, %v20353_v42 }
 0x828   : > { %14226 = vmatprep.mubr.msk.bf16.mxu1 %vm687_vm5, %v20451_v39 }
 0x82f   : > { %14227 = vmatmul.mubr.msk.bf16.gmra.mrb[28].mxu1 %vm687_vm5, %v21493_v57 }
 0x830   : > { %14230 = vmatprep.mubr.msk.bf16.mxu1 %vm687_vm5, %v21494_v13 }
 0x837   : > { %14231 = vmatmul.mubr.msk.bf16.gmra.mrb[0].mxu1 %vm687_vm5, %v21495_v8 }
 0x838   : > { %14234 = vmatprep.mubr.msk.bf16.mxu1 %vm687_vm5, %v21496_v46 }
 0x83f   : > { %14235 = vmatmul.mubr.msk.bf16.gmra.mrb[4].mxu1 %vm687_vm5, %v21497_v48 }
 0x840   : > { %14238 = vmatprep.mubr.msk.bf16.mxu1 %vm687_vm5, %v20578_v38 }
 0x847   : > { %14239 = vmatmul.mubr.msk.bf16.gmra.mrb[8].mxu1 %vm687_vm5, %v20581_v62 }
 0x848   : > { %14242 = vmatprep.mubr.msk.bf16.mxu1 %vm687_vm5, %v20624_v10 }
 0x84f   : > { %14243 = vmatmul.mubr.msk.bf16.gmra.mrb[12].mxu1 %vm687_vm5, %v20794_v0 }
 0x850   : > { %14248 = vmatprep.mubr.msk.bf16.mxu1 %vm687_vm5, %v20379_v59  ;;  %v11647_v59 = vsel %vm3503_vm6, %v9825_v21, 0 }
 0x857   : > { %14249 = vmatmul.mubr.msk.bf16.vlgmr.msra.gmra.mrb[16].mxu1 %vm687_vm5, %v20377_v51 }
 0x858   : > { %14281 = vmatpush3.bf16.msra.mxu1 %v11437_v20  ;;  %14252 = vmatprep.mubr.msk.bf16.mxu1 %vm687_vm5, %v20403_v56  ;;  %v21505_v20 = vld [vmem:[#allocation17_spill] sm:$0xff] }
 0x859   : > { %15212 = vmatprep.subr.msk.bf16.mxu1 %vm3503_vm6, %v9825_v21 }
 0x85f   : > { %14253 = vmatmul.mubr.msk.bf16.gmra.mrb[20].mxu1 %vm687_vm5, %v20400_v19 }
 0x860   : > { %14256 = vmatprep.mubr.msk.bf16.mxu1 %vm687_vm5, %v20435_v1 }
 0x867   : > { %14257 = vmatmul.mubr.msk.bf16.gmra.mrb[24].mxu1 %vm687_vm5, %v20439_v45 }
 0x868   : > { %14260 = vmatprep.mubr.msk.bf16.mxu1 %vm687_vm5, %v20456_v53 }
 0x86f   : > { %14261 = vmatmul.mubr.msk.bf16.gmra.mrb[28].mxu1 %vm687_vm5, %v20463_v60 }
 0x870   : > { %14264 = vmatprep.mubr.msk.bf16.mxu1 %vm687_vm5, %v20503_v27 }
 0x877   : > { %14265 = vmatmul.mubr.msk.bf16.gmra.mrb[0].mxu1 %vm687_vm5, %v20510_v47 }
 0x878   : > { %14268 = vmatprep.mubr.msk.bf16.mxu1 %vm687_vm5, %v20543_v25 }
 0x87f   : > { %14269 = vmatmul.mubr.msk.bf16.gmra.mrb[4].mxu1 %vm687_vm5, %v20550_v14 }
 0x880   : > { %14272 = vmatprep.mubr.msk.bf16.mxu1 %vm687_vm5, %v20583_v54 }
 0x887   : > { %14273 = vmatmul.mubr.msk.bf16.gmra.mrb[8].mxu1 %vm687_vm5, %v20590_v17 }
 0x888   : > { %14276 = vmatprep.mubr.msk.bf16.mxu1 %vm687_vm5, %v20628_v16 }
 0x88f   : > { %14277 = vmatmul.mubr.msk.bf16.gmra.mrb[12].mxu1 %vm687_vm5, %v20634_v22 }
 0x890   : > { %14282 = vmatprep.mubr.msk.bf16.mxu1 %vm687_vm5, %v20361_v33  ;;  %v9815_v33 = vld [vmem:[#allocation3 + $0x198] sm:$0xff] }
 0x897   : > { %14283 = vmatmul.mubr.msk.bf16.vlgmr.msra.gmra.mrb[16].mxu1 %vm687_vm5, %v20390_v34  ;;  %v11842_v34 = vrot.slane %v9815_v33, 2 }
 0x898   : > { %14315 = vmatpush3.bf16.msra.mxu1 %v11647_v59  ;;  %14286 = vmatprep.mubr.msk.bf16.mxu1 %vm687_vm5, %v20383_v40  ;;  %v9816_v40 = vld [vmem:[#allocation3 + $0x1a0] sm:$0xff] }
 0x899   : > { %15213 = vmatprep.subr.msk.bf16.mxu1 %vm3503_vm6, %v9826_v35 }
 0x89f   : > { %14287 = vmatmul.mubr.msk.bf16.gmra.mrb[20].mxu1 %vm687_vm5, %v20420_v61  ;;  %v9817_v61 = vld [vmem:[#allocation3 + $0x1a8] sm:$0x3] }
 0x8a0   : > { %14290 = vmatprep.mubr.msk.bf16.mxu1 %vm687_vm5, %v20413_v55  ;;  %v11843_v55 = vrot.slane %v9816_v40, 2 }
 0x8a7   : > { %14291 = vmatmul.mubr.msk.bf16.gmra.mrb[24].mxu1 %vm687_vm5, %v20443_v44  ;;  %v11845_v44 = vrot.slane %v9817_v61, 2 }
 0x8a8   : > { %14294 = vmatprep.mubr.msk.bf16.mxu1 %vm687_vm5, %v20441_v9  ;;  %v11844_v9 = vsel %vm1521_vm4, %v11842_v34, %v11843_v55 }
 0x8af   : > { %14295 = vmatmul.mubr.msk.bf16.gmra.mrb[28].mxu1 %vm687_vm5, %v20490_v50  ;;  %v11432_v50 = vpack.c.bf16 %v9816_v40, %v9815_v33 }
 0x8b0   : > { %14298 = vmatprep.mubr.msk.bf16.mxu1 %vm687_vm5, %v20488_v49  ;;  %v11846_v49 = vsel %vm1521_vm4, %v11843_v55, %v11845_v44 }
 0x8b7   : > { %14299 = vmatmul.mubr.msk.bf16.gmra.mrb[0].mxu1 %vm687_vm5, %v20530_v63  ;;  %v11854_v63 = vsel %vm3503_vm6, %v9826_v35, 0 }
 0x8b8   : > { %14302 = vmatprep.mubr.msk.bf16.mxu1 %vm687_vm5, %v20528_v5  ;;  %v11849_v5 = vpack.c.bf16 %v11846_v49, %v11844_v9 }
 0x8bf   : > { %14303 = vmatmul.mubr.msk.bf16.gmra.mrb[4].mxu1 %vm687_vm5, %v20570_v30  ;;  %v21501_v30 = vld [vmem:[#allocation21_spill] sm:$0xff] }
 0x8c0   : > { %14306 = vmatprep.mubr.msk.bf16.mxu1 %vm687_vm5, %v20568_v15 }
 0x8c7   : > { %14307 = vmatmul.mubr.msk.bf16.gmra.mrb[8].mxu1 %vm687_vm5, %v20614_v32 }
 0x8c8   : > { %14310 = vmatprep.mubr.msk.bf16.mxu1 %vm687_vm5, %v20750_v4 }
 0x8cf   : > { %14311 = vmatmul.mubr.msk.bf16.gmra.mrb[12].mxu1 %vm687_vm5, %v11432_v50 }
 0x8d0   : > { %14316 = vmatprep.mubr.msk.bf16.mxu1 %vm687_vm5, %v20279_v31  ;;  %v11636_v31 = vrot.slane %v9816_v40, 1 }
 0x8d7   : > { %14317 = vmatmul.mubr.msk.bf16.vlgmr.msra.gmra.mrb[16].mxu1 %vm687_vm5, %v20305_v12  ;;  %v11638_v12 = vrot.slane %v9817_v61, 1 }
 0x8d8   : > { %14349 = vmatpush3.bf16.msra.mxu1 %v11854_v63  ;;  %14320 = vmatprep.mubr.msk.bf16.mxu1 %vm687_vm5, %v20307_v6 }
 0x8df   : > { %14321 = vmatmul.mubr.msk.bf16.gmra.mrb[20].mxu1 %vm687_vm5, %v20351_v18  ;;  %v11639_v18 = vsel %vm967_vm3, %v11636_v31, %v11638_v12 }
 0x8e0   : > { %14324 = vmatprep.mubr.msk.bf16.mxu1 %vm687_vm5, %v20353_v42 }
 0x8e7   : > { %14325 = vmatmul.mubr.msk.bf16.gmra.mrb[24].mxu1 %vm687_vm5, %v20451_v39  ;;  %v11635_v39 = vrot.slane %v9815_v33, 1 }
 0x8e8   : > { %14328 = vmatprep.mubr.msk.bf16.mxu1 %vm687_vm5, %v21493_v57 }
 0x8e9   : > { %v11637_v6 = vsel %vm967_vm3, %v11635_v39, %v11636_v31 }
 0x8ea   : > { %v11642_v42 = vpack.c.bf16 %v11639_v18, %v11637_v6  ;;  %v21507_v6 = vld [vmem:[#allocation32_spill] sm:$0xff] }
 0x8ef   : > { %14329 = vmatmul.mubr.msk.bf16.gmra.mrb[28].mxu1 %vm687_vm5, %v21494_v13  ;;  %v21503_v13 = vld [vmem:[#allocation25_spill] sm:$0xff] }
 0x8f0   : > { %14332 = vmatprep.mubr.msk.bf16.mxu1 %vm687_vm5, %v21495_v8 }
 0x8f7   : > { %14333 = vmatmul.mubr.msk.bf16.gmra.mrb[0].mxu1 %vm687_vm5, %v21496_v46 }
 0x8f8   : > { %14336 = vmatprep.mubr.msk.bf16.mxu1 %vm687_vm5, %v21497_v48 }
 0x8ff   : > { %14337 = vmatmul.mubr.msk.bf16.gmra.mrb[4].mxu1 %vm687_vm5, %v20578_v38 }
 0x900   : > { %14340 = vmatprep.mubr.msk.bf16.mxu1 %vm687_vm5, %v20581_v62  ;;  %v20941_v62 = vld [vmem:[%s21171_s17] ss:$0 sm:$0xff] }
 0x907   : > { %14341 = vmatmul.mubr.msk.bf16.gmra.mrb[8].mxu1 %vm687_vm5, %v20624_v10  ;;  %v20959_v10 = vld [vmem:[%s21173_s19] ss:$0 sm:$0xff] }
 0x908   : > { %14344 = vmatprep.mubr.msk.bf16.mxu1 %vm687_vm5, %v20794_v0 }
 0x90f   : > { %14345 = vmatmul.mubr.msk.bf16.gmra.mrb[12].mxu1 %vm687_vm5, %v11642_v42 }
 0x910   : > { %14350 = vmatprep.mubr.msk.bf16.mxu1 %vm687_vm5, %v20377_v51  ;;  %v21498_v51 = vld [vmem:[#allocation13_spill] sm:$0xff] }
 0x917   : > { %14351 = vmatmul.mubr.msk.bf16.vlgmr.msra.gmra.mrb[16].mxu1 %vm687_vm5, %v20403_v56 }
 0x918   : > { %14354 = vmatprep.mubr.msk.bf16.mxu1 %vm687_vm5, %v20400_v19 }
 0x91f   : > { %14355 = vmatmul.mubr.msk.bf16.gmra.mrb[20].mxu1 %vm687_vm5, %v20435_v1  ;;  %v21499_v1 = vld [vmem:[#allocation15_spill] sm:$0xff] }
 0x920   : > { %14358 = vmatprep.mubr.msk.bf16.mxu1 %vm687_vm5, %v20439_v45 }
 0x927   : > { %14359 = vmatmul.mubr.msk.bf16.gmra.mrb[24].mxu1 %vm687_vm5, %v20456_v53 }
 0x928   : > { %14362 = vmatprep.mubr.msk.bf16.mxu1 %vm687_vm5, %v20463_v60 }
 0x92f   : > { %14363 = vmatmul.mubr.msk.bf16.gmra.mrb[28].mxu1 %vm687_vm5, %v20503_v27  ;;  %v21500_v27 = vld [vmem:[#allocation16_spill] sm:$0xff] }
 0x930   : > { %14366 = vmatprep.mubr.msk.bf16.mxu1 %vm687_vm5, %v20510_v47 }
 0x937   : > { %14367 = vmatmul.mubr.msk.bf16.gmra.mrb[0].mxu1 %vm687_vm5, %v20543_v25 }
 0x938   : > { %14370 = vmatprep.mubr.msk.bf16.mxu1 %vm687_vm5, %v20550_v14  ;;  %v20950_v14 = vld [vmem:[%s21172_s18] ss:$0 sm:$0xff] }
 0x93f   : > { %14371 = vmatmul.mubr.msk.bf16.gmra.mrb[4].mxu1 %vm687_vm5, %v20583_v54 }
 0x940   : > { %14374 = vmatprep.mubr.msk.bf16.mxu1 %vm687_vm5, %v20590_v17 }
 0x947   : > { %14375 = vmatmul.mubr.msk.bf16.gmra.mrb[8].mxu1 %vm687_vm5, %v20628_v16 }
 0x948   : > { %14378 = vmatprep.mubr.msk.bf16.mxu1 %vm687_vm5, %v20634_v22 }
 0x94f   : > { %14379 = vmatmul.mubr.msk.bf16.gmra.mrb[12].mxu1 %vm687_vm5, %v11849_v5  ;;  %v21506_v5 = vld [vmem:[#allocation31_spill] sm:$0xff] }
 0x9ea   : > { %v14352_v38 = vpop.f32.mrb[16].mxu1 }
 0x9eb   : > { %v14384_v19 = vadd.f32 %v14352_v38, %v21498_v51  ;;  %v11890_v56 = vpop.f32.mrb[17].mxu1 }
 0x9ec   : > { %v14385_v45 = vadd.f32 %v11890_v56, %v21499_v1  ;;  %v14353_v53 = vpop.f32.mrb[18].mxu1 }
 0x9ed   : > { %v12090_v60 = vadd.f32 %v14384_v19, %v20941_v62  ;;  %v14386_v47 = vadd.f32 %v14353_v53, %v21500_v27  ;;  %v11893_v25 = vpop.f32.mrb[19].mxu1  ;;  %v21508_v19 = vld [vmem:[#allocation33_spill] sm:$0xff] }
 0x9ee   : > { %v12088_v15 = vadd.f32 %v14385_v45, %v20941_v62  ;;  %v14387_v54 = vadd.f32 %v11893_v25, %v21501_v30 }
 0x9ef   : > { %v12122_v17 = vmax.f32 %v12090_v60, 0.0  ;;  %v12091_v32 = vadd.f32 %v14386_v47, %v20941_v62  ;;  %v21509_v60 = vld [vmem:[#allocation34_spill] sm:$0xff] }
 0x9f0   : > { %v12120_v16 = vmax.f32 %v12088_v15, 0.0  ;;  %v12089_v22 = vadd.f32 %v14387_v54, %v20941_v62 }
 0x9f1   : > { %v12161_v3 = vmul.f32 %v20950_v14, %v12122_v17  ;;  %v12123_v43 = vmax.f32 %v12091_v32, 0.0 }
 0x9f2   : > { %v12159_v7 = vmul.f32 %v20950_v14, %v12120_v16  ;;  %v12121_v2 = vmax.f32 %v12089_v22, 0.0  ;;  %v14356_v58 = vpop.f32.mrb[20].mxu1 }
 0x9f3   : > { %v12200_v41 = vadd.f32 %v20959_v10, %v12161_v3  ;;  %v12162_v29 = vmul.f32 %v20950_v14, %v12123_v43  ;;  %v14388_v4 = vadd.f32 %v14356_v58, %v21502_v52  ;;  %v11906_v26 = vpop.f32.mrb[21].mxu1  ;;  %v21511_v52 = vld [vmem:[#allocation36_spill] sm:$0xff] }
 0x9f4   : > { %v12198_v11 = vadd.f32 %v20959_v10, %v12159_v7  ;;  %v12160_v57 = vmul.f32 %v20950_v14, %v12121_v2  ;;  %v14389_v8 = vadd.f32 %v11906_v26, %v21503_v13  ;;  %v14357_v46 = vpop.f32.mrb[22].mxu1  ;;  %v21510_v7 = vld [vmem:[#allocation35_spill] sm:$0xff]  ;;  %v21512_v13 = vld [vmem:[#allocation38_spill] sm:$0xff] }
 0x9f5   : > { %12232 = vst.msk [vmem:[%s20966_s28 + $0x10] sm:$0xff] %vm687_vm5, %v12200_v41  ;;  %v12201_v48 = vadd.f32 %v20959_v10, %v12162_v29  ;;  %v12094_v24 = vadd.f32 %v14388_v4, %v20941_v62  ;;  %v14390_v36 = vadd.f32 %v14357_v46, %v21504_v37  ;;  %v11909_v28 = vpop.f32.mrb[23].mxu1  ;;  %v21513_v37 = vld [vmem:[#allocation40_spill] sm:$0xff] }
 0x9f6   : > { %12230 = vst.msk [vmem:[%s20966_s28] sm:$0xff] %vm687_vm5, %v12198_v11  ;;  %v12199_v23 = vadd.f32 %v20959_v10, %v12160_v57  ;;  %v12092_v0 = vadd.f32 %v14389_v8, %v20941_v62  ;;  %v14391_v21 = vadd.f32 %v11909_v28, %v21505_v20 }
 0x9f7   : > { %12233 = vst.msk [vmem:[%s20966_s28 + $0x18] sm:$0xff] %vm687_vm5, %v12201_v48  ;;  %v12126_v59 = vmax.f32 %v12094_v24, 0.0  ;;  %v12095_v35 = vadd.f32 %v14390_v36, %v20941_v62 }
 0x9f8   : > { %12231 = vst.msk [vmem:[%s20966_s28 + $0x8] sm:$0xff] %vm687_vm5, %v12199_v23  ;;  %v12124_v33 = vmax.f32 %v12092_v0, 0.0  ;;  %v12093_v40 = vadd.f32 %v14391_v21, %v20941_v62 }
 0x9f9   : > { %v12165_v34 = vmul.f32 %v20950_v14, %v12126_v59  ;;  %v12127_v55 = vmax.f32 %v12095_v35, 0.0 }
 0x9fa   : > { %v12163_v61 = vmul.f32 %v20950_v14, %v12124_v33  ;;  %v12125_v9 = vmax.f32 %v12093_v40, 0.0  ;;  %v14360_v44 = vpop.f32.mrb[24].mxu1 }
 0x9fb   : > { %v12204_v49 = vadd.f32 %v20959_v10, %v12165_v34  ;;  %v12166_v50 = vmul.f32 %v20950_v14, %v12127_v55  ;;  %v14392_v63 = vadd.f32 %v14360_v44, %v21506_v5  ;;  %v11922_v39 = vpop.f32.mrb[25].mxu1  ;;  %v21515_v5 = vld [vmem:[#allocation5_spill] sm:$0xff] }
 0x9fc   : > { %v12202_v31 = vadd.f32 %v20959_v10, %v12163_v61  ;;  %v12164_v12 = vmul.f32 %v20950_v14, %v12125_v9  ;;  %v14393_v18 = vadd.f32 %v11922_v39, %v21507_v6  ;;  %v14361_v42 = vpop.f32.mrb[26].mxu1  ;;  %v21514_v61 = vld [vmem:[#allocation4_spill] sm:$0xff]  ;;  %v21516_v6 = vld [vmem:[#allocation6_spill] sm:$0xff] }
 0x9fd   : > { %12236 = vst.msk [vmem:[%s20966_s28 + $0x30] sm:$0xff] %vm687_vm5, %v12204_v49  ;;  %v12205_v38 = vadd.f32 %v20959_v10, %v12166_v50  ;;  %v12098_v51 = vadd.f32 %v14392_v63, %v20941_v62  ;;  %v14394_v56 = vadd.f32 %v14361_v42, %v21508_v19  ;;  %v11925_v1 = vpop.f32.mrb[27].mxu1  ;;  %v21517_v19 = vld [vmem:[#allocation26_spill] sm:$0xff] }
 0x9fe   : > { %12234 = vst.msk [vmem:[%s20966_s28 + $0x20] sm:$0xff] %vm687_vm5, %v12202_v31  ;;  %v12203_v45 = vadd.f32 %v20959_v10, %v12164_v12  ;;  %v12096_v53 = vadd.f32 %v14393_v18, %v20941_v62  ;;  %v14395_v27 = vadd.f32 %v11925_v1, %v21509_v60 }
 0x9ff   : > { %12237 = vst.msk [vmem:[%s20966_s28 + $0x38] sm:$0xff] %vm687_vm5, %v12205_v38  ;;  %v12130_v47 = vmax.f32 %v12098_v51, 0.0  ;;  %v12099_v25 = vadd.f32 %v14394_v56, %v20941_v62 }
 0xa00   : > { %12235 = vst.msk [vmem:[%s20966_s28 + $0x28] sm:$0xff] %vm687_vm5, %v12203_v45  ;;  %v12128_v15 = vmax.f32 %v12096_v53, 0.0  ;;  %v12097_v30 = vadd.f32 %v14395_v27, %v20941_v62 }
 0xa01   : > { %v12169_v54 = vmul.f32 %v20950_v14, %v12130_v47  ;;  %v12131_v17 = vmax.f32 %v12099_v25, 0.0 }
 0xa02   : > { %v12167_v32 = vmul.f32 %v20950_v14, %v12128_v15  ;;  %v12129_v16 = vmax.f32 %v12097_v30, 0.0  ;;  %v14364_v22 = vpop.f32.mrb[28].mxu1 }
 0xa03   : > { %v12208_v3 = vadd.f32 %v20959_v10, %v12169_v54  ;;  %v12170_v43 = vmul.f32 %v20950_v14, %v12131_v17  ;;  %v14396_v2 = vadd.f32 %v14364_v22, %v21510_v7  ;;  %v11938_v58 = vpop.f32.mrb[29].mxu1  ;;  %v21519_v7 = vld [vmem:[#allocation27_spill] sm:$0xff] }
 0xa04   : > { %v12206_v41 = vadd.f32 %v20959_v10, %v12167_v32  ;;  %v12168_v29 = vmul.f32 %v20950_v14, %v12129_v16  ;;  %v14397_v4 = vadd.f32 %v11938_v58, %v21511_v52  ;;  %v14365_v26 = vpop.f32.mrb[30].mxu1  ;;  %v21518_v32 = vld [vmem:[#allocation24_spill] sm:$0xff] }
 0xa05   : > { %12240 = vst.msk [vmem:[%s20966_s28 + $0x50] sm:$0xff] %vm687_vm5, %v12208_v3  ;;  %v12209_v11 = vadd.f32 %v20959_v10, %v12170_v43  ;;  %v12102_v57 = vadd.f32 %v14396_v2, %v20941_v62  ;;  %v14398_v8 = vadd.f32 %v14365_v26, %v21512_v13  ;;  %v11941_v46 = vpop.f32.mrb[31].mxu1  ;;  %v21520_v52 = vld [vmem:[#allocation28_spill] sm:$0xff]  ;;  %v21521_v13 = vld [vmem:[#allocation29_spill] sm:$0xff] }
 0xa06   : > { %12238 = vst.msk [vmem:[%s20966_s28 + $0x40] sm:$0xff] %vm687_vm5, %v12206_v41  ;;  %v12207_v48 = vadd.f32 %v20959_v10, %v12168_v29  ;;  %v12100_v24 = vadd.f32 %v14397_v4, %v20941_v62  ;;  %v14399_v36 = vadd.f32 %v11941_v46, %v21513_v37 }
 0xa07   : > { %12241 = vst.msk [vmem:[%s20966_s28 + $0x58] sm:$0xff] %vm687_vm5, %v12209_v11  ;;  %v12134_v28 = vmax.f32 %v12102_v57, 0.0  ;;  %v12103_v23 = vadd.f32 %v14398_v8, %v20941_v62 }
 0xa08   : > { %12239 = vst.msk [vmem:[%s20966_s28 + $0x48] sm:$0xff] %vm687_vm5, %v12207_v48  ;;  %v12132_v0 = vmax.f32 %v12100_v24, 0.0  ;;  %v12101_v20 = vadd.f32 %v14399_v36, %v20941_v62 }
 0xa09   : > { %v12173_v21 = vmul.f32 %v20950_v14, %v12134_v28  ;;  %v12135_v59 = vmax.f32 %v12103_v23, 0.0 }
 0xa0a   : > { %v12171_v35 = vmul.f32 %v20950_v14, %v12132_v0  ;;  %v12133_v33 = vmax.f32 %v12101_v20, 0.0  ;;  %v14368_v40 = vpop.f32.mrb[0].mxu1 }
 0xa0b   : > { %v12212_v34 = vadd.f32 %v20959_v10, %v12173_v21  ;;  %v12174_v55 = vmul.f32 %v20950_v14, %v12135_v59  ;;  %v14400_v9 = vadd.f32 %v14368_v40, %v21514_v61  ;;  %v11954_v44 = vpop.f32.mrb[1].mxu1  ;;  %v21523_v61 = vld [vmem:[#allocation8_spill] sm:$0xff] }
 0xa0c   : > { %v12210_v49 = vadd.f32 %v20959_v10, %v12171_v35  ;;  %v12172_v50 = vmul.f32 %v20950_v14, %v12133_v33  ;;  %v14401_v63 = vadd.f32 %v11954_v44, %v21515_v5  ;;  %v14369_v39 = vpop.f32.mrb[2].mxu1  ;;  %v21522_v35 = vld [vmem:[#allocation7_spill] sm:$0xff]  ;;  %v21524_v5 = vld [vmem:[#allocation9_spill] sm:$0xff] }
 0xa0d   : > { %12244 = vst.msk [vmem:[%s20966_s28 + $0x70] sm:$0xff] %vm687_vm5, %v12212_v34  ;;  %v12213_v31 = vadd.f32 %v20959_v10, %v12174_v55  ;;  %v12106_v12 = vadd.f32 %v14400_v9, %v20941_v62  ;;  %v14402_v18 = vadd.f32 %v14369_v39, %v21516_v6  ;;  %v11957_v42 = vpop.f32.mrb[3].mxu1  ;;  %v21525_v6 = vld [vmem:[#allocation37_spill] sm:$0xff] }
 0xa0e   : > { %12242 = vst.msk [vmem:[%s20966_s28 + $0x60] sm:$0xff] %vm687_vm5, %v12210_v49  ;;  %v12211_v38 = vadd.f32 %v20959_v10, %v12172_v50  ;;  %v12104_v51 = vadd.f32 %v14401_v63, %v20941_v62  ;;  %v14403_v56 = vadd.f32 %v11957_v42, %v21517_v19 }
 0xa0f   : > { %12245 = vst.msk [vmem:[%s20966_s28 + $0x78] sm:$0xff] %vm687_vm5, %v12213_v31  ;;  %v12138_v1 = vmax.f32 %v12106_v12, 0.0  ;;  %v12107_v45 = vadd.f32 %v14402_v18, %v20941_v62 }
 0xa10   : > { %12243 = vst.msk [vmem:[%s20966_s28 + $0x68] sm:$0xff] %vm687_vm5, %v12211_v38  ;;  %v12136_v53 = vmax.f32 %v12104_v51, 0.0  ;;  %v12105_v60 = vadd.f32 %v14403_v56, %v20941_v62 }
 0xa11   : > { %v12177_v27 = vmul.f32 %v20950_v14, %v12138_v1  ;;  %v12139_v47 = vmax.f32 %v12107_v45, 0.0 }
 0xa12   : > { %v12175_v25 = vmul.f32 %v20950_v14, %v12136_v53  ;;  %v12137_v15 = vmax.f32 %v12105_v60, 0.0  ;;  %v14372_v30 = vpop.f32.mrb[4].mxu1 }
 0xa13   : > { %v12216_v54 = vadd.f32 %v20959_v10, %v12177_v27  ;;  %v12178_v17 = vmul.f32 %v20950_v14, %v12139_v47  ;;  %v14404_v16 = vadd.f32 %v14372_v30, %v21518_v32  ;;  %v11970_v22 = vpop.f32.mrb[5].mxu1  ;;  %v21527_v32 = vld [vmem:[#allocation10_spill] sm:$0xff] }
 0xa14   : > { %v12214_v3 = vadd.f32 %v20959_v10, %v12175_v25  ;;  %v12176_v43 = vmul.f32 %v20950_v14, %v12137_v15  ;;  %v14405_v2 = vadd.f32 %v11970_v22, %v21519_v7  ;;  %v14373_v58 = vpop.f32.mrb[6].mxu1  ;;  %v21526_v25 = vld [vmem:[#allocation39_spill] sm:$0xff] }
 0xa15   : > { %12248 = vst.msk [vmem:[%s20966_s28 + $0x90] sm:$0xff] %vm687_vm5, %v12216_v54  ;;  %v12217_v41 = vadd.f32 %v20959_v10, %v12178_v17  ;;  %v12110_v29 = vadd.f32 %v14404_v16, %v20941_v62  ;;  %v14406_v4 = vadd.f32 %v14373_v58, %v21520_v52  ;;  %v11973_v26 = vpop.f32.mrb[7].mxu1  ;;  %v21528_v7 = vld [vmem:[#allocation11_spill] sm:$0xff]  ;;  %v21529_v52 = vld [vmem:[#allocation12_spill] sm:$0xff] }
 0xa16   : > { %12246 = vst.msk [vmem:[%s20966_s28 + $0x80] sm:$0xff] %vm687_vm5, %v12214_v3  ;;  %v12215_v11 = vadd.f32 %v20959_v10, %v12176_v43  ;;  %v12108_v57 = vadd.f32 %v14405_v2, %v20941_v62  ;;  %v14407_v8 = vadd.f32 %v11973_v26, %v21521_v13 }
 0xa17   : > { %12249 = vst.msk [vmem:[%s20966_s28 + $0x98] sm:$0xff] %vm687_vm5, %v12217_v41  ;;  %v12142_v46 = vmax.f32 %v12110_v29, 0.0  ;;  %v12111_v48 = vadd.f32 %v14406_v4, %v20941_v62 }
 0xa18   : > { %12247 = vst.msk [vmem:[%s20966_s28 + $0x88] sm:$0xff] %vm687_vm5, %v12215_v11  ;;  %v12140_v24 = vmax.f32 %v12108_v57, 0.0  ;;  %v12109_v37 = vadd.f32 %v14407_v8, %v20941_v62 }
 0xa19   : > { %v12181_v36 = vmul.f32 %v20950_v14, %v12142_v46  ;;  %v12143_v28 = vmax.f32 %v12111_v48, 0.0 }
 0xa1a   : > { %v12179_v23 = vmul.f32 %v20950_v14, %v12140_v24  ;;  %v12141_v0 = vmax.f32 %v12109_v37, 0.0  ;;  %v14376_v20 = vpop.f32.mrb[8].mxu1 }
 0xa1b   : > { %v12220_v21 = vadd.f32 %v20959_v10, %v12181_v36  ;;  %v12182_v59 = vmul.f32 %v20950_v14, %v12143_v28  ;;  %v14408_v33 = vadd.f32 %v14376_v20, %v21522_v35  ;;  %v11986_v40 = vpop.f32.mrb[9].mxu1 }
 0xa1c   : > { %v12218_v34 = vadd.f32 %v20959_v10, %v12179_v23  ;;  %v12180_v55 = vmul.f32 %v20950_v14, %v12141_v0  ;;  %v14409_v9 = vadd.f32 %v11986_v40, %v21523_v61  ;;  %v14377_v44 = vpop.f32.mrb[10].mxu1 }
 0xa1d   : > { %12252 = vst.msk [vmem:[%s20966_s28 + $0xb0] sm:$0xff] %vm687_vm5, %v12220_v21  ;;  %v12221_v49 = vadd.f32 %v20959_v10, %v12182_v59  ;;  %v12114_v50 = vadd.f32 %v14408_v33, %v20941_v62  ;;  %v14410_v63 = vadd.f32 %v14377_v44, %v21524_v5  ;;  %v11989_v39 = vpop.f32.mrb[11].mxu1 }
 0xa1e   : > { %12250 = vst.msk [vmem:[%s20966_s28 + $0xa0] sm:$0xff] %vm687_vm5, %v12218_v34  ;;  %v12219_v31 = vadd.f32 %v20959_v10, %v12180_v55  ;;  %v12112_v12 = vadd.f32 %v14409_v9, %v20941_v62  ;;  %v14411_v18 = vadd.f32 %v11989_v39, %v21525_v6 }
 0xa1f   : > { %12253 = vst.msk [vmem:[%s20966_s28 + $0xb8] sm:$0xff] %vm687_vm5, %v12221_v49  ;;  %v12146_v42 = vmax.f32 %v12114_v50, 0.0  ;;  %v12115_v38 = vadd.f32 %v14410_v63, %v20941_v62 }
 0xa20   : > { %12251 = vst.msk [vmem:[%s20966_s28 + $0xa8] sm:$0xff] %vm687_vm5, %v12219_v31  ;;  %v12144_v51 = vmax.f32 %v12112_v12, 0.0  ;;  %v12113_v19 = vadd.f32 %v14411_v18, %v20941_v62 }
 0xa21   : > { %v12185_v56 = vmul.f32 %v20950_v14, %v12146_v42  ;;  %v12147_v1 = vmax.f32 %v12115_v38, 0.0 }
 0xa22   : > { %v12183_v45 = vmul.f32 %v20950_v14, %v12144_v51  ;;  %v12145_v53 = vmax.f32 %v12113_v19, 0.0  ;;  %v14380_v60 = vpop.f32.mrb[12].mxu1 }
 0xa23   : > { %v12224_v27 = vadd.f32 %v20959_v10, %v12185_v56  ;;  %v12186_v47 = vmul.f32 %v20950_v14, %v12147_v1  ;;  %v14412_v15 = vadd.f32 %v14380_v60, %v21526_v25  ;;  %v12002_v30 = vpop.f32.mrb[13].mxu1 }
 0xa24   : > { %v12222_v54 = vadd.f32 %v20959_v10, %v12183_v45  ;;  %v12184_v17 = vmul.f32 %v20950_v14, %v12145_v53  ;;  %v14413_v16 = vadd.f32 %v12002_v30, %v21527_v32  ;;  %v14381_v22 = vpop.f32.mrb[14].mxu1 }
 0xa25   : > { %12256 = vst.msk [vmem:[%s20966_s28 + $0xd0] sm:$0xff] %vm687_vm5, %v12224_v27  ;;  %v12225_v3 = vadd.f32 %v20959_v10, %v12186_v47  ;;  %v12118_v43 = vadd.f32 %v14412_v15, %v20941_v62  ;;  %v14414_v2 = vadd.f32 %v14381_v22, %v21528_v7  ;;  %v12005_v58 = vpop.f32.mrb[15].mxu1 }
 0xa26   : > { %12254 = vst.msk [vmem:[%s20966_s28 + $0xc0] sm:$0xff] %vm687_vm5, %v12222_v54  ;;  %v12223_v41 = vadd.f32 %v20959_v10, %v12184_v17  ;;  %v12116_v29 = vadd.f32 %v14413_v16, %v20941_v62  ;;  %v14415_v4 = vadd.f32 %v12005_v58, %v21529_v52 }
 0xa27   : > { %12257 = vst.msk [vmem:[%s20966_s28 + $0xd8] sm:$0xff] %vm687_vm5, %v12225_v3  ;;  %v12150_v26 = vmax.f32 %v12118_v43, 0.0  ;;  %v12119_v11 = vadd.f32 %v14414_v2, %v20941_v62 }
 0xa28   : > { %12255 = vst.msk [vmem:[%s20966_s28 + $0xc8] sm:$0xff] %vm687_vm5, %v12223_v41  ;;  %v12148_v57 = vmax.f32 %v12116_v29, 0.0  ;;  %v12117_v13 = vadd.f32 %v14415_v4, %v20941_v62 }
 0xa29   : > { %v12189_v8 = vmul.f32 %v20950_v14, %v12150_v26  ;;  %v12151_v46 = vmax.f32 %v12119_v11, 0.0 }
 0xa2a   : > { %v12187_v48 = vmul.f32 %v20950_v14, %v12148_v57  ;;  %v12149_v24 = vmax.f32 %v12117_v13, 0.0 }
 0xa2b   : > { %v12228_v37 = vadd.f32 %v20959_v10, %v12189_v8  ;;  %v12190_v36 = vmul.f32 %v20950_v14, %v12151_v46 }
 0xa2c   : > { %v12226_v28 = vadd.f32 %v20959_v10, %v12187_v48  ;;  %v12188_v23 = vmul.f32 %v20950_v14, %v12149_v24 }
 0xa2d   : > { %12260 = vst.msk [vmem:[%s20966_s28 + $0xf0] sm:$0xff] %vm687_vm5, %v12228_v37  ;;  %v12229_v0 = vadd.f32 %v20959_v10, %v12190_v36 }
 0xa2e   : > { %12258 = vst.msk [vmem:[%s20966_s28 + $0xe0] sm:$0xff] %vm687_vm5, %v12226_v28  ;;  %v12227_v62 = vadd.f32 %v20959_v10, %v12188_v23 }
 0xa2f   : > { %12261 = vst.msk [vmem:[%s20966_s28 + $0xf8] sm:$0xff] %vm687_vm5, %v12229_v0 }
 0xa30   : > { %12259 = vst.msk [vmem:[%s20966_s28 + $0xe8] sm:$0xff] %vm687_vm5, %v12227_v62 }
 0xa31 PF: > { %s30_s1 = sadd.s32 1, %s15329_s1  }
 0xa32   : > { %p27_p4 = scmp.ge.s32.totalorder %s30_s1, 4  }
 0xa34   :  { %29 = sbr.rel (!%p27_p4) target bundleno = 6 (0x6), region = 132 }

</bundles_post_ra>
